<compile_context>
chip_gen: v6e
topology: v6e:2x2x1
jax: 0.10.0
libtpu: 0.0.40
codegen_flags: <defaults>
</compile_context>

<pallas_src>
import functools

import jax
import jax.numpy as jnp
from jax.experimental import pallas as pl
from jax.experimental.pallas import tpu as pltpu

F32 = jnp.float32

# ---- static model / demo configuration -------------------------------------
T = 8            # sequence length
E = 32           # bert embed size (demo scale)
E_PAD = 128      # lane-padded feature width (embed / knowledge output)
H = 64           # per-direction GRU hidden  (= memory_len // 2 = tagger hid // 2)
MEM = 2 * H      # 128 (memory_len / bidirectional GRU output width)
GATE = 2 * H     # 128-wide, lane-aligned gate block: [gate_f(0:H) | gate_b(H:2H)]
M_MAX = 8        # fixed memory capacity (torch uses an unbounded Python list)
VOCAB = 50
NUM_TAGS = 16
TAG_PAD = 128    # tag head padded to a full 128-lane vreg
PAD_ID = 0


# ---------------------------------------------------------------------------
# One fused kernel for the whole SLUTagging forward pass.
# ---------------------------------------------------------------------------
def slu_fused_kernel(count_ref, embed_ref, mem_ref, mask_ref, labels_ref,
                     wihF_ref, wihB_ref, whh_ref, bih_ref, bhh_ref,
                     ffm_ref, ffu_ref, ffb_ref, kw_ref, kb_ref, ow_ref, ob_ref,
                     prob_ref, loss_ref, cmem_ref,
                     hs0, hs1, hs2, hs3):
    # Time-reversal permutation matrix (T,T); the flips run on the idle MXU.
    ri = jax.lax.broadcasted_iota(jnp.int32, (T, T), 0)
    ci = jax.lax.broadcasted_iota(jnp.int32, (T, T), 1)
    rev = (ri + ci == T - 1).astype(F32)
    lane = jax.lax.broadcasted_iota(jnp.int32, (T, MEM), 1)

    def bigru(x, k, hs_ref):
        """Fused fwd+bwd GRU. State (1, 2H) = [h_f | h_b]; one
        (1,128)@(128,384) matmul per step; 128-lane aligned gate blocks."""
        wf, wb, wh = wihF_ref[k], wihB_ref[k], whh_ref[k]
        bi, bh = bih_ref[k], bhh_ref[k]
        # Input projections for all timesteps; the backward gates are
        # time-reversed up front so the loop reads one lane-dense row per step.
        gx = (jnp.dot(x, wf, preferred_element_type=F32)
              + jnp.dot(rev, jnp.dot(x, wb, preferred_element_type=F32),
                        preferred_element_type=F32)
              + bi)
        h = jnp.zeros((1, MEM), F32)
        for t in range(T):                       # static full unroll (T small)
            gh = jnp.dot(h, wh, preferred_element_type=F32) + bh
            gx_t = gx[t:t + 1, :]
            r = jax.nn.sigmoid(gx_t[:, 0:GATE] + gh[:, 0:GATE])
            z = jax.nn.sigmoid(gx_t[:, GATE:2 * GATE] + gh[:, GATE:2 * GATE])
            n = jnp.tanh(gx_t[:, 2 * GATE:3 * GATE] + r * gh[:, 2 * GATE:3 * GATE])
            h = (1.0 - z) * n + z * h
            hs_ref[pl.ds(t, 1), :] = h           # single lane-dense (1,128) store
        hseq = hs_ref[...]                       # row t = [h_f(t) | h_b(T-1-t)]
        # Re-align the backward half in time: row-permute on MXU + lane select.
        hrev = jnp.dot(rev, hseq, preferred_element_type=F32)
        return jnp.where(lane < H, hseq, hrev)

    embed = embed_ref[...]                       # (T, E_PAD), zero-padded lanes
    u = bigru(embed, 0, hs0)                     # c_rnn      -> [T, 128]
    cmem = bigru(embed, 1, hs1)                  # m_rnn      -> [T, 128]
    cmem_ref[...] = cmem

    # ---- memory attention over the fixed-capacity memory buffer ----
    count = count_ref[0]
    mems, logits_m = [], []
    for i in range(M_MAX):                       # static loop, M_MAX fixed
        mi = mem_ref[i]
        mems.append(mi)
        s_i = jnp.sum(mi * u)                    # <flatten(mem_i), flatten(u)>
        logits_m.append(jnp.where(count > i, s_i, -1e30))
    pmax = logits_m[0]
    for v in logits_m[1:]:
        pmax = jnp.maximum(pmax, v)
    exps = [jnp.exp(v - pmax) for v in logits_m]
    denom = exps[0]
    for ex in exps[1:]:
        denom = denom + ex
    inv = 1.0 / denom
    wmem = mems[0] * (exps[0] * inv)
    for i in range(1, M_MAX):
        wmem = wmem + mems[i] * (exps[i] * inv)
    # G = sum_i p_i * ff([mem_i ; u]) = (sum_i p_i mem_i) @ W_mem + u @ W_u + b
    G = (jnp.dot(wmem, ffm_ref[...], preferred_element_type=F32)
         + jnp.dot(u, ffu_ref[...], preferred_element_type=F32)
         + ffb_ref[...])
    h_sess = bigru(G, 2, hs2) * (count > 0).astype(F32)   # h = 0 if memory empty

    # ---- knowledge encoder + tagging decoder ----
    o = jnp.dot(u + h_sess, kw_ref[...], preferred_element_type=F32) + kb_ref[...]
    dhid = bigru(embed + o, 3, hs3)              # tagger BiGRU -> [T, 128]

    mask = mask_ref[...]                         # (T, 1) f32
    logits = jnp.dot(dhid, ow_ref[...], preferred_element_type=F32) + ob_ref[...]
    logits = logits + (1.0 - mask) * (-1e32)     # padded tag cols carry -1e30 bias
    mrow = jnp.max(logits, axis=-1, keepdims=True)
    ex = jnp.exp(logits - mrow)
    s = jnp.sum(ex, axis=-1, keepdims=True)
    prob_ref[...] = ex * pl.reciprocal(s, approx=True)    # lane-dense (T,128) store

    logsm = logits - mrow - jnp.log(s)
    labels = labels_ref[...]                     # (T, 1) int32
    tag_iota = jax.lax.broadcasted_iota(jnp.int32, (T, TAG_PAD), 1)
    onehot = (tag_iota == labels).astype(F32)
    per_tok = -jnp.sum(onehot * logsm, axis=-1, keepdims=True)
    valid = (labels != PAD_ID).astype(F32)
    loss_ref[...] = jnp.reshape(jnp.sum(per_tok * valid) / jnp.sum(valid), (1, 1))


# ---------------------------------------------------------------------------
# Parameters (deterministic synthetic init, laid out in the fused/padded format)
# ---------------------------------------------------------------------------
def init_params(key):
    keys = iter(jax.random.split(key, 64))

    def nrm(shape):
        return jax.random.normal(next(keys), shape, F32) * 0.1

    def gru_combined(in_dim):
        """torch-style bidirectional GRU params -> fused block layout:
        gate blocks (width 2H): [r_f|r_b][z_f|z_b][n_f|n_b]; state = [h_f|h_b]."""
        wih_f, wih_b = nrm((in_dim, 3 * H)), nrm((in_dim, 3 * H))
        whh_f, whh_b = nrm((H, 3 * H)), nrm((H, 3 * H))
        bih_f, bih_b = nrm((3 * H,)), nrm((3 * H,))
        bhh_f, bhh_b = nrm((3 * H,)), nrm((3 * H,))
        WF = jnp.zeros((E_PAD, 3 * GATE), F32)
        WB = jnp.zeros((E_PAD, 3 * GATE), F32)
        WH = jnp.zeros((2 * H, 3 * GATE), F32)
        BI = jnp.zeros((1, 3 * GATE), F32)
        BH = jnp.zeros((1, 3 * GATE), F32)
        for g in range(3):                       # gate order r | z | n (torch)
            c, s = g * GATE, slice(g * H, (g + 1) * H)
            WF = WF.at[:in_dim, c:c + H].set(wih_f[:, s])
            WB = WB.at[:in_dim, c + H:c + 2 * H].set(wih_b[:, s])
            WH = WH.at[:H, c:c + H].set(whh_f[:, s])
            WH = WH.at[H:, c + H:c + 2 * H].set(whh_b[:, s])
            BI = BI.at[0, c:c + H].set(bih_f[s])
            BI = BI.at[0, c + H:c + 2 * H].set(bih_b[s])
            BH = BH.at[0, c:c + H].set(bhh_f[s])
            BH = BH.at[0, c + H:c + 2 * H].set(bhh_b[s])
        return WF, WB, WH, BI, BH

    # 0 = c_rnn, 1 = m_rnn, 2 = session_encoder, 3 = tagger rnn
    grus = [gru_combined(E), gru_combined(E), gru_combined(MEM), gru_combined(E)]

    ff_w = nrm((2 * MEM, MEM))                   # ff_layer: [mem ; u] -> 128
    params = {
        # TODO(synk): BertModel.from_pretrained('../bert') has no Pallas
        # equivalent; replaced by a deterministic (lane-padded) embedding table.
        "embed_table": jnp.zeros((VOCAB, E_PAD), F32).at[:, :E].set(nrm((VOCAB, E))),
        "wihF": jnp.stack([g[0] for g in grus]),     # (4, 128, 384)
        "wihB": jnp.stack([g[1] for g in grus]),     # (4, 128, 384)
        "whh":  jnp.stack([g[2] for g in grus]),     # (4, 128, 384)
        "bih":  jnp.stack([g[3] for g in grus]),     # (4, 1, 384)
        "bhh":  jnp.stack([g[4] for g in grus]),     # (4, 1, 384)
        "ff_wm": ff_w[:MEM],                         # memory half of ff weight
        "ff_wu": ff_w[MEM:],                         # u half of ff weight
        "ff_b": nrm((1, MEM)),
        "know_wT": jnp.zeros((MEM, E_PAD), F32).at[:, :E].set(nrm((MEM, E))),
        "know_b": jnp.zeros((1, E_PAD), F32).at[0, :E].set(nrm((E,))),
        # output head padded to 128 tags; padded columns get a large finite
        # negative bias (NOT -inf) so masked rows stay NaN-free.
        "out_wT": jnp.zeros((MEM, TAG_PAD), F32).at[:, :NUM_TAGS].set(
            nrm((MEM, NUM_TAGS))),
        "out_b": jnp.full((1, TAG_PAD), -1e30, F32).at[0, :NUM_TAGS].set(
            nrm((NUM_TAGS,))),
    }
    return params


# ---------------------------------------------------------------------------
# SLUTagging.forward for a single utterance (functional, jit-safe memory).
# ---------------------------------------------------------------------------
def slu_forward(params, input_ids, tag_mask, tag_ids, memory_buf, mem_count):
    embed = params["embed_table"][input_ids]         # (T, E_PAD) gather (glue)
    vmem = pl.BlockSpec(memory_space=pltpu.MemorySpace.VMEM)
    smem = pl.BlockSpec(memory_space=pltpu.MemorySpace.SMEM)

    prob_pad, loss, c_memory = pl.pallas_call(
        slu_fused_kernel,
        out_shape=(jax.ShapeDtypeStruct((T, TAG_PAD), F32),   # padded probs
                   jax.ShapeDtypeStruct((1, 1), F32),         # scalar loss
                   jax.ShapeDtypeStruct((T, MEM), F32)),      # new memory slot
        in_specs=[smem] + [vmem] * 16,
        out_specs=(vmem, vmem, vmem),
        scratch_shapes=[pltpu.VMEM((T, MEM), F32)] * 4,       # per-BiGRU h-seq
    )(jnp.reshape(mem_count, (1,)).astype(jnp.int32),
      embed, memory_buf,
      jnp.reshape(tag_mask, (T, 1)).astype(F32),
      jnp.reshape(tag_ids, (T, 1)).astype(jnp.int32),
      params["wihF"], params["wihB"], params["whh"], params["bih"], params["bhh"],
      params["ff_wm"], params["ff_wu"], params["ff_b"],
      params["know_wT"], params["know_b"],
      params["out_wT"], params["out_b"])

    # memory.append(c_memory.detach()) -> functional fixed-capacity update.
    # TODO(synk): sessions longer than M_MAX need a ring/eviction policy; the
    # torch reference keeps an unbounded Python list.
    new_buf = memory_buf.at[mem_count].set(c_memory)
    new_count = jnp.minimum(mem_count + 1, M_MAX)
    return prob_pad[:, :NUM_TAGS], loss[0, 0], new_buf, new_count


if __name__ == "__main__":
    key = jax.random.PRNGKey(0)
    pkey, dkey = jax.random.split(key)
    params = init_params(pkey)

    k_ids, k_tags = jax.random.split(dkey)
    utt_keys = jax.random.split(k_ids, 3)

    tag_mask = jnp.concatenate([jnp.ones((6,), F32), jnp.zeros((2,), F32)])
    tag_ids = jnp.where(tag_mask > 0,
                        jax.random.randint(k_tags, (T,), 1, NUM_TAGS),
                        PAD_ID).astype(jnp.int32)

    memory_buf = jnp.zeros((M_MAX, T, MEM), F32)     # fixed-capacity session memory
    mem_count = jnp.int32(0)

    forward = jax.jit(slu_forward)                   # single compile for the session

    results = []
    for uk in utt_keys:  # 3 utterances: covers empty-memory and M=1, M=2 branches
        input_ids = jax.random.randint(uk, (T,), 0, VOCAB)
        prob, loss, memory_buf, mem_count = forward(
            params, input_ids, tag_mask, tag_ids, memory_buf, mem_count)
        results.append((prob, loss))

    jax.block_until_ready(results)
    assert results[-1][0].shape == (T, NUM_TAGS)
    print("KERNEL_OK")
</pallas_src>

<mosaic_0001>
module attributes {stable_mosaic.version = 11 : i64} {
  func.func @slu_fused_kernel(%arg0: memref<1xi32, #tpu.memory_space<smem>>, %arg1: memref<8x128xf32, #tpu.memory_space<vmem>>, %arg2: memref<8x8x128xf32, #tpu.memory_space<vmem>>, %arg3: memref<8x1xf32, #tpu.memory_space<vmem>>, %arg4: memref<8x1xi32, #tpu.memory_space<vmem>>, %arg5: memref<4x128x384xf32, #tpu.memory_space<vmem>>, %arg6: memref<4x128x384xf32, #tpu.memory_space<vmem>>, %arg7: memref<4x128x384xf32, #tpu.memory_space<vmem>>, %arg8: memref<4x1x384xf32, #tpu.memory_space<vmem>>, %arg9: memref<4x1x384xf32, #tpu.memory_space<vmem>>, %arg10: memref<128x128xf32, #tpu.memory_space<vmem>>, %arg11: memref<128x128xf32, #tpu.memory_space<vmem>>, %arg12: memref<1x128xf32, #tpu.memory_space<vmem>>, %arg13: memref<128x128xf32, #tpu.memory_space<vmem>>, %arg14: memref<1x128xf32, #tpu.memory_space<vmem>>, %arg15: memref<128x128xf32, #tpu.memory_space<vmem>>, %arg16: memref<1x128xf32, #tpu.memory_space<vmem>>, %arg17: memref<8x128xf32, #tpu.memory_space<vmem>>, %arg18: memref<1x1xf32, #tpu.memory_space<vmem>>, %arg19: memref<8x128xf32, #tpu.memory_space<vmem>>, %arg20: memref<8x128xf32, #tpu.memory_space<vmem>>, %arg21: memref<8x128xf32, #tpu.memory_space<vmem>>, %arg22: memref<8x128xf32, #tpu.memory_space<vmem>>, %arg23: memref<8x128xf32, #tpu.memory_space<vmem>>) attributes {dimension_semantics = [], scalar_prefetch = 0 : i64, scratch_operands = 4 : i64, tpu.core_type = #tpu.core_type<tc>} {
    %0 = tpu.iota {dimensions = array<i32: 0>} : vector<8x8xi32>
    %1 = tpu.iota {dimensions = array<i32: 1>} : vector<8x8xi32>
    %2 = arith.addi %0, %1 : vector<8x8xi32>
    %c7_i32 = arith.constant 7 : i32
    %3 = vector.broadcast %c7_i32 : i32 to vector<8x8xi32>
    %4 = arith.cmpi eq, %2, %3 : vector<8x8xi32>
    %5 = arith.extui %4 : vector<8x8xi1> to vector<8x8xi32>
    %6 = arith.sitofp %5 : vector<8x8xi32> to vector<8x8xf32>
    %7 = tpu.iota {dimensions = array<i32: 1>} : vector<8x128xi32>
    %c0 = arith.constant 0 : index
    %c0_0 = arith.constant 0 : index
    %8 = vector.load %arg1[%c0, %c0_0] : memref<8x128xf32, #tpu.memory_space<vmem>>, vector<8x128xf32>
    %c0_1 = arith.constant 0 : index
    %c0_2 = arith.constant 0 : index
    %c0_3 = arith.constant 0 : index
    %9 = vector.load %arg5[%c0_1, %c0_2, %c0_3] : memref<4x128x384xf32, #tpu.memory_space<vmem>>, vector<1x128x384xf32>
    %10 = vector.shape_cast %9 : vector<1x128x384xf32> to vector<128x384xf32>
    %c0_4 = arith.constant 0 : index
    %c0_5 = arith.constant 0 : index
    %c0_6 = arith.constant 0 : index
    %11 = vector.load %arg6[%c0_4, %c0_5, %c0_6] : memref<4x128x384xf32, #tpu.memory_space<vmem>>, vector<1x128x384xf32>
    %12 = vector.shape_cast %11 : vector<1x128x384xf32> to vector<128x384xf32>
    %c0_7 = arith.constant 0 : index
    %c0_8 = arith.constant 0 : index
    %c0_9 = arith.constant 0 : index
    %13 = vector.load %arg7[%c0_7, %c0_8, %c0_9] : memref<4x128x384xf32, #tpu.memory_space<vmem>>, vector<1x128x384xf32>
    %14 = vector.shape_cast %13 : vector<1x128x384xf32> to vector<128x384xf32>
    %c0_10 = arith.constant 0 : index
    %c0_11 = arith.constant 0 : index
    %c0_12 = arith.constant 0 : index
    %15 = vector.load %arg8[%c0_10, %c0_11, %c0_12] : memref<4x1x384xf32, #tpu.memory_space<vmem>>, vector<1x1x384xf32>
    %16 = vector.shape_cast %15 : vector<1x1x384xf32> to vector<1x384xf32>
    %c0_13 = arith.constant 0 : index
    %c0_14 = arith.constant 0 : index
    %c0_15 = arith.constant 0 : index
    %17 = vector.load %arg9[%c0_13, %c0_14, %c0_15] : memref<4x1x384xf32, #tpu.memory_space<vmem>>, vector<1x1x384xf32>
    %18 = vector.shape_cast %17 : vector<1x1x384xf32> to vector<1x384xf32>
    %cst = arith.constant dense<0.000000e+00> : vector<8x384xf32>
    %19 = tpu.matmul %8, %10, %cst {dimension_numbers = #tpu.dot_dimension_numbers<[1], [0], [0], [1], [0, 0, 1, 1], [], []>} : vector<8x128xf32>, vector<128x384xf32>, vector<8x384xf32> -> vector<8x384xf32>
    %cst_16 = arith.constant dense<0.000000e+00> : vector<8x384xf32>
    %20 = tpu.matmul %8, %12, %cst_16 {dimension_numbers = #tpu.dot_dimension_numbers<[1], [0], [0], [1], [0, 0, 1, 1], [], []>} : vector<8x128xf32>, vector<128x384xf32>, vector<8x384xf32> -> vector<8x384xf32>
    %cst_17 = arith.constant dense<0.000000e+00> : vector<8x384xf32>
    %21 = tpu.matmul %6, %20, %cst_17 {dimension_numbers = #tpu.dot_dimension_numbers<[1], [0], [0], [1], [0, 0, 1, 1], [], []>} : vector<8x8xf32>, vector<8x384xf32>, vector<8x384xf32> -> vector<8x384xf32>
    %22 = arith.addf %19, %21 : vector<8x384xf32>
    %23 = vector.broadcast %16 : vector<1x384xf32> to vector<8x384xf32>
    %24 = arith.addf %22, %23 : vector<8x384xf32>
    %cst_18 = arith.constant 0.000000e+00 : f32
    %25 = vector.broadcast %cst_18 : f32 to vector<1x128xf32>
    %cst_19 = arith.constant dense<0.000000e+00> : vector<1x384xf32>
    %26 = tpu.matmul %25, %14, %cst_19 {dimension_numbers = #tpu.dot_dimension_numbers<[1], [0], [0], [1], [0, 0, 1, 1], [], []>} : vector<1x128xf32>, vector<128x384xf32>, vector<1x384xf32> -> vector<1x384xf32>
    %27 = arith.addf %26, %18 : vector<1x384xf32>
    %28 = vector.extract_strided_slice %24 {offsets = [0, 0], sizes = [1, 384], strides = [1, 1]} : vector<8x384xf32> to vector<1x384xf32>
    %29 = vector.extract_strided_slice %28 {offsets = [0, 0], sizes = [1, 128], strides = [1, 1]} : vector<1x384xf32> to vector<1x128xf32>
    %30 = vector.extract_strided_slice %27 {offsets = [0, 0], sizes = [1, 128], strides = [1, 1]} : vector<1x384xf32> to vector<1x128xf32>
    %31 = arith.addf %29, %30 : vector<1x128xf32>
    %32 = arith.negf %31 : vector<1x128xf32>
    %33 = math.exp %32 : vector<1x128xf32>
    %cst_20 = arith.constant 1.000000e+00 : f32
    %34 = vector.broadcast %cst_20 : f32 to vector<1x128xf32>
    %35 = arith.addf %34, %33 : vector<1x128xf32>
    %36 = arith.divf %34, %35 : vector<1x128xf32>
    %37 = vector.extract_strided_slice %28 {offsets = [0, 128], sizes = [1, 128], strides = [1, 1]} : vector<1x384xf32> to vector<1x128xf32>
    %38 = vector.extract_strided_slice %27 {offsets = [0, 128], sizes = [1, 128], strides = [1, 1]} : vector<1x384xf32> to vector<1x128xf32>
    %39 = arith.addf %37, %38 : vector<1x128xf32>
    %40 = arith.negf %39 : vector<1x128xf32>
    %41 = math.exp %40 : vector<1x128xf32>
    %cst_21 = arith.constant 1.000000e+00 : f32
    %42 = vector.broadcast %cst_21 : f32 to vector<1x128xf32>
    %43 = arith.addf %42, %41 : vector<1x128xf32>
    %44 = arith.divf %42, %43 : vector<1x128xf32>
    %45 = vector.extract_strided_slice %28 {offsets = [0, 256], sizes = [1, 128], strides = [1, 1]} : vector<1x384xf32> to vector<1x128xf32>
    %46 = vector.extract_strided_slice %27 {offsets = [0, 256], sizes = [1, 128], strides = [1, 1]} : vector<1x384xf32> to vector<1x128xf32>
    %47 = arith.mulf %36, %46 : vector<1x128xf32>
    %48 = arith.addf %45, %47 : vector<1x128xf32>
    %49 = math.tanh %48 : vector<1x128xf32>
    %cst_22 = arith.constant 1.000000e+00 : f32
    %50 = vector.broadcast %cst_22 : f32 to vector<1x128xf32>
    %51 = arith.subf %50, %44 : vector<1x128xf32>
    %52 = arith.mulf %51, %49 : vector<1x128xf32>
    %53 = arith.mulf %44, %25 : vector<1x128xf32>
    %54 = arith.addf %52, %53 : vector<1x128xf32>
    %c0_23 = arith.constant 0 : index
    %c0_24 = arith.constant 0 : index
    %55 = vector.load %arg20[%c0_23, %c0_24] : memref<8x128xf32, #tpu.memory_space<vmem>>, vector<1x128xf32>
    tpu.vector_store %arg20[%c0_23, %c0_24], %54 {strides = array<i32>} : memref<8x128xf32, #tpu.memory_space<vmem>>, vector<1x128xf32>,
    %cst_25 = arith.constant dense<0.000000e+00> : vector<1x384xf32>
    %56 = tpu.matmul %54, %14, %cst_25 {dimension_numbers = #tpu.dot_dimension_numbers<[1], [0], [0], [1], [0, 0, 1, 1], [], []>} : vector<1x128xf32>, vector<128x384xf32>, vector<1x384xf32> -> vector<1x384xf32>
    %57 = arith.addf %56, %18 : vector<1x384xf32>
    %58 = vector.extract_strided_slice %24 {offsets = [1, 0], sizes = [1, 384], strides = [1, 1]} : vector<8x384xf32> to vector<1x384xf32>
    %59 = vector.extract_strided_slice %58 {offsets = [0, 0], sizes = [1, 128], strides = [1, 1]} : vector<1x384xf32> to vector<1x128xf32>
    %60 = vector.extract_strided_slice %57 {offsets = [0, 0], sizes = [1, 128], strides = [1, 1]} : vector<1x384xf32> to vector<1x128xf32>
    %61 = arith.addf %59, %60 : vector<1x128xf32>
    %62 = arith.negf %61 : vector<1x128xf32>
    %63 = math.exp %62 : vector<1x128xf32>
    %cst_26 = arith.constant 1.000000e+00 : f32
    %64 = vector.broadcast %cst_26 : f32 to vector<1x128xf32>
    %65 = arith.addf %64, %63 : vector<1x128xf32>
    %66 = arith.divf %64, %65 : vector<1x128xf32>
    %67 = vector.extract_strided_slice %58 {offsets = [0, 128], sizes = [1, 128], strides = [1, 1]} : vector<1x384xf32> to vector<1x128xf32>
    %68 = vector.extract_strided_slice %57 {offsets = [0, 128], sizes = [1, 128], strides = [1, 1]} : vector<1x384xf32> to vector<1x128xf32>
    %69 = arith.addf %67, %68 : vector<1x128xf32>
    %70 = arith.negf %69 : vector<1x128xf32>
    %71 = math.exp %70 : vector<1x128xf32>
    %cst_27 = arith.constant 1.000000e+00 : f32
    %72 = vector.broadcast %cst_27 : f32 to vector<1x128xf32>
    %73 = arith.addf %72, %71 : vector<1x128xf32>
    %74 = arith.divf %72, %73 : vector<1x128xf32>
    %75 = vector.extract_strided_slice %58 {offsets = [0, 256], sizes = [1, 128], strides = [1, 1]} : vector<1x384xf32> to vector<1x128xf32>
    %76 = vector.extract_strided_slice %57 {offsets = [0, 256], sizes = [1, 128], strides = [1, 1]} : vector<1x384xf32> to vector<1x128xf32>
    %77 = arith.mulf %66, %76 : vector<1x128xf32>
    %78 = arith.addf %75, %77 : vector<1x128xf32>
    %79 = math.tanh %78 : vector<1x128xf32>
    %cst_28 = arith.constant 1.000000e+00 : f32
    %80 = vector.broadcast %cst_28 : f32 to vector<1x128xf32>
    %81 = arith.subf %80, %74 : vector<1x128xf32>
    %82 = arith.mulf %81, %79 : vector<1x128xf32>
    %83 = arith.mulf %74, %54 : vector<1x128xf32>
    %84 = arith.addf %82, %83 : vector<1x128xf32>
    %c1 = arith.constant 1 : index
    %c0_29 = arith.constant 0 : index
    %85 = vector.load %arg20[%c1, %c0_29] : memref<8x128xf32, #tpu.memory_space<vmem>>, vector<1x128xf32>
    tpu.vector_store %arg20[%c1, %c0_29], %84 {strides = array<i32>} : memref<8x128xf32, #tpu.memory_space<vmem>>, vector<1x128xf32>,
    %cst_30 = arith.constant dense<0.000000e+00> : vector<1x384xf32>
    %86 = tpu.matmul %84, %14, %cst_30 {dimension_numbers = #tpu.dot_dimension_numbers<[1], [0], [0], [1], [0, 0, 1, 1], [], []>} : vector<1x128xf32>, vector<128x384xf32>, vector<1x384xf32> -> vector<1x384xf32>
    %87 = arith.addf %86, %18 : vector<1x384xf32>
    %88 = vector.extract_strided_slice %24 {offsets = [2, 0], sizes = [1, 384], strides = [1, 1]} : vector<8x384xf32> to vector<1x384xf32>
    %89 = vector.extract_strided_slice %88 {offsets = [0, 0], sizes = [1, 128], strides = [1, 1]} : vector<1x384xf32> to vector<1x128xf32>
    %90 = vector.extract_strided_slice %87 {offsets = [0, 0], sizes = [1, 128], strides = [1, 1]} : vector<1x384xf32> to vector<1x128xf32>
    %91 = arith.addf %89, %90 : vector<1x128xf32>
    %92 = arith.negf %91 : vector<1x128xf32>
    %93 = math.exp %92 : vector<1x128xf32>
    %cst_31 = arith.constant 1.000000e+00 : f32
    %94 = vector.broadcast %cst_31 : f32 to vector<1x128xf32>
    %95 = arith.addf %94, %93 : vector<1x128xf32>
    %96 = arith.divf %94, %95 : vector<1x128xf32>
    %97 = vector.extract_strided_slice %88 {offsets = [0, 128], sizes = [1, 128], strides = [1, 1]} : vector<1x384xf32> to vector<1x128xf32>
    %98 = vector.extract_strided_slice %87 {offsets = [0, 128], sizes = [1, 128], strides = [1, 1]} : vector<1x384xf32> to vector<1x128xf32>
    %99 = arith.addf %97, %98 : vector<1x128xf32>
    %100 = arith.negf %99 : vector<1x128xf32>
    %101 = math.exp %100 : vector<1x128xf32>
    %cst_32 = arith.constant 1.000000e+00 : f32
    %102 = vector.broadcast %cst_32 : f32 to vector<1x128xf32>
    %103 = arith.addf %102, %101 : vector<1x128xf32>
    %104 = arith.divf %102, %103 : vector<1x128xf32>
    %105 = vector.extract_strided_slice %88 {offsets = [0, 256], sizes = [1, 128], strides = [1, 1]} : vector<1x384xf32> to vector<1x128xf32>
    %106 = vector.extract_strided_slice %87 {offsets = [0, 256], sizes = [1, 128], strides = [1, 1]} : vector<1x384xf32> to vector<1x128xf32>
    %107 = arith.mulf %96, %106 : vector<1x128xf32>
    %108 = arith.addf %105, %107 : vector<1x128xf32>
    %109 = math.tanh %108 : vector<1x128xf32>
    %cst_33 = arith.constant 1.000000e+00 : f32
    %110 = vector.broadcast %cst_33 : f32 to vector<1x128xf32>
    %111 = arith.subf %110, %104 : vector<1x128xf32>
    %112 = arith.mulf %111, %109 : vector<1x128xf32>
    %113 = arith.mulf %104, %84 : vector<1x128xf32>
    %114 = arith.addf %112, %113 : vector<1x128xf32>
    %c2 = arith.constant 2 : index
    %c0_34 = arith.constant 0 : index
    %115 = vector.load %arg20[%c2, %c0_34] : memref<8x128xf32, #tpu.memory_space<vmem>>, vector<1x128xf32>
    tpu.vector_store %arg20[%c2, %c0_34], %114 {strides = array<i32>} : memref<8x128xf32, #tpu.memory_space<vmem>>, vector<1x128xf32>,
    %cst_35 = arith.constant dense<0.000000e+00> : vector<1x384xf32>
    %116 = tpu.matmul %114, %14, %cst_35 {dimension_numbers = #tpu.dot_dimension_numbers<[1], [0], [0], [1], [0, 0, 1, 1], [], []>} : vector<1x128xf32>, vector<128x384xf32>, vector<1x384xf32> -> vector<1x384xf32>
    %117 = arith.addf %116, %18 : vector<1x384xf32>
    %118 = vector.extract_strided_slice %24 {offsets = [3, 0], sizes = [1, 384], strides = [1, 1]} : vector<8x384xf32> to vector<1x384xf32>
    %119 = vector.extract_strided_slice %118 {offsets = [0, 0], sizes = [1, 128], strides = [1, 1]} : vector<1x384xf32> to vector<1x128xf32>
    %120 = vector.extract_strided_slice %117 {offsets = [0, 0], sizes = [1, 128], strides = [1, 1]} : vector<1x384xf32> to vector<1x128xf32>
    %121 = arith.addf %119, %120 : vector<1x128xf32>
    %122 = arith.negf %121 : vector<1x128xf32>
    %123 = math.exp %122 : vector<1x128xf32>
    %cst_36 = arith.constant 1.000000e+00 : f32
    %124 = vector.broadcast %cst_36 : f32 to vector<1x128xf32>
    %125 = arith.addf %124, %123 : vector<1x128xf32>
    %126 = arith.divf %124, %125 : vector<1x128xf32>
    %127 = vector.extract_strided_slice %118 {offsets = [0, 128], sizes = [1, 128], strides = [1, 1]} : vector<1x384xf32> to vector<1x128xf32>
    %128 = vector.extract_strided_slice %117 {offsets = [0, 128], sizes = [1, 128], strides = [1, 1]} : vector<1x384xf32> to vector<1x128xf32>
    %129 = arith.addf %127, %128 : vector<1x128xf32>
    %130 = arith.negf %129 : vector<1x128xf32>
    %131 = math.exp %130 : vector<1x128xf32>
    %cst_37 = arith.constant 1.000000e+00 : f32
    %132 = vector.broadcast %cst_37 : f32 to vector<1x128xf32>
    %133 = arith.addf %132, %131 : vector<1x128xf32>
    %134 = arith.divf %132, %133 : vector<1x128xf32>
    %135 = vector.extract_strided_slice %118 {offsets = [0, 256], sizes = [1, 128], strides = [1, 1]} : vector<1x384xf32> to vector<1x128xf32>
    %136 = vector.extract_strided_slice %117 {offsets = [0, 256], sizes = [1, 128], strides = [1, 1]} : vector<1x384xf32> to vector<1x128xf32>
    %137 = arith.mulf %126, %136 : vector<1x128xf32>
    %138 = arith.addf %135, %137 : vector<1x128xf32>
    %139 = math.tanh %138 : vector<1x128xf32>
    %cst_38 = arith.constant 1.000000e+00 : f32
    %140 = vector.broadcast %cst_38 : f32 to vector<1x128xf32>
    %141 = arith.subf %140, %134 : vector<1x128xf32>
    %142 = arith.mulf %141, %139 : vector<1x128xf32>
    %143 = arith.mulf %134, %114 : vector<1x128xf32>
    %144 = arith.addf %142, %143 : vector<1x128xf32>
    %c3 = arith.constant 3 : index
    %c0_39 = arith.constant 0 : index
    %145 = vector.load %arg20[%c3, %c0_39] : memref<8x128xf32, #tpu.memory_space<vmem>>, vector<1x128xf32>
    tpu.vector_store %arg20[%c3, %c0_39], %144 {strides = array<i32>} : memref<8x128xf32, #tpu.memory_space<vmem>>, vector<1x128xf32>,
    %cst_40 = arith.constant dense<0.000000e+00> : vector<1x384xf32>
    %146 = tpu.matmul %144, %14, %cst_40 {dimension_numbers = #tpu.dot_dimension_numbers<[1], [0], [0], [1], [0, 0, 1, 1], [], []>} : vector<1x128xf32>, vector<128x384xf32>, vector<1x384xf32> -> vector<1x384xf32>
    %147 = arith.addf %146, %18 : vector<1x384xf32>
    %148 = vector.extract_strided_slice %24 {offsets = [4, 0], sizes = [1, 384], strides = [1, 1]} : vector<8x384xf32> to vector<1x384xf32>
    %149 = vector.extract_strided_slice %148 {offsets = [0, 0], sizes = [1, 128], strides = [1, 1]} : vector<1x384xf32> to vector<1x128xf32>
    %150 = vector.extract_strided_slice %147 {offsets = [0, 0], sizes = [1, 128], strides = [1, 1]} : vector<1x384xf32> to vector<1x128xf32>
    %151 = arith.addf %149, %150 : vector<1x128xf32>
    %152 = arith.negf %151 : vector<1x128xf32>
    %153 = math.exp %152 : vector<1x128xf32>
    %cst_41 = arith.constant 1.000000e+00 : f32
    %154 = vector.broadcast %cst_41 : f32 to vector<1x128xf32>
    %155 = arith.addf %154, %153 : vector<1x128xf32>
    %156 = arith.divf %154, %155 : vector<1x128xf32>
    %157 = vector.extract_strided_slice %148 {offsets = [0, 128], sizes = [1, 128], strides = [1, 1]} : vector<1x384xf32> to vector<1x128xf32>
    %158 = vector.extract_strided_slice %147 {offsets = [0, 128], sizes = [1, 128], strides = [1, 1]} : vector<1x384xf32> to vector<1x128xf32>
    %159 = arith.addf %157, %158 : vector<1x128xf32>
    %160 = arith.negf %159 : vector<1x128xf32>
    %161 = math.exp %160 : vector<1x128xf32>
    %cst_42 = arith.constant 1.000000e+00 : f32
    %162 = vector.broadcast %cst_42 : f32 to vector<1x128xf32>
    %163 = arith.addf %162, %161 : vector<1x128xf32>
    %164 = arith.divf %162, %163 : vector<1x128xf32>
    %165 = vector.extract_strided_slice %148 {offsets = [0, 256], sizes = [1, 128], strides = [1, 1]} : vector<1x384xf32> to vector<1x128xf32>
    %166 = vector.extract_strided_slice %147 {offsets = [0, 256], sizes = [1, 128], strides = [1, 1]} : vector<1x384xf32> to vector<1x128xf32>
    %167 = arith.mulf %156, %166 : vector<1x128xf32>
    %168 = arith.addf %165, %167 : vector<1x128xf32>
    %169 = math.tanh %168 : vector<1x128xf32>
    %cst_43 = arith.constant 1.000000e+00 : f32
    %170 = vector.broadcast %cst_43 : f32 to vector<1x128xf32>
    %171 = arith.subf %170, %164 : vector<1x128xf32>
    %172 = arith.mulf %171, %169 : vector<1x128xf32>
    %173 = arith.mulf %164, %144 : vector<1x128xf32>
    %174 = arith.addf %172, %173 : vector<1x128xf32>
    %c4 = arith.constant 4 : index
    %c0_44 = arith.constant 0 : index
    %175 = vector.load %arg20[%c4, %c0_44] : memref<8x128xf32, #tpu.memory_space<vmem>>, vector<1x128xf32>
    tpu.vector_store %arg20[%c4, %c0_44], %174 {strides = array<i32>} : memref<8x128xf32, #tpu.memory_space<vmem>>, vector<1x128xf32>,
    %cst_45 = arith.constant dense<0.000000e+00> : vector<1x384xf32>
    %176 = tpu.matmul %174, %14, %cst_45 {dimension_numbers = #tpu.dot_dimension_numbers<[1], [0], [0], [1], [0, 0, 1, 1], [], []>} : vector<1x128xf32>, vector<128x384xf32>, vector<1x384xf32> -> vector<1x384xf32>
    %177 = arith.addf %176, %18 : vector<1x384xf32>
    %178 = vector.extract_strided_slice %24 {offsets = [5, 0], sizes = [1, 384], strides = [1, 1]} : vector<8x384xf32> to vector<1x384xf32>
    %179 = vector.extract_strided_slice %178 {offsets = [0, 0], sizes = [1, 128], strides = [1, 1]} : vector<1x384xf32> to vector<1x128xf32>
    %180 = vector.extract_strided_slice %177 {offsets = [0, 0], sizes = [1, 128], strides = [1, 1]} : vector<1x384xf32> to vector<1x128xf32>
    %181 = arith.addf %179, %180 : vector<1x128xf32>
    %182 = arith.negf %181 : vector<1x128xf32>
    %183 = math.exp %182 : vector<1x128xf32>
    %cst_46 = arith.constant 1.000000e+00 : f32
    %184 = vector.broadcast %cst_46 : f32 to vector<1x128xf32>
    %185 = arith.addf %184, %183 : vector<1x128xf32>
    %186 = arith.divf %184, %185 : vector<1x128xf32>
    %187 = vector.extract_strided_slice %178 {offsets = [0, 128], sizes = [1, 128], strides = [1, 1]} : vector<1x384xf32> to vector<1x128xf32>
    %188 = vector.extract_strided_slice %177 {offsets = [0, 128], sizes = [1, 128], strides = [1, 1]} : vector<1x384xf32> to vector<1x128xf32>
    %189 = arith.addf %187, %188 : vector<1x128xf32>
    %190 = arith.negf %189 : vector<1x128xf32>
    %191 = math.exp %190 : vector<1x128xf32>
    %cst_47 = arith.constant 1.000000e+00 : f32
    %192 = vector.broadcast %cst_47 : f32 to vector<1x128xf32>
    %193 = arith.addf %192, %191 : vector<1x128xf32>
    %194 = arith.divf %192, %193 : vector<1x128xf32>
    %195 = vector.extract_strided_slice %178 {offsets = [0, 256], sizes = [1, 128], strides = [1, 1]} : vector<1x384xf32> to vector<1x128xf32>
    %196 = vector.extract_strided_slice %177 {offsets = [0, 256], sizes = [1, 128], strides = [1, 1]} : vector<1x384xf32> to vector<1x128xf32>
    %197 = arith.mulf %186, %196 : vector<1x128xf32>
    %198 = arith.addf %195, %197 : vector<1x128xf32>
    %199 = math.tanh %198 : vector<1x128xf32>
    %cst_48 = arith.constant 1.000000e+00 : f32
    %200 = vector.broadcast %cst_48 : f32 to vector<1x128xf32>
    %201 = arith.subf %200, %194 : vector<1x128xf32>
    %202 = arith.mulf %201, %199 : vector<1x128xf32>
    %203 = arith.mulf %194, %174 : vector<1x128xf32>
    %204 = arith.addf %202, %203 : vector<1x128xf32>
    %c5 = arith.constant 5 : index
    %c0_49 = arith.constant 0 : index
    %205 = vector.load %arg20[%c5, %c0_49] : memref<8x128xf32, #tpu.memory_space<vmem>>, vector<1x128xf32>
    tpu.vector_store %arg20[%c5, %c0_49], %204 {strides = array<i32>} : memref<8x128xf32, #tpu.memory_space<vmem>>, vector<1x128xf32>,
    %cst_50 = arith.constant dense<0.000000e+00> : vector<1x384xf32>
    %206 = tpu.matmul %204, %14, %cst_50 {dimension_numbers = #tpu.dot_dimension_numbers<[1], [0], [0], [1], [0, 0, 1, 1], [], []>} : vector<1x128xf32>, vector<128x384xf32>, vector<1x384xf32> -> vector<1x384xf32>
    %207 = arith.addf %206, %18 : vector<1x384xf32>
    %208 = vector.extract_strided_slice %24 {offsets = [6, 0], sizes = [1, 384], strides = [1, 1]} : vector<8x384xf32> to vector<1x384xf32>
    %209 = vector.extract_strided_slice %208 {offsets = [0, 0], sizes = [1, 128], strides = [1, 1]} : vector<1x384xf32> to vector<1x128xf32>
    %210 = vector.extract_strided_slice %207 {offsets = [0, 0], sizes = [1, 128], strides = [1, 1]} : vector<1x384xf32> to vector<1x128xf32>
    %211 = arith.addf %209, %210 : vector<1x128xf32>
    %212 = arith.negf %211 : vector<1x128xf32>
    %213 = math.exp %212 : vector<1x128xf32>
    %cst_51 = arith.constant 1.000000e+00 : f32
    %214 = vector.broadcast %cst_51 : f32 to vector<1x128xf32>
    %215 = arith.addf %214, %213 : vector<1x128xf32>
    %216 = arith.divf %214, %215 : vector<1x128xf32>
    %217 = vector.extract_strided_slice %208 {offsets = [0, 128], sizes = [1, 128], strides = [1, 1]} : vector<1x384xf32> to vector<1x128xf32>
    %218 = vector.extract_strided_slice %207 {offsets = [0, 128], sizes = [1, 128], strides = [1, 1]} : vector<1x384xf32> to vector<1x128xf32>
    %219 = arith.addf %217, %218 : vector<1x128xf32>
    %220 = arith.negf %219 : vector<1x128xf32>
    %221 = math.exp %220 : vector<1x128xf32>
    %cst_52 = arith.constant 1.000000e+00 : f32
    %222 = vector.broadcast %cst_52 : f32 to vector<1x128xf32>
    %223 = arith.addf %222, %221 : vector<1x128xf32>
    %224 = arith.divf %222, %223 : vector<1x128xf32>
    %225 = vector.extract_strided_slice %208 {offsets = [0, 256], sizes = [1, 128], strides = [1, 1]} : vector<1x384xf32> to vector<1x128xf32>
    %226 = vector.extract_strided_slice %207 {offsets = [0, 256], sizes = [1, 128], strides = [1, 1]} : vector<1x384xf32> to vector<1x128xf32>
    %227 = arith.mulf %216, %226 : vector<1x128xf32>
    %228 = arith.addf %225, %227 : vector<1x128xf32>
    %229 = math.tanh %228 : vector<1x128xf32>
    %cst_53 = arith.constant 1.000000e+00 : f32
    %230 = vector.broadcast %cst_53 : f32 to vector<1x128xf32>
    %231 = arith.subf %230, %224 : vector<1x128xf32>
    %232 = arith.mulf %231, %229 : vector<1x128xf32>
    %233 = arith.mulf %224, %204 : vector<1x128xf32>
    %234 = arith.addf %232, %233 : vector<1x128xf32>
    %c6 = arith.constant 6 : index
    %c0_54 = arith.constant 0 : index
    %235 = vector.load %arg20[%c6, %c0_54] : memref<8x128xf32, #tpu.memory_space<vmem>>, vector<1x128xf32>
    tpu.vector_store %arg20[%c6, %c0_54], %234 {strides = array<i32>} : memref<8x128xf32, #tpu.memory_space<vmem>>, vector<1x128xf32>,
    %cst_55 = arith.constant dense<0.000000e+00> : vector<1x384xf32>
    %236 = tpu.matmul %234, %14, %cst_55 {dimension_numbers = #tpu.dot_dimension_numbers<[1], [0], [0], [1], [0, 0, 1, 1], [], []>} : vector<1x128xf32>, vector<128x384xf32>, vector<1x384xf32> -> vector<1x384xf32>
    %237 = arith.addf %236, %18 : vector<1x384xf32>
    %238 = vector.extract_strided_slice %24 {offsets = [7, 0], sizes = [1, 384], strides = [1, 1]} : vector<8x384xf32> to vector<1x384xf32>
    %239 = vector.extract_strided_slice %238 {offsets = [0, 0], sizes = [1, 128], strides = [1, 1]} : vector<1x384xf32> to vector<1x128xf32>
    %240 = vector.extract_strided_slice %237 {offsets = [0, 0], sizes = [1, 128], strides = [1, 1]} : vector<1x384xf32> to vector<1x128xf32>
    %241 = arith.addf %239, %240 : vector<1x128xf32>
    %242 = arith.negf %241 : vector<1x128xf32>
    %243 = math.exp %242 : vector<1x128xf32>
    %cst_56 = arith.constant 1.000000e+00 : f32
    %244 = vector.broadcast %cst_56 : f32 to vector<1x128xf32>
    %245 = arith.addf %244, %243 : vector<1x128xf32>
    %246 = arith.divf %244, %245 : vector<1x128xf32>
    %247 = vector.extract_strided_slice %238 {offsets = [0, 128], sizes = [1, 128], strides = [1, 1]} : vector<1x384xf32> to vector<1x128xf32>
    %248 = vector.extract_strided_slice %237 {offsets = [0, 128], sizes = [1, 128], strides = [1, 1]} : vector<1x384xf32> to vector<1x128xf32>
    %249 = arith.addf %247, %248 : vector<1x128xf32>
    %250 = arith.negf %249 : vector<1x128xf32>
    %251 = math.exp %250 : vector<1x128xf32>
    %cst_57 = arith.constant 1.000000e+00 : f32
    %252 = vector.broadcast %cst_57 : f32 to vector<1x128xf32>
    %253 = arith.addf %252, %251 : vector<1x128xf32>
    %254 = arith.divf %252, %253 : vector<1x128xf32>
    %255 = vector.extract_strided_slice %238 {offsets = [0, 256], sizes = [1, 128], strides = [1, 1]} : vector<1x384xf32> to vector<1x128xf32>
    %256 = vector.extract_strided_slice %237 {offsets = [0, 256], sizes = [1, 128], strides = [1, 1]} : vector<1x384xf32> to vector<1x128xf32>
    %257 = arith.mulf %246, %256 : vector<1x128xf32>
    %258 = arith.addf %255, %257 : vector<1x128xf32>
    %259 = math.tanh %258 : vector<1x128xf32>
    %cst_58 = arith.constant 1.000000e+00 : f32
    %260 = vector.broadcast %cst_58 : f32 to vector<1x128xf32>
    %261 = arith.subf %260, %254 : vector<1x128xf32>
    %262 = arith.mulf %261, %259 : vector<1x128xf32>
    %263 = arith.mulf %254, %234 : vector<1x128xf32>
    %264 = arith.addf %262, %263 : vector<1x128xf32>
    %c7 = arith.constant 7 : index
    %c0_59 = arith.constant 0 : index
    %265 = vector.load %arg20[%c7, %c0_59] : memref<8x128xf32, #tpu.memory_space<vmem>>, vector<1x128xf32>
    tpu.vector_store %arg20[%c7, %c0_59], %264 {strides = array<i32>} : memref<8x128xf32, #tpu.memory_space<vmem>>, vector<1x128xf32>,
    %c0_60 = arith.constant 0 : index
    %c0_61 = arith.constant 0 : index
    %266 = vector.load %arg20[%c0_60, %c0_61] : memref<8x128xf32, #tpu.memory_space<vmem>>, vector<8x128xf32>
    %cst_62 = arith.constant dense<0.000000e+00> : vector<8x128xf32>
    %267 = tpu.matmul %6, %266, %cst_62 {dimension_numbers = #tpu.dot_dimension_numbers<[1], [0], [0], [1], [0, 0, 1, 1], [], []>} : vector<8x8xf32>, vector<8x128xf32>, vector<8x128xf32> -> vector<8x128xf32>
    %c64_i32 = arith.constant 64 : i32
    %268 = vector.broadcast %c64_i32 : i32 to vector<8x128xi32>
    %269 = arith.cmpi slt, %7, %268 : vector<8x128xi32>
    %270 = arith.select %269, %266, %267 : vector<8x128xi1>, vector<8x128xf32>
    %c1_63 = arith.constant 1 : index
    %c0_64 = arith.constant 0 : index
    %c0_65 = arith.constant 0 : index
    %271 = vector.load %arg5[%c1_63, %c0_64, %c0_65] : memref<4x128x384xf32, #tpu.memory_space<vmem>>, vector<1x128x384xf32>
    %272 = vector.shape_cast %271 : vector<1x128x384xf32> to vector<128x384xf32>
    %c1_66 = arith.constant 1 : index
    %c0_67 = arith.constant 0 : index
    %c0_68 = arith.constant 0 : index
    %273 = vector.load %arg6[%c1_66, %c0_67, %c0_68] : memref<4x128x384xf32, #tpu.memory_space<vmem>>, vector<1x128x384xf32>
    %274 = vector.shape_cast %273 : vector<1x128x384xf32> to vector<128x384xf32>
    %c1_69 = arith.constant 1 : index
    %c0_70 = arith.constant 0 : index
    %c0_71 = arith.constant 0 : index
    %275 = vector.load %arg7[%c1_69, %c0_70, %c0_71] : memref<4x128x384xf32, #tpu.memory_space<vmem>>, vector<1x128x384xf32>
    %276 = vector.shape_cast %275 : vector<1x128x384xf32> to vector<128x384xf32>
    %c1_72 = arith.constant 1 : index
    %c0_73 = arith.constant 0 : index
    %c0_74 = arith.constant 0 : index
    %277 = vector.load %arg8[%c1_72, %c0_73, %c0_74] : memref<4x1x384xf32, #tpu.memory_space<vmem>>, vector<1x1x384xf32>
    %278 = vector.shape_cast %277 : vector<1x1x384xf32> to vector<1x384xf32>
    %c1_75 = arith.constant 1 : index
    %c0_76 = arith.constant 0 : index
    %c0_77 = arith.constant 0 : index
    %279 = vector.load %arg9[%c1_75, %c0_76, %c0_77] : memref<4x1x384xf32, #tpu.memory_space<vmem>>, vector<1x1x384xf32>
    %280 = vector.shape_cast %279 : vector<1x1x384xf32> to vector<1x384xf32>
    %cst_78 = arith.constant dense<0.000000e+00> : vector<8x384xf32>
    %281 = tpu.matmul %8, %272, %cst_78 {dimension_numbers = #tpu.dot_dimension_numbers<[1], [0], [0], [1], [0, 0, 1, 1], [], []>} : vector<8x128xf32>, vector<128x384xf32>, vector<8x384xf32> -> vector<8x384xf32>
    %cst_79 = arith.constant dense<0.000000e+00> : vector<8x384xf32>
    %282 = tpu.matmul %8, %274, %cst_79 {dimension_numbers = #tpu.dot_dimension_numbers<[1], [0], [0], [1], [0, 0, 1, 1], [], []>} : vector<8x128xf32>, vector<128x384xf32>, vector<8x384xf32> -> vector<8x384xf32>
    %cst_80 = arith.constant dense<0.000000e+00> : vector<8x384xf32>
    %283 = tpu.matmul %6, %282, %cst_80 {dimension_numbers = #tpu.dot_dimension_numbers<[1], [0], [0], [1], [0, 0, 1, 1], [], []>} : vector<8x8xf32>, vector<8x384xf32>, vector<8x384xf32> -> vector<8x384xf32>
    %284 = arith.addf %281, %283 : vector<8x384xf32>
    %285 = vector.broadcast %278 : vector<1x384xf32> to vector<8x384xf32>
    %286 = arith.addf %284, %285 : vector<8x384xf32>
    %cst_81 = arith.constant 0.000000e+00 : f32
    %287 = vector.broadcast %cst_81 : f32 to vector<1x128xf32>
    %cst_82 = arith.constant dense<0.000000e+00> : vector<1x384xf32>
    %288 = tpu.matmul %287, %276, %cst_82 {dimension_numbers = #tpu.dot_dimension_numbers<[1], [0], [0], [1], [0, 0, 1, 1], [], []>} : vector<1x128xf32>, vector<128x384xf32>, vector<1x384xf32> -> vector<1x384xf32>
    %289 = arith.addf %288, %280 : vector<1x384xf32>
    %290 = vector.extract_strided_slice %286 {offsets = [0, 0], sizes = [1, 384], strides = [1, 1]} : vector<8x384xf32> to vector<1x384xf32>
    %291 = vector.extract_strided_slice %290 {offsets = [0, 0], sizes = [1, 128], strides = [1, 1]} : vector<1x384xf32> to vector<1x128xf32>
    %292 = vector.extract_strided_slice %289 {offsets = [0, 0], sizes = [1, 128], strides = [1, 1]} : vector<1x384xf32> to vector<1x128xf32>
    %293 = arith.addf %291, %292 : vector<1x128xf32>
    %294 = arith.negf %293 : vector<1x128xf32>
    %295 = math.exp %294 : vector<1x128xf32>
    %cst_83 = arith.constant 1.000000e+00 : f32
    %296 = vector.broadcast %cst_83 : f32 to vector<1x128xf32>
    %297 = arith.addf %296, %295 : vector<1x128xf32>
    %298 = arith.divf %296, %297 : vector<1x128xf32>
    %299 = vector.extract_strided_slice %290 {offsets = [0, 128], sizes = [1, 128], strides = [1, 1]} : vector<1x384xf32> to vector<1x128xf32>
    %300 = vector.extract_strided_slice %289 {offsets = [0, 128], sizes = [1, 128], strides = [1, 1]} : vector<1x384xf32> to vector<1x128xf32>
    %301 = arith.addf %299, %300 : vector<1x128xf32>
    %302 = arith.negf %301 : vector<1x128xf32>
    %303 = math.exp %302 : vector<1x128xf32>
    %cst_84 = arith.constant 1.000000e+00 : f32
    %304 = vector.broadcast %cst_84 : f32 to vector<1x128xf32>
    %305 = arith.addf %304, %303 : vector<1x128xf32>
    %306 = arith.divf %304, %305 : vector<1x128xf32>
    %307 = vector.extract_strided_slice %290 {offsets = [0, 256], sizes = [1, 128], strides = [1, 1]} : vector<1x384xf32> to vector<1x128xf32>
    %308 = vector.extract_strided_slice %289 {offsets = [0, 256], sizes = [1, 128], strides = [1, 1]} : vector<1x384xf32> to vector<1x128xf32>
    %309 = arith.mulf %298, %308 : vector<1x128xf32>
    %310 = arith.addf %307, %309 : vector<1x128xf32>
    %311 = math.tanh %310 : vector<1x128xf32>
    %cst_85 = arith.constant 1.000000e+00 : f32
    %312 = vector.broadcast %cst_85 : f32 to vector<1x128xf32>
    %313 = arith.subf %312, %306 : vector<1x128xf32>
    %314 = arith.mulf %313, %311 : vector<1x128xf32>
    %315 = arith.mulf %306, %287 : vector<1x128xf32>
    %316 = arith.addf %314, %315 : vector<1x128xf32>
    %c0_86 = arith.constant 0 : index
    %c0_87 = arith.constant 0 : index
    %317 = vector.load %arg21[%c0_86, %c0_87] : memref<8x128xf32, #tpu.memory_space<vmem>>, vector<1x128xf32>
    tpu.vector_store %arg21[%c0_86, %c0_87], %316 {strides = array<i32>} : memref<8x128xf32, #tpu.memory_space<vmem>>, vector<1x128xf32>,
    %cst_88 = arith.constant dense<0.000000e+00> : vector<1x384xf32>
    %318 = tpu.matmul %316, %276, %cst_88 {dimension_numbers = #tpu.dot_dimension_numbers<[1], [0], [0], [1], [0, 0, 1, 1], [], []>} : vector<1x128xf32>, vector<128x384xf32>, vector<1x384xf32> -> vector<1x384xf32>
    %319 = arith.addf %318, %280 : vector<1x384xf32>
    %320 = vector.extract_strided_slice %286 {offsets = [1, 0], sizes = [1, 384], strides = [1, 1]} : vector<8x384xf32> to vector<1x384xf32>
    %321 = vector.extract_strided_slice %320 {offsets = [0, 0], sizes = [1, 128], strides = [1, 1]} : vector<1x384xf32> to vector<1x128xf32>
    %322 = vector.extract_strided_slice %319 {offsets = [0, 0], sizes = [1, 128], strides = [1, 1]} : vector<1x384xf32> to vector<1x128xf32>
    %323 = arith.addf %321, %322 : vector<1x128xf32>
    %324 = arith.negf %323 : vector<1x128xf32>
    %325 = math.exp %324 : vector<1x128xf32>
    %cst_89 = arith.constant 1.000000e+00 : f32
    %326 = vector.broadcast %cst_89 : f32 to vector<1x128xf32>
    %327 = arith.addf %326, %325 : vector<1x128xf32>
    %328 = arith.divf %326, %327 : vector<1x128xf32>
    %329 = vector.extract_strided_slice %320 {offsets = [0, 128], sizes = [1, 128], strides = [1, 1]} : vector<1x384xf32> to vector<1x128xf32>
    %330 = vector.extract_strided_slice %319 {offsets = [0, 128], sizes = [1, 128], strides = [1, 1]} : vector<1x384xf32> to vector<1x128xf32>
    %331 = arith.addf %329, %330 : vector<1x128xf32>
    %332 = arith.negf %331 : vector<1x128xf32>
    %333 = math.exp %332 : vector<1x128xf32>
    %cst_90 = arith.constant 1.000000e+00 : f32
    %334 = vector.broadcast %cst_90 : f32 to vector<1x128xf32>
    %335 = arith.addf %334, %333 : vector<1x128xf32>
    %336 = arith.divf %334, %335 : vector<1x128xf32>
    %337 = vector.extract_strided_slice %320 {offsets = [0, 256], sizes = [1, 128], strides = [1, 1]} : vector<1x384xf32> to vector<1x128xf32>
    %338 = vector.extract_strided_slice %319 {offsets = [0, 256], sizes = [1, 128], strides = [1, 1]} : vector<1x384xf32> to vector<1x128xf32>
    %339 = arith.mulf %328, %338 : vector<1x128xf32>
    %340 = arith.addf %337, %339 : vector<1x128xf32>
    %341 = math.tanh %340 : vector<1x128xf32>
    %cst_91 = arith.constant 1.000000e+00 : f32
    %342 = vector.broadcast %cst_91 : f32 to vector<1x128xf32>
    %343 = arith.subf %342, %336 : vector<1x128xf32>
    %344 = arith.mulf %343, %341 : vector<1x128xf32>
    %345 = arith.mulf %336, %316 : vector<1x128xf32>
    %346 = arith.addf %344, %345 : vector<1x128xf32>
    %c1_92 = arith.constant 1 : index
    %c0_93 = arith.constant 0 : index
    %347 = vector.load %arg21[%c1_92, %c0_93] : memref<8x128xf32, #tpu.memory_space<vmem>>, vector<1x128xf32>
    tpu.vector_store %arg21[%c1_92, %c0_93], %346 {strides = array<i32>} : memref<8x128xf32, #tpu.memory_space<vmem>>, vector<1x128xf32>,
    %cst_94 = arith.constant dense<0.000000e+00> : vector<1x384xf32>
    %348 = tpu.matmul %346, %276, %cst_94 {dimension_numbers = #tpu.dot_dimension_numbers<[1], [0], [0], [1], [0, 0, 1, 1], [], []>} : vector<1x128xf32>, vector<128x384xf32>, vector<1x384xf32> -> vector<1x384xf32>
    %349 = arith.addf %348, %280 : vector<1x384xf32>
    %350 = vector.extract_strided_slice %286 {offsets = [2, 0], sizes = [1, 384], strides = [1, 1]} : vector<8x384xf32> to vector<1x384xf32>
    %351 = vector.extract_strided_slice %350 {offsets = [0, 0], sizes = [1, 128], strides = [1, 1]} : vector<1x384xf32> to vector<1x128xf32>
    %352 = vector.extract_strided_slice %349 {offsets = [0, 0], sizes = [1, 128], strides = [1, 1]} : vector<1x384xf32> to vector<1x128xf32>
    %353 = arith.addf %351, %352 : vector<1x128xf32>
    %354 = arith.negf %353 : vector<1x128xf32>
    %355 = math.exp %354 : vector<1x128xf32>
    %cst_95 = arith.constant 1.000000e+00 : f32
    %356 = vector.broadcast %cst_95 : f32 to vector<1x128xf32>
    %357 = arith.addf %356, %355 : vector<1x128xf32>
    %358 = arith.divf %356, %357 : vector<1x128xf32>
    %359 = vector.extract_strided_slice %350 {offsets = [0, 128], sizes = [1, 128], strides = [1, 1]} : vector<1x384xf32> to vector<1x128xf32>
    %360 = vector.extract_strided_slice %349 {offsets = [0, 128], sizes = [1, 128], strides = [1, 1]} : vector<1x384xf32> to vector<1x128xf32>
    %361 = arith.addf %359, %360 : vector<1x128xf32>
    %362 = arith.negf %361 : vector<1x128xf32>
    %363 = math.exp %362 : vector<1x128xf32>
    %cst_96 = arith.constant 1.000000e+00 : f32
    %364 = vector.broadcast %cst_96 : f32 to vector<1x128xf32>
    %365 = arith.addf %364, %363 : vector<1x128xf32>
    %366 = arith.divf %364, %365 : vector<1x128xf32>
    %367 = vector.extract_strided_slice %350 {offsets = [0, 256], sizes = [1, 128], strides = [1, 1]} : vector<1x384xf32> to vector<1x128xf32>
    %368 = vector.extract_strided_slice %349 {offsets = [0, 256], sizes = [1, 128], strides = [1, 1]} : vector<1x384xf32> to vector<1x128xf32>
    %369 = arith.mulf %358, %368 : vector<1x128xf32>
    %370 = arith.addf %367, %369 : vector<1x128xf32>
    %371 = math.tanh %370 : vector<1x128xf32>
    %cst_97 = arith.constant 1.000000e+00 : f32
    %372 = vector.broadcast %cst_97 : f32 to vector<1x128xf32>
    %373 = arith.subf %372, %366 : vector<1x128xf32>
    %374 = arith.mulf %373, %371 : vector<1x128xf32>
    %375 = arith.mulf %366, %346 : vector<1x128xf32>
    %376 = arith.addf %374, %375 : vector<1x128xf32>
    %c2_98 = arith.constant 2 : index
    %c0_99 = arith.constant 0 : index
    %377 = vector.load %arg21[%c2_98, %c0_99] : memref<8x128xf32, #tpu.memory_space<vmem>>, vector<1x128xf32>
    tpu.vector_store %arg21[%c2_98, %c0_99], %376 {strides = array<i32>} : memref<8x128xf32, #tpu.memory_space<vmem>>, vector<1x128xf32>,
    %cst_100 = arith.constant dense<0.000000e+00> : vector<1x384xf32>
    %378 = tpu.matmul %376, %276, %cst_100 {dimension_numbers = #tpu.dot_dimension_numbers<[1], [0], [0], [1], [0, 0, 1, 1], [], []>} : vector<1x128xf32>, vector<128x384xf32>, vector<1x384xf32> -> vector<1x384xf32>
    %379 = arith.addf %378, %280 : vector<1x384xf32>
    %380 = vector.extract_strided_slice %286 {offsets = [3, 0], sizes = [1, 384], strides = [1, 1]} : vector<8x384xf32> to vector<1x384xf32>
    %381 = vector.extract_strided_slice %380 {offsets = [0, 0], sizes = [1, 128], strides = [1, 1]} : vector<1x384xf32> to vector<1x128xf32>
    %382 = vector.extract_strided_slice %379 {offsets = [0, 0], sizes = [1, 128], strides = [1, 1]} : vector<1x384xf32> to vector<1x128xf32>
    %383 = arith.addf %381, %382 : vector<1x128xf32>
    %384 = arith.negf %383 : vector<1x128xf32>
    %385 = math.exp %384 : vector<1x128xf32>
    %cst_101 = arith.constant 1.000000e+00 : f32
    %386 = vector.broadcast %cst_101 : f32 to vector<1x128xf32>
    %387 = arith.addf %386, %385 : vector<1x128xf32>
    %388 = arith.divf %386, %387 : vector<1x128xf32>
    %389 = vector.extract_strided_slice %380 {offsets = [0, 128], sizes = [1, 128], strides = [1, 1]} : vector<1x384xf32> to vector<1x128xf32>
    %390 = vector.extract_strided_slice %379 {offsets = [0, 128], sizes = [1, 128], strides = [1, 1]} : vector<1x384xf32> to vector<1x128xf32>
    %391 = arith.addf %389, %390 : vector<1x128xf32>
    %392 = arith.negf %391 : vector<1x128xf32>
    %393 = math.exp %392 : vector<1x128xf32>
    %cst_102 = arith.constant 1.000000e+00 : f32
    %394 = vector.broadcast %cst_102 : f32 to vector<1x128xf32>
    %395 = arith.addf %394, %393 : vector<1x128xf32>
    %396 = arith.divf %394, %395 : vector<1x128xf32>
    %397 = vector.extract_strided_slice %380 {offsets = [0, 256], sizes = [1, 128], strides = [1, 1]} : vector<1x384xf32> to vector<1x128xf32>
    %398 = vector.extract_strided_slice %379 {offsets = [0, 256], sizes = [1, 128], strides = [1, 1]} : vector<1x384xf32> to vector<1x128xf32>
    %399 = arith.mulf %388, %398 : vector<1x128xf32>
    %400 = arith.addf %397, %399 : vector<1x128xf32>
    %401 = math.tanh %400 : vector<1x128xf32>
    %cst_103 = arith.constant 1.000000e+00 : f32
    %402 = vector.broadcast %cst_103 : f32 to vector<1x128xf32>
    %403 = arith.subf %402, %396 : vector<1x128xf32>
    %404 = arith.mulf %403, %401 : vector<1x128xf32>
    %405 = arith.mulf %396, %376 : vector<1x128xf32>
    %406 = arith.addf %404, %405 : vector<1x128xf32>
    %c3_104 = arith.constant 3 : index
    %c0_105 = arith.constant 0 : index
    %407 = vector.load %arg21[%c3_104, %c0_105] : memref<8x128xf32, #tpu.memory_space<vmem>>, vector<1x128xf32>
    tpu.vector_store %arg21[%c3_104, %c0_105], %406 {strides = array<i32>} : memref<8x128xf32, #tpu.memory_space<vmem>>, vector<1x128xf32>,
    %cst_106 = arith.constant dense<0.000000e+00> : vector<1x384xf32>
    %408 = tpu.matmul %406, %276, %cst_106 {dimension_numbers = #tpu.dot_dimension_numbers<[1], [0], [0], [1], [0, 0, 1, 1], [], []>} : vector<1x128xf32>, vector<128x384xf32>, vector<1x384xf32> -> vector<1x384xf32>
    %409 = arith.addf %408, %280 : vector<1x384xf32>
    %410 = vector.extract_strided_slice %286 {offsets = [4, 0], sizes = [1, 384], strides = [1, 1]} : vector<8x384xf32> to vector<1x384xf32>
    %411 = vector.extract_strided_slice %410 {offsets = [0, 0], sizes = [1, 128], strides = [1, 1]} : vector<1x384xf32> to vector<1x128xf32>
    %412 = vector.extract_strided_slice %409 {offsets = [0, 0], sizes = [1, 128], strides = [1, 1]} : vector<1x384xf32> to vector<1x128xf32>
    %413 = arith.addf %411, %412 : vector<1x128xf32>
    %414 = arith.negf %413 : vector<1x128xf32>
    %415 = math.exp %414 : vector<1x128xf32>
    %cst_107 = arith.constant 1.000000e+00 : f32
    %416 = vector.broadcast %cst_107 : f32 to vector<1x128xf32>
    %417 = arith.addf %416, %415 : vector<1x128xf32>
    %418 = arith.divf %416, %417 : vector<1x128xf32>
    %419 = vector.extract_strided_slice %410 {offsets = [0, 128], sizes = [1, 128], strides = [1, 1]} : vector<1x384xf32> to vector<1x128xf32>
    %420 = vector.extract_strided_slice %409 {offsets = [0, 128], sizes = [1, 128], strides = [1, 1]} : vector<1x384xf32> to vector<1x128xf32>
    %421 = arith.addf %419, %420 : vector<1x128xf32>
    %422 = arith.negf %421 : vector<1x128xf32>
    %423 = math.exp %422 : vector<1x128xf32>
    %cst_108 = arith.constant 1.000000e+00 : f32
    %424 = vector.broadcast %cst_108 : f32 to vector<1x128xf32>
    %425 = arith.addf %424, %423 : vector<1x128xf32>
    %426 = arith.divf %424, %425 : vector<1x128xf32>
    %427 = vector.extract_strided_slice %410 {offsets = [0, 256], sizes = [1, 128], strides = [1, 1]} : vector<1x384xf32> to vector<1x128xf32>
    %428 = vector.extract_strided_slice %409 {offsets = [0, 256], sizes = [1, 128], strides = [1, 1]} : vector<1x384xf32> to vector<1x128xf32>
    %429 = arith.mulf %418, %428 : vector<1x128xf32>
    %430 = arith.addf %427, %429 : vector<1x128xf32>
    %431 = math.tanh %430 : vector<1x128xf32>
    %cst_109 = arith.constant 1.000000e+00 : f32
    %432 = vector.broadcast %cst_109 : f32 to vector<1x128xf32>
    %433 = arith.subf %432, %426 : vector<1x128xf32>
    %434 = arith.mulf %433, %431 : vector<1x128xf32>
    %435 = arith.mulf %426, %406 : vector<1x128xf32>
    %436 = arith.addf %434, %435 : vector<1x128xf32>
    %c4_110 = arith.constant 4 : index
    %c0_111 = arith.constant 0 : index
    %437 = vector.load %arg21[%c4_110, %c0_111] : memref<8x128xf32, #tpu.memory_space<vmem>>, vector<1x128xf32>
    tpu.vector_store %arg21[%c4_110, %c0_111], %436 {strides = array<i32>} : memref<8x128xf32, #tpu.memory_space<vmem>>, vector<1x128xf32>,
    %cst_112 = arith.constant dense<0.000000e+00> : vector<1x384xf32>
    %438 = tpu.matmul %436, %276, %cst_112 {dimension_numbers = #tpu.dot_dimension_numbers<[1], [0], [0], [1], [0, 0, 1, 1], [], []>} : vector<1x128xf32>, vector<128x384xf32>, vector<1x384xf32> -> vector<1x384xf32>
    %439 = arith.addf %438, %280 : vector<1x384xf32>
    %440 = vector.extract_strided_slice %286 {offsets = [5, 0], sizes = [1, 384], strides = [1, 1]} : vector<8x384xf32> to vector<1x384xf32>
    %441 = vector.extract_strided_slice %440 {offsets = [0, 0], sizes = [1, 128], strides = [1, 1]} : vector<1x384xf32> to vector<1x128xf32>
    %442 = vector.extract_strided_slice %439 {offsets = [0, 0], sizes = [1, 128], strides = [1, 1]} : vector<1x384xf32> to vector<1x128xf32>
    %443 = arith.addf %441, %442 : vector<1x128xf32>
    %444 = arith.negf %443 : vector<1x128xf32>
    %445 = math.exp %444 : vector<1x128xf32>
    %cst_113 = arith.constant 1.000000e+00 : f32
    %446 = vector.broadcast %cst_113 : f32 to vector<1x128xf32>
    %447 = arith.addf %446, %445 : vector<1x128xf32>
    %448 = arith.divf %446, %447 : vector<1x128xf32>
    %449 = vector.extract_strided_slice %440 {offsets = [0, 128], sizes = [1, 128], strides = [1, 1]} : vector<1x384xf32> to vector<1x128xf32>
    %450 = vector.extract_strided_slice %439 {offsets = [0, 128], sizes = [1, 128], strides = [1, 1]} : vector<1x384xf32> to vector<1x128xf32>
    %451 = arith.addf %449, %450 : vector<1x128xf32>
    %452 = arith.negf %451 : vector<1x128xf32>
    %453 = math.exp %452 : vector<1x128xf32>
    %cst_114 = arith.constant 1.000000e+00 : f32
    %454 = vector.broadcast %cst_114 : f32 to vector<1x128xf32>
    %455 = arith.addf %454, %453 : vector<1x128xf32>
    %456 = arith.divf %454, %455 : vector<1x128xf32>
    %457 = vector.extract_strided_slice %440 {offsets = [0, 256], sizes = [1, 128], strides = [1, 1]} : vector<1x384xf32> to vector<1x128xf32>
    %458 = vector.extract_strided_slice %439 {offsets = [0, 256], sizes = [1, 128], strides = [1, 1]} : vector<1x384xf32> to vector<1x128xf32>
    %459 = arith.mulf %448, %458 : vector<1x128xf32>
    %460 = arith.addf %457, %459 : vector<1x128xf32>
    %461 = math.tanh %460 : vector<1x128xf32>
    %cst_115 = arith.constant 1.000000e+00 : f32
    %462 = vector.broadcast %cst_115 : f32 to vector<1x128xf32>
    %463 = arith.subf %462, %456 : vector<1x128xf32>
    %464 = arith.mulf %463, %461 : vector<1x128xf32>
    %465 = arith.mulf %456, %436 : vector<1x128xf32>
    %466 = arith.addf %464, %465 : vector<1x128xf32>
    %c5_116 = arith.constant 5 : index
    %c0_117 = arith.constant 0 : index
    %467 = vector.load %arg21[%c5_116, %c0_117] : memref<8x128xf32, #tpu.memory_space<vmem>>, vector<1x128xf32>
    tpu.vector_store %arg21[%c5_116, %c0_117], %466 {strides = array<i32>} : memref<8x128xf32, #tpu.memory_space<vmem>>, vector<1x128xf32>,
    %cst_118 = arith.constant dense<0.000000e+00> : vector<1x384xf32>
    %468 = tpu.matmul %466, %276, %cst_118 {dimension_numbers = #tpu.dot_dimension_numbers<[1], [0], [0], [1], [0, 0, 1, 1], [], []>} : vector<1x128xf32>, vector<128x384xf32>, vector<1x384xf32> -> vector<1x384xf32>
    %469 = arith.addf %468, %280 : vector<1x384xf32>
    %470 = vector.extract_strided_slice %286 {offsets = [6, 0], sizes = [1, 384], strides = [1, 1]} : vector<8x384xf32> to vector<1x384xf32>
    %471 = vector.extract_strided_slice %470 {offsets = [0, 0], sizes = [1, 128], strides = [1, 1]} : vector<1x384xf32> to vector<1x128xf32>
    %472 = vector.extract_strided_slice %469 {offsets = [0, 0], sizes = [1, 128], strides = [1, 1]} : vector<1x384xf32> to vector<1x128xf32>
    %473 = arith.addf %471, %472 : vector<1x128xf32>
    %474 = arith.negf %473 : vector<1x128xf32>
    %475 = math.exp %474 : vector<1x128xf32>
    %cst_119 = arith.constant 1.000000e+00 : f32
    %476 = vector.broadcast %cst_119 : f32 to vector<1x128xf32>
    %477 = arith.addf %476, %475 : vector<1x128xf32>
    %478 = arith.divf %476, %477 : vector<1x128xf32>
    %479 = vector.extract_strided_slice %470 {offsets = [0, 128], sizes = [1, 128], strides = [1, 1]} : vector<1x384xf32> to vector<1x128xf32>
    %480 = vector.extract_strided_slice %469 {offsets = [0, 128], sizes = [1, 128], strides = [1, 1]} : vector<1x384xf32> to vector<1x128xf32>
    %481 = arith.addf %479, %480 : vector<1x128xf32>
    %482 = arith.negf %481 : vector<1x128xf32>
    %483 = math.exp %482 : vector<1x128xf32>
    %cst_120 = arith.constant 1.000000e+00 : f32
    %484 = vector.broadcast %cst_120 : f32 to vector<1x128xf32>
    %485 = arith.addf %484, %483 : vector<1x128xf32>
    %486 = arith.divf %484, %485 : vector<1x128xf32>
    %487 = vector.extract_strided_slice %470 {offsets = [0, 256], sizes = [1, 128], strides = [1, 1]} : vector<1x384xf32> to vector<1x128xf32>
    %488 = vector.extract_strided_slice %469 {offsets = [0, 256], sizes = [1, 128], strides = [1, 1]} : vector<1x384xf32> to vector<1x128xf32>
    %489 = arith.mulf %478, %488 : vector<1x128xf32>
    %490 = arith.addf %487, %489 : vector<1x128xf32>
    %491 = math.tanh %490 : vector<1x128xf32>
    %cst_121 = arith.constant 1.000000e+00 : f32
    %492 = vector.broadcast %cst_121 : f32 to vector<1x128xf32>
    %493 = arith.subf %492, %486 : vector<1x128xf32>
    %494 = arith.mulf %493, %491 : vector<1x128xf32>
    %495 = arith.mulf %486, %466 : vector<1x128xf32>
    %496 = arith.addf %494, %495 : vector<1x128xf32>
    %c6_122 = arith.constant 6 : index
    %c0_123 = arith.constant 0 : index
    %497 = vector.load %arg21[%c6_122, %c0_123] : memref<8x128xf32, #tpu.memory_space<vmem>>, vector<1x128xf32>
    tpu.vector_store %arg21[%c6_122, %c0_123], %496 {strides = array<i32>} : memref<8x128xf32, #tpu.memory_space<vmem>>, vector<1x128xf32>,
    %cst_124 = arith.constant dense<0.000000e+00> : vector<1x384xf32>
    %498 = tpu.matmul %496, %276, %cst_124 {dimension_numbers = #tpu.dot_dimension_numbers<[1], [0], [0], [1], [0, 0, 1, 1], [], []>} : vector<1x128xf32>, vector<128x384xf32>, vector<1x384xf32> -> vector<1x384xf32>
    %499 = arith.addf %498, %280 : vector<1x384xf32>
    %500 = vector.extract_strided_slice %286 {offsets = [7, 0], sizes = [1, 384], strides = [1, 1]} : vector<8x384xf32> to vector<1x384xf32>
    %501 = vector.extract_strided_slice %500 {offsets = [0, 0], sizes = [1, 128], strides = [1, 1]} : vector<1x384xf32> to vector<1x128xf32>
    %502 = vector.extract_strided_slice %499 {offsets = [0, 0], sizes = [1, 128], strides = [1, 1]} : vector<1x384xf32> to vector<1x128xf32>
    %503 = arith.addf %501, %502 : vector<1x128xf32>
    %504 = arith.negf %503 : vector<1x128xf32>
    %505 = math.exp %504 : vector<1x128xf32>
    %cst_125 = arith.constant 1.000000e+00 : f32
    %506 = vector.broadcast %cst_125 : f32 to vector<1x128xf32>
    %507 = arith.addf %506, %505 : vector<1x128xf32>
    %508 = arith.divf %506, %507 : vector<1x128xf32>
    %509 = vector.extract_strided_slice %500 {offsets = [0, 128], sizes = [1, 128], strides = [1, 1]} : vector<1x384xf32> to vector<1x128xf32>
    %510 = vector.extract_strided_slice %499 {offsets = [0, 128], sizes = [1, 128], strides = [1, 1]} : vector<1x384xf32> to vector<1x128xf32>
    %511 = arith.addf %509, %510 : vector<1x128xf32>
    %512 = arith.negf %511 : vector<1x128xf32>
    %513 = math.exp %512 : vector<1x128xf32>
    %cst_126 = arith.constant 1.000000e+00 : f32
    %514 = vector.broadcast %cst_126 : f32 to vector<1x128xf32>
    %515 = arith.addf %514, %513 : vector<1x128xf32>
    %516 = arith.divf %514, %515 : vector<1x128xf32>
    %517 = vector.extract_strided_slice %500 {offsets = [0, 256], sizes = [1, 128], strides = [1, 1]} : vector<1x384xf32> to vector<1x128xf32>
    %518 = vector.extract_strided_slice %499 {offsets = [0, 256], sizes = [1, 128], strides = [1, 1]} : vector<1x384xf32> to vector<1x128xf32>
    %519 = arith.mulf %508, %518 : vector<1x128xf32>
    %520 = arith.addf %517, %519 : vector<1x128xf32>
    %521 = math.tanh %520 : vector<1x128xf32>
    %cst_127 = arith.constant 1.000000e+00 : f32
    %522 = vector.broadcast %cst_127 : f32 to vector<1x128xf32>
    %523 = arith.subf %522, %516 : vector<1x128xf32>
    %524 = arith.mulf %523, %521 : vector<1x128xf32>
    %525 = arith.mulf %516, %496 : vector<1x128xf32>
    %526 = arith.addf %524, %525 : vector<1x128xf32>
    %c7_128 = arith.constant 7 : index
    %c0_129 = arith.constant 0 : index
    %527 = vector.load %arg21[%c7_128, %c0_129] : memref<8x128xf32, #tpu.memory_space<vmem>>, vector<1x128xf32>
    tpu.vector_store %arg21[%c7_128, %c0_129], %526 {strides = array<i32>} : memref<8x128xf32, #tpu.memory_space<vmem>>, vector<1x128xf32>,
    %c0_130 = arith.constant 0 : index
    %c0_131 = arith.constant 0 : index
    %528 = vector.load %arg21[%c0_130, %c0_131] : memref<8x128xf32, #tpu.memory_space<vmem>>, vector<8x128xf32>
    %cst_132 = arith.constant dense<0.000000e+00> : vector<8x128xf32>
    %529 = tpu.matmul %6, %528, %cst_132 {dimension_numbers = #tpu.dot_dimension_numbers<[1], [0], [0], [1], [0, 0, 1, 1], [], []>} : vector<8x8xf32>, vector<8x128xf32>, vector<8x128xf32> -> vector<8x128xf32>
    %c64_i32_133 = arith.constant 64 : i32
    %530 = vector.broadcast %c64_i32_133 : i32 to vector<8x128xi32>
    %531 = arith.cmpi slt, %7, %530 : vector<8x128xi32>
    %532 = arith.select %531, %528, %529 : vector<8x128xi1>, vector<8x128xf32>
    %c0_134 = arith.constant 0 : index
    %c0_135 = arith.constant 0 : index
    %533 = vector.load %arg19[%c0_134, %c0_135] : memref<8x128xf32, #tpu.memory_space<vmem>>, vector<8x128xf32>
    tpu.vector_store %arg19[%c0_134, %c0_135], %532 {strides = array<i32>} : memref<8x128xf32, #tpu.memory_space<vmem>>, vector<8x128xf32>,
    %c0_136 = arith.constant 0 : index
    %534 = memref.load %arg0[%c0_136] : memref<1xi32, #tpu.memory_space<smem>>
    %c0_137 = arith.constant 0 : index
    %c0_138 = arith.constant 0 : index
    %c0_139 = arith.constant 0 : index
    %535 = vector.load %arg2[%c0_137, %c0_138, %c0_139] : memref<8x8x128xf32, #tpu.memory_space<vmem>>, vector<1x8x128xf32>
    %536 = vector.shape_cast %535 : vector<1x8x128xf32> to vector<8x128xf32>
    %537 = arith.mulf %536, %270 : vector<8x128xf32>
    %538 = vector.shape_cast %537 : vector<8x128xf32> to vector<1x8x128xf32>
    %cst_140 = arith.constant dense<0.000000e+00> : vector<1xf32>
    %539 = vector.multi_reduction <add>, %538, %cst_140 [1, 2] : vector<1x8x128xf32> to vector<1xf32>
    %540 = vector.shape_cast %539 : vector<1xf32> to vector<1x1x1xf32>
    %541 = vector.extract %540[0, 0, 0] : f32 from vector<1x1x1xf32>
    %c0_i32 = arith.constant 0 : i32
    %542 = arith.cmpi sgt, %534, %c0_i32 : i32
    %cst_141 = arith.constant -1.000000e+30 : f32
    %543 = arith.select %542, %541, %cst_141 : f32
    %c1_142 = arith.constant 1 : index
    %c0_143 = arith.constant 0 : index
    %c0_144 = arith.constant 0 : index
    %544 = vector.load %arg2[%c1_142, %c0_143, %c0_144] : memref<8x8x128xf32, #tpu.memory_space<vmem>>, vector<1x8x128xf32>
    %545 = vector.shape_cast %544 : vector<1x8x128xf32> to vector<8x128xf32>
    %546 = arith.mulf %545, %270 : vector<8x128xf32>
    %547 = vector.shape_cast %546 : vector<8x128xf32> to vector<1x8x128xf32>
    %cst_145 = arith.constant dense<0.000000e+00> : vector<1xf32>
    %548 = vector.multi_reduction <add>, %547, %cst_145 [1, 2] : vector<1x8x128xf32> to vector<1xf32>
    %549 = vector.shape_cast %548 : vector<1xf32> to vector<1x1x1xf32>
    %550 = vector.extract %549[0, 0, 0] : f32 from vector<1x1x1xf32>
    %c1_i32 = arith.constant 1 : i32
    %551 = arith.cmpi sgt, %534, %c1_i32 : i32
    %cst_146 = arith.constant -1.000000e+30 : f32
    %552 = arith.select %551, %550, %cst_146 : f32
    %c2_147 = arith.constant 2 : index
    %c0_148 = arith.constant 0 : index
    %c0_149 = arith.constant 0 : index
    %553 = vector.load %arg2[%c2_147, %c0_148, %c0_149] : memref<8x8x128xf32, #tpu.memory_space<vmem>>, vector<1x8x128xf32>
    %554 = vector.shape_cast %553 : vector<1x8x128xf32> to vector<8x128xf32>
    %555 = arith.mulf %554, %270 : vector<8x128xf32>
    %556 = vector.shape_cast %555 : vector<8x128xf32> to vector<1x8x128xf32>
    %cst_150 = arith.constant dense<0.000000e+00> : vector<1xf32>
    %557 = vector.multi_reduction <add>, %556, %cst_150 [1, 2] : vector<1x8x128xf32> to vector<1xf32>
    %558 = vector.shape_cast %557 : vector<1xf32> to vector<1x1x1xf32>
    %559 = vector.extract %558[0, 0, 0] : f32 from vector<1x1x1xf32>
    %c2_i32 = arith.constant 2 : i32
    %560 = arith.cmpi sgt, %534, %c2_i32 : i32
    %cst_151 = arith.constant -1.000000e+30 : f32
    %561 = arith.select %560, %559, %cst_151 : f32
    %c3_152 = arith.constant 3 : index
    %c0_153 = arith.constant 0 : index
    %c0_154 = arith.constant 0 : index
    %562 = vector.load %arg2[%c3_152, %c0_153, %c0_154] : memref<8x8x128xf32, #tpu.memory_space<vmem>>, vector<1x8x128xf32>
    %563 = vector.shape_cast %562 : vector<1x8x128xf32> to vector<8x128xf32>
    %564 = arith.mulf %563, %270 : vector<8x128xf32>
    %565 = vector.shape_cast %564 : vector<8x128xf32> to vector<1x8x128xf32>
    %cst_155 = arith.constant dense<0.000000e+00> : vector<1xf32>
    %566 = vector.multi_reduction <add>, %565, %cst_155 [1, 2] : vector<1x8x128xf32> to vector<1xf32>
    %567 = vector.shape_cast %566 : vector<1xf32> to vector<1x1x1xf32>
    %568 = vector.extract %567[0, 0, 0] : f32 from vector<1x1x1xf32>
    %c3_i32 = arith.constant 3 : i32
    %569 = arith.cmpi sgt, %534, %c3_i32 : i32
    %cst_156 = arith.constant -1.000000e+30 : f32
    %570 = arith.select %569, %568, %cst_156 : f32
    %c4_157 = arith.constant 4 : index
    %c0_158 = arith.constant 0 : index
    %c0_159 = arith.constant 0 : index
    %571 = vector.load %arg2[%c4_157, %c0_158, %c0_159] : memref<8x8x128xf32, #tpu.memory_space<vmem>>, vector<1x8x128xf32>
    %572 = vector.shape_cast %571 : vector<1x8x128xf32> to vector<8x128xf32>
    %573 = arith.mulf %572, %270 : vector<8x128xf32>
    %574 = vector.shape_cast %573 : vector<8x128xf32> to vector<1x8x128xf32>
    %cst_160 = arith.constant dense<0.000000e+00> : vector<1xf32>
    %575 = vector.multi_reduction <add>, %574, %cst_160 [1, 2] : vector<1x8x128xf32> to vector<1xf32>
    %576 = vector.shape_cast %575 : vector<1xf32> to vector<1x1x1xf32>
    %577 = vector.extract %576[0, 0, 0] : f32 from vector<1x1x1xf32>
    %c4_i32 = arith.constant 4 : i32
    %578 = arith.cmpi sgt, %534, %c4_i32 : i32
    %cst_161 = arith.constant -1.000000e+30 : f32
    %579 = arith.select %578, %577, %cst_161 : f32
    %c5_162 = arith.constant 5 : index
    %c0_163 = arith.constant 0 : index
    %c0_164 = arith.constant 0 : index
    %580 = vector.load %arg2[%c5_162, %c0_163, %c0_164] : memref<8x8x128xf32, #tpu.memory_space<vmem>>, vector<1x8x128xf32>
    %581 = vector.shape_cast %580 : vector<1x8x128xf32> to vector<8x128xf32>
    %582 = arith.mulf %581, %270 : vector<8x128xf32>
    %583 = vector.shape_cast %582 : vector<8x128xf32> to vector<1x8x128xf32>
    %cst_165 = arith.constant dense<0.000000e+00> : vector<1xf32>
    %584 = vector.multi_reduction <add>, %583, %cst_165 [1, 2] : vector<1x8x128xf32> to vector<1xf32>
    %585 = vector.shape_cast %584 : vector<1xf32> to vector<1x1x1xf32>
    %586 = vector.extract %585[0, 0, 0] : f32 from vector<1x1x1xf32>
    %c5_i32 = arith.constant 5 : i32
    %587 = arith.cmpi sgt, %534, %c5_i32 : i32
    %cst_166 = arith.constant -1.000000e+30 : f32
    %588 = arith.select %587, %586, %cst_166 : f32
    %c6_167 = arith.constant 6 : index
    %c0_168 = arith.constant 0 : index
    %c0_169 = arith.constant 0 : index
    %589 = vector.load %arg2[%c6_167, %c0_168, %c0_169] : memref<8x8x128xf32, #tpu.memory_space<vmem>>, vector<1x8x128xf32>
    %590 = vector.shape_cast %589 : vector<1x8x128xf32> to vector<8x128xf32>
    %591 = arith.mulf %590, %270 : vector<8x128xf32>
    %592 = vector.shape_cast %591 : vector<8x128xf32> to vector<1x8x128xf32>
    %cst_170 = arith.constant dense<0.000000e+00> : vector<1xf32>
    %593 = vector.multi_reduction <add>, %592, %cst_170 [1, 2] : vector<1x8x128xf32> to vector<1xf32>
    %594 = vector.shape_cast %593 : vector<1xf32> to vector<1x1x1xf32>
    %595 = vector.extract %594[0, 0, 0] : f32 from vector<1x1x1xf32>
    %c6_i32 = arith.constant 6 : i32
    %596 = arith.cmpi sgt, %534, %c6_i32 : i32
    %cst_171 = arith.constant -1.000000e+30 : f32
    %597 = arith.select %596, %595, %cst_171 : f32
    %c7_172 = arith.constant 7 : index
    %c0_173 = arith.constant 0 : index
    %c0_174 = arith.constant 0 : index
    %598 = vector.load %arg2[%c7_172, %c0_173, %c0_174] : memref<8x8x128xf32, #tpu.memory_space<vmem>>, vector<1x8x128xf32>
    %599 = vector.shape_cast %598 : vector<1x8x128xf32> to vector<8x128xf32>
    %600 = arith.mulf %599, %270 : vector<8x128xf32>
    %601 = vector.shape_cast %600 : vector<8x128xf32> to vector<1x8x128xf32>
    %cst_175 = arith.constant dense<0.000000e+00> : vector<1xf32>
    %602 = vector.multi_reduction <add>, %601, %cst_175 [1, 2] : vector<1x8x128xf32> to vector<1xf32>
    %603 = vector.shape_cast %602 : vector<1xf32> to vector<1x1x1xf32>
    %604 = vector.extract %603[0, 0, 0] : f32 from vector<1x1x1xf32>
    %c7_i32_176 = arith.constant 7 : i32
    %605 = arith.cmpi sgt, %534, %c7_i32_176 : i32
    %cst_177 = arith.constant -1.000000e+30 : f32
    %606 = arith.select %605, %604, %cst_177 : f32
    %607 = arith.maximumf %543, %552 : f32
    %608 = arith.maximumf %607, %561 : f32
    %609 = arith.maximumf %608, %570 : f32
    %610 = arith.maximumf %609, %579 : f32
    %611 = arith.maximumf %610, %588 : f32
    %612 = arith.maximumf %611, %597 : f32
    %613 = arith.maximumf %612, %606 : f32
    %614 = arith.subf %543, %613 : f32
    %615 = math.exp %614 : f32
    %616 = arith.subf %552, %613 : f32
    %617 = math.exp %616 : f32
    %618 = arith.subf %561, %613 : f32
    %619 = math.exp %618 : f32
    %620 = arith.subf %570, %613 : f32
    %621 = math.exp %620 : f32
    %622 = arith.subf %579, %613 : f32
    %623 = math.exp %622 : f32
    %624 = arith.subf %588, %613 : f32
    %625 = math.exp %624 : f32
    %626 = arith.subf %597, %613 : f32
    %627 = math.exp %626 : f32
    %628 = arith.subf %606, %613 : f32
    %629 = math.exp %628 : f32
    %630 = arith.addf %615, %617 : f32
    %631 = arith.addf %630, %619 : f32
    %632 = arith.addf %631, %621 : f32
    %633 = arith.addf %632, %623 : f32
    %634 = arith.addf %633, %625 : f32
    %635 = arith.addf %634, %627 : f32
    %636 = arith.addf %635, %629 : f32
    %cst_178 = arith.constant 1.000000e+00 : f32
    %637 = arith.divf %cst_178, %636 : f32
    %638 = arith.mulf %615, %637 : f32
    %639 = vector.broadcast %638 : f32 to vector<8x128xf32>
    %640 = arith.mulf %536, %639 : vector<8x128xf32>
    %641 = arith.mulf %617, %637 : f32
    %642 = vector.broadcast %641 : f32 to vector<8x128xf32>
    %643 = arith.mulf %545, %642 : vector<8x128xf32>
    %644 = arith.addf %640, %643 : vector<8x128xf32>
    %645 = arith.mulf %619, %637 : f32
    %646 = vector.broadcast %645 : f32 to vector<8x128xf32>
    %647 = arith.mulf %554, %646 : vector<8x128xf32>
    %648 = arith.addf %644, %647 : vector<8x128xf32>
    %649 = arith.mulf %621, %637 : f32
    %650 = vector.broadcast %649 : f32 to vector<8x128xf32>
    %651 = arith.mulf %563, %650 : vector<8x128xf32>
    %652 = arith.addf %648, %651 : vector<8x128xf32>
    %653 = arith.mulf %623, %637 : f32
    %654 = vector.broadcast %653 : f32 to vector<8x128xf32>
    %655 = arith.mulf %572, %654 : vector<8x128xf32>
    %656 = arith.addf %652, %655 : vector<8x128xf32>
    %657 = arith.mulf %625, %637 : f32
    %658 = vector.broadcast %657 : f32 to vector<8x128xf32>
    %659 = arith.mulf %581, %658 : vector<8x128xf32>
    %660 = arith.addf %656, %659 : vector<8x128xf32>
    %661 = arith.mulf %627, %637 : f32
    %662 = vector.broadcast %661 : f32 to vector<8x128xf32>
    %663 = arith.mulf %590, %662 : vector<8x128xf32>
    %664 = arith.addf %660, %663 : vector<8x128xf32>
    %665 = arith.mulf %629, %637 : f32
    %666 = vector.broadcast %665 : f32 to vector<8x128xf32>
    %667 = arith.mulf %599, %666 : vector<8x128xf32>
    %668 = arith.addf %664, %667 : vector<8x128xf32>
    %c0_179 = arith.constant 0 : index
    %c0_180 = arith.constant 0 : index
    %669 = vector.load %arg10[%c0_179, %c0_180] : memref<128x128xf32, #tpu.memory_space<vmem>>, vector<128x128xf32>
    %cst_181 = arith.constant dense<0.000000e+00> : vector<8x128xf32>
    %670 = tpu.matmul %668, %669, %cst_181 {dimension_numbers = #tpu.dot_dimension_numbers<[1], [0], [0], [1], [0, 0, 1, 1], [], []>} : vector<8x128xf32>, vector<128x128xf32>, vector<8x128xf32> -> vector<8x128xf32>
    %c0_182 = arith.constant 0 : index
    %c0_183 = arith.constant 0 : index
    %671 = vector.load %arg11[%c0_182, %c0_183] : memref<128x128xf32, #tpu.memory_space<vmem>>, vector<128x128xf32>
    %cst_184 = arith.constant dense<0.000000e+00> : vector<8x128xf32>
    %672 = tpu.matmul %270, %671, %cst_184 {dimension_numbers = #tpu.dot_dimension_numbers<[1], [0], [0], [1], [0, 0, 1, 1], [], []>} : vector<8x128xf32>, vector<128x128xf32>, vector<8x128xf32> -> vector<8x128xf32>
    %673 = arith.addf %670, %672 : vector<8x128xf32>
    %c0_185 = arith.constant 0 : index
    %c0_186 = arith.constant 0 : index
    %674 = vector.load %arg12[%c0_185, %c0_186] : memref<1x128xf32, #tpu.memory_space<vmem>>, vector<1x128xf32>
    %675 = vector.broadcast %674 : vector<1x128xf32> to vector<8x128xf32>
    %676 = arith.addf %673, %675 : vector<8x128xf32>
    %c2_187 = arith.constant 2 : index
    %c0_188 = arith.constant 0 : index
    %c0_189 = arith.constant 0 : index
    %677 = vector.load %arg5[%c2_187, %c0_188, %c0_189] : memref<4x128x384xf32, #tpu.memory_space<vmem>>, vector<1x128x384xf32>
    %678 = vector.shape_cast %677 : vector<1x128x384xf32> to vector<128x384xf32>
    %c2_190 = arith.constant 2 : index
    %c0_191 = arith.constant 0 : index
    %c0_192 = arith.constant 0 : index
    %679 = vector.load %arg6[%c2_190, %c0_191, %c0_192] : memref<4x128x384xf32, #tpu.memory_space<vmem>>, vector<1x128x384xf32>
    %680 = vector.shape_cast %679 : vector<1x128x384xf32> to vector<128x384xf32>
    %c2_193 = arith.constant 2 : index
    %c0_194 = arith.constant 0 : index
    %c0_195 = arith.constant 0 : index
    %681 = vector.load %arg7[%c2_193, %c0_194, %c0_195] : memref<4x128x384xf32, #tpu.memory_space<vmem>>, vector<1x128x384xf32>
    %682 = vector.shape_cast %681 : vector<1x128x384xf32> to vector<128x384xf32>
    %c2_196 = arith.constant 2 : index
    %c0_197 = arith.constant 0 : index
    %c0_198 = arith.constant 0 : index
    %683 = vector.load %arg8[%c2_196, %c0_197, %c0_198] : memref<4x1x384xf32, #tpu.memory_space<vmem>>, vector<1x1x384xf32>
    %684 = vector.shape_cast %683 : vector<1x1x384xf32> to vector<1x384xf32>
    %c2_199 = arith.constant 2 : index
    %c0_200 = arith.constant 0 : index
    %c0_201 = arith.constant 0 : index
    %685 = vector.load %arg9[%c2_199, %c0_200, %c0_201] : memref<4x1x384xf32, #tpu.memory_space<vmem>>, vector<1x1x384xf32>
    %686 = vector.shape_cast %685 : vector<1x1x384xf32> to vector<1x384xf32>
    %cst_202 = arith.constant dense<0.000000e+00> : vector<8x384xf32>
    %687 = tpu.matmul %676, %678, %cst_202 {dimension_numbers = #tpu.dot_dimension_numbers<[1], [0], [0], [1], [0, 0, 1, 1], [], []>} : vector<8x128xf32>, vector<128x384xf32>, vector<8x384xf32> -> vector<8x384xf32>
    %cst_203 = arith.constant dense<0.000000e+00> : vector<8x384xf32>
    %688 = tpu.matmul %676, %680, %cst_203 {dimension_numbers = #tpu.dot_dimension_numbers<[1], [0], [0], [1], [0, 0, 1, 1], [], []>} : vector<8x128xf32>, vector<128x384xf32>, vector<8x384xf32> -> vector<8x384xf32>
    %cst_204 = arith.constant dense<0.000000e+00> : vector<8x384xf32>
    %689 = tpu.matmul %6, %688, %cst_204 {dimension_numbers = #tpu.dot_dimension_numbers<[1], [0], [0], [1], [0, 0, 1, 1], [], []>} : vector<8x8xf32>, vector<8x384xf32>, vector<8x384xf32> -> vector<8x384xf32>
    %690 = arith.addf %687, %689 : vector<8x384xf32>
    %691 = vector.broadcast %684 : vector<1x384xf32> to vector<8x384xf32>
    %692 = arith.addf %690, %691 : vector<8x384xf32>
    %cst_205 = arith.constant 0.000000e+00 : f32
    %693 = vector.broadcast %cst_205 : f32 to vector<1x128xf32>
    %cst_206 = arith.constant dense<0.000000e+00> : vector<1x384xf32>
    %694 = tpu.matmul %693, %682, %cst_206 {dimension_numbers = #tpu.dot_dimension_numbers<[1], [0], [0], [1], [0, 0, 1, 1], [], []>} : vector<1x128xf32>, vector<128x384xf32>, vector<1x384xf32> -> vector<1x384xf32>
    %695 = arith.addf %694, %686 : vector<1x384xf32>
    %696 = vector.extract_strided_slice %692 {offsets = [0, 0], sizes = [1, 384], strides = [1, 1]} : vector<8x384xf32> to vector<1x384xf32>
    %697 = vector.extract_strided_slice %696 {offsets = [0, 0], sizes = [1, 128], strides = [1, 1]} : vector<1x384xf32> to vector<1x128xf32>
    %698 = vector.extract_strided_slice %695 {offsets = [0, 0], sizes = [1, 128], strides = [1, 1]} : vector<1x384xf32> to vector<1x128xf32>
    %699 = arith.addf %697, %698 : vector<1x128xf32>
    %700 = arith.negf %699 : vector<1x128xf32>
    %701 = math.exp %700 : vector<1x128xf32>
    %cst_207 = arith.constant 1.000000e+00 : f32
    %702 = vector.broadcast %cst_207 : f32 to vector<1x128xf32>
    %703 = arith.addf %702, %701 : vector<1x128xf32>
    %704 = arith.divf %702, %703 : vector<1x128xf32>
    %705 = vector.extract_strided_slice %696 {offsets = [0, 128], sizes = [1, 128], strides = [1, 1]} : vector<1x384xf32> to vector<1x128xf32>
    %706 = vector.extract_strided_slice %695 {offsets = [0, 128], sizes = [1, 128], strides = [1, 1]} : vector<1x384xf32> to vector<1x128xf32>
    %707 = arith.addf %705, %706 : vector<1x128xf32>
    %708 = arith.negf %707 : vector<1x128xf32>
    %709 = math.exp %708 : vector<1x128xf32>
    %cst_208 = arith.constant 1.000000e+00 : f32
    %710 = vector.broadcast %cst_208 : f32 to vector<1x128xf32>
    %711 = arith.addf %710, %709 : vector<1x128xf32>
    %712 = arith.divf %710, %711 : vector<1x128xf32>
    %713 = vector.extract_strided_slice %696 {offsets = [0, 256], sizes = [1, 128], strides = [1, 1]} : vector<1x384xf32> to vector<1x128xf32>
    %714 = vector.extract_strided_slice %695 {offsets = [0, 256], sizes = [1, 128], strides = [1, 1]} : vector<1x384xf32> to vector<1x128xf32>
    %715 = arith.mulf %704, %714 : vector<1x128xf32>
    %716 = arith.addf %713, %715 : vector<1x128xf32>
    %717 = math.tanh %716 : vector<1x128xf32>
    %cst_209 = arith.constant 1.000000e+00 : f32
    %718 = vector.broadcast %cst_209 : f32 to vector<1x128xf32>
    %719 = arith.subf %718, %712 : vector<1x128xf32>
    %720 = arith.mulf %719, %717 : vector<1x128xf32>
    %721 = arith.mulf %712, %693 : vector<1x128xf32>
    %722 = arith.addf %720, %721 : vector<1x128xf32>
    %c0_210 = arith.constant 0 : index
    %c0_211 = arith.constant 0 : index
    %723 = vector.load %arg22[%c0_210, %c0_211] : memref<8x128xf32, #tpu.memory_space<vmem>>, vector<1x128xf32>
    tpu.vector_store %arg22[%c0_210, %c0_211], %722 {strides = array<i32>} : memref<8x128xf32, #tpu.memory_space<vmem>>, vector<1x128xf32>,
    %cst_212 = arith.constant dense<0.000000e+00> : vector<1x384xf32>
    %724 = tpu.matmul %722, %682, %cst_212 {dimension_numbers = #tpu.dot_dimension_numbers<[1], [0], [0], [1], [0, 0, 1, 1], [], []>} : vector<1x128xf32>, vector<128x384xf32>, vector<1x384xf32> -> vector<1x384xf32>
    %725 = arith.addf %724, %686 : vector<1x384xf32>
    %726 = vector.extract_strided_slice %692 {offsets = [1, 0], sizes = [1, 384], strides = [1, 1]} : vector<8x384xf32> to vector<1x384xf32>
    %727 = vector.extract_strided_slice %726 {offsets = [0, 0], sizes = [1, 128], strides = [1, 1]} : vector<1x384xf32> to vector<1x128xf32>
    %728 = vector.extract_strided_slice %725 {offsets = [0, 0], sizes = [1, 128], strides = [1, 1]} : vector<1x384xf32> to vector<1x128xf32>
    %729 = arith.addf %727, %728 : vector<1x128xf32>
    %730 = arith.negf %729 : vector<1x128xf32>
    %731 = math.exp %730 : vector<1x128xf32>
    %cst_213 = arith.constant 1.000000e+00 : f32
    %732 = vector.broadcast %cst_213 : f32 to vector<1x128xf32>
    %733 = arith.addf %732, %731 : vector<1x128xf32>
    %734 = arith.divf %732, %733 : vector<1x128xf32>
    %735 = vector.extract_strided_slice %726 {offsets = [0, 128], sizes = [1, 128], strides = [1, 1]} : vector<1x384xf32> to vector<1x128xf32>
    %736 = vector.extract_strided_slice %725 {offsets = [0, 128], sizes = [1, 128], strides = [1, 1]} : vector<1x384xf32> to vector<1x128xf32>
    %737 = arith.addf %735, %736 : vector<1x128xf32>
    %738 = arith.negf %737 : vector<1x128xf32>
    %739 = math.exp %738 : vector<1x128xf32>
    %cst_214 = arith.constant 1.000000e+00 : f32
    %740 = vector.broadcast %cst_214 : f32 to vector<1x128xf32>
    %741 = arith.addf %740, %739 : vector<1x128xf32>
    %742 = arith.divf %740, %741 : vector<1x128xf32>
    %743 = vector.extract_strided_slice %726 {offsets = [0, 256], sizes = [1, 128], strides = [1, 1]} : vector<1x384xf32> to vector<1x128xf32>
    %744 = vector.extract_strided_slice %725 {offsets = [0, 256], sizes = [1, 128], strides = [1, 1]} : vector<1x384xf32> to vector<1x128xf32>
    %745 = arith.mulf %734, %744 : vector<1x128xf32>
    %746 = arith.addf %743, %745 : vector<1x128xf32>
    %747 = math.tanh %746 : vector<1x128xf32>
    %cst_215 = arith.constant 1.000000e+00 : f32
    %748 = vector.broadcast %cst_215 : f32 to vector<1x128xf32>
    %749 = arith.subf %748, %742 : vector<1x128xf32>
    %750 = arith.mulf %749, %747 : vector<1x128xf32>
    %751 = arith.mulf %742, %722 : vector<1x128xf32>
    %752 = arith.addf %750, %751 : vector<1x128xf32>
    %c1_216 = arith.constant 1 : index
    %c0_217 = arith.constant 0 : index
    %753 = vector.load %arg22[%c1_216, %c0_217] : memref<8x128xf32, #tpu.memory_space<vmem>>, vector<1x128xf32>
    tpu.vector_store %arg22[%c1_216, %c0_217], %752 {strides = array<i32>} : memref<8x128xf32, #tpu.memory_space<vmem>>, vector<1x128xf32>,
    %cst_218 = arith.constant dense<0.000000e+00> : vector<1x384xf32>
    %754 = tpu.matmul %752, %682, %cst_218 {dimension_numbers = #tpu.dot_dimension_numbers<[1], [0], [0], [1], [0, 0, 1, 1], [], []>} : vector<1x128xf32>, vector<128x384xf32>, vector<1x384xf32> -> vector<1x384xf32>
    %755 = arith.addf %754, %686 : vector<1x384xf32>
    %756 = vector.extract_strided_slice %692 {offsets = [2, 0], sizes = [1, 384], strides = [1, 1]} : vector<8x384xf32> to vector<1x384xf32>
    %757 = vector.extract_strided_slice %756 {offsets = [0, 0], sizes = [1, 128], strides = [1, 1]} : vector<1x384xf32> to vector<1x128xf32>
    %758 = vector.extract_strided_slice %755 {offsets = [0, 0], sizes = [1, 128], strides = [1, 1]} : vector<1x384xf32> to vector<1x128xf32>
    %759 = arith.addf %757, %758 : vector<1x128xf32>
    %760 = arith.negf %759 : vector<1x128xf32>
    %761 = math.exp %760 : vector<1x128xf32>
    %cst_219 = arith.constant 1.000000e+00 : f32
    %762 = vector.broadcast %cst_219 : f32 to vector<1x128xf32>
    %763 = arith.addf %762, %761 : vector<1x128xf32>
    %764 = arith.divf %762, %763 : vector<1x128xf32>
    %765 = vector.extract_strided_slice %756 {offsets = [0, 128], sizes = [1, 128], strides = [1, 1]} : vector<1x384xf32> to vector<1x128xf32>
    %766 = vector.extract_strided_slice %755 {offsets = [0, 128], sizes = [1, 128], strides = [1, 1]} : vector<1x384xf32> to vector<1x128xf32>
    %767 = arith.addf %765, %766 : vector<1x128xf32>
    %768 = arith.negf %767 : vector<1x128xf32>
    %769 = math.exp %768 : vector<1x128xf32>
    %cst_220 = arith.constant 1.000000e+00 : f32
    %770 = vector.broadcast %cst_220 : f32 to vector<1x128xf32>
    %771 = arith.addf %770, %769 : vector<1x128xf32>
    %772 = arith.divf %770, %771 : vector<1x128xf32>
    %773 = vector.extract_strided_slice %756 {offsets = [0, 256], sizes = [1, 128], strides = [1, 1]} : vector<1x384xf32> to vector<1x128xf32>
    %774 = vector.extract_strided_slice %755 {offsets = [0, 256], sizes = [1, 128], strides = [1, 1]} : vector<1x384xf32> to vector<1x128xf32>
    %775 = arith.mulf %764, %774 : vector<1x128xf32>
    %776 = arith.addf %773, %775 : vector<1x128xf32>
    %777 = math.tanh %776 : vector<1x128xf32>
    %cst_221 = arith.constant 1.000000e+00 : f32
    %778 = vector.broadcast %cst_221 : f32 to vector<1x128xf32>
    %779 = arith.subf %778, %772 : vector<1x128xf32>
    %780 = arith.mulf %779, %777 : vector<1x128xf32>
    %781 = arith.mulf %772, %752 : vector<1x128xf32>
    %782 = arith.addf %780, %781 : vector<1x128xf32>
    %c2_222 = arith.constant 2 : index
    %c0_223 = arith.constant 0 : index
    %783 = vector.load %arg22[%c2_222, %c0_223] : memref<8x128xf32, #tpu.memory_space<vmem>>, vector<1x128xf32>
    tpu.vector_store %arg22[%c2_222, %c0_223], %782 {strides = array<i32>} : memref<8x128xf32, #tpu.memory_space<vmem>>, vector<1x128xf32>,
    %cst_224 = arith.constant dense<0.000000e+00> : vector<1x384xf32>
    %784 = tpu.matmul %782, %682, %cst_224 {dimension_numbers = #tpu.dot_dimension_numbers<[1], [0], [0], [1], [0, 0, 1, 1], [], []>} : vector<1x128xf32>, vector<128x384xf32>, vector<1x384xf32> -> vector<1x384xf32>
    %785 = arith.addf %784, %686 : vector<1x384xf32>
    %786 = vector.extract_strided_slice %692 {offsets = [3, 0], sizes = [1, 384], strides = [1, 1]} : vector<8x384xf32> to vector<1x384xf32>
    %787 = vector.extract_strided_slice %786 {offsets = [0, 0], sizes = [1, 128], strides = [1, 1]} : vector<1x384xf32> to vector<1x128xf32>
    %788 = vector.extract_strided_slice %785 {offsets = [0, 0], sizes = [1, 128], strides = [1, 1]} : vector<1x384xf32> to vector<1x128xf32>
    %789 = arith.addf %787, %788 : vector<1x128xf32>
    %790 = arith.negf %789 : vector<1x128xf32>
    %791 = math.exp %790 : vector<1x128xf32>
    %cst_225 = arith.constant 1.000000e+00 : f32
    %792 = vector.broadcast %cst_225 : f32 to vector<1x128xf32>
    %793 = arith.addf %792, %791 : vector<1x128xf32>
    %794 = arith.divf %792, %793 : vector<1x128xf32>
    %795 = vector.extract_strided_slice %786 {offsets = [0, 128], sizes = [1, 128], strides = [1, 1]} : vector<1x384xf32> to vector<1x128xf32>
    %796 = vector.extract_strided_slice %785 {offsets = [0, 128], sizes = [1, 128], strides = [1, 1]} : vector<1x384xf32> to vector<1x128xf32>
    %797 = arith.addf %795, %796 : vector<1x128xf32>
    %798 = arith.negf %797 : vector<1x128xf32>
    %799 = math.exp %798 : vector<1x128xf32>
    %cst_226 = arith.constant 1.000000e+00 : f32
    %800 = vector.broadcast %cst_226 : f32 to vector<1x128xf32>
    %801 = arith.addf %800, %799 : vector<1x128xf32>
    %802 = arith.divf %800, %801 : vector<1x128xf32>
    %803 = vector.extract_strided_slice %786 {offsets = [0, 256], sizes = [1, 128], strides = [1, 1]} : vector<1x384xf32> to vector<1x128xf32>
    %804 = vector.extract_strided_slice %785 {offsets = [0, 256], sizes = [1, 128], strides = [1, 1]} : vector<1x384xf32> to vector<1x128xf32>
    %805 = arith.mulf %794, %804 : vector<1x128xf32>
    %806 = arith.addf %803, %805 : vector<1x128xf32>
    %807 = math.tanh %806 : vector<1x128xf32>
    %cst_227 = arith.constant 1.000000e+00 : f32
    %808 = vector.broadcast %cst_227 : f32 to vector<1x128xf32>
    %809 = arith.subf %808, %802 : vector<1x128xf32>
    %810 = arith.mulf %809, %807 : vector<1x128xf32>
    %811 = arith.mulf %802, %782 : vector<1x128xf32>
    %812 = arith.addf %810, %811 : vector<1x128xf32>
    %c3_228 = arith.constant 3 : index
    %c0_229 = arith.constant 0 : index
    %813 = vector.load %arg22[%c3_228, %c0_229] : memref<8x128xf32, #tpu.memory_space<vmem>>, vector<1x128xf32>
    tpu.vector_store %arg22[%c3_228, %c0_229], %812 {strides = array<i32>} : memref<8x128xf32, #tpu.memory_space<vmem>>, vector<1x128xf32>,
    %cst_230 = arith.constant dense<0.000000e+00> : vector<1x384xf32>
    %814 = tpu.matmul %812, %682, %cst_230 {dimension_numbers = #tpu.dot_dimension_numbers<[1], [0], [0], [1], [0, 0, 1, 1], [], []>} : vector<1x128xf32>, vector<128x384xf32>, vector<1x384xf32> -> vector<1x384xf32>
    %815 = arith.addf %814, %686 : vector<1x384xf32>
    %816 = vector.extract_strided_slice %692 {offsets = [4, 0], sizes = [1, 384], strides = [1, 1]} : vector<8x384xf32> to vector<1x384xf32>
    %817 = vector.extract_strided_slice %816 {offsets = [0, 0], sizes = [1, 128], strides = [1, 1]} : vector<1x384xf32> to vector<1x128xf32>
    %818 = vector.extract_strided_slice %815 {offsets = [0, 0], sizes = [1, 128], strides = [1, 1]} : vector<1x384xf32> to vector<1x128xf32>
    %819 = arith.addf %817, %818 : vector<1x128xf32>
    %820 = arith.negf %819 : vector<1x128xf32>
    %821 = math.exp %820 : vector<1x128xf32>
    %cst_231 = arith.constant 1.000000e+00 : f32
    %822 = vector.broadcast %cst_231 : f32 to vector<1x128xf32>
    %823 = arith.addf %822, %821 : vector<1x128xf32>
    %824 = arith.divf %822, %823 : vector<1x128xf32>
    %825 = vector.extract_strided_slice %816 {offsets = [0, 128], sizes = [1, 128], strides = [1, 1]} : vector<1x384xf32> to vector<1x128xf32>
    %826 = vector.extract_strided_slice %815 {offsets = [0, 128], sizes = [1, 128], strides = [1, 1]} : vector<1x384xf32> to vector<1x128xf32>
    %827 = arith.addf %825, %826 : vector<1x128xf32>
    %828 = arith.negf %827 : vector<1x128xf32>
    %829 = math.exp %828 : vector<1x128xf32>
    %cst_232 = arith.constant 1.000000e+00 : f32
    %830 = vector.broadcast %cst_232 : f32 to vector<1x128xf32>
    %831 = arith.addf %830, %829 : vector<1x128xf32>
    %832 = arith.divf %830, %831 : vector<1x128xf32>
    %833 = vector.extract_strided_slice %816 {offsets = [0, 256], sizes = [1, 128], strides = [1, 1]} : vector<1x384xf32> to vector<1x128xf32>
    %834 = vector.extract_strided_slice %815 {offsets = [0, 256], sizes = [1, 128], strides = [1, 1]} : vector<1x384xf32> to vector<1x128xf32>
    %835 = arith.mulf %824, %834 : vector<1x128xf32>
    %836 = arith.addf %833, %835 : vector<1x128xf32>
    %837 = math.tanh %836 : vector<1x128xf32>
    %cst_233 = arith.constant 1.000000e+00 : f32
    %838 = vector.broadcast %cst_233 : f32 to vector<1x128xf32>
    %839 = arith.subf %838, %832 : vector<1x128xf32>
    %840 = arith.mulf %839, %837 : vector<1x128xf32>
    %841 = arith.mulf %832, %812 : vector<1x128xf32>
    %842 = arith.addf %840, %841 : vector<1x128xf32>
    %c4_234 = arith.constant 4 : index
    %c0_235 = arith.constant 0 : index
    %843 = vector.load %arg22[%c4_234, %c0_235] : memref<8x128xf32, #tpu.memory_space<vmem>>, vector<1x128xf32>
    tpu.vector_store %arg22[%c4_234, %c0_235], %842 {strides = array<i32>} : memref<8x128xf32, #tpu.memory_space<vmem>>, vector<1x128xf32>,
    %cst_236 = arith.constant dense<0.000000e+00> : vector<1x384xf32>
    %844 = tpu.matmul %842, %682, %cst_236 {dimension_numbers = #tpu.dot_dimension_numbers<[1], [0], [0], [1], [0, 0, 1, 1], [], []>} : vector<1x128xf32>, vector<128x384xf32>, vector<1x384xf32> -> vector<1x384xf32>
    %845 = arith.addf %844, %686 : vector<1x384xf32>
    %846 = vector.extract_strided_slice %692 {offsets = [5, 0], sizes = [1, 384], strides = [1, 1]} : vector<8x384xf32> to vector<1x384xf32>
    %847 = vector.extract_strided_slice %846 {offsets = [0, 0], sizes = [1, 128], strides = [1, 1]} : vector<1x384xf32> to vector<1x128xf32>
    %848 = vector.extract_strided_slice %845 {offsets = [0, 0], sizes = [1, 128], strides = [1, 1]} : vector<1x384xf32> to vector<1x128xf32>
    %849 = arith.addf %847, %848 : vector<1x128xf32>
    %850 = arith.negf %849 : vector<1x128xf32>
    %851 = math.exp %850 : vector<1x128xf32>
    %cst_237 = arith.constant 1.000000e+00 : f32
    %852 = vector.broadcast %cst_237 : f32 to vector<1x128xf32>
    %853 = arith.addf %852, %851 : vector<1x128xf32>
    %854 = arith.divf %852, %853 : vector<1x128xf32>
    %855 = vector.extract_strided_slice %846 {offsets = [0, 128], sizes = [1, 128], strides = [1, 1]} : vector<1x384xf32> to vector<1x128xf32>
    %856 = vector.extract_strided_slice %845 {offsets = [0, 128], sizes = [1, 128], strides = [1, 1]} : vector<1x384xf32> to vector<1x128xf32>
    %857 = arith.addf %855, %856 : vector<1x128xf32>
    %858 = arith.negf %857 : vector<1x128xf32>
    %859 = math.exp %858 : vector<1x128xf32>
    %cst_238 = arith.constant 1.000000e+00 : f32
    %860 = vector.broadcast %cst_238 : f32 to vector<1x128xf32>
    %861 = arith.addf %860, %859 : vector<1x128xf32>
    %862 = arith.divf %860, %861 : vector<1x128xf32>
    %863 = vector.extract_strided_slice %846 {offsets = [0, 256], sizes = [1, 128], strides = [1, 1]} : vector<1x384xf32> to vector<1x128xf32>
    %864 = vector.extract_strided_slice %845 {offsets = [0, 256], sizes = [1, 128], strides = [1, 1]} : vector<1x384xf32> to vector<1x128xf32>
    %865 = arith.mulf %854, %864 : vector<1x128xf32>
    %866 = arith.addf %863, %865 : vector<1x128xf32>
    %867 = math.tanh %866 : vector<1x128xf32>
    %cst_239 = arith.constant 1.000000e+00 : f32
    %868 = vector.broadcast %cst_239 : f32 to vector<1x128xf32>
    %869 = arith.subf %868, %862 : vector<1x128xf32>
    %870 = arith.mulf %869, %867 : vector<1x128xf32>
    %871 = arith.mulf %862, %842 : vector<1x128xf32>
    %872 = arith.addf %870, %871 : vector<1x128xf32>
    %c5_240 = arith.constant 5 : index
    %c0_241 = arith.constant 0 : index
    %873 = vector.load %arg22[%c5_240, %c0_241] : memref<8x128xf32, #tpu.memory_space<vmem>>, vector<1x128xf32>
    tpu.vector_store %arg22[%c5_240, %c0_241], %872 {strides = array<i32>} : memref<8x128xf32, #tpu.memory_space<vmem>>, vector<1x128xf32>,
    %cst_242 = arith.constant dense<0.000000e+00> : vector<1x384xf32>
    %874 = tpu.matmul %872, %682, %cst_242 {dimension_numbers = #tpu.dot_dimension_numbers<[1], [0], [0], [1], [0, 0, 1, 1], [], []>} : vector<1x128xf32>, vector<128x384xf32>, vector<1x384xf32> -> vector<1x384xf32>
    %875 = arith.addf %874, %686 : vector<1x384xf32>
    %876 = vector.extract_strided_slice %692 {offsets = [6, 0], sizes = [1, 384], strides = [1, 1]} : vector<8x384xf32> to vector<1x384xf32>
    %877 = vector.extract_strided_slice %876 {offsets = [0, 0], sizes = [1, 128], strides = [1, 1]} : vector<1x384xf32> to vector<1x128xf32>
    %878 = vector.extract_strided_slice %875 {offsets = [0, 0], sizes = [1, 128], strides = [1, 1]} : vector<1x384xf32> to vector<1x128xf32>
    %879 = arith.addf %877, %878 : vector<1x128xf32>
    %880 = arith.negf %879 : vector<1x128xf32>
    %881 = math.exp %880 : vector<1x128xf32>
    %cst_243 = arith.constant 1.000000e+00 : f32
    %882 = vector.broadcast %cst_243 : f32 to vector<1x128xf32>
    %883 = arith.addf %882, %881 : vector<1x128xf32>
    %884 = arith.divf %882, %883 : vector<1x128xf32>
    %885 = vector.extract_strided_slice %876 {offsets = [0, 128], sizes = [1, 128], strides = [1, 1]} : vector<1x384xf32> to vector<1x128xf32>
    %886 = vector.extract_strided_slice %875 {offsets = [0, 128], sizes = [1, 128], strides = [1, 1]} : vector<1x384xf32> to vector<1x128xf32>
    %887 = arith.addf %885, %886 : vector<1x128xf32>
    %888 = arith.negf %887 : vector<1x128xf32>
    %889 = math.exp %888 : vector<1x128xf32>
    %cst_244 = arith.constant 1.000000e+00 : f32
    %890 = vector.broadcast %cst_244 : f32 to vector<1x128xf32>
    %891 = arith.addf %890, %889 : vector<1x128xf32>
    %892 = arith.divf %890, %891 : vector<1x128xf32>
    %893 = vector.extract_strided_slice %876 {offsets = [0, 256], sizes = [1, 128], strides = [1, 1]} : vector<1x384xf32> to vector<1x128xf32>
    %894 = vector.extract_strided_slice %875 {offsets = [0, 256], sizes = [1, 128], strides = [1, 1]} : vector<1x384xf32> to vector<1x128xf32>
    %895 = arith.mulf %884, %894 : vector<1x128xf32>
    %896 = arith.addf %893, %895 : vector<1x128xf32>
    %897 = math.tanh %896 : vector<1x128xf32>
    %cst_245 = arith.constant 1.000000e+00 : f32
    %898 = vector.broadcast %cst_245 : f32 to vector<1x128xf32>
    %899 = arith.subf %898, %892 : vector<1x128xf32>
    %900 = arith.mulf %899, %897 : vector<1x128xf32>
    %901 = arith.mulf %892, %872 : vector<1x128xf32>
    %902 = arith.addf %900, %901 : vector<1x128xf32>
    %c6_246 = arith.constant 6 : index
    %c0_247 = arith.constant 0 : index
    %903 = vector.load %arg22[%c6_246, %c0_247] : memref<8x128xf32, #tpu.memory_space<vmem>>, vector<1x128xf32>
    tpu.vector_store %arg22[%c6_246, %c0_247], %902 {strides = array<i32>} : memref<8x128xf32, #tpu.memory_space<vmem>>, vector<1x128xf32>,
    %cst_248 = arith.constant dense<0.000000e+00> : vector<1x384xf32>
    %904 = tpu.matmul %902, %682, %cst_248 {dimension_numbers = #tpu.dot_dimension_numbers<[1], [0], [0], [1], [0, 0, 1, 1], [], []>} : vector<1x128xf32>, vector<128x384xf32>, vector<1x384xf32> -> vector<1x384xf32>
    %905 = arith.addf %904, %686 : vector<1x384xf32>
    %906 = vector.extract_strided_slice %692 {offsets = [7, 0], sizes = [1, 384], strides = [1, 1]} : vector<8x384xf32> to vector<1x384xf32>
    %907 = vector.extract_strided_slice %906 {offsets = [0, 0], sizes = [1, 128], strides = [1, 1]} : vector<1x384xf32> to vector<1x128xf32>
    %908 = vector.extract_strided_slice %905 {offsets = [0, 0], sizes = [1, 128], strides = [1, 1]} : vector<1x384xf32> to vector<1x128xf32>
    %909 = arith.addf %907, %908 : vector<1x128xf32>
    %910 = arith.negf %909 : vector<1x128xf32>
    %911 = math.exp %910 : vector<1x128xf32>
    %cst_249 = arith.constant 1.000000e+00 : f32
    %912 = vector.broadcast %cst_249 : f32 to vector<1x128xf32>
    %913 = arith.addf %912, %911 : vector<1x128xf32>
    %914 = arith.divf %912, %913 : vector<1x128xf32>
    %915 = vector.extract_strided_slice %906 {offsets = [0, 128], sizes = [1, 128], strides = [1, 1]} : vector<1x384xf32> to vector<1x128xf32>
    %916 = vector.extract_strided_slice %905 {offsets = [0, 128], sizes = [1, 128], strides = [1, 1]} : vector<1x384xf32> to vector<1x128xf32>
    %917 = arith.addf %915, %916 : vector<1x128xf32>
    %918 = arith.negf %917 : vector<1x128xf32>
    %919 = math.exp %918 : vector<1x128xf32>
    %cst_250 = arith.constant 1.000000e+00 : f32
    %920 = vector.broadcast %cst_250 : f32 to vector<1x128xf32>
    %921 = arith.addf %920, %919 : vector<1x128xf32>
    %922 = arith.divf %920, %921 : vector<1x128xf32>
    %923 = vector.extract_strided_slice %906 {offsets = [0, 256], sizes = [1, 128], strides = [1, 1]} : vector<1x384xf32> to vector<1x128xf32>
    %924 = vector.extract_strided_slice %905 {offsets = [0, 256], sizes = [1, 128], strides = [1, 1]} : vector<1x384xf32> to vector<1x128xf32>
    %925 = arith.mulf %914, %924 : vector<1x128xf32>
    %926 = arith.addf %923, %925 : vector<1x128xf32>
    %927 = math.tanh %926 : vector<1x128xf32>
    %cst_251 = arith.constant 1.000000e+00 : f32
    %928 = vector.broadcast %cst_251 : f32 to vector<1x128xf32>
    %929 = arith.subf %928, %922 : vector<1x128xf32>
    %930 = arith.mulf %929, %927 : vector<1x128xf32>
    %931 = arith.mulf %922, %902 : vector<1x128xf32>
    %932 = arith.addf %930, %931 : vector<1x128xf32>
    %c7_252 = arith.constant 7 : index
    %c0_253 = arith.constant 0 : index
    %933 = vector.load %arg22[%c7_252, %c0_253] : memref<8x128xf32, #tpu.memory_space<vmem>>, vector<1x128xf32>
    tpu.vector_store %arg22[%c7_252, %c0_253], %932 {strides = array<i32>} : memref<8x128xf32, #tpu.memory_space<vmem>>, vector<1x128xf32>,
    %c0_254 = arith.constant 0 : index
    %c0_255 = arith.constant 0 : index
    %934 = vector.load %arg22[%c0_254, %c0_255] : memref<8x128xf32, #tpu.memory_space<vmem>>, vector<8x128xf32>
    %cst_256 = arith.constant dense<0.000000e+00> : vector<8x128xf32>
    %935 = tpu.matmul %6, %934, %cst_256 {dimension_numbers = #tpu.dot_dimension_numbers<[1], [0], [0], [1], [0, 0, 1, 1], [], []>} : vector<8x8xf32>, vector<8x128xf32>, vector<8x128xf32> -> vector<8x128xf32>
    %c64_i32_257 = arith.constant 64 : i32
    %936 = vector.broadcast %c64_i32_257 : i32 to vector<8x128xi32>
    %937 = arith.cmpi slt, %7, %936 : vector<8x128xi32>
    %938 = arith.select %937, %934, %935 : vector<8x128xi1>, vector<8x128xf32>
    %c0_i32_258 = arith.constant 0 : i32
    %939 = arith.cmpi sgt, %534, %c0_i32_258 : i32
    %940 = arith.extui %939 : i1 to i32
    %941 = arith.sitofp %940 : i32 to f32
    %942 = vector.broadcast %941 : f32 to vector<8x128xf32>
    %943 = arith.mulf %938, %942 : vector<8x128xf32>
    %944 = arith.addf %270, %943 : vector<8x128xf32>
    %c0_259 = arith.constant 0 : index
    %c0_260 = arith.constant 0 : index
    %945 = vector.load %arg13[%c0_259, %c0_260] : memref<128x128xf32, #tpu.memory_space<vmem>>, vector<128x128xf32>
    %cst_261 = arith.constant dense<0.000000e+00> : vector<8x128xf32>
    %946 = tpu.matmul %944, %945, %cst_261 {dimension_numbers = #tpu.dot_dimension_numbers<[1], [0], [0], [1], [0, 0, 1, 1], [], []>} : vector<8x128xf32>, vector<128x128xf32>, vector<8x128xf32> -> vector<8x128xf32>
    %c0_262 = arith.constant 0 : index
    %c0_263 = arith.constant 0 : index
    %947 = vector.load %arg14[%c0_262, %c0_263] : memref<1x128xf32, #tpu.memory_space<vmem>>, vector<1x128xf32>
    %948 = vector.broadcast %947 : vector<1x128xf32> to vector<8x128xf32>
    %949 = arith.addf %946, %948 : vector<8x128xf32>
    %950 = arith.addf %8, %949 : vector<8x128xf32>
    %c3_264 = arith.constant 3 : index
    %c0_265 = arith.constant 0 : index
    %c0_266 = arith.constant 0 : index
    %951 = vector.load %arg5[%c3_264, %c0_265, %c0_266] : memref<4x128x384xf32, #tpu.memory_space<vmem>>, vector<1x128x384xf32>
    %952 = vector.shape_cast %951 : vector<1x128x384xf32> to vector<128x384xf32>
    %c3_267 = arith.constant 3 : index
    %c0_268 = arith.constant 0 : index
    %c0_269 = arith.constant 0 : index
    %953 = vector.load %arg6[%c3_267, %c0_268, %c0_269] : memref<4x128x384xf32, #tpu.memory_space<vmem>>, vector<1x128x384xf32>
    %954 = vector.shape_cast %953 : vector<1x128x384xf32> to vector<128x384xf32>
    %c3_270 = arith.constant 3 : index
    %c0_271 = arith.constant 0 : index
    %c0_272 = arith.constant 0 : index
    %955 = vector.load %arg7[%c3_270, %c0_271, %c0_272] : memref<4x128x384xf32, #tpu.memory_space<vmem>>, vector<1x128x384xf32>
    %956 = vector.shape_cast %955 : vector<1x128x384xf32> to vector<128x384xf32>
    %c3_273 = arith.constant 3 : index
    %c0_274 = arith.constant 0 : index
    %c0_275 = arith.constant 0 : index
    %957 = vector.load %arg8[%c3_273, %c0_274, %c0_275] : memref<4x1x384xf32, #tpu.memory_space<vmem>>, vector<1x1x384xf32>
    %958 = vector.shape_cast %957 : vector<1x1x384xf32> to vector<1x384xf32>
    %c3_276 = arith.constant 3 : index
    %c0_277 = arith.constant 0 : index
    %c0_278 = arith.constant 0 : index
    %959 = vector.load %arg9[%c3_276, %c0_277, %c0_278] : memref<4x1x384xf32, #tpu.memory_space<vmem>>, vector<1x1x384xf32>
    %960 = vector.shape_cast %959 : vector<1x1x384xf32> to vector<1x384xf32>
    %cst_279 = arith.constant dense<0.000000e+00> : vector<8x384xf32>
    %961 = tpu.matmul %950, %952, %cst_279 {dimension_numbers = #tpu.dot_dimension_numbers<[1], [0], [0], [1], [0, 0, 1, 1], [], []>} : vector<8x128xf32>, vector<128x384xf32>, vector<8x384xf32> -> vector<8x384xf32>
    %cst_280 = arith.constant dense<0.000000e+00> : vector<8x384xf32>
    %962 = tpu.matmul %950, %954, %cst_280 {dimension_numbers = #tpu.dot_dimension_numbers<[1], [0], [0], [1], [0, 0, 1, 1], [], []>} : vector<8x128xf32>, vector<128x384xf32>, vector<8x384xf32> -> vector<8x384xf32>
    %cst_281 = arith.constant dense<0.000000e+00> : vector<8x384xf32>
    %963 = tpu.matmul %6, %962, %cst_281 {dimension_numbers = #tpu.dot_dimension_numbers<[1], [0], [0], [1], [0, 0, 1, 1], [], []>} : vector<8x8xf32>, vector<8x384xf32>, vector<8x384xf32> -> vector<8x384xf32>
    %964 = arith.addf %961, %963 : vector<8x384xf32>
    %965 = vector.broadcast %958 : vector<1x384xf32> to vector<8x384xf32>
    %966 = arith.addf %964, %965 : vector<8x384xf32>
    %cst_282 = arith.constant 0.000000e+00 : f32
    %967 = vector.broadcast %cst_282 : f32 to vector<1x128xf32>
    %cst_283 = arith.constant dense<0.000000e+00> : vector<1x384xf32>
    %968 = tpu.matmul %967, %956, %cst_283 {dimension_numbers = #tpu.dot_dimension_numbers<[1], [0], [0], [1], [0, 0, 1, 1], [], []>} : vector<1x128xf32>, vector<128x384xf32>, vector<1x384xf32> -> vector<1x384xf32>
    %969 = arith.addf %968, %960 : vector<1x384xf32>
    %970 = vector.extract_strided_slice %966 {offsets = [0, 0], sizes = [1, 384], strides = [1, 1]} : vector<8x384xf32> to vector<1x384xf32>
    %971 = vector.extract_strided_slice %970 {offsets = [0, 0], sizes = [1, 128], strides = [1, 1]} : vector<1x384xf32> to vector<1x128xf32>
    %972 = vector.extract_strided_slice %969 {offsets = [0, 0], sizes = [1, 128], strides = [1, 1]} : vector<1x384xf32> to vector<1x128xf32>
    %973 = arith.addf %971, %972 : vector<1x128xf32>
    %974 = arith.negf %973 : vector<1x128xf32>
    %975 = math.exp %974 : vector<1x128xf32>
    %cst_284 = arith.constant 1.000000e+00 : f32
    %976 = vector.broadcast %cst_284 : f32 to vector<1x128xf32>
    %977 = arith.addf %976, %975 : vector<1x128xf32>
    %978 = arith.divf %976, %977 : vector<1x128xf32>
    %979 = vector.extract_strided_slice %970 {offsets = [0, 128], sizes = [1, 128], strides = [1, 1]} : vector<1x384xf32> to vector<1x128xf32>
    %980 = vector.extract_strided_slice %969 {offsets = [0, 128], sizes = [1, 128], strides = [1, 1]} : vector<1x384xf32> to vector<1x128xf32>
    %981 = arith.addf %979, %980 : vector<1x128xf32>
    %982 = arith.negf %981 : vector<1x128xf32>
    %983 = math.exp %982 : vector<1x128xf32>
    %cst_285 = arith.constant 1.000000e+00 : f32
    %984 = vector.broadcast %cst_285 : f32 to vector<1x128xf32>
    %985 = arith.addf %984, %983 : vector<1x128xf32>
    %986 = arith.divf %984, %985 : vector<1x128xf32>
    %987 = vector.extract_strided_slice %970 {offsets = [0, 256], sizes = [1, 128], strides = [1, 1]} : vector<1x384xf32> to vector<1x128xf32>
    %988 = vector.extract_strided_slice %969 {offsets = [0, 256], sizes = [1, 128], strides = [1, 1]} : vector<1x384xf32> to vector<1x128xf32>
    %989 = arith.mulf %978, %988 : vector<1x128xf32>
    %990 = arith.addf %987, %989 : vector<1x128xf32>
    %991 = math.tanh %990 : vector<1x128xf32>
    %cst_286 = arith.constant 1.000000e+00 : f32
    %992 = vector.broadcast %cst_286 : f32 to vector<1x128xf32>
    %993 = arith.subf %992, %986 : vector<1x128xf32>
    %994 = arith.mulf %993, %991 : vector<1x128xf32>
    %995 = arith.mulf %986, %967 : vector<1x128xf32>
    %996 = arith.addf %994, %995 : vector<1x128xf32>
    %c0_287 = arith.constant 0 : index
    %c0_288 = arith.constant 0 : index
    %997 = vector.load %arg23[%c0_287, %c0_288] : memref<8x128xf32, #tpu.memory_space<vmem>>, vector<1x128xf32>
    tpu.vector_store %arg23[%c0_287, %c0_288], %996 {strides = array<i32>} : memref<8x128xf32, #tpu.memory_space<vmem>>, vector<1x128xf32>,
    %cst_289 = arith.constant dense<0.000000e+00> : vector<1x384xf32>
    %998 = tpu.matmul %996, %956, %cst_289 {dimension_numbers = #tpu.dot_dimension_numbers<[1], [0], [0], [1], [0, 0, 1, 1], [], []>} : vector<1x128xf32>, vector<128x384xf32>, vector<1x384xf32> -> vector<1x384xf32>
    %999 = arith.addf %998, %960 : vector<1x384xf32>
    %1000 = vector.extract_strided_slice %966 {offsets = [1, 0], sizes = [1, 384], strides = [1, 1]} : vector<8x384xf32> to vector<1x384xf32>
    %1001 = vector.extract_strided_slice %1000 {offsets = [0, 0], sizes = [1, 128], strides = [1, 1]} : vector<1x384xf32> to vector<1x128xf32>
    %1002 = vector.extract_strided_slice %999 {offsets = [0, 0], sizes = [1, 128], strides = [1, 1]} : vector<1x384xf32> to vector<1x128xf32>
    %1003 = arith.addf %1001, %1002 : vector<1x128xf32>
    %1004 = arith.negf %1003 : vector<1x128xf32>
    %1005 = math.exp %1004 : vector<1x128xf32>
    %cst_290 = arith.constant 1.000000e+00 : f32
    %1006 = vector.broadcast %cst_290 : f32 to vector<1x128xf32>
    %1007 = arith.addf %1006, %1005 : vector<1x128xf32>
    %1008 = arith.divf %1006, %1007 : vector<1x128xf32>
    %1009 = vector.extract_strided_slice %1000 {offsets = [0, 128], sizes = [1, 128], strides = [1, 1]} : vector<1x384xf32> to vector<1x128xf32>
    %1010 = vector.extract_strided_slice %999 {offsets = [0, 128], sizes = [1, 128], strides = [1, 1]} : vector<1x384xf32> to vector<1x128xf32>
    %1011 = arith.addf %1009, %1010 : vector<1x128xf32>
    %1012 = arith.negf %1011 : vector<1x128xf32>
    %1013 = math.exp %1012 : vector<1x128xf32>
    %cst_291 = arith.constant 1.000000e+00 : f32
    %1014 = vector.broadcast %cst_291 : f32 to vector<1x128xf32>
    %1015 = arith.addf %1014, %1013 : vector<1x128xf32>
    %1016 = arith.divf %1014, %1015 : vector<1x128xf32>
    %1017 = vector.extract_strided_slice %1000 {offsets = [0, 256], sizes = [1, 128], strides = [1, 1]} : vector<1x384xf32> to vector<1x128xf32>
    %1018 = vector.extract_strided_slice %999 {offsets = [0, 256], sizes = [1, 128], strides = [1, 1]} : vector<1x384xf32> to vector<1x128xf32>
    %1019 = arith.mulf %1008, %1018 : vector<1x128xf32>
    %1020 = arith.addf %1017, %1019 : vector<1x128xf32>
    %1021 = math.tanh %1020 : vector<1x128xf32>
    %cst_292 = arith.constant 1.000000e+00 : f32
    %1022 = vector.broadcast %cst_292 : f32 to vector<1x128xf32>
    %1023 = arith.subf %1022, %1016 : vector<1x128xf32>
    %1024 = arith.mulf %1023, %1021 : vector<1x128xf32>
    %1025 = arith.mulf %1016, %996 : vector<1x128xf32>
    %1026 = arith.addf %1024, %1025 : vector<1x128xf32>
    %c1_293 = arith.constant 1 : index
    %c0_294 = arith.constant 0 : index
    %1027 = vector.load %arg23[%c1_293, %c0_294] : memref<8x128xf32, #tpu.memory_space<vmem>>, vector<1x128xf32>
    tpu.vector_store %arg23[%c1_293, %c0_294], %1026 {strides = array<i32>} : memref<8x128xf32, #tpu.memory_space<vmem>>, vector<1x128xf32>,
    %cst_295 = arith.constant dense<0.000000e+00> : vector<1x384xf32>
    %1028 = tpu.matmul %1026, %956, %cst_295 {dimension_numbers = #tpu.dot_dimension_numbers<[1], [0], [0], [1], [0, 0, 1, 1], [], []>} : vector<1x128xf32>, vector<128x384xf32>, vector<1x384xf32> -> vector<1x384xf32>
    %1029 = arith.addf %1028, %960 : vector<1x384xf32>
    %1030 = vector.extract_strided_slice %966 {offsets = [2, 0], sizes = [1, 384], strides = [1, 1]} : vector<8x384xf32> to vector<1x384xf32>
    %1031 = vector.extract_strided_slice %1030 {offsets = [0, 0], sizes = [1, 128], strides = [1, 1]} : vector<1x384xf32> to vector<1x128xf32>
    %1032 = vector.extract_strided_slice %1029 {offsets = [0, 0], sizes = [1, 128], strides = [1, 1]} : vector<1x384xf32> to vector<1x128xf32>
    %1033 = arith.addf %1031, %1032 : vector<1x128xf32>
    %1034 = arith.negf %1033 : vector<1x128xf32>
    %1035 = math.exp %1034 : vector<1x128xf32>
    %cst_296 = arith.constant 1.000000e+00 : f32
    %1036 = vector.broadcast %cst_296 : f32 to vector<1x128xf32>
    %1037 = arith.addf %1036, %1035 : vector<1x128xf32>
    %1038 = arith.divf %1036, %1037 : vector<1x128xf32>
    %1039 = vector.extract_strided_slice %1030 {offsets = [0, 128], sizes = [1, 128], strides = [1, 1]} : vector<1x384xf32> to vector<1x128xf32>
    %1040 = vector.extract_strided_slice %1029 {offsets = [0, 128], sizes = [1, 128], strides = [1, 1]} : vector<1x384xf32> to vector<1x128xf32>
    %1041 = arith.addf %1039, %1040 : vector<1x128xf32>
    %1042 = arith.negf %1041 : vector<1x128xf32>
    %1043 = math.exp %1042 : vector<1x128xf32>
    %cst_297 = arith.constant 1.000000e+00 : f32
    %1044 = vector.broadcast %cst_297 : f32 to vector<1x128xf32>
    %1045 = arith.addf %1044, %1043 : vector<1x128xf32>
    %1046 = arith.divf %1044, %1045 : vector<1x128xf32>
    %1047 = vector.extract_strided_slice %1030 {offsets = [0, 256], sizes = [1, 128], strides = [1, 1]} : vector<1x384xf32> to vector<1x128xf32>
    %1048 = vector.extract_strided_slice %1029 {offsets = [0, 256], sizes = [1, 128], strides = [1, 1]} : vector<1x384xf32> to vector<1x128xf32>
    %1049 = arith.mulf %1038, %1048 : vector<1x128xf32>
    %1050 = arith.addf %1047, %1049 : vector<1x128xf32>
    %1051 = math.tanh %1050 : vector<1x128xf32>
    %cst_298 = arith.constant 1.000000e+00 : f32
    %1052 = vector.broadcast %cst_298 : f32 to vector<1x128xf32>
    %1053 = arith.subf %1052, %1046 : vector<1x128xf32>
    %1054 = arith.mulf %1053, %1051 : vector<1x128xf32>
    %1055 = arith.mulf %1046, %1026 : vector<1x128xf32>
    %1056 = arith.addf %1054, %1055 : vector<1x128xf32>
    %c2_299 = arith.constant 2 : index
    %c0_300 = arith.constant 0 : index
    %1057 = vector.load %arg23[%c2_299, %c0_300] : memref<8x128xf32, #tpu.memory_space<vmem>>, vector<1x128xf32>
    tpu.vector_store %arg23[%c2_299, %c0_300], %1056 {strides = array<i32>} : memref<8x128xf32, #tpu.memory_space<vmem>>, vector<1x128xf32>,
    %cst_301 = arith.constant dense<0.000000e+00> : vector<1x384xf32>
    %1058 = tpu.matmul %1056, %956, %cst_301 {dimension_numbers = #tpu.dot_dimension_numbers<[1], [0], [0], [1], [0, 0, 1, 1], [], []>} : vector<1x128xf32>, vector<128x384xf32>, vector<1x384xf32> -> vector<1x384xf32>
    %1059 = arith.addf %1058, %960 : vector<1x384xf32>
    %1060 = vector.extract_strided_slice %966 {offsets = [3, 0], sizes = [1, 384], strides = [1, 1]} : vector<8x384xf32> to vector<1x384xf32>
    %1061 = vector.extract_strided_slice %1060 {offsets = [0, 0], sizes = [1, 128], strides = [1, 1]} : vector<1x384xf32> to vector<1x128xf32>
    %1062 = vector.extract_strided_slice %1059 {offsets = [0, 0], sizes = [1, 128], strides = [1, 1]} : vector<1x384xf32> to vector<1x128xf32>
    %1063 = arith.addf %1061, %1062 : vector<1x128xf32>
    %1064 = arith.negf %1063 : vector<1x128xf32>
    %1065 = math.exp %1064 : vector<1x128xf32>
    %cst_302 = arith.constant 1.000000e+00 : f32
    %1066 = vector.broadcast %cst_302 : f32 to vector<1x128xf32>
    %1067 = arith.addf %1066, %1065 : vector<1x128xf32>
    %1068 = arith.divf %1066, %1067 : vector<1x128xf32>
    %1069 = vector.extract_strided_slice %1060 {offsets = [0, 128], sizes = [1, 128], strides = [1, 1]} : vector<1x384xf32> to vector<1x128xf32>
    %1070 = vector.extract_strided_slice %1059 {offsets = [0, 128], sizes = [1, 128], strides = [1, 1]} : vector<1x384xf32> to vector<1x128xf32>
    %1071 = arith.addf %1069, %1070 : vector<1x128xf32>
    %1072 = arith.negf %1071 : vector<1x128xf32>
    %1073 = math.exp %1072 : vector<1x128xf32>
    %cst_303 = arith.constant 1.000000e+00 : f32
    %1074 = vector.broadcast %cst_303 : f32 to vector<1x128xf32>
    %1075 = arith.addf %1074, %1073 : vector<1x128xf32>
    %1076 = arith.divf %1074, %1075 : vector<1x128xf32>
    %1077 = vector.extract_strided_slice %1060 {offsets = [0, 256], sizes = [1, 128], strides = [1, 1]} : vector<1x384xf32> to vector<1x128xf32>
    %1078 = vector.extract_strided_slice %1059 {offsets = [0, 256], sizes = [1, 128], strides = [1, 1]} : vector<1x384xf32> to vector<1x128xf32>
    %1079 = arith.mulf %1068, %1078 : vector<1x128xf32>
    %1080 = arith.addf %1077, %1079 : vector<1x128xf32>
    %1081 = math.tanh %1080 : vector<1x128xf32>
    %cst_304 = arith.constant 1.000000e+00 : f32
    %1082 = vector.broadcast %cst_304 : f32 to vector<1x128xf32>
    %1083 = arith.subf %1082, %1076 : vector<1x128xf32>
    %1084 = arith.mulf %1083, %1081 : vector<1x128xf32>
    %1085 = arith.mulf %1076, %1056 : vector<1x128xf32>
    %1086 = arith.addf %1084, %1085 : vector<1x128xf32>
    %c3_305 = arith.constant 3 : index
    %c0_306 = arith.constant 0 : index
    %1087 = vector.load %arg23[%c3_305, %c0_306] : memref<8x128xf32, #tpu.memory_space<vmem>>, vector<1x128xf32>
    tpu.vector_store %arg23[%c3_305, %c0_306], %1086 {strides = array<i32>} : memref<8x128xf32, #tpu.memory_space<vmem>>, vector<1x128xf32>,
    %cst_307 = arith.constant dense<0.000000e+00> : vector<1x384xf32>
    %1088 = tpu.matmul %1086, %956, %cst_307 {dimension_numbers = #tpu.dot_dimension_numbers<[1], [0], [0], [1], [0, 0, 1, 1], [], []>} : vector<1x128xf32>, vector<128x384xf32>, vector<1x384xf32> -> vector<1x384xf32>
    %1089 = arith.addf %1088, %960 : vector<1x384xf32>
    %1090 = vector.extract_strided_slice %966 {offsets = [4, 0], sizes = [1, 384], strides = [1, 1]} : vector<8x384xf32> to vector<1x384xf32>
    %1091 = vector.extract_strided_slice %1090 {offsets = [0, 0], sizes = [1, 128], strides = [1, 1]} : vector<1x384xf32> to vector<1x128xf32>
    %1092 = vector.extract_strided_slice %1089 {offsets = [0, 0], sizes = [1, 128], strides = [1, 1]} : vector<1x384xf32> to vector<1x128xf32>
    %1093 = arith.addf %1091, %1092 : vector<1x128xf32>
    %1094 = arith.negf %1093 : vector<1x128xf32>
    %1095 = math.exp %1094 : vector<1x128xf32>
    %cst_308 = arith.constant 1.000000e+00 : f32
    %1096 = vector.broadcast %cst_308 : f32 to vector<1x128xf32>
    %1097 = arith.addf %1096, %1095 : vector<1x128xf32>
    %1098 = arith.divf %1096, %1097 : vector<1x128xf32>
    %1099 = vector.extract_strided_slice %1090 {offsets = [0, 128], sizes = [1, 128], strides = [1, 1]} : vector<1x384xf32> to vector<1x128xf32>
    %1100 = vector.extract_strided_slice %1089 {offsets = [0, 128], sizes = [1, 128], strides = [1, 1]} : vector<1x384xf32> to vector<1x128xf32>
    %1101 = arith.addf %1099, %1100 : vector<1x128xf32>
    %1102 = arith.negf %1101 : vector<1x128xf32>
    %1103 = math.exp %1102 : vector<1x128xf32>
    %cst_309 = arith.constant 1.000000e+00 : f32
    %1104 = vector.broadcast %cst_309 : f32 to vector<1x128xf32>
    %1105 = arith.addf %1104, %1103 : vector<1x128xf32>
    %1106 = arith.divf %1104, %1105 : vector<1x128xf32>
    %1107 = vector.extract_strided_slice %1090 {offsets = [0, 256], sizes = [1, 128], strides = [1, 1]} : vector<1x384xf32> to vector<1x128xf32>
    %1108 = vector.extract_strided_slice %1089 {offsets = [0, 256], sizes = [1, 128], strides = [1, 1]} : vector<1x384xf32> to vector<1x128xf32>
    %1109 = arith.mulf %1098, %1108 : vector<1x128xf32>
    %1110 = arith.addf %1107, %1109 : vector<1x128xf32>
    %1111 = math.tanh %1110 : vector<1x128xf32>
    %cst_310 = arith.constant 1.000000e+00 : f32
    %1112 = vector.broadcast %cst_310 : f32 to vector<1x128xf32>
    %1113 = arith.subf %1112, %1106 : vector<1x128xf32>
    %1114 = arith.mulf %1113, %1111 : vector<1x128xf32>
    %1115 = arith.mulf %1106, %1086 : vector<1x128xf32>
    %1116 = arith.addf %1114, %1115 : vector<1x128xf32>
    %c4_311 = arith.constant 4 : index
    %c0_312 = arith.constant 0 : index
    %1117 = vector.load %arg23[%c4_311, %c0_312] : memref<8x128xf32, #tpu.memory_space<vmem>>, vector<1x128xf32>
    tpu.vector_store %arg23[%c4_311, %c0_312], %1116 {strides = array<i32>} : memref<8x128xf32, #tpu.memory_space<vmem>>, vector<1x128xf32>,
    %cst_313 = arith.constant dense<0.000000e+00> : vector<1x384xf32>
    %1118 = tpu.matmul %1116, %956, %cst_313 {dimension_numbers = #tpu.dot_dimension_numbers<[1], [0], [0], [1], [0, 0, 1, 1], [], []>} : vector<1x128xf32>, vector<128x384xf32>, vector<1x384xf32> -> vector<1x384xf32>
    %1119 = arith.addf %1118, %960 : vector<1x384xf32>
    %1120 = vector.extract_strided_slice %966 {offsets = [5, 0], sizes = [1, 384], strides = [1, 1]} : vector<8x384xf32> to vector<1x384xf32>
    %1121 = vector.extract_strided_slice %1120 {offsets = [0, 0], sizes = [1, 128], strides = [1, 1]} : vector<1x384xf32> to vector<1x128xf32>
    %1122 = vector.extract_strided_slice %1119 {offsets = [0, 0], sizes = [1, 128], strides = [1, 1]} : vector<1x384xf32> to vector<1x128xf32>
    %1123 = arith.addf %1121, %1122 : vector<1x128xf32>
    %1124 = arith.negf %1123 : vector<1x128xf32>
    %1125 = math.exp %1124 : vector<1x128xf32>
    %cst_314 = arith.constant 1.000000e+00 : f32
    %1126 = vector.broadcast %cst_314 : f32 to vector<1x128xf32>
    %1127 = arith.addf %1126, %1125 : vector<1x128xf32>
    %1128 = arith.divf %1126, %1127 : vector<1x128xf32>
    %1129 = vector.extract_strided_slice %1120 {offsets = [0, 128], sizes = [1, 128], strides = [1, 1]} : vector<1x384xf32> to vector<1x128xf32>
    %1130 = vector.extract_strided_slice %1119 {offsets = [0, 128], sizes = [1, 128], strides = [1, 1]} : vector<1x384xf32> to vector<1x128xf32>
    %1131 = arith.addf %1129, %1130 : vector<1x128xf32>
    %1132 = arith.negf %1131 : vector<1x128xf32>
    %1133 = math.exp %1132 : vector<1x128xf32>
    %cst_315 = arith.constant 1.000000e+00 : f32
    %1134 = vector.broadcast %cst_315 : f32 to vector<1x128xf32>
    %1135 = arith.addf %1134, %1133 : vector<1x128xf32>
    %1136 = arith.divf %1134, %1135 : vector<1x128xf32>
    %1137 = vector.extract_strided_slice %1120 {offsets = [0, 256], sizes = [1, 128], strides = [1, 1]} : vector<1x384xf32> to vector<1x128xf32>
    %1138 = vector.extract_strided_slice %1119 {offsets = [0, 256], sizes = [1, 128], strides = [1, 1]} : vector<1x384xf32> to vector<1x128xf32>
    %1139 = arith.mulf %1128, %1138 : vector<1x128xf32>
    %1140 = arith.addf %1137, %1139 : vector<1x128xf32>
    %1141 = math.tanh %1140 : vector<1x128xf32>
    %cst_316 = arith.constant 1.000000e+00 : f32
    %1142 = vector.broadcast %cst_316 : f32 to vector<1x128xf32>
    %1143 = arith.subf %1142, %1136 : vector<1x128xf32>
    %1144 = arith.mulf %1143, %1141 : vector<1x128xf32>
    %1145 = arith.mulf %1136, %1116 : vector<1x128xf32>
    %1146 = arith.addf %1144, %1145 : vector<1x128xf32>
    %c5_317 = arith.constant 5 : index
    %c0_318 = arith.constant 0 : index
    %1147 = vector.load %arg23[%c5_317, %c0_318] : memref<8x128xf32, #tpu.memory_space<vmem>>, vector<1x128xf32>
    tpu.vector_store %arg23[%c5_317, %c0_318], %1146 {strides = array<i32>} : memref<8x128xf32, #tpu.memory_space<vmem>>, vector<1x128xf32>,
    %cst_319 = arith.constant dense<0.000000e+00> : vector<1x384xf32>
    %1148 = tpu.matmul %1146, %956, %cst_319 {dimension_numbers = #tpu.dot_dimension_numbers<[1], [0], [0], [1], [0, 0, 1, 1], [], []>} : vector<1x128xf32>, vector<128x384xf32>, vector<1x384xf32> -> vector<1x384xf32>
    %1149 = arith.addf %1148, %960 : vector<1x384xf32>
    %1150 = vector.extract_strided_slice %966 {offsets = [6, 0], sizes = [1, 384], strides = [1, 1]} : vector<8x384xf32> to vector<1x384xf32>
    %1151 = vector.extract_strided_slice %1150 {offsets = [0, 0], sizes = [1, 128], strides = [1, 1]} : vector<1x384xf32> to vector<1x128xf32>
    %1152 = vector.extract_strided_slice %1149 {offsets = [0, 0], sizes = [1, 128], strides = [1, 1]} : vector<1x384xf32> to vector<1x128xf32>
    %1153 = arith.addf %1151, %1152 : vector<1x128xf32>
    %1154 = arith.negf %1153 : vector<1x128xf32>
    %1155 = math.exp %1154 : vector<1x128xf32>
    %cst_320 = arith.constant 1.000000e+00 : f32
    %1156 = vector.broadcast %cst_320 : f32 to vector<1x128xf32>
    %1157 = arith.addf %1156, %1155 : vector<1x128xf32>
    %1158 = arith.divf %1156, %1157 : vector<1x128xf32>
    %1159 = vector.extract_strided_slice %1150 {offsets = [0, 128], sizes = [1, 128], strides = [1, 1]} : vector<1x384xf32> to vector<1x128xf32>
    %1160 = vector.extract_strided_slice %1149 {offsets = [0, 128], sizes = [1, 128], strides = [1, 1]} : vector<1x384xf32> to vector<1x128xf32>
    %1161 = arith.addf %1159, %1160 : vector<1x128xf32>
    %1162 = arith.negf %1161 : vector<1x128xf32>
    %1163 = math.exp %1162 : vector<1x128xf32>
    %cst_321 = arith.constant 1.000000e+00 : f32
    %1164 = vector.broadcast %cst_321 : f32 to vector<1x128xf32>
    %1165 = arith.addf %1164, %1163 : vector<1x128xf32>
    %1166 = arith.divf %1164, %1165 : vector<1x128xf32>
    %1167 = vector.extract_strided_slice %1150 {offsets = [0, 256], sizes = [1, 128], strides = [1, 1]} : vector<1x384xf32> to vector<1x128xf32>
    %1168 = vector.extract_strided_slice %1149 {offsets = [0, 256], sizes = [1, 128], strides = [1, 1]} : vector<1x384xf32> to vector<1x128xf32>
    %1169 = arith.mulf %1158, %1168 : vector<1x128xf32>
    %1170 = arith.addf %1167, %1169 : vector<1x128xf32>
    %1171 = math.tanh %1170 : vector<1x128xf32>
    %cst_322 = arith.constant 1.000000e+00 : f32
    %1172 = vector.broadcast %cst_322 : f32 to vector<1x128xf32>
    %1173 = arith.subf %1172, %1166 : vector<1x128xf32>
    %1174 = arith.mulf %1173, %1171 : vector<1x128xf32>
    %1175 = arith.mulf %1166, %1146 : vector<1x128xf32>
    %1176 = arith.addf %1174, %1175 : vector<1x128xf32>
    %c6_323 = arith.constant 6 : index
    %c0_324 = arith.constant 0 : index
    %1177 = vector.load %arg23[%c6_323, %c0_324] : memref<8x128xf32, #tpu.memory_space<vmem>>, vector<1x128xf32>
    tpu.vector_store %arg23[%c6_323, %c0_324], %1176 {strides = array<i32>} : memref<8x128xf32, #tpu.memory_space<vmem>>, vector<1x128xf32>,
    %cst_325 = arith.constant dense<0.000000e+00> : vector<1x384xf32>
    %1178 = tpu.matmul %1176, %956, %cst_325 {dimension_numbers = #tpu.dot_dimension_numbers<[1], [0], [0], [1], [0, 0, 1, 1], [], []>} : vector<1x128xf32>, vector<128x384xf32>, vector<1x384xf32> -> vector<1x384xf32>
    %1179 = arith.addf %1178, %960 : vector<1x384xf32>
    %1180 = vector.extract_strided_slice %966 {offsets = [7, 0], sizes = [1, 384], strides = [1, 1]} : vector<8x384xf32> to vector<1x384xf32>
    %1181 = vector.extract_strided_slice %1180 {offsets = [0, 0], sizes = [1, 128], strides = [1, 1]} : vector<1x384xf32> to vector<1x128xf32>
    %1182 = vector.extract_strided_slice %1179 {offsets = [0, 0], sizes = [1, 128], strides = [1, 1]} : vector<1x384xf32> to vector<1x128xf32>
    %1183 = arith.addf %1181, %1182 : vector<1x128xf32>
    %1184 = arith.negf %1183 : vector<1x128xf32>
    %1185 = math.exp %1184 : vector<1x128xf32>
    %cst_326 = arith.constant 1.000000e+00 : f32
    %1186 = vector.broadcast %cst_326 : f32 to vector<1x128xf32>
    %1187 = arith.addf %1186, %1185 : vector<1x128xf32>
    %1188 = arith.divf %1186, %1187 : vector<1x128xf32>
    %1189 = vector.extract_strided_slice %1180 {offsets = [0, 128], sizes = [1, 128], strides = [1, 1]} : vector<1x384xf32> to vector<1x128xf32>
    %1190 = vector.extract_strided_slice %1179 {offsets = [0, 128], sizes = [1, 128], strides = [1, 1]} : vector<1x384xf32> to vector<1x128xf32>
    %1191 = arith.addf %1189, %1190 : vector<1x128xf32>
    %1192 = arith.negf %1191 : vector<1x128xf32>
    %1193 = math.exp %1192 : vector<1x128xf32>
    %cst_327 = arith.constant 1.000000e+00 : f32
    %1194 = vector.broadcast %cst_327 : f32 to vector<1x128xf32>
    %1195 = arith.addf %1194, %1193 : vector<1x128xf32>
    %1196 = arith.divf %1194, %1195 : vector<1x128xf32>
    %1197 = vector.extract_strided_slice %1180 {offsets = [0, 256], sizes = [1, 128], strides = [1, 1]} : vector<1x384xf32> to vector<1x128xf32>
    %1198 = vector.extract_strided_slice %1179 {offsets = [0, 256], sizes = [1, 128], strides = [1, 1]} : vector<1x384xf32> to vector<1x128xf32>
    %1199 = arith.mulf %1188, %1198 : vector<1x128xf32>
    %1200 = arith.addf %1197, %1199 : vector<1x128xf32>
    %1201 = math.tanh %1200 : vector<1x128xf32>
    %cst_328 = arith.constant 1.000000e+00 : f32
    %1202 = vector.broadcast %cst_328 : f32 to vector<1x128xf32>
    %1203 = arith.subf %1202, %1196 : vector<1x128xf32>
    %1204 = arith.mulf %1203, %1201 : vector<1x128xf32>
    %1205 = arith.mulf %1196, %1176 : vector<1x128xf32>
    %1206 = arith.addf %1204, %1205 : vector<1x128xf32>
    %c7_329 = arith.constant 7 : index
    %c0_330 = arith.constant 0 : index
    %1207 = vector.load %arg23[%c7_329, %c0_330] : memref<8x128xf32, #tpu.memory_space<vmem>>, vector<1x128xf32>
    tpu.vector_store %arg23[%c7_329, %c0_330], %1206 {strides = array<i32>} : memref<8x128xf32, #tpu.memory_space<vmem>>, vector<1x128xf32>,
    %c0_331 = arith.constant 0 : index
    %c0_332 = arith.constant 0 : index
    %1208 = vector.load %arg23[%c0_331, %c0_332] : memref<8x128xf32, #tpu.memory_space<vmem>>, vector<8x128xf32>
    %cst_333 = arith.constant dense<0.000000e+00> : vector<8x128xf32>
    %1209 = tpu.matmul %6, %1208, %cst_333 {dimension_numbers = #tpu.dot_dimension_numbers<[1], [0], [0], [1], [0, 0, 1, 1], [], []>} : vector<8x8xf32>, vector<8x128xf32>, vector<8x128xf32> -> vector<8x128xf32>
    %c64_i32_334 = arith.constant 64 : i32
    %1210 = vector.broadcast %c64_i32_334 : i32 to vector<8x128xi32>
    %1211 = arith.cmpi slt, %7, %1210 : vector<8x128xi32>
    %1212 = arith.select %1211, %1208, %1209 : vector<8x128xi1>, vector<8x128xf32>
    %c0_335 = arith.constant 0 : index
    %c0_336 = arith.constant 0 : index
    %1213 = vector.load %arg3[%c0_335, %c0_336] : memref<8x1xf32, #tpu.memory_space<vmem>>, vector<8x1xf32>
    %c0_337 = arith.constant 0 : index
    %c0_338 = arith.constant 0 : index
    %1214 = vector.load %arg15[%c0_337, %c0_338] : memref<128x128xf32, #tpu.memory_space<vmem>>, vector<128x128xf32>
    %cst_339 = arith.constant dense<0.000000e+00> : vector<8x128xf32>
    %1215 = tpu.matmul %1212, %1214, %cst_339 {dimension_numbers = #tpu.dot_dimension_numbers<[1], [0], [0], [1], [0, 0, 1, 1], [], []>} : vector<8x128xf32>, vector<128x128xf32>, vector<8x128xf32> -> vector<8x128xf32>
    %c0_340 = arith.constant 0 : index
    %c0_341 = arith.constant 0 : index
    %1216 = vector.load %arg16[%c0_340, %c0_341] : memref<1x128xf32, #tpu.memory_space<vmem>>, vector<1x128xf32>
    %1217 = vector.broadcast %1216 : vector<1x128xf32> to vector<8x128xf32>
    %1218 = arith.addf %1215, %1217 : vector<8x128xf32>
    %cst_342 = arith.constant 1.000000e+00 : f32
    %1219 = vector.broadcast %cst_342 : f32 to vector<8x1xf32>
    %1220 = arith.subf %1219, %1213 : vector<8x1xf32>
    %cst_343 = arith.constant -1.000000e+32 : f32
    %1221 = vector.broadcast %cst_343 : f32 to vector<8x1xf32>
    %1222 = arith.mulf %1220, %1221 : vector<8x1xf32>
    %1223 = vector.broadcast %1222 : vector<8x1xf32> to vector<8x128xf32>
    %1224 = arith.addf %1218, %1223 : vector<8x128xf32>
    %cst_344 = arith.constant dense<0xFF800000> : vector<8xf32>
    %1225 = vector.multi_reduction <maximumf>, %1224, %cst_344 [1] : vector<8x128xf32> to vector<8xf32>
    %1226 = vector.shape_cast %1225 : vector<8xf32> to vector<8x1xf32>
    %1227 = vector.broadcast %1226 : vector<8x1xf32> to vector<8x128xf32>
    %1228 = arith.subf %1224, %1227 : vector<8x128xf32>
    %1229 = math.exp %1228 : vector<8x128xf32>
    %cst_345 = arith.constant dense<0.000000e+00> : vector<8xf32>
    %1230 = vector.multi_reduction <add>, %1229, %cst_345 [1] : vector<8x128xf32> to vector<8xf32>
    %1231 = vector.shape_cast %1230 : vector<8xf32> to vector<8x1xf32>
    %1232 = tpu.reciprocal %1231 {approx = true} : vector<8x1xf32> -> vector<8x1xf32>
    %1233 = vector.broadcast %1232 : vector<8x1xf32> to vector<8x128xf32>
    %1234 = arith.mulf %1229, %1233 : vector<8x128xf32>
    %c0_346 = arith.constant 0 : index
    %c0_347 = arith.constant 0 : index
    %1235 = vector.load %arg17[%c0_346, %c0_347] : memref<8x128xf32, #tpu.memory_space<vmem>>, vector<8x128xf32>
    tpu.vector_store %arg17[%c0_346, %c0_347], %1234 {strides = array<i32>} : memref<8x128xf32, #tpu.memory_space<vmem>>, vector<8x128xf32>,
    %1236 = vector.broadcast %1226 : vector<8x1xf32> to vector<8x128xf32>
    %1237 = arith.subf %1224, %1236 : vector<8x128xf32>
    %1238 = math.log %1231 : vector<8x1xf32>
    %1239 = vector.broadcast %1238 : vector<8x1xf32> to vector<8x128xf32>
    %1240 = arith.subf %1237, %1239 : vector<8x128xf32>
    %c0_348 = arith.constant 0 : index
    %c0_349 = arith.constant 0 : index
    %1241 = vector.load %arg4[%c0_348, %c0_349] : memref<8x1xi32, #tpu.memory_space<vmem>>, vector<8x1xi32>
    %1242 = tpu.iota {dimensions = array<i32: 1>} : vector<8x128xi32>
    %1243 = vector.broadcast %1241 : vector<8x1xi32> to vector<8x128xi32>
    %1244 = arith.cmpi eq, %1242, %1243 : vector<8x128xi32>
    %1245 = arith.extui %1244 : vector<8x128xi1> to vector<8x128xi32>
    %1246 = arith.sitofp %1245 : vector<8x128xi32> to vector<8x128xf32>
    %1247 = arith.mulf %1246, %1240 : vector<8x128xf32>
    %cst_350 = arith.constant dense<0.000000e+00> : vector<8xf32>
    %1248 = vector.multi_reduction <add>, %1247, %cst_350 [1] : vector<8x128xf32> to vector<8xf32>
    %1249 = vector.shape_cast %1248 : vector<8xf32> to vector<8x1xf32>
    %cst_351 = arith.constant 0.000000e+00 : f32
    %1250 = vector.broadcast %cst_351 : f32 to vector<8x1xf32>
    %1251 = arith.subf %1250, %1249 : vector<8x1xf32>
    %c0_i32_352 = arith.constant 0 : i32
    %1252 = vector.broadcast %c0_i32_352 : i32 to vector<8x1xi32>
    %1253 = arith.cmpi ne, %1241, %1252 : vector<8x1xi32>
    %1254 = arith.extui %1253 : vector<8x1xi1> to vector<8x1xi32>
    %1255 = arith.sitofp %1254 : vector<8x1xi32> to vector<8x1xf32>
    %1256 = arith.mulf %1251, %1255 : vector<8x1xf32>
    %1257 = vector.shape_cast %1256 : vector<8x1xf32> to vector<1x8x1xf32>
    %cst_353 = arith.constant dense<0.000000e+00> : vector<1xf32>
    %1258 = vector.multi_reduction <add>, %1257, %cst_353 [1, 2] : vector<1x8x1xf32> to vector<1xf32>
    %1259 = vector.shape_cast %1258 : vector<1xf32> to vector<1x1x1xf32>
    %1260 = vector.extract %1259[0, 0, 0] : f32 from vector<1x1x1xf32>
    %1261 = vector.shape_cast %1255 : vector<8x1xf32> to vector<1x8x1xf32>
    %cst_354 = arith.constant dense<0.000000e+00> : vector<1xf32>
    %1262 = vector.multi_reduction <add>, %1261, %cst_354 [1, 2] : vector<1x8x1xf32> to vector<1xf32>
    %1263 = vector.shape_cast %1262 : vector<1xf32> to vector<1x1x1xf32>
    %1264 = vector.extract %1263[0, 0, 0] : f32 from vector<1x1x1xf32>
    %1265 = arith.divf %1260, %1264 : f32
    %1266 = vector.broadcast %1265 : f32 to vector<1x1xf32>
    %c0_355 = arith.constant 0 : index
    %c0_356 = arith.constant 0 : index
    %1267 = vector.load %arg18[%c0_355, %c0_356] : memref<1x1xf32, #tpu.memory_space<vmem>>, vector<1x1xf32>
    tpu.vector_store %arg18[%c0_355, %c0_356], %1266 {strides = array<i32>} : memref<1x1xf32, #tpu.memory_space<vmem>>, vector<1x1xf32>,
    return
  }
}

</mosaic_0001>

<bundles_post_ra>
// kernel: slu_forward.1
= control target key start
LH: loop header
LB: loop body
LE: loop exit
PB: predicated region body
PF: predicated region fallthrough
CT: control target
= control target key end

     0   :  { %s16601_s0 = inlined_call_operand.<no memory space> [shape: s32[1], index: 0, kind: input, shape index: {}]   ;;  %s16602_s1 = inlined_call_operand.vmem [shape: f32[8,128], index: 1, kind: input, shape index: {}]   ;;  %s16603_s2 = inlined_call_operand.vmem [shape: f32[8,8,128], index: 2, kind: input, shape index: {}]   ;;  %s16604_s3 = inlined_call_operand.vmem [shape: f32[8,1], index: 3, kind: input, shape index: {}]   ;;  %s16605_s4 = inlined_call_operand.vmem [shape: s32[8,1], index: 4, kind: input, shape index: {}]   ;;  %s16606_s5 = inlined_call_operand.hbm [shape: f32[4,128,384], index: 5, kind: input, shape index: {}]   ;;  %s16607_s6 = inlined_call_operand.hbm [shape: f32[4,128,384], index: 6, kind: input, shape index: {}]   ;;  %s16608_s7 = inlined_call_operand.hbm [shape: f32[4,128,384], index: 7, kind: input, shape index: {}]   ;;  %s16609_s8 = inlined_call_operand.hbm [shape: f32[4,1,384], index: 8, kind: input, shape index: {}]   ;;  %s16610_s9 = inlined_call_operand.hbm [shape: f32[4,1,384], index: 9, kind: input, shape index: {}]   ;;  %s16611_s10 = inlined_call_operand.vmem [shape: f32[128,128], index: 10, kind: input, shape index: {}]   ;;  %s16612_s11 = inlined_call_operand.vmem [shape: f32[128,128], index: 11, kind: input, shape index: {}]   ;;  %s16613_s12 = inlined_call_operand.vmem [shape: f32[1,128], index: 12, kind: input, shape index: {}]   ;;  %s16614_s13 = inlined_call_operand.hbm [shape: f32[128,128], index: 13, kind: input, shape index: {}]   ;;  %s16615_s14 = inlined_call_operand.hbm [shape: f32[1,128], index: 14, kind: input, shape index: {}]   ;;  %s16616_s15 = inlined_call_operand.hbm [shape: f32[128,128], index: 15, kind: input, shape index: {}]   ;;  %s16617_s16 = inlined_call_operand.hbm [shape: f32[1,128], index: 16, kind: input, shape index: {}]   ;;  %s16618_s17 = inlined_call_operand.hbm [shape: f32[8,128], index: 17, kind: output, shape index: {0}]   ;;  %s16619_s18 = inlined_call_operand.hbm [shape: f32[1,1], index: 18, kind: output, shape index: {1}]   ;;  %s16620_s19 = inlined_call_operand.vmem [shape: f32[8,128], index: 19, kind: output, shape index: {2}]  }
   0x1   :  { %16800 = sst [smem:[#allocation53_spill]] %s16601_s0 }
   0x2   :  { %16801 = sst [smem:[#allocation54_spill]] %s16602_s1 }
   0x3   :  { %16802 = sst [smem:[#allocation55_spill]] %s16603_s2 }
   0x4   :  { %16803 = sst [smem:[#allocation56_spill]] %s16604_s3 }
   0x5   :  { %26 = vsyncpa [#allocation8], 0 }
   0x6   :  { %27 = vsyncpa [#allocation11], 0 }
   0x7   :  { %28 = vsyncpa [#allocation14], 0 }
   0x8   :  { %29 = vsyncpa [#allocation17], 0 }
   0x9   :  { %30 = vsyncpa [#allocation20], 0 }
   0xa   :  { %31 = vsyncpa [#allocation9], 0 }
   0xb   :  { %32 = vsyncpa [#allocation24], 0  ;;  %s12467_s0 = smov [#allocation10]   ;;  %s12468_s20 = smov [#allocation13]  }
   0xc   :  { %s60_s30 = sshll.u32 %s12467_s0, 4  ;;  %s84_s21 = sshll.u32 %s12468_s20, 4  ;;  %s61_s30 = int_to_ptr.vmem [resolvable:$true] %s60_s30  ;;  %s85_s21 = int_to_ptr.vmem [resolvable:$true] %s84_s21 }
   0xd   :  { %s12241_s1 = scalar_lea.vmem %s61_s30, 24576  ;;  %p12246_p1 = scmp.lt.s32.totalorder %s61_s30, %s61_s30 }
   0xe   :  { %p12242_p0 = scmp.ne.s32.totalorder %s61_s30, %s12241_s1  ;;  %p12247_p2 = scmp.lt.s32.totalorder %s12241_s1, %s12241_s1 }
  0x10   :  { %p12248_p3 = por %p12247_p2, %p12246_p1 }
  0x12   :  { %p12249_p4 = pnand %p12248_p3, %p12242_p0 }
  0x14   :  { %12252 = shalt.err (!%p12249_p4)
}
  0x15   :  { %s12469_s22 = smov 384   ;;  %s12470_s2 = smov 24  }
  0x16   :  { %66 = dma.hbm_to_vmem [thread:$0]  %s16607_s6, 24576, %s61_s30, [#allocation11], %s12469_s22, %s12469_s22, %s12470_s2  }
  0x17   :  { %s12261_s25 = scalar_lea.vmem %s85_s21, 192  ;;  %p12266_p6 = scmp.lt.s32.totalorder %s85_s21, %s85_s21 }
  0x18   :  { %p12262_p5 = scmp.ne.s32.totalorder %s85_s21, %s12261_s25  ;;  %p12267_p7 = scmp.lt.s32.totalorder %s12261_s25, %s12261_s25 }
  0x1a   :  { %p12268_p8 = por %p12267_p7, %p12266_p6 }
  0x1c   :  { %p12269_p9 = pnand %p12268_p8, %p12262_p5 }
  0x1e   :  { %12272 = shalt.err (!%p12269_p9)
}
  0x1f   :  { %s12471_s3 = smov 48   ;;  %s12472_s26 = smov 3  }
  0x20   :  { %90 = dma.hbm_to_vmem [thread:$0]  %s16609_s8, 192, %s85_s21, [#allocation14], %s12471_s3, %s12471_s3, %s12472_s26  }
  0x21   :  { %s12473_s29 = smov [#allocation16]  }
  0x22   :  { %s114_s0 = sshll.u32 %s12473_s29, 4  ;;  %s115_s0 = int_to_ptr.vmem [resolvable:$true] %s114_s0 }
  0x23   :  { %s12281_s6 = scalar_lea.vmem %s115_s0, 2048  ;;  %p12286_p11 = scmp.lt.s32.totalorder %s115_s0, %s115_s0 }
  0x24   :  { %p12282_p10 = scmp.ne.s32.totalorder %s115_s0, %s12281_s6  ;;  %p12287_p12 = scmp.lt.s32.totalorder %s12281_s6, %s12281_s6 }
  0x26   :  { %p12288_p13 = por %p12287_p12, %p12286_p11 }
  0x28   :  { %p12289_p0 = pnand %p12288_p13, %p12282_p10 }
  0x2a   :  { %12292 = shalt.err (!%p12289_p0)
}
  0x2b   :  { %s12474_s30 = smov 128   ;;  %s12475_s20 = smov 8  }
  0x2c   :  { %120 = dma.hbm_to_vmem [thread:$0]  %s16614_s13, 2048, %s115_s0, [#allocation17], %s12474_s30, %s12474_s30, %s12475_s20  }
  0x2d   :  { %s12476_s24 = smov [#allocation19]   ;;  %s12477_s8 = smov [#allocation7]  }
  0x2e   :  { %s136_s25 = sshll.u32 %s12476_s24, 4  ;;  %s48_s21 = sshll.u32 %s12477_s8, 4  ;;  %s137_s25 = int_to_ptr.vmem [resolvable:$true] %s136_s25  ;;  %s49_s21 = int_to_ptr.vmem [resolvable:$true] %s48_s21 }
  0x2f   :  { %s12301_s27 = scalar_lea.vmem %s137_s25, 2048  ;;  %p12306_p2 = scmp.lt.s32.totalorder %s137_s25, %s137_s25 }
  0x30   :  { %p12302_p1 = scmp.ne.s32.totalorder %s137_s25, %s12301_s27  ;;  %p12307_p3 = scmp.lt.s32.totalorder %s12301_s27, %s12301_s27 }
  0x32   :  { %p12308_p4 = por %p12307_p3, %p12306_p2 }
  0x34   :  { %p12309_p5 = pnand %p12308_p4, %p12302_p1 }
  0x36   :  { %12312 = shalt.err (!%p12309_p5)
}
  0x37   :  { %142 = dma.hbm_to_vmem [thread:$0]  %s16616_s15, 2048, %s137_s25, [#allocation20], %s12474_s30, %s12474_s30, %s12475_s20  }
  0x38   :  { %s12321_s6 = scalar_lea.vmem %s49_s21, 24576  ;;  %p12326_p7 = scmp.lt.s32.totalorder %s49_s21, %s49_s21 }
  0x39   :  { %p12322_p6 = scmp.ne.s32.totalorder %s49_s21, %s12321_s6  ;;  %p12327_p8 = scmp.lt.s32.totalorder %s12321_s6, %s12321_s6 }
  0x3b   :  { %p12328_p9 = por %p12327_p8, %p12326_p7 }
  0x3d   :  { %p12329_p10 = pnand %p12328_p9, %p12322_p6 }
  0x3f   :  { %12332 = shalt.err (!%p12329_p10)
}
  0x40   :  { %54 = dma.hbm_to_vmem [thread:$0]  %s16606_s5, 24576, %s49_s21, [#allocation8], %s12469_s22, %s12469_s22, %s12470_s2  }
  0x41   :  { %s12478_s1 = smov [#allocation12]   ;;  %s12479_s24 = smov [#allocation15]  }
  0x42   :  { %s72_s23 = sshll.u32 %s12478_s1, 4  ;;  %s96_s15 = sshll.u32 %s12479_s24, 4  ;;  %s73_s23 = int_to_ptr.vmem [resolvable:$true] %s72_s23  ;;  %s97_s15 = int_to_ptr.vmem [resolvable:$true] %s96_s15 }
  0x43   :  { %s12341_s30 = scalar_lea.vmem %s73_s23, 24576  ;;  %p12346_p12 = scmp.lt.s32.totalorder %s73_s23, %s73_s23 }
  0x44   :  { %p12342_p11 = scmp.ne.s32.totalorder %s73_s23, %s12341_s30  ;;  %p12347_p13 = scmp.lt.s32.totalorder %s12341_s30, %s12341_s30 }
  0x46   :  { %p12348_p0 = por %p12347_p13, %p12346_p12 }
  0x48   :  { %p12349_p1 = pnand %p12348_p0, %p12342_p11 }
  0x4a   :  { %12352 = shalt.err (!%p12349_p1)
}
  0x4b   :  { %78 = dma.hbm_to_vmem [thread:$0]  %s16608_s7, 24576, %s73_s23, [#allocation11], %s12469_s22, %s12469_s22, %s12470_s2  }
  0x4c   :  { %s12361_s5 = scalar_lea.vmem %s97_s15, 192  ;;  %p12366_p3 = scmp.lt.s32.totalorder %s97_s15, %s97_s15 }
  0x4d   :  { %p12362_p2 = scmp.ne.s32.totalorder %s97_s15, %s12361_s5  ;;  %p12367_p4 = scmp.lt.s32.totalorder %s12361_s5, %s12361_s5 }
  0x4f   :  { %p12368_p5 = por %p12367_p4, %p12366_p3 }
  0x51   :  { %p12369_p6 = pnand %p12368_p5, %p12362_p2 }
  0x53   :  { %12372 = shalt.err (!%p12369_p6)
}
  0x54   :  { %102 = dma.hbm_to_vmem [thread:$0]  %s16610_s9, 192, %s97_s15, [#allocation14], %s12471_s3, %s12471_s3, %s12472_s26  }
  0x55   :  { %s12480_s27 = smov [#allocation18]   ;;  %s12481_s29 = smov [#allocation21]  }
  0x56   :  { %s127_s28 = sshll.u32 %s12480_s27, 4  ;;  %s149_s7 = sshll.u32 %s12481_s29, 4  ;;  %s128_s28 = int_to_ptr.vmem [resolvable:$true] %s127_s28  ;;  %s150_s7 = int_to_ptr.vmem [resolvable:$true] %s149_s7 }
  0x57   :  { %s12381_s22 = scalar_lea.vmem %s128_s28, 16  ;;  %s12385_s2 = scalar_lea.vmem %s128_s28, 32 }
  0x58   :  { %p12382_p7 = scmp.ne.s32.totalorder %s128_s28, %s12381_s22  ;;  %p12386_p8 = scmp.lt.s32.totalorder %s128_s28, %s128_s28 }
  0x59   :  { %p12387_p9 = scmp.lt.s32.totalorder %s12385_s2, %s12381_s22 }
  0x5b   :  { %p12388_p10 = por %p12387_p9, %p12386_p8 }
  0x5d   :  { %p12389_p11 = pnand %p12388_p10, %p12382_p7 }
  0x5f   :  { %12392 = shalt.err (!%p12389_p11)
}
  0x60   :  { %130 = dma.hbm_to_vmem [thread:$0]  %s16615_s14, 16, %s128_s28, [#allocation17]  }
  0x61   :  { %s12401_s0 = scalar_lea.vmem %s150_s7, 16  ;;  %s12405_s9 = scalar_lea.vmem %s150_s7, 32 }
  0x62   :  { %p12402_p12 = scmp.ne.s32.totalorder %s150_s7, %s12401_s0  ;;  %p12406_p13 = scmp.lt.s32.totalorder %s150_s7, %s150_s7 }
  0x63   :  { %p12407_p0 = scmp.lt.s32.totalorder %s12405_s9, %s12401_s0 }
  0x65   :  { %p12408_p1 = por %p12407_p0, %p12406_p13 }
  0x67   :  { %p12409_p2 = pnand %p12408_p1, %p12402_p12 }
  0x69   :  { %12412 = shalt.err (!%p12409_p2)
}
  0x6a   :  { %152 = dma.hbm_to_vmem [thread:$0]  %s16617_s16, 16, %s150_s7, [#allocation20]  }
  0x6b   :  { %12453 = dma.done.wait [#allocation8], 24576  }
  0x6c   :  { %12454 = vsyncadd [#allocation8], 4294942720 }
  0x6d   :  { %12455 = dma.done.wait [#allocation11], 49152  }
  0x6e   :  { %12456 = vsyncadd [#allocation11], 4294918144 }
  0x6f   :  { %12457 = dma.done.wait [#allocation14], 384  }
  0x70   :  { %12458 = vsyncadd [#allocation14], 4294966912 }
  0x71   :  { %12459 = dma.done.wait [#allocation17], 2064  }
  0x72   :  { %12460 = vsyncadd [#allocation17], 4294965232 }
  0x73   :  { %12461 = dma.done.wait [#allocation20], 2064  }
  0x74   :  { %12462 = vsyncadd [#allocation20], 4294965232  ;;  %v16628_v0 = vmov 0.0   ;;  %vm12483_vm0 = vmmov 0   ;;  %v283_v1 = vld [vmem:[#allocation10 + $0x170] sm:$0xff]  ;;  %v282_v2 = vld [vmem:[#allocation10 + $0x168] sm:$0xff] }
  0x75   :  { %10041 = vmatprep.subr.mxu1 %v16628_v0  ;;  %399 = vmatprep.mubr.f32.mxu0 %v16628_v0  ;;  %v280_v3 = vld [vmem:[#allocation10 + $0x158] sm:$0xff]  ;;  %v279_v4 = vld [vmem:[#allocation10 + $0x150] sm:$0xff]  ;;  %v277_v5 = vld [vmem:[#allocation10 + $0x140] sm:$0xff]  ;;  %s16804_s1 = sld [smem:[#allocation54_spill]]  ;;  %vm476_vm2 = vcmask 64512   ;;  %vm9123_vm6 = vcmask 7168  }
  0x76   :  { %10073 = vmatprep.mubr.msk.f32.mxu1 %vm12483_vm0, %v16628_v0  ;;  %335 = vmatprep.subr.mxu0 %v283_v1  ;;  %v284_v6 = vld [vmem:[#allocation10 + $0x178] sm:$0xff]  ;;  %v281_v8 = vld [vmem:[#allocation10 + $0x160] sm:$0xff]  ;;  %v274_v9 = vld [vmem:[#allocation10 + $0x128] sm:$0xff]  ;;  %s16868_s20 = sld [smem:[#allocation55_spill]] }
  0x77   :  { %336 = vmatpush1.msra.mxu0 %v282_v2  ;;  %v276_v7 = vld [vmem:[#allocation10 + $0x138] sm:$0xff]  ;;  %10042 = vmatpush3.msra.mxu1 %v284_v6  ;;  %v278_v10 = vld [vmem:[#allocation10 + $0x148] sm:$0xff]  ;;  %v273_v11 = vld [vmem:[#allocation10 + $0x120] sm:$0xff]  ;;  %s16883_s14 = sld [smem:[#allocation53_spill]] }
  0x78   :  { %337 = vmatprep.subr.mxu0 %v280_v3  ;;  %10043 = vmatprep.subr.mxu1 %v16628_v0  ;;  %v271_v12 = vld [vmem:[#allocation10 + $0x110] sm:$0xff]  ;;  %v270_v14 = vld [vmem:[#allocation10 + $0x108] sm:$0xff]  ;;  %v268_v15 = vld [vmem:[#allocation10 + $0xf8] sm:$0xff] }
  0x79   :  { %338 = vmatpush1.msra.mxu0 %v279_v4  ;;  %10044 = vmatpush3.msra.mxu1 %v281_v8  ;;  %v275_v13 = vld [vmem:[#allocation10 + $0x130] sm:$0xff]  ;;  %v272_v16 = vld [vmem:[#allocation10 + $0x118] sm:$0xff]  ;;  %v265_v18 = vld [vmem:[#allocation10 + $0xe0] sm:$0xff] }
  0x7a   :  { %339 = vmatprep.subr.mxu0 %v277_v5  ;;  %10045 = vmatprep.subr.mxu1 %v16628_v0  ;;  %v267_v17 = vld [vmem:[#allocation10 + $0xf0] sm:$0xff]  ;;  %v269_v19 = vld [vmem:[#allocation10 + $0x100] sm:$0xff]  ;;  %v264_v20 = vld [vmem:[#allocation10 + $0xd8] sm:$0xff] }
  0x7b   :  { %340 = vmatpush1.msra.mxu0 %v276_v7  ;;  %10046 = vmatpush3.msra.mxu1 %v278_v10  ;;  %v262_v21 = vld [vmem:[#allocation10 + $0xc8] sm:$0xff]  ;;  %v261_v23 = vld [vmem:[#allocation10 + $0xc0] sm:$0xff]  ;;  %v259_v24 = vld [vmem:[#allocation10 + $0xb0] sm:$0xff] }
  0x7c   :  { %341 = vmatprep.subr.mxu0 %v274_v9  ;;  %10047 = vmatprep.subr.mxu1 %v16628_v0  ;;  %v266_v22 = vld [vmem:[#allocation10 + $0xe8] sm:$0xff]  ;;  %v263_v25 = vld [vmem:[#allocation10 + $0xd0] sm:$0xff]  ;;  %v256_v27 = vld [vmem:[#allocation10 + $0x98] sm:$0xff] }
  0x7d   :  { %342 = vmatpush1.msra.mxu0 %v273_v11  ;;  %10048 = vmatpush3.msra.mxu1 %v275_v13  ;;  %v258_v26 = vld [vmem:[#allocation10 + $0xa8] sm:$0xff]  ;;  %v260_v28 = vld [vmem:[#allocation10 + $0xb8] sm:$0xff]  ;;  %v255_v29 = vld [vmem:[#allocation10 + $0x90] sm:$0xff]  ;;  %p4364_p3 = scmp.gt.s32.totalorder %s16883_s14, 0  ;;  %p4378_p4 = scmp.gt.s32.totalorder %s16883_s14, 1 }
  0x7e   :  { %343 = vmatprep.subr.mxu0 %v271_v12  ;;  %10049 = vmatprep.subr.mxu1 %v16628_v0  ;;  %v253_v30 = vld [vmem:[#allocation10 + $0x80] sm:$0xff]  ;;  %v252_v32 = vld [vmem:[#allocation10 + $0x78] sm:$0xff]  ;;  %v250_v33 = vld [vmem:[#allocation10 + $0x68] sm:$0xff]  ;;  %p4392_p5 = scmp.gt.s32.totalorder %s16883_s14, 2  ;;  %p4406_p6 = scmp.gt.s32.totalorder %s16883_s14, 3 }
  0x7f   :  { %344 = vmatpush1.msra.mxu0 %v270_v14  ;;  %10050 = vmatpush3.msra.mxu1 %v272_v16  ;;  %v257_v31 = vld [vmem:[#allocation10 + $0xa0] sm:$0xff]  ;;  %v254_v34 = vld [vmem:[#allocation10 + $0x88] sm:$0xff]  ;;  %v247_v36 = vld [vmem:[#allocation10 + $0x50] sm:$0xff]  ;;  %p4420_p7 = scmp.gt.s32.totalorder %s16883_s14, 4  ;;  %p4434_p8 = scmp.gt.s32.totalorder %s16883_s14, 5 }
  0x80   :  { %345 = vmatprep.subr.mxu0 %v268_v15  ;;  %10051 = vmatprep.subr.mxu1 %v16628_v0  ;;  %v249_v35 = vld [vmem:[#allocation10 + $0x60] sm:$0xff]  ;;  %v251_v37 = vld [vmem:[#allocation10 + $0x70] sm:$0xff]  ;;  %v246_v38 = vld [vmem:[#allocation10 + $0x48] sm:$0xff]  ;;  %p4448_p9 = scmp.gt.s32.totalorder %s16883_s14, 6  ;;  %p4462_p10 = scmp.gt.s32.totalorder %s16883_s14, 7 }
  0x81   :  { %346 = vmatpush1.msra.mxu0 %v267_v17  ;;  %10052 = vmatpush3.msra.mxu1 %v269_v19  ;;  %v244_v39 = vld [vmem:[#allocation10 + $0x38] sm:$0xff]  ;;  %v243_v41 = vld [vmem:[#allocation10 + $0x30] sm:$0xff]  ;;  %v241_v42 = vld [vmem:[#allocation10 + $0x20] sm:$0xff] }
  0x82   :  { %347 = vmatprep.subr.mxu0 %v265_v18  ;;  %10053 = vmatprep.subr.mxu1 %v16628_v0  ;;  %v248_v40 = vld [vmem:[#allocation10 + $0x58] sm:$0xff]  ;;  %v245_v43 = vld [vmem:[#allocation10 + $0x40] sm:$0xff]  ;;  %v238_v45 = vld [vmem:[#allocation10 + $0x8] sm:$0xff] }
  0x83   :  { %348 = vmatpush1.msra.mxu0 %v264_v20  ;;  %10054 = vmatpush3.msra.mxu1 %v266_v22  ;;  %v240_v44 = vld [vmem:[#allocation10 + $0x18] sm:$0xff]  ;;  %v242_v46 = vld [vmem:[#allocation10 + $0x28] sm:$0xff]  ;;  %v237_v47 = vld [vmem:[#allocation10] sm:$0xff] }
  0x84   :  { %349 = vmatprep.subr.mxu0 %v262_v21  ;;  %10055 = vmatprep.subr.mxu1 %v16628_v0  ;;  %v12649_v48 = vld [vmem:[%s16804_s1] sm:$0xff]  ;;  %v239_v49 = vld [vmem:[#allocation10 + $0x10] sm:$0xff]  ;;  %v234_v51 = vld [vmem:[#allocation7 + $0x168] sm:$0xff] }
  0x85   :  { %350 = vmatpush1.msra.mxu0 %v261_v23  ;;  %10056 = vmatpush3.msra.mxu1 %v263_v25  ;;  %v235_v50 = vld [vmem:[#allocation7 + $0x170] sm:$0xff]  ;;  %v232_v52 = vld [vmem:[#allocation7 + $0x158] sm:$0xff]  ;;  %v229_v54 = vld [vmem:[#allocation7 + $0x140] sm:$0xff] }
  0x86   :  { %351 = vmatprep.subr.mxu0 %v259_v24  ;;  %10057 = vmatprep.subr.mxu1 %v16628_v0  ;;  %v231_v53 = vld [vmem:[#allocation7 + $0x150] sm:$0xff]  ;;  %v228_v55 = vld [vmem:[#allocation7 + $0x138] sm:$0xff]  ;;  %v226_v56 = vld [vmem:[#allocation7 + $0x128] sm:$0xff] }
  0x87   :  { %352 = vmatpush1.msra.mxu0 %v258_v26  ;;  %10058 = vmatpush3.msra.mxu1 %v260_v28  ;;  %v225_v57 = vld [vmem:[#allocation7 + $0x120] sm:$0xff]  ;;  %v223_v58 = vld [vmem:[#allocation7 + $0x110] sm:$0xff]  ;;  %v222_v59 = vld [vmem:[#allocation7 + $0x108] sm:$0xff] }
  0x88   :  { %353 = vmatprep.subr.mxu0 %v256_v27  ;;  %10059 = vmatprep.subr.mxu1 %v16628_v0  ;;  %v220_v60 = vld [vmem:[#allocation7 + $0xf8] sm:$0xff]  ;;  %v219_v61 = vld [vmem:[#allocation7 + $0xf0] sm:$0xff]  ;;  %v217_v62 = vld [vmem:[#allocation7 + $0xe0] sm:$0xff] }
  0x89   :  { %354 = vmatpush1.msra.mxu0 %v255_v29  ;;  %10060 = vmatpush3.msra.mxu1 %v257_v31  ;;  %v216_v63 = vld [vmem:[#allocation7 + $0xd8] sm:$0xff]  ;;  %v214_v1 = vld [vmem:[#allocation7 + $0xc8] sm:$0xff]  ;;  %v213_v2 = vld [vmem:[#allocation7 + $0xc0] sm:$0xff] }
  0x8a   :  { %355 = vmatprep.subr.mxu0 %v253_v30  ;;  %10061 = vmatprep.subr.mxu1 %v16628_v0  ;;  %v211_v3 = vld [vmem:[#allocation7 + $0xb0] sm:$0xff]  ;;  %v210_v4 = vld [vmem:[#allocation7 + $0xa8] sm:$0xff]  ;;  %v208_v5 = vld [vmem:[#allocation7 + $0x98] sm:$0xff] }
  0x8b   :  { %356 = vmatpush1.msra.mxu0 %v252_v32  ;;  %10062 = vmatpush3.msra.mxu1 %v254_v34  ;;  %v207_v6 = vld [vmem:[#allocation7 + $0x90] sm:$0xff]  ;;  %v205_v7 = vld [vmem:[#allocation7 + $0x80] sm:$0xff]  ;;  %v204_v8 = vld [vmem:[#allocation7 + $0x78] sm:$0xff] }
  0x8c   :  { %357 = vmatprep.subr.mxu0 %v250_v33  ;;  %10063 = vmatprep.subr.mxu1 %v16628_v0  ;;  %v202_v9 = vld [vmem:[#allocation7 + $0x68] sm:$0xff]  ;;  %v201_v10 = vld [vmem:[#allocation7 + $0x60] sm:$0xff]  ;;  %v199_v11 = vld [vmem:[#allocation7 + $0x50] sm:$0xff] }
  0x8d   :  { %358 = vmatpush1.msra.mxu0 %v249_v35  ;;  %10064 = vmatpush3.msra.mxu1 %v251_v37  ;;  %v198_v12 = vld [vmem:[#allocation7 + $0x48] sm:$0xff]  ;;  %v196_v13 = vld [vmem:[#allocation7 + $0x38] sm:$0xff]  ;;  %v195_v14 = vld [vmem:[#allocation7 + $0x30] sm:$0xff] }
  0x8e   :  { %359 = vmatprep.subr.mxu0 %v247_v36  ;;  %10065 = vmatprep.subr.mxu1 %v16628_v0  ;;  %v193_v15 = vld [vmem:[#allocation7 + $0x20] sm:$0xff]  ;;  %v192_v16 = vld [vmem:[#allocation7 + $0x18] sm:$0xff]  ;;  %v190_v17 = vld [vmem:[#allocation7 + $0x8] sm:$0xff] }
  0x8f   :  { %360 = vmatpush1.msra.mxu0 %v246_v38  ;;  %10066 = vmatpush3.msra.mxu1 %v248_v40  ;;  %v189_v18 = vld [vmem:[#allocation7] sm:$0xff]  ;;  %v12657_v19 = vld [vmem:[#allocation12 + $0x170] sm:$0xff]  ;;  %v12659_v20 = vld [vmem:[#allocation12 + $0x168] sm:$0xff] }
  0x90   :  { %361 = vmatprep.subr.mxu0 %v244_v39  ;;  %10067 = vmatprep.subr.mxu1 %v16628_v0  ;;  %16805 = vst [vmem:[#allocation32_spill] sm:$0xff] %v12657_v19  ;;  %v12661_v21 = vld [vmem:[#allocation12 + $0x158] sm:$0xff]  ;;  %v12665_v22 = vld [vmem:[#allocation12 + $0x150] sm:$0xff]  ;;  %v12668_v23 = vld [vmem:[#allocation12 + $0x140] sm:$0xff] }
  0x91   :  { %362 = vmatpush1.msra.mxu0 %v243_v41  ;;  %10068 = vmatpush3.msra.mxu1 %v245_v43  ;;  %v12672_v24 = vld [vmem:[#allocation12 + $0x138] sm:$0xff]  ;;  %v12675_v25 = vld [vmem:[#allocation12 + $0x128] sm:$0xff]  ;;  %v12678_v26 = vld [vmem:[#allocation12 + $0x120] sm:$0xff] }
  0x92   :  { %363 = vmatprep.subr.mxu0 %v241_v42  ;;  %10069 = vmatprep.subr.mxu1 %v16628_v0  ;;  %v12681_v27 = vld [vmem:[#allocation12 + $0x110] sm:$0xff]  ;;  %v12684_v28 = vld [vmem:[#allocation12 + $0x108] sm:$0xff]  ;;  %v12687_v29 = vld [vmem:[#allocation12 + $0xf8] sm:$0xff] }
  0x93   :  { %364 = vmatpush1.msra.mxu0 %v240_v44  ;;  %10070 = vmatpush3.msra.mxu1 %v242_v46  ;;  %v12690_v30 = vld [vmem:[#allocation12 + $0xf0] sm:$0xff]  ;;  %v12693_v31 = vld [vmem:[#allocation12 + $0xe0] sm:$0xff]  ;;  %v12696_v32 = vld [vmem:[#allocation12 + $0xd8] sm:$0xff] }
  0x94   :  { %365 = vmatprep.subr.mxu0 %v238_v45  ;;  %10071 = vmatprep.subr.mxu1 %v16628_v0  ;;  %v12699_v33 = vld [vmem:[#allocation12 + $0xc8] sm:$0xff]  ;;  %v12702_v34 = vld [vmem:[#allocation12 + $0xc0] sm:$0xff]  ;;  %v12705_v35 = vld [vmem:[#allocation12 + $0xb0] sm:$0xff] }
  0x95   :  { %366 = vmatpush1.msra.mxu0 %v237_v47  ;;  %10072 = vmatpush3.msra.mxu1 %v239_v49  ;;  %v12708_v36 = vld [vmem:[#allocation12 + $0xa8] sm:$0xff]  ;;  %v12711_v37 = vld [vmem:[#allocation12 + $0x98] sm:$0xff]  ;;  %v12714_v38 = vld [vmem:[#allocation12 + $0x90] sm:$0xff] }
  0x96   :  { %400 = vmatmul.mubr.f32.vlgmr.msra.gmra.mxu0 %v12649_v48  ;;  %10074 = vmatmul.mubr.f32.vlgmr.msra.gmra.mxu1 %v12649_v48  ;;  %v12717_v39 = vld [vmem:[#allocation12 + $0x80] sm:$0xff]  ;;  %v12720_v40 = vld [vmem:[#allocation12 + $0x78] sm:$0xff]  ;;  %v12723_v41 = vld [vmem:[#allocation12 + $0x68] sm:$0xff] }
  0x97   :  { %621 = vmatprep.subr.mxu0 %v235_v50  ;;  %685 = vmatprep.mubr.f32.mxu0 %v16628_v0  ;;  %v12726_v42 = vld [vmem:[#allocation12 + $0x60] sm:$0xff]  ;;  %v12729_v43 = vld [vmem:[#allocation12 + $0x50] sm:$0xff]  ;;  %v12734_v44 = vld [vmem:[#allocation12 + $0x48] sm:$0xff] }
  0x98   :  { %622 = vmatpush1.msra.mxu0 %v234_v51  ;;  %544 = vmatprep.mubr.f32.mxu1 %v16628_v0  ;;  %v12737_v45 = vld [vmem:[#allocation12 + $0x38] sm:$0xff]  ;;  %v12740_v46 = vld [vmem:[#allocation12 + $0x30] sm:$0xff]  ;;  %v12743_v47 = vld [vmem:[#allocation12 + $0x20] sm:$0xff] }
  0x99   :  { %623 = vmatprep.subr.mxu0 %v232_v52  ;;  %16806 = vst [vmem:[#allocation33_spill] sm:$0xff] %v12743_v47  ;;  %v12746_v49 = vld [vmem:[#allocation12 + $0x18] sm:$0xff]  ;;  %v12749_v50 = vld [vmem:[#allocation12 + $0x8] sm:$0xff]  ;;  %v12752_v51 = vld [vmem:[#allocation12] sm:$0xff]  ;;  %v180_v52 = vlaneseq }
  0x9a   :  { %624 = vmatpush1.msra.mxu0 %v231_v53  ;;  %16807 = vst [vmem:[#allocation34_spill] sm:$0xff] %v12746_v49  ;;  %16808 = vst [vmem:[#allocation35_spill] sm:$0xff] %v12749_v50 }
  0x9b   :  { %625 = vmatprep.subr.mxu0 %v229_v54  ;;  %16809 = vst [vmem:[#allocation36_spill] sm:$0xff] %v12752_v51  ;;  %v12790_v53 = vshrl.u32 %v180_v52, 7  ;;  %v12792_v54 = vand.u32 127, %v180_v52  ;;  %v12850_v52 = vld [vmem:[#allocation12 + $0xe8] sm:$0xff] }
  0x9c   :  { %626 = vmatpush1.msra.mxu0 %v228_v55 }
  0x9d   :  { %627 = vmatprep.subr.mxu0 %v226_v56  ;;  %16810 = vst [vmem:[#allocation37_spill] sm:$0xff] %v12792_v54  ;;  %v184_v55 = vadd.s32 %v12792_v54, %v12790_v53 }
  0x9e   :  { %628 = vmatpush1.msra.mxu0 %v225_v57 }
  0x9f   :  { %629 = vmatprep.subr.mxu0 %v223_v58  ;;  %vm185_vm1 = vcmp.eq.s32.totalorder %v184_v55, 7  ;;  %v12854_v55 = vld [vmem:[#allocation12 + $0xd0] sm:$0xff] }
  0xa0   :  { %630 = vmatpush1.msra.mxu0 %v222_v59  ;;  %v12797_v59 = vsel %vm185_vm1, 1.0, %v16628_v0 }
  0xa1   :  { %631 = vmatprep.subr.mxu0 %v220_v60  ;;  %16811 = vst [vmem:[#allocation38_spill] sm:$0xff] %v12797_v59 }
  0xa2   :  { %632 = vmatpush1.msra.mxu0 %v219_v61  ;;  %v236_v61 = vld [vmem:[#allocation7 + $0x178] sm:$0xff] }
  0xa3   :  { %633 = vmatprep.subr.mxu0 %v217_v62  ;;  %v233_v62 = vld [vmem:[#allocation7 + $0x160] sm:$0xff] }
  0xa4   :  { %634 = vmatpush1.msra.mxu0 %v216_v63  ;;  %v230_v63 = vld [vmem:[#allocation7 + $0x148] sm:$0xff] }
  0xa5   :  { %635 = vmatprep.subr.mxu0 %v214_v1  ;;  %v227_v1 = vld [vmem:[#allocation7 + $0x130] sm:$0xff] }
  0xa6   :  { %636 = vmatpush1.msra.mxu0 %v213_v2  ;;  %v224_v2 = vld [vmem:[#allocation7 + $0x118] sm:$0xff] }
  0xa7   :  { %637 = vmatprep.subr.mxu0 %v211_v3  ;;  %v221_v3 = vld [vmem:[#allocation7 + $0x100] sm:$0xff] }
  0xa8   :  { %638 = vmatpush1.msra.mxu0 %v210_v4  ;;  %v218_v4 = vld [vmem:[#allocation7 + $0xe8] sm:$0xff] }
  0xa9   :  { %639 = vmatprep.subr.mxu0 %v208_v5  ;;  %v215_v5 = vld [vmem:[#allocation7 + $0xd0] sm:$0xff] }
  0xaa   :  { %640 = vmatpush1.msra.mxu0 %v207_v6  ;;  %v212_v6 = vld [vmem:[#allocation7 + $0xb8] sm:$0xff] }
  0xab   :  { %641 = vmatprep.subr.mxu0 %v205_v7  ;;  %v209_v7 = vld [vmem:[#allocation7 + $0xa0] sm:$0xff] }
  0xac   :  { %642 = vmatpush1.msra.mxu0 %v204_v8  ;;  %v206_v8 = vld [vmem:[#allocation7 + $0x88] sm:$0xff] }
  0xad   :  { %643 = vmatprep.subr.mxu0 %v202_v9  ;;  %v203_v9 = vld [vmem:[#allocation7 + $0x70] sm:$0xff] }
  0xae   :  { %644 = vmatpush1.msra.mxu0 %v201_v10  ;;  %v200_v10 = vld [vmem:[#allocation7 + $0x58] sm:$0xff] }
  0xaf   :  { %645 = vmatprep.subr.mxu0 %v199_v11  ;;  %v197_v11 = vld [vmem:[#allocation7 + $0x40] sm:$0xff] }
  0xb0   :  { %646 = vmatpush1.msra.mxu0 %v198_v12  ;;  %v194_v12 = vld [vmem:[#allocation7 + $0x28] sm:$0xff] }
  0xb1   :  { %647 = vmatprep.subr.mxu0 %v196_v13  ;;  %v191_v13 = vld [vmem:[#allocation7 + $0x10] sm:$0xff] }
  0xb2   :  { %648 = vmatpush1.msra.mxu0 %v195_v14  ;;  %v12824_v14 = vld [vmem:[#allocation12 + $0x178] sm:$0xff] }
  0xb3   :  { %649 = vmatprep.subr.mxu0 %v193_v15  ;;  %v12828_v15 = vld [vmem:[#allocation12 + $0x160] sm:$0xff] }
  0xb4   :  { %650 = vmatpush1.msra.mxu0 %v192_v16  ;;  %v12834_v16 = vld [vmem:[#allocation12 + $0x148] sm:$0xff] }
  0xb5   :  { %651 = vmatprep.subr.mxu0 %v190_v17  ;;  %v12838_v17 = vld [vmem:[#allocation12 + $0x130] sm:$0xff] }
  0xb6   :  { %652 = vmatpush1.msra.mxu0 %v189_v18  ;;  %v12846_v18 = vld [vmem:[#allocation12 + $0x100] sm:$0xff] }
  0xb7   :  { %797 = vmatprep.subr.mxu0 %v12657_v19  ;;  %686 = vmatmul.mubr.f32.vlgmr.msra.gmra.mxu0 %v12649_v48 }
  0xb8   :  { %798 = vmatpush1.msra.mxu0 %v12659_v20  ;;  %861 = vmatprep.mubr.f32.mxu0 %v16628_v0 }
  0xb9   :  { %799 = vmatprep.subr.mxu0 %v12661_v21 }
  0xba   :  { %800 = vmatpush1.msra.mxu0 %v12665_v22 }
  0xbb   :  { %801 = vmatprep.subr.mxu0 %v12668_v23 }
  0xbc   :  { %802 = vmatpush1.msra.mxu0 %v12672_v24 }
  0xbd   :  { %803 = vmatprep.subr.mxu0 %v12675_v25 }
  0xbe   :  { %804 = vmatpush1.msra.mxu0 %v12678_v26 }
  0xbf   :  { %805 = vmatprep.subr.mxu0 %v12681_v27 }
  0xc0   :  { %806 = vmatpush1.msra.mxu0 %v12684_v28 }
  0xc1   :  { %807 = vmatprep.subr.mxu0 %v12687_v29 }
  0xc2   :  { %808 = vmatpush1.msra.mxu0 %v12690_v30 }
  0xc3   :  { %809 = vmatprep.subr.mxu0 %v12693_v31 }
  0xc4   :  { %810 = vmatpush1.msra.mxu0 %v12696_v32 }
  0xc5   :  { %811 = vmatprep.subr.mxu0 %v12699_v33 }
  0xc6   :  { %812 = vmatpush1.msra.mxu0 %v12702_v34 }
  0xc7   :  { %813 = vmatprep.subr.mxu0 %v12705_v35 }
  0xc8   :  { %814 = vmatpush1.msra.mxu0 %v12708_v36 }
  0xc9   :  { %815 = vmatprep.subr.mxu0 %v12711_v37 }
  0xca   :  { %816 = vmatpush1.msra.mxu0 %v12714_v38 }
  0xcb   :  { %817 = vmatprep.subr.mxu0 %v12717_v39 }
  0xcc   :  { %818 = vmatpush1.msra.mxu0 %v12720_v40 }
  0xcd   :  { %819 = vmatprep.subr.mxu0 %v12723_v41 }
  0xce   :  { %820 = vmatpush1.msra.mxu0 %v12726_v42 }
  0xcf   :  { %821 = vmatprep.subr.mxu0 %v12729_v43 }
  0xd0   :  { %822 = vmatpush1.msra.mxu0 %v12734_v44 }
  0xd1   :  { %823 = vmatprep.subr.mxu0 %v12737_v45 }
  0xd2   :  { %824 = vmatpush1.msra.mxu0 %v12740_v46 }
  0xd3   :  { %825 = vmatprep.subr.mxu0 %v12743_v47 }
  0xd4   :  { %826 = vmatpush1.msra.mxu0 %v12746_v49 }
  0xd5   :  { %827 = vmatprep.subr.mxu0 %v12749_v50 }
  0xd6   :  { %828 = vmatpush1.msra.mxu0 %v12752_v51 }
  0xd7   :  { %862 = vmatmul.mubr.f32.vlgmr.msra.gmra.mxu0 %v16628_v0  ;;  %960 = vmatprep.subr.mxu0 %v12657_v19 }
  0xd8   :  { %961 = vmatpush1.msra.mxu0 %v12659_v20  ;;  %1024 = vmatprep.mubr.f32.mxu0 %v16628_v0 }
  0xd9   :  { %962 = vmatprep.subr.mxu0 %v12661_v21 }
  0xda   :  { %963 = vmatpush1.msra.mxu0 %v12665_v22 }
  0xdb   :  { %964 = vmatprep.subr.mxu0 %v12668_v23 }
  0xdc   :  { %965 = vmatpush1.msra.mxu0 %v12672_v24 }
  0xdd   :  { %966 = vmatprep.subr.mxu0 %v12675_v25 }
  0xde   :  { %967 = vmatpush1.msra.mxu0 %v12678_v26 }
  0xdf   :  { %968 = vmatprep.subr.mxu0 %v12681_v27 }
  0xe0   :  { %969 = vmatpush1.msra.mxu0 %v12684_v28 }
  0xe1   :  { %970 = vmatprep.subr.mxu0 %v12687_v29 }
  0xe2   :  { %971 = vmatpush1.msra.mxu0 %v12690_v30 }
  0xe3   :  { %972 = vmatprep.subr.mxu0 %v12693_v31 }
  0xe4   :  { %973 = vmatpush1.msra.mxu0 %v12696_v32 }
  0xe5   :  { %974 = vmatprep.subr.mxu0 %v12699_v33 }
  0xe6   :  { %975 = vmatpush1.msra.mxu0 %v12702_v34 }
  0xe7   :  { %976 = vmatprep.subr.mxu0 %v12705_v35 }
  0xe8   :  { %977 = vmatpush1.msra.mxu0 %v12708_v36 }
  0xe9   :  { %978 = vmatprep.subr.mxu0 %v12711_v37 }
  0xea   :  { %979 = vmatpush1.msra.mxu0 %v12714_v38 }
  0xeb   :  { %980 = vmatprep.subr.mxu0 %v12717_v39 }
  0xec   :  { %981 = vmatpush1.msra.mxu0 %v12720_v40 }
  0xed   :  { %982 = vmatprep.subr.mxu0 %v12723_v41 }
  0xee   :  { %983 = vmatpush1.msra.mxu0 %v12726_v42 }
  0xef   :  { %984 = vmatprep.subr.mxu0 %v12729_v43 }
  0xf0   :  { %985 = vmatpush1.msra.mxu0 %v12734_v44 }
  0xf1   :  { %986 = vmatprep.subr.mxu0 %v12737_v45 }
  0xf2   :  { %987 = vmatpush1.msra.mxu0 %v12740_v46 }
  0xf3   :  { %988 = vmatprep.subr.mxu0 %v12743_v47 }
  0xf4   :  { %989 = vmatpush1.msra.mxu0 %v12746_v49 }
  0xf5   :  { %990 = vmatprep.subr.mxu0 %v12749_v50 }
  0xf6   :  { %991 = vmatpush1.msra.mxu0 %v12752_v51 }
  0xf7   :  { %1138 = vmatprep.subr.mxu0 %v12657_v19  ;;  %v12939_v19 = vsub.s32 1, %v12790_v53 }
  0xf9   :  { %16818 = vst [vmem:[#allocation45_spill] sm:$0xff] %v12939_v19 }
 0x156   :  { %v401_v56 = vpop.f32.mrf.mxu0  ;;  %v472_v57 = vpop.f32.mrf.mxu1 }
 0x158   :  { %v403_v58 = vpop.f32.mrf.mxu0  ;;  %v10075_v60 = vpop.f32.mrf.mxu1 }
 0x159   :  { %510 = vmatprep.subr.mxu1 %v403_v58  ;;  %v12866_v58 = vld [vmem:[#allocation12 + $0x88] sm:$0xff]  ;;  %v12870_v60 = vld [vmem:[#allocation12 + $0x70] sm:$0xff] }
 0x15a   :  { %511 = vmatpush1.msra.mxu1 %v401_v56  ;;  %v12858_v56 = vld [vmem:[#allocation12 + $0xb8] sm:$0xff] }
 0x15b   :  { %9189 = vmatmul.mubr.msk.f32.vlgmr.msra.gmra.mxu1 %vm476_vm2, %v12797_v59  ;;  %10076 = vmatprep.subr.mxu1 %v16628_v0 }
 0x15c   :  { %10077 = vmatpush3.msra.mxu1 %v472_v57  ;;  %10078 = vmatprep.mubr.msk.f32.mxu1 %vm12483_vm0, %v16628_v0  ;;  %v12862_v57 = vld [vmem:[#allocation12 + $0xa0] sm:$0xff] }
 0x15d   :  { %10081 = vmatprep.subr.mxu1 %v16628_v0 }
 0x15f   :  { %10079 = vmatmul.mubr.msk.f32.vlgmr.msra.gmra.mxu1 %vm476_vm2, %v12797_v59 }
 0x160   :  { %10082 = vmatpush3.msra.mxu1 %v236_v61  ;;  %10113 = vmatprep.mubr.msk.f32.mxu1 %vm12483_vm0, %v16628_v0  ;;  %v12874_v61 = vld [vmem:[#allocation12 + $0x58] sm:$0xff] }
 0x161   :  { %10083 = vmatprep.subr.mxu1 %v16628_v0 }
 0x162   :  { %10084 = vmatpush3.msra.mxu1 %v233_v62  ;;  %v12878_v62 = vld [vmem:[#allocation12 + $0x40] sm:$0xff] }
 0x163   :  { %10085 = vmatprep.subr.mxu1 %v16628_v0  ;;  %16812 = vst [vmem:[#allocation39_spill] sm:$0xff] %v12878_v62 }
 0x164   :  { %10086 = vmatpush3.msra.mxu1 %v230_v63  ;;  %v12882_v63 = vld [vmem:[#allocation12 + $0x28] sm:$0xff] }
 0x165   :  { %10087 = vmatprep.subr.mxu1 %v16628_v0  ;;  %16813 = vst [vmem:[#allocation40_spill] sm:$0xff] %v12882_v63 }
 0x166   :  { %10088 = vmatpush3.msra.mxu1 %v227_v1  ;;  %v12886_v1 = vld [vmem:[#allocation12 + $0x10] sm:$0xff] }
 0x167   :  { %10089 = vmatprep.subr.mxu1 %v16628_v0  ;;  %16814 = vst [vmem:[#allocation41_spill] sm:$0xff] %v12886_v1 }
 0x168   :  { %10090 = vmatpush3.msra.mxu1 %v224_v2 }
 0x169   :  { %10091 = vmatprep.subr.mxu1 %v16628_v0 }
 0x16a   :  { %10092 = vmatpush3.msra.mxu1 %v221_v3 }
 0x16b   :  { %10093 = vmatprep.subr.mxu1 %v16628_v0 }
 0x16c   :  { %10094 = vmatpush3.msra.mxu1 %v218_v4 }
 0x16d   :  { %10095 = vmatprep.subr.mxu1 %v16628_v0 }
 0x16e   :  { %10096 = vmatpush3.msra.mxu1 %v215_v5 }
 0x16f   :  { %10097 = vmatprep.subr.mxu1 %v16628_v0 }
 0x170   :  { %10098 = vmatpush3.msra.mxu1 %v212_v6 }
 0x171   :  { %10099 = vmatprep.subr.mxu1 %v16628_v0 }
 0x172   :  { %10100 = vmatpush3.msra.mxu1 %v209_v7  ;;  %v12928_v7 = vsub.s32 0, %v12790_v53 }
 0x173   :  { %10101 = vmatprep.subr.mxu1 %v16628_v0 }
 0x174   :  { %10102 = vmatpush3.msra.mxu1 %v206_v8  ;;  %16815 = vst [vmem:[#allocation42_spill] sm:$0xff] %v12928_v7  ;;  %v333_v8 = vld [vmem:[#allocation13] sm:$0x7] }
 0x175   :  { %10103 = vmatprep.subr.mxu1 %v16628_v0  ;;  %v770_v50 = vrot.slane %v333_v8, %v12939_v19 }
 0x176   :  { %10104 = vmatpush3.msra.mxu1 %v203_v9 }
 0x177   :  { %10105 = vmatprep.subr.mxu1 %v16628_v0  ;;  %v687_v6 = vpop.f32.mrf.mxu0 }
 0x178   :  { %10106 = vmatpush3.msra.mxu1 %v200_v10  ;;  %v334_v10 = vld [vmem:[#allocation15] sm:$0x7] }
 0x179   :  { %10107 = vmatprep.subr.mxu1 %v16628_v0  ;;  %v689_v9 = vpop.f32.mrf.mxu0 }
 0x17a   :  { %10108 = vmatpush3.msra.mxu1 %v197_v11 }
 0x17b   :  { %10109 = vmatprep.subr.mxu1 %v16628_v0 }
 0x17c   :  { %10110 = vmatpush3.msra.mxu1 %v194_v12  ;;  %v766_v12 = vrot.slane %v333_v8, %v12928_v7 }
 0x17d   :  { %10111 = vmatprep.subr.mxu1 %v16628_v0 }
 0x17e   :  { %10112 = vmatpush3.msra.mxu1 %v191_v13  ;;  %v12932_v13 = vrot.slane %v334_v10, %v12928_v7 }
 0x17f   :  { %10114 = vmatmul.mubr.f32.vlgmr.msra.gmra.mxu1 %v12649_v48  ;;  %10116 = vmatprep.subr.mxu1 %v16628_v0  ;;  %v12842_v48 = vld [vmem:[#allocation12 + $0x118] sm:$0xff] }
 0x180   :  { %10117 = vmatpush3.msra.mxu1 %v12824_v14  ;;  %10148 = vmatprep.mubr.msk.f32.mxu1 %vm12483_vm0, %v16628_v0  ;;  %16816 = vst [vmem:[#allocation43_spill] sm:$0xff] %v12932_v13 }
 0x181   :  { %10118 = vmatprep.subr.mxu1 %v16628_v0 }
 0x182   :  { %10119 = vmatpush3.msra.mxu1 %v12828_v15 }
 0x183   :  { %10120 = vmatprep.subr.mxu1 %v16628_v0 }
 0x184   :  { %10121 = vmatpush3.msra.mxu1 %v12834_v16 }
 0x185   :  { %10122 = vmatprep.subr.mxu1 %v16628_v0 }
 0x186   :  { %10123 = vmatpush3.msra.mxu1 %v12838_v17 }
 0x187   :  { %10124 = vmatprep.subr.mxu1 %v16628_v0 }
 0x188   :  { %10125 = vmatpush3.msra.mxu1 %v12842_v48 }
 0x189   :  { %10126 = vmatprep.subr.mxu1 %v16628_v0 }
 0x18a   :  { %10127 = vmatpush3.msra.mxu1 %v12846_v18 }
 0x18b   :  { %10128 = vmatprep.subr.mxu1 %v16628_v0 }
 0x18c   :  { %10129 = vmatpush3.msra.mxu1 %v12850_v52 }
 0x18d   :  { %10130 = vmatprep.subr.mxu1 %v16628_v0 }
 0x18e   :  { %10131 = vmatpush3.msra.mxu1 %v12854_v55 }
 0x18f   :  { %10132 = vmatprep.subr.mxu1 %v16628_v0 }
 0x190   :  { %10133 = vmatpush3.msra.mxu1 %v12858_v56 }
 0x191   :  { %10134 = vmatprep.subr.mxu1 %v16628_v0 }
 0x192   :  { %10135 = vmatpush3.msra.mxu1 %v12862_v57 }
 0x193   :  { %10136 = vmatprep.subr.mxu1 %v16628_v0 }
 0x194   :  { %10137 = vmatpush3.msra.mxu1 %v12866_v58 }
 0x195   :  { %10138 = vmatprep.subr.mxu1 %v16628_v0 }
 0x196   :  { %10139 = vmatpush3.msra.mxu1 %v12870_v60 }
 0x197   :  { %10140 = vmatprep.subr.mxu1 %v16628_v0  ;;  %v863_v54 = vpop.f32.mrf.mxu0 }
 0x198   :  { %10141 = vmatpush3.msra.mxu1 %v12874_v61 }
 0x199   :  { %10142 = vmatprep.subr.mxu1 %v16628_v0 }
 0x19a   :  { %10143 = vmatpush3.msra.mxu1 %v12878_v62 }
 0x19b   :  { %10144 = vmatprep.subr.mxu1 %v16628_v0 }
 0x19c   :  { %10145 = vmatpush3.msra.mxu1 %v12882_v63 }
 0x19d   :  { %10146 = vmatprep.subr.mxu1 %v16628_v0 }
 0x19e   :  { %10147 = vmatpush3.msra.mxu1 %v12886_v1 }
 0x19f   :  { %10149 = vmatmul.mubr.f32.vlgmr.msra.gmra.mxu1 %v16628_v0  ;;  %10151 = vmatprep.subr.mxu1 %v16628_v0 }
 0x1a0   :  { %10152 = vmatpush3.msra.mxu1 %v12824_v14  ;;  %10183 = vmatprep.mubr.msk.f32.mxu1 %vm12483_vm0, %v16628_v0 }
 0x1a1   :  { %10153 = vmatprep.subr.mxu1 %v16628_v0 }
 0x1a2   :  { %10154 = vmatpush3.msra.mxu1 %v12828_v15 }
 0x1a3   :  { %10155 = vmatprep.subr.mxu1 %v16628_v0 }
 0x1a4   :  { %10156 = vmatpush3.msra.mxu1 %v12834_v16 }
 0x1a5   :  { %10157 = vmatprep.subr.mxu1 %v16628_v0 }
 0x1a6   :  { %10158 = vmatpush3.msra.mxu1 %v12838_v17 }
 0x1a7   :  { %10159 = vmatprep.subr.mxu1 %v16628_v0 }
 0x1a8   :  { %10160 = vmatpush3.msra.mxu1 %v12842_v48 }
 0x1a9   :  { %10161 = vmatprep.subr.mxu1 %v16628_v0 }
 0x1aa   :  { %10162 = vmatpush3.msra.mxu1 %v12846_v18 }
 0x1ab   :  { %10163 = vmatprep.subr.mxu1 %v16628_v0 }
 0x1ac   :  { %10164 = vmatpush3.msra.mxu1 %v12850_v52 }
 0x1ad   :  { %10165 = vmatprep.subr.mxu1 %v16628_v0 }
 0x1ae   :  { %10166 = vmatpush3.msra.mxu1 %v12854_v55 }
 0x1af   :  { %10167 = vmatprep.subr.mxu1 %v16628_v0 }
 0x1b0   :  { %10168 = vmatpush3.msra.mxu1 %v12858_v56 }
 0x1b1   :  { %10169 = vmatprep.subr.mxu1 %v16628_v0 }
 0x1b2   :  { %10170 = vmatpush3.msra.mxu1 %v12862_v57 }
 0x1b3   :  { %10171 = vmatprep.subr.mxu1 %v16628_v0 }
 0x1b4   :  { %10172 = vmatpush3.msra.mxu1 %v12866_v58 }
 0x1b5   :  { %10173 = vmatprep.subr.mxu1 %v16628_v0 }
 0x1b6   :  { %10174 = vmatpush3.msra.mxu1 %v12870_v60 }
 0x1b7   :  { %10175 = vmatprep.subr.mxu1 %v16628_v0 }
 0x1b8   :  { %10176 = vmatpush3.msra.mxu1 %v12874_v61 }
 0x1b9   :  { %10177 = vmatprep.subr.mxu1 %v16628_v0 }
 0x1ba   :  { %10178 = vmatpush3.msra.mxu1 %v12878_v62 }
 0x1bb   :  { %10179 = vmatprep.subr.mxu1 %v16628_v0 }
 0x1bc   :  { %10180 = vmatpush3.msra.mxu1 %v12882_v63 }
 0x1bd   :  { %10181 = vmatprep.subr.mxu1 %v16628_v0 }
 0x1be   :  { %10182 = vmatpush3.msra.mxu1 %v12886_v1 }
 0x1bf   :  { %10186 = vmatprep.subr.mxu1 %v16628_v0  ;;  %v864_v0 = vadd.f32 %v863_v54, %v12932_v13 }
 0x21b   :  { %v546_v2 = vpop.f32.mrf.mxu1 }
 0x21c   :  { %v688_v11 = vadd.f32 %v687_v6, %v546_v2  ;;  %v12943_v2 = vrot.slane %v334_v10, %v12939_v19  ;;  %v865_v6 = vpop.f32.mrf.mxu0 }
 0x21d   :  { %v548_v3 = vpop.f32.mrf.mxu1 }
 0x21e   :  { %v12934_v59 = vadd.f32 %v766_v12, %v688_v11  ;;  %v690_v51 = vadd.f32 %v689_v9, %v548_v3  ;;  %16819 = vst [vmem:[#allocation46_spill] sm:$0xff] %v12943_v2  ;;  %v866_v54 = vadd.f32 %v865_v6, %v12943_v2  ;;  %v12950_v3 = vsub.s32 2, %v12790_v53 }
 0x21f   :  { %v617_v4 = vpop.f32.mrf.mxu1 }
 0x220   :  { %16817 = vst [vmem:[#allocation44_spill] sm:$0xff] %v12934_v59  ;;  %v12945_v11 = vadd.f32 %v770_v50, %v690_v51  ;;  %16821 = vst [vmem:[#allocation48_spill] sm:$0xff] %v12950_v3  ;;  %v12953_v19 = vrot.slane %v334_v10, %v12950_v3  ;;  %v774_v50 = vrot.slane %v333_v8, %v12950_v3  ;;  %v16823_v8 = vld [vmem:[#allocation40_spill] sm:$0xff] }
 0x221   :  { %v10080_v5 = vpop.f32.mrf.mxu1 }
 0x222   :  { %v938_v5 = vadd.f32 %v864_v0, %v12934_v59  ;;  %16820 = vst [vmem:[#allocation47_spill] sm:$0xff] %v12945_v11  ;;  %v945_v0 = vadd.f32 %v866_v54, %v12945_v11 }
 0x224   :  { %v9191_v1 = vmul.f32 -1.442695, %v938_v5  ;;  %v9192_v12 = vmul.f32 -1.442695, %v945_v0 }
 0x226   :  { %11683 = vpow2.f32 %v9191_v1 }
 0x227   :  { %11685 = vpow2.f32 %v9192_v12 }
 0x233   :  { %v11684_v59 = vpop.eup %11683 }
 0x234   :  { %v942_v5 = vadd.f32 1.0, %v11684_v59  ;;  %v11686_v9 = vpop.eup %11685 }
 0x235   :  { %v949_v1 = vadd.f32 1.0, %v11686_v9 }
 0x236   :  { %11687 = vrcp.f32 %v942_v5 }
 0x237   :  { %11689 = vrcp.f32 %v949_v1  ;;  %v16826_v1 = vld [vmem:[#allocation41_spill] sm:$0xff] }
 0x23f   :  { %v758_v7 = vpop.f32.mrf.mxu1 }
 0x241   :  { %v10115_v63 = vpop.f32.mrf.mxu1 }
 0x242   :  { %v759_v63 = vadd.f32 %v758_v7, %v617_v4  ;;  %v16822_v7 = vmov 0.0  }
 0x243   :  { %v11688_v54 = vpop.eup %11687 }
 0x244   :  { %v12957_v12 = vadd.f32 %v774_v50, %v759_v63  ;;  %v11690_v5 = vpop.eup %11689  ;;  %v16827_v63 = vld [vmem:[#allocation32_spill] sm:$0xff] }
 0x245   :  { %v955_v11 = vsub.f32 1.0, %v11690_v5  ;;  %v957_v9 = vmul.f32 0.0, %v11690_v5 }
 0x25f   :  { %v934_v51 = vpop.f32.mrf.mxu1 }
 0x260   :  { %v935_v6 = vadd.f32 %v934_v51, %v12953_v19 }
 0x261   :  { %v10150_v0 = vpop.f32.mrf.mxu1 }
 0x262   :  { %v952_v59 = vmul.f32 %v11688_v54, %v935_v6 }
 0x264   :  { %v953_v53 = vadd.f32 %v952_v59, %v12957_v12 }
 0x266   :  { %11691 = vtanh.f32 %v953_v53  ;;  %v16828_v53 = vld [vmem:[#allocation46_spill] sm:$0xff] }
 0x273   :  { %v11692_v10 = vpop.eup %11691 }
 0x274   :  { %v956_v2 = vmul.f32 %v11692_v10, %v955_v11  ;;  %v16825_v11 = vld [vmem:[#allocation36_spill] sm:$0xff] }
 0x275   :  { %v16829_v10 = vld [vmem:[#allocation44_spill] sm:$0xff] }
 0x276   :  { %v12960_v4 = vadd.f32 %v957_v9, %v956_v2  ;;  %v16824_v2 = vld [vmem:[#allocation35_spill] sm:$0xff] }
 0x278   :  { %959 = vst [vmem:[#allocation2] sm:$0x1] %v12960_v4  ;;  %1025 = vmatmul.mubr.f32.vlgmr.msra.gmra.mxu0 %v12960_v4  ;;  %10184 = vmatmul.mubr.f32.vlgmr.msra.gmra.mxu1 %v12960_v4 }
 0x279   :  { %1139 = vmatpush1.msra.mxu0 %v12659_v20  ;;  %10187 = vmatpush3.msra.mxu1 %v12824_v14 }
 0x27a   :  { %1140 = vmatprep.subr.mxu0 %v12661_v21  ;;  %10188 = vmatprep.subr.mxu1 %v16822_v7 }
 0x27b   :  { %1141 = vmatpush1.msra.mxu0 %v12665_v22  ;;  %10189 = vmatpush3.msra.mxu1 %v12828_v15 }
 0x27c   :  { %1142 = vmatprep.subr.mxu0 %v12668_v23  ;;  %10190 = vmatprep.subr.mxu1 %v16822_v7 }
 0x27d   :  { %1143 = vmatpush1.msra.mxu0 %v12672_v24  ;;  %10191 = vmatpush3.msra.mxu1 %v12834_v16 }
 0x27e   :  { %1144 = vmatprep.subr.mxu0 %v12675_v25  ;;  %10192 = vmatprep.subr.mxu1 %v16822_v7 }
 0x27f   :  { %1145 = vmatpush1.msra.mxu0 %v12678_v26  ;;  %10193 = vmatpush3.msra.mxu1 %v12838_v17 }
 0x280   :  { %1146 = vmatprep.subr.mxu0 %v12681_v27  ;;  %10194 = vmatprep.subr.mxu1 %v16822_v7 }
 0x281   :  { %1147 = vmatpush1.msra.mxu0 %v12684_v28  ;;  %10195 = vmatpush3.msra.mxu1 %v12842_v48 }
 0x282   :  { %1148 = vmatprep.subr.mxu0 %v12687_v29  ;;  %10196 = vmatprep.subr.mxu1 %v16822_v7 }
 0x283   :  { %1149 = vmatpush1.msra.mxu0 %v12690_v30  ;;  %10197 = vmatpush3.msra.mxu1 %v12846_v18 }
 0x284   :  { %1150 = vmatprep.subr.mxu0 %v12693_v31  ;;  %10198 = vmatprep.subr.mxu1 %v16822_v7 }
 0x285   :  { %1151 = vmatpush1.msra.mxu0 %v12696_v32  ;;  %10199 = vmatpush3.msra.mxu1 %v12850_v52 }
 0x286   :  { %1152 = vmatprep.subr.mxu0 %v12699_v33  ;;  %10200 = vmatprep.subr.mxu1 %v16822_v7 }
 0x287   :  { %1153 = vmatpush1.msra.mxu0 %v12702_v34  ;;  %10201 = vmatpush3.msra.mxu1 %v12854_v55 }
 0x288   :  { %1154 = vmatprep.subr.mxu0 %v12705_v35  ;;  %10202 = vmatprep.subr.mxu1 %v16822_v7 }
 0x289   :  { %1155 = vmatpush1.msra.mxu0 %v12708_v36  ;;  %10203 = vmatpush3.msra.mxu1 %v12858_v56 }
 0x28a   :  { %1156 = vmatprep.subr.mxu0 %v12711_v37  ;;  %10204 = vmatprep.subr.mxu1 %v16822_v7 }
 0x28b   :  { %1157 = vmatpush1.msra.mxu0 %v12714_v38  ;;  %10205 = vmatpush3.msra.mxu1 %v12862_v57 }
 0x28c   :  { %1158 = vmatprep.subr.mxu0 %v12717_v39  ;;  %10206 = vmatprep.subr.mxu1 %v16822_v7 }
 0x28d   :  { %1159 = vmatpush1.msra.mxu0 %v12720_v40  ;;  %10207 = vmatpush3.msra.mxu1 %v12866_v58 }
 0x28e   :  { %1160 = vmatprep.subr.mxu0 %v12723_v41  ;;  %10208 = vmatprep.subr.mxu1 %v16822_v7 }
 0x28f   :  { %1161 = vmatpush1.msra.mxu0 %v12726_v42  ;;  %10209 = vmatpush3.msra.mxu1 %v12870_v60 }
 0x290   :  { %1162 = vmatprep.subr.mxu0 %v12729_v43  ;;  %10210 = vmatprep.subr.mxu1 %v16822_v7 }
 0x291   :  { %1163 = vmatpush1.msra.mxu0 %v12734_v44  ;;  %10211 = vmatpush3.msra.mxu1 %v12874_v61 }
 0x292   :  { %1164 = vmatprep.subr.mxu0 %v12737_v45  ;;  %10212 = vmatprep.subr.mxu1 %v16822_v7 }
 0x293   :  { %1165 = vmatpush1.msra.mxu0 %v12740_v46  ;;  %10213 = vmatpush3.msra.mxu1 %v12878_v62 }
 0x294   :  { %1166 = vmatprep.subr.mxu0 %v12743_v47  ;;  %10214 = vmatprep.subr.mxu1 %v16822_v7 }
 0x295   :  { %1167 = vmatpush1.msra.mxu0 %v12746_v49  ;;  %10215 = vmatpush3.msra.mxu1 %v16823_v8 }
 0x296   :  { %1168 = vmatprep.subr.mxu0 %v16824_v2  ;;  %10216 = vmatprep.subr.mxu1 %v16822_v7 }
 0x297   :  { %1169 = vmatpush1.msra.mxu0 %v16825_v11  ;;  %1202 = vmatprep.mubr.f32.mxu0 %v16822_v7  ;;  %v16830_v11 = vld [vmem:[#allocation47_spill] sm:$0xff] }
 0x298   :  { %10217 = vmatpush3.msra.mxu1 %v16826_v1  ;;  %10218 = vmatprep.mubr.msk.f32.mxu1 %vm12483_vm0, %v16822_v7 }
 0x299   :  { %1315 = vmatprep.subr.mxu0 %v16827_v63  ;;  %10221 = vmatprep.subr.mxu1 %v16822_v7 }
 0x338   :  { %v1026_v50 = vpop.f32.mrf.mxu0  ;;  %v1097_v51 = vpop.f32.mrf.mxu1 }
 0x339   :  { %v1027_v6 = vadd.f32 %v1026_v50, %v12932_v13  ;;  %v1098_v50 = vadd.f32 %v1097_v51, %v12953_v19 }
 0x33a   :  { %v1028_v54 = vpop.f32.mrf.mxu0  ;;  %v10185_v0 = vpop.f32.mrf.mxu1 }
 0x33b   :  { %v1102_v59 = vrot.slane %v1027_v6, 7  ;;  %v1029_v5 = vadd.f32 %v1028_v54, %v16828_v53  ;;  %v1122_v0 = vrot.slane %v1098_v50, 7 }
 0x33d   :  { %v1104_v9 = vadd.f32 %v1102_v59, %v16829_v10  ;;  %v1112_v1 = vrot.slane %v1029_v5, 7 }
 0x33f   :  { %v9193_v3 = vmul.f32 -1.442695, %v1104_v9  ;;  %v1114_v2 = vadd.f32 %v1112_v1, %v16830_v11 }
 0x341   :  { %11693 = vpow2.f32 %v9193_v3  ;;  %v9194_v8 = vmul.f32 -1.442695, %v1114_v2  ;;  %v1130_v3 = vrot.slane %v12960_v4, 7 }
 0x343   :  { %11695 = vpow2.f32 %v9194_v8 }
 0x34e   :  { %v11694_v63 = vpop.eup %11693 }
 0x34f   :  { %v1108_v49 = vadd.f32 1.0, %v11694_v63 }
 0x350   :  { %v11696_v47 = vpop.eup %11695 }
 0x351   :  { %11697 = vrcp.f32 %v1108_v49  ;;  %v1118_v13 = vadd.f32 1.0, %v11696_v47 }
 0x353   :  { %11699 = vrcp.f32 %v1118_v13 }
 0x35e   :  { %v11698_v6 = vpop.eup %11697 }
 0x35f   :  { %v1124_v62 = vmul.f32 %v11698_v6, %v1122_v0 }
 0x360   :  { %v11700_v59 = vpop.eup %11699 }
 0x361   :  { %v1125_v54 = vadd.f32 %v1124_v62, %v12957_v12  ;;  %v1127_v1 = vsub.f32 1.0, %v11700_v59  ;;  %v1132_v5 = vmul.f32 %v11700_v59, %v1130_v3  ;;  %v13121_v3 = vld [vmem:[#allocation12 + $0x168] sm:$0xff] }
 0x363   :  { %11701 = vtanh.f32 %v1125_v54 }
 0x370   :  { %v11702_v2 = vpop.eup %11701 }
 0x371   :  { %v1128_v8 = vmul.f32 %v11702_v2, %v1127_v1  ;;  %v13125_v1 = vld [vmem:[#allocation12 + $0x158] sm:$0xff]  ;;  %v13129_v2 = vld [vmem:[#allocation12 + $0x150] sm:$0xff] }
 0x373   :  { %v13039_v63 = vadd.f32 %v1132_v5, %v1128_v8  ;;  %v13133_v8 = vld [vmem:[#allocation12 + $0x140] sm:$0xff]  ;;  %v13137_v5 = vld [vmem:[#allocation12 + $0x138] sm:$0xff] }
 0x375   :  { %1134 = vst [vmem:[#allocation2] sm:$0x2] %v13039_v63  ;;  %v1136_v47 = vrot.slane %v13039_v63, 1  ;;  %v1307_v9 = vrot.slane %v13039_v63, 7  ;;  %v13141_v63 = vld [vmem:[#allocation12 + $0x128] sm:$0xff] }
 0x377   :  { %1203 = vmatmul.mubr.f32.vlgmr.msra.gmra.mxu0 %v1136_v47  ;;  %10219 = vmatmul.mubr.f32.vlgmr.msra.gmra.mxu1 %v1136_v47  ;;  %v13145_v47 = vld [vmem:[#allocation12 + $0x120] sm:$0xff] }
 0x378   :  { %1316 = vmatpush1.msra.mxu0 %v12659_v20  ;;  %10222 = vmatpush3.msra.mxu1 %v12824_v14  ;;  %v16831_v20 = vld [vmem:[#allocation39_spill] sm:$0xff] }
 0x379   :  { %1317 = vmatprep.subr.mxu0 %v12661_v21  ;;  %10223 = vmatprep.subr.mxu1 %v16822_v7  ;;  %v16832_v21 = vld [vmem:[#allocation33_spill] sm:$0xff] }
 0x37a   :  { %1318 = vmatpush1.msra.mxu0 %v12665_v22  ;;  %10224 = vmatpush3.msra.mxu1 %v12828_v15  ;;  %v16833_v22 = vld [vmem:[#allocation34_spill] sm:$0xff] }
 0x37b   :  { %1319 = vmatprep.subr.mxu0 %v12668_v23  ;;  %10225 = vmatprep.subr.mxu1 %v16822_v7  ;;  %v16834_v23 = vld [vmem:[#allocation40_spill] sm:$0xff] }
 0x37c   :  { %1320 = vmatpush1.msra.mxu0 %v12672_v24  ;;  %10226 = vmatpush3.msra.mxu1 %v12834_v16  ;;  %v16835_v24 = vld [vmem:[#allocation35_spill] sm:$0xff] }
 0x37d   :  { %1321 = vmatprep.subr.mxu0 %v12675_v25  ;;  %10227 = vmatprep.subr.mxu1 %v16822_v7  ;;  %v16836_v25 = vld [vmem:[#allocation36_spill] sm:$0xff] }
 0x37e   :  { %1322 = vmatpush1.msra.mxu0 %v12678_v26  ;;  %10228 = vmatpush3.msra.mxu1 %v12838_v17  ;;  %v16837_v26 = vld [vmem:[#allocation41_spill] sm:$0xff] }
 0x37f   :  { %1323 = vmatprep.subr.mxu0 %v12681_v27  ;;  %10229 = vmatprep.subr.mxu1 %v16822_v7  ;;  %v16838_v27 = vld [vmem:[#allocation32_spill] sm:$0xff] }
 0x380   :  { %1324 = vmatpush1.msra.mxu0 %v12684_v28  ;;  %10230 = vmatpush3.msra.mxu1 %v12842_v48 }
 0x381   :  { %1325 = vmatprep.subr.mxu0 %v12687_v29  ;;  %10231 = vmatprep.subr.mxu1 %v16822_v7 }
 0x382   :  { %1326 = vmatpush1.msra.mxu0 %v12690_v30  ;;  %10232 = vmatpush3.msra.mxu1 %v12846_v18  ;;  %v16839_v30 = vld [vmem:[#allocation43_spill] sm:$0xff] }
 0x383   :  { %1327 = vmatprep.subr.mxu0 %v12693_v31  ;;  %10233 = vmatprep.subr.mxu1 %v16822_v7 }
 0x384   :  { %1328 = vmatpush1.msra.mxu0 %v12696_v32  ;;  %10234 = vmatpush3.msra.mxu1 %v12850_v52 }
 0x385   :  { %1329 = vmatprep.subr.mxu0 %v12699_v33  ;;  %10235 = vmatprep.subr.mxu1 %v16822_v7 }
 0x386   :  { %1330 = vmatpush1.msra.mxu0 %v12702_v34  ;;  %10236 = vmatpush3.msra.mxu1 %v12854_v55 }
 0x387   :  { %1331 = vmatprep.subr.mxu0 %v12705_v35  ;;  %10237 = vmatprep.subr.mxu1 %v16822_v7 }
 0x388   :  { %1332 = vmatpush1.msra.mxu0 %v12708_v36  ;;  %10238 = vmatpush3.msra.mxu1 %v12858_v56 }
 0x389   :  { %1333 = vmatprep.subr.mxu0 %v12711_v37  ;;  %10239 = vmatprep.subr.mxu1 %v16822_v7 }
 0x38a   :  { %1334 = vmatpush1.msra.mxu0 %v12714_v38  ;;  %10240 = vmatpush3.msra.mxu1 %v12862_v57 }
 0x38b   :  { %1335 = vmatprep.subr.mxu0 %v12717_v39  ;;  %10241 = vmatprep.subr.mxu1 %v16822_v7 }
 0x38c   :  { %1336 = vmatpush1.msra.mxu0 %v12720_v40  ;;  %10242 = vmatpush3.msra.mxu1 %v12866_v58 }
 0x38d   :  { %1337 = vmatprep.subr.mxu0 %v12723_v41  ;;  %10243 = vmatprep.subr.mxu1 %v16822_v7 }
 0x38e   :  { %1338 = vmatpush1.msra.mxu0 %v12726_v42  ;;  %10244 = vmatpush3.msra.mxu1 %v12870_v60 }
 0x38f   :  { %1339 = vmatprep.subr.mxu0 %v12729_v43  ;;  %10245 = vmatprep.subr.mxu1 %v16822_v7 }
 0x390   :  { %1340 = vmatpush1.msra.mxu0 %v12734_v44  ;;  %10246 = vmatpush3.msra.mxu1 %v12874_v61 }
 0x391   :  { %1341 = vmatprep.subr.mxu0 %v12737_v45  ;;  %10247 = vmatprep.subr.mxu1 %v16822_v7 }
 0x392   :  { %1342 = vmatpush1.msra.mxu0 %v12740_v46  ;;  %10248 = vmatpush3.msra.mxu1 %v16831_v20 }
 0x393   :  { %1343 = vmatprep.subr.mxu0 %v16832_v21  ;;  %10249 = vmatprep.subr.mxu1 %v16822_v7  ;;  %v13149_v21 = vld [vmem:[#allocation12 + $0x110] sm:$0xff] }
 0x394   :  { %1344 = vmatpush1.msra.mxu0 %v16833_v22  ;;  %10250 = vmatpush3.msra.mxu1 %v16834_v23  ;;  %v13153_v22 = vld [vmem:[#allocation12 + $0x108] sm:$0xff] }
 0x395   :  { %1345 = vmatprep.subr.mxu0 %v16835_v24  ;;  %10251 = vmatprep.subr.mxu1 %v16822_v7  ;;  %v13157_v24 = vld [vmem:[#allocation12 + $0xf8] sm:$0xff] }
 0x396   :  { %1346 = vmatpush1.msra.mxu0 %v16836_v25  ;;  %1379 = vmatprep.mubr.f32.mxu0 %v16822_v7  ;;  %v13161_v25 = vld [vmem:[#allocation12 + $0xf0] sm:$0xff] }
 0x397   :  { %10252 = vmatpush3.msra.mxu1 %v16837_v26  ;;  %10253 = vmatprep.mubr.msk.f32.mxu1 %vm12483_vm0, %v16822_v7 }
 0x398   :  { %1492 = vmatprep.subr.mxu0 %v16838_v27  ;;  %10256 = vmatprep.subr.mxu1 %v16822_v7  ;;  %v13165_v27 = vld [vmem:[#allocation12 + $0xe0] sm:$0xff] }
 0x437   :  { %v1204_v28 = vpop.f32.mrf.mxu0  ;;  %v1275_v29 = vpop.f32.mrf.mxu1 }
 0x438   :  { %v1205_v31 = vadd.f32 %v1204_v28, %v16839_v30  ;;  %v1276_v44 = vadd.f32 %v1275_v29, %v12953_v19  ;;  %v13169_v28 = vld [vmem:[#allocation12 + $0xd8] sm:$0xff]  ;;  %v13173_v29 = vld [vmem:[#allocation12 + $0xc8] sm:$0xff] }
 0x439   :  { %v1206_v32 = vpop.f32.mrf.mxu0  ;;  %v10220_v33 = vpop.f32.mrf.mxu1 }
 0x43a   :  { %v1280_v34 = vrot.slane %v1205_v31, 6  ;;  %v1207_v35 = vadd.f32 %v1206_v32, %v16828_v53  ;;  %v1300_v46 = vrot.slane %v1276_v44, 6  ;;  %v13177_v31 = vld [vmem:[#allocation12 + $0xc0] sm:$0xff]  ;;  %v13181_v32 = vld [vmem:[#allocation12 + $0xb0] sm:$0xff]  ;;  %v13185_v33 = vld [vmem:[#allocation12 + $0xa8] sm:$0xff] }
 0x43b   :  { %v13229_v44 = vld [vmem:[#allocation12 + $0x20] sm:$0xff] }
 0x43c   :  { %v1282_v36 = vadd.f32 %v1280_v34, %v16829_v10  ;;  %v1290_v38 = vrot.slane %v1207_v35, 6  ;;  %v13189_v34 = vld [vmem:[#allocation12 + $0x98] sm:$0xff]  ;;  %v13193_v35 = vld [vmem:[#allocation12 + $0x90] sm:$0xff]  ;;  %16840 = vst [vmem:[#allocation46_spill] sm:$0xff] %v13229_v44 }
 0x43e   :  { %v9195_v37 = vmul.f32 -1.442695, %v1282_v36  ;;  %v1292_v39 = vadd.f32 %v1290_v38, %v16830_v11  ;;  %v13197_v36 = vld [vmem:[#allocation12 + $0x80] sm:$0xff]  ;;  %v13205_v38 = vld [vmem:[#allocation12 + $0x68] sm:$0xff] }
 0x440   :  { %11703 = vpow2.f32 %v9195_v37  ;;  %v9196_v40 = vmul.f32 -1.442695, %v1292_v39  ;;  %v13201_v37 = vld [vmem:[#allocation12 + $0x78] sm:$0xff]  ;;  %v13209_v39 = vld [vmem:[#allocation12 + $0x60] sm:$0xff] }
 0x442   :  { %11705 = vpow2.f32 %v9196_v40  ;;  %v13213_v40 = vld [vmem:[#allocation12 + $0x50] sm:$0xff] }
 0x44d   :  { %v11704_v41 = vpop.eup %11703 }
 0x44e   :  { %v1286_v42 = vadd.f32 1.0, %v11704_v41  ;;  %v13217_v41 = vld [vmem:[#allocation12 + $0x48] sm:$0xff] }
 0x44f   :  { %v11706_v43 = vpop.eup %11705 }
 0x450   :  { %11707 = vrcp.f32 %v1286_v42  ;;  %v1296_v45 = vadd.f32 1.0, %v11706_v43  ;;  %v13221_v42 = vld [vmem:[#allocation12 + $0x38] sm:$0xff]  ;;  %v13225_v43 = vld [vmem:[#allocation12 + $0x30] sm:$0xff] }
 0x452   :  { %11709 = vrcp.f32 %v1296_v45  ;;  %v13233_v45 = vld [vmem:[#allocation12 + $0x18] sm:$0xff] }
 0x453   :  { %16841 = vst [vmem:[#allocation44_spill] sm:$0xff] %v13233_v45 }
 0x45d   :  { %v11708_v49 = vpop.eup %11707 }
 0x45e   :  { %v1302_v62 = vmul.f32 %v11708_v49, %v1300_v46  ;;  %v13237_v46 = vld [vmem:[#allocation12 + $0x8] sm:$0xff]  ;;  %v13241_v49 = vld [vmem:[#allocation12] sm:$0xff] }
 0x45f   :  { %v11710_v4 = vpop.eup %11709  ;;  %16842 = vst [vmem:[#allocation47_spill] sm:$0xff] %v13237_v46  ;;  %16843 = vst [vmem:[#allocation33_spill] sm:$0xff] %v13241_v49 }
 0x460   :  { %v1303_v13 = vadd.f32 %v1302_v62, %v12957_v12  ;;  %v1305_v51 = vsub.f32 1.0, %v11710_v4  ;;  %v1309_v6 = vmul.f32 %v11710_v4, %v1307_v9  ;;  %v13248_v62 = vld [vmem:[#allocation12 + $0x170] sm:$0xff] }
 0x461   :  { %16844 = vst [vmem:[#allocation34_spill] sm:$0xff] %v13248_v62 }
 0x462   :  { %11711 = vtanh.f32 %v1303_v13 }
 0x46f   :  { %v11712_v50 = vpop.eup %11711 }
 0x470   :  { %v1306_v0 = vmul.f32 %v11712_v50, %v1305_v51 }
 0x472   :  { %v13117_v54 = vadd.f32 %v1309_v6, %v1306_v0 }
 0x474   :  { %1311 = vst [vmem:[#allocation2] sm:$0x4] %v13117_v54  ;;  %v1313_v59 = vrot.slane %v13117_v54, 2 }
 0x476   :  { %1380 = vmatmul.mubr.f32.vlgmr.msra.gmra.mxu0 %v1313_v59  ;;  %10254 = vmatmul.mubr.f32.vlgmr.msra.gmra.mxu1 %v1313_v59 }
 0x477   :  { %1493 = vmatpush1.msra.mxu0 %v13121_v3  ;;  %10257 = vmatpush3.msra.mxu1 %v12824_v14 }
 0x478   :  { %1494 = vmatprep.subr.mxu0 %v13125_v1  ;;  %10258 = vmatprep.subr.mxu1 %v16822_v7 }
 0x479   :  { %1495 = vmatpush1.msra.mxu0 %v13129_v2  ;;  %10259 = vmatpush3.msra.mxu1 %v12828_v15 }
 0x47a   :  { %1496 = vmatprep.subr.mxu0 %v13133_v8  ;;  %10260 = vmatprep.subr.mxu1 %v16822_v7 }
 0x47b   :  { %1497 = vmatpush1.msra.mxu0 %v13137_v5  ;;  %10261 = vmatpush3.msra.mxu1 %v12834_v16 }
 0x47c   :  { %1498 = vmatprep.subr.mxu0 %v13141_v63  ;;  %10262 = vmatprep.subr.mxu1 %v16822_v7 }
 0x47d   :  { %1499 = vmatpush1.msra.mxu0 %v13145_v47  ;;  %10263 = vmatpush3.msra.mxu1 %v12838_v17 }
 0x47e   :  { %1500 = vmatprep.subr.mxu0 %v13149_v21  ;;  %10264 = vmatprep.subr.mxu1 %v16822_v7 }
 0x47f   :  { %1501 = vmatpush1.msra.mxu0 %v13153_v22  ;;  %10265 = vmatpush3.msra.mxu1 %v12842_v48 }
 0x480   :  { %1502 = vmatprep.subr.mxu0 %v13157_v24  ;;  %10266 = vmatprep.subr.mxu1 %v16822_v7 }
 0x481   :  { %1503 = vmatpush1.msra.mxu0 %v13161_v25  ;;  %10267 = vmatpush3.msra.mxu1 %v12846_v18 }
 0x482   :  { %1504 = vmatprep.subr.mxu0 %v13165_v27  ;;  %10268 = vmatprep.subr.mxu1 %v16822_v7 }
 0x483   :  { %1505 = vmatpush1.msra.mxu0 %v13169_v28  ;;  %10269 = vmatpush3.msra.mxu1 %v12850_v52 }
 0x484   :  { %1506 = vmatprep.subr.mxu0 %v13173_v29  ;;  %10270 = vmatprep.subr.mxu1 %v16822_v7 }
 0x485   :  { %1507 = vmatpush1.msra.mxu0 %v13177_v31  ;;  %10271 = vmatpush3.msra.mxu1 %v12854_v55 }
 0x486   :  { %1508 = vmatprep.subr.mxu0 %v13181_v32  ;;  %10272 = vmatprep.subr.mxu1 %v16822_v7 }
 0x487   :  { %1509 = vmatpush1.msra.mxu0 %v13185_v33  ;;  %10273 = vmatpush3.msra.mxu1 %v12858_v56 }
 0x488   :  { %1510 = vmatprep.subr.mxu0 %v13189_v34  ;;  %10274 = vmatprep.subr.mxu1 %v16822_v7 }
 0x489   :  { %1511 = vmatpush1.msra.mxu0 %v13193_v35  ;;  %10275 = vmatpush3.msra.mxu1 %v12862_v57 }
 0x48a   :  { %1512 = vmatprep.subr.mxu0 %v13197_v36  ;;  %10276 = vmatprep.subr.mxu1 %v16822_v7 }
 0x48b   :  { %1513 = vmatpush1.msra.mxu0 %v13201_v37  ;;  %10277 = vmatpush3.msra.mxu1 %v12866_v58 }
 0x48c   :  { %1514 = vmatprep.subr.mxu0 %v13205_v38  ;;  %10278 = vmatprep.subr.mxu1 %v16822_v7 }
 0x48d   :  { %1515 = vmatpush1.msra.mxu0 %v13209_v39  ;;  %10279 = vmatpush3.msra.mxu1 %v12870_v60 }
 0x48e   :  { %1516 = vmatprep.subr.mxu0 %v13213_v40  ;;  %10280 = vmatprep.subr.mxu1 %v16822_v7 }
 0x48f   :  { %1517 = vmatpush1.msra.mxu0 %v13217_v41  ;;  %10281 = vmatpush3.msra.mxu1 %v12874_v61 }
 0x490   :  { %1518 = vmatprep.subr.mxu0 %v13221_v42  ;;  %10282 = vmatprep.subr.mxu1 %v16822_v7 }
 0x491   :  { %1519 = vmatpush1.msra.mxu0 %v13225_v43  ;;  %10283 = vmatpush3.msra.mxu1 %v16831_v20 }
 0x492   :  { %1520 = vmatprep.subr.mxu0 %v13229_v44  ;;  %10284 = vmatprep.subr.mxu1 %v16822_v7 }
 0x493   :  { %1521 = vmatpush1.msra.mxu0 %v13233_v45  ;;  %10285 = vmatpush3.msra.mxu1 %v16834_v23 }
 0x494   :  { %1522 = vmatprep.subr.mxu0 %v13237_v46  ;;  %10286 = vmatprep.subr.mxu1 %v16822_v7 }
 0x495   :  { %1523 = vmatpush1.msra.mxu0 %v13241_v49  ;;  %1556 = vmatprep.mubr.f32.mxu0 %v16822_v7 }
 0x496   :  { %10287 = vmatpush3.msra.mxu1 %v16837_v26  ;;  %10288 = vmatprep.mubr.msk.f32.mxu1 %vm12483_vm0, %v16822_v7 }
 0x497   :  { %1669 = vmatprep.subr.mxu0 %v13248_v62  ;;  %10291 = vmatprep.subr.mxu1 %v16822_v7 }
 0x536   :  { %v1381_v13 = vpop.f32.mrf.mxu0  ;;  %v1452_v4 = vpop.f32.mrf.mxu1 }
 0x537   :  { %v1382_v51 = vadd.f32 %v1381_v13, %v16839_v30  ;;  %v1453_v13 = vadd.f32 %v1452_v4, %v12953_v19 }
 0x538   :  { %v1383_v9 = vpop.f32.mrf.mxu0  ;;  %v10255_v50 = vpop.f32.mrf.mxu1 }
 0x539   :  { %v1457_v0 = vrot.slane %v1382_v51, 5  ;;  %v1384_v6 = vadd.f32 %v1383_v9, %v16828_v53  ;;  %v1477_v50 = vrot.slane %v1453_v13, 5 }
 0x53b   :  { %v1459_v59 = vadd.f32 %v1457_v0, %v16829_v10  ;;  %v1467_v49 = vrot.slane %v1384_v6, 5 }
 0x53d   :  { %v9197_v26 = vmul.f32 -1.442695, %v1459_v59  ;;  %v1469_v46 = vadd.f32 %v1467_v49, %v16830_v11  ;;  %v1484_v49 = vrot.slane %v13117_v54, 7 }
 0x53f   :  { %11713 = vpow2.f32 %v9197_v26  ;;  %v9198_v23 = vmul.f32 -1.442695, %v1469_v46 }
 0x541   :  { %11715 = vpow2.f32 %v9198_v23 }
 0x54c   :  { %v11714_v62 = vpop.eup %11713 }
 0x54d   :  { %v1463_v45 = vadd.f32 1.0, %v11714_v62 }
 0x54e   :  { %v11716_v44 = vpop.eup %11715 }
 0x54f   :  { %11717 = vrcp.f32 %v1463_v45  ;;  %v1473_v30 = vadd.f32 1.0, %v11716_v44 }
 0x551   :  { %11719 = vrcp.f32 %v1473_v30 }
 0x55c   :  { %v11718_v51 = vpop.eup %11717 }
 0x55d   :  { %v1479_v20 = vmul.f32 %v11718_v51, %v1477_v50 }
 0x55e   :  { %v11720_v0 = vpop.eup %11719 }
 0x55f   :  { %v1480_v9 = vadd.f32 %v1479_v20, %v12957_v12  ;;  %v1482_v26 = vsub.f32 1.0, %v11720_v0  ;;  %v1486_v6 = vmul.f32 %v11720_v0, %v1484_v49 }
 0x561   :  { %11721 = vtanh.f32 %v1480_v9 }
 0x56e   :  { %v11722_v46 = vpop.eup %11721 }
 0x56f   :  { %v1483_v23 = vmul.f32 %v11722_v46, %v1482_v26 }
 0x571   :  { %v13259_v62 = vadd.f32 %v1486_v6, %v1483_v23 }
 0x573   :  { %1488 = vst [vmem:[#allocation2] sm:$0x8] %v13259_v62  ;;  %v1490_v44 = vrot.slane %v13259_v62, 3 }
 0x575   :  { %1557 = vmatmul.mubr.f32.vlgmr.msra.gmra.mxu0 %v1490_v44  ;;  %10289 = vmatmul.mubr.f32.vlgmr.msra.gmra.mxu1 %v1490_v44 }
 0x576   :  { %1670 = vmatpush1.msra.mxu0 %v13121_v3  ;;  %10292 = vmatpush3.msra.mxu1 %v12824_v14  ;;  %v16845_v14 = vld [vmem:[#allocation39_spill] sm:$0xff] }
 0x577   :  { %1671 = vmatprep.subr.mxu0 %v13125_v1  ;;  %10293 = vmatprep.subr.mxu1 %v16822_v7 }
 0x578   :  { %1672 = vmatpush1.msra.mxu0 %v13129_v2  ;;  %10294 = vmatpush3.msra.mxu1 %v12828_v15  ;;  %v16846_v15 = vld [vmem:[#allocation46_spill] sm:$0xff] }
 0x579   :  { %1673 = vmatprep.subr.mxu0 %v13133_v8  ;;  %10295 = vmatprep.subr.mxu1 %v16822_v7 }
 0x57a   :  { %1674 = vmatpush1.msra.mxu0 %v13137_v5  ;;  %10296 = vmatpush3.msra.mxu1 %v12834_v16  ;;  %v16847_v16 = vld [vmem:[#allocation44_spill] sm:$0xff] }
 0x57b   :  { %1675 = vmatprep.subr.mxu0 %v13141_v63  ;;  %10297 = vmatprep.subr.mxu1 %v16822_v7 }
 0x57c   :  { %1676 = vmatpush1.msra.mxu0 %v13145_v47  ;;  %10298 = vmatpush3.msra.mxu1 %v12838_v17  ;;  %v16848_v17 = vld [vmem:[#allocation40_spill] sm:$0xff] }
 0x57d   :  { %1677 = vmatprep.subr.mxu0 %v13149_v21  ;;  %10299 = vmatprep.subr.mxu1 %v16822_v7 }
 0x57e   :  { %1678 = vmatpush1.msra.mxu0 %v13153_v22  ;;  %10300 = vmatpush3.msra.mxu1 %v12842_v48  ;;  %v16849_v48 = vld [vmem:[#allocation47_spill] sm:$0xff] }
 0x57f   :  { %1679 = vmatprep.subr.mxu0 %v13157_v24  ;;  %10301 = vmatprep.subr.mxu1 %v16822_v7 }
 0x580   :  { %1680 = vmatpush1.msra.mxu0 %v13161_v25  ;;  %10302 = vmatpush3.msra.mxu1 %v12846_v18  ;;  %v16850_v18 = vld [vmem:[#allocation33_spill] sm:$0xff] }
 0x581   :  { %1681 = vmatprep.subr.mxu0 %v13165_v27  ;;  %10303 = vmatprep.subr.mxu1 %v16822_v7 }
 0x582   :  { %1682 = vmatpush1.msra.mxu0 %v13169_v28  ;;  %10304 = vmatpush3.msra.mxu1 %v12850_v52  ;;  %v16851_v52 = vld [vmem:[#allocation41_spill] sm:$0xff] }
 0x583   :  { %1683 = vmatprep.subr.mxu0 %v13173_v29  ;;  %10305 = vmatprep.subr.mxu1 %v16822_v7 }
 0x584   :  { %1684 = vmatpush1.msra.mxu0 %v13177_v31  ;;  %10306 = vmatpush3.msra.mxu1 %v12854_v55  ;;  %v16852_v55 = vld [vmem:[#allocation34_spill] sm:$0xff] }
 0x585   :  { %1685 = vmatprep.subr.mxu0 %v13181_v32  ;;  %10307 = vmatprep.subr.mxu1 %v16822_v7 }
 0x586   :  { %1686 = vmatpush1.msra.mxu0 %v13185_v33  ;;  %10308 = vmatpush3.msra.mxu1 %v12858_v56 }
 0x587   :  { %1687 = vmatprep.subr.mxu0 %v13189_v34  ;;  %10309 = vmatprep.subr.mxu1 %v16822_v7 }
 0x588   :  { %1688 = vmatpush1.msra.mxu0 %v13193_v35  ;;  %10310 = vmatpush3.msra.mxu1 %v12862_v57 }
 0x589   :  { %1689 = vmatprep.subr.mxu0 %v13197_v36  ;;  %10311 = vmatprep.subr.mxu1 %v16822_v7 }
 0x58a   :  { %1690 = vmatpush1.msra.mxu0 %v13201_v37  ;;  %10312 = vmatpush3.msra.mxu1 %v12866_v58  ;;  %v16853_v58 = vld [vmem:[#allocation43_spill] sm:$0xff] }
 0x58b   :  { %1691 = vmatprep.subr.mxu0 %v13205_v38  ;;  %10313 = vmatprep.subr.mxu1 %v16822_v7 }
 0x58c   :  { %1692 = vmatpush1.msra.mxu0 %v13209_v39  ;;  %10314 = vmatpush3.msra.mxu1 %v12870_v60 }
 0x58d   :  { %1693 = vmatprep.subr.mxu0 %v13213_v40  ;;  %10315 = vmatprep.subr.mxu1 %v16822_v7 }
 0x58e   :  { %1694 = vmatpush1.msra.mxu0 %v13217_v41  ;;  %10316 = vmatpush3.msra.mxu1 %v12874_v61 }
 0x58f   :  { %1695 = vmatprep.subr.mxu0 %v13221_v42  ;;  %10317 = vmatprep.subr.mxu1 %v16822_v7 }
 0x590   :  { %1696 = vmatpush1.msra.mxu0 %v13225_v43  ;;  %10318 = vmatpush3.msra.mxu1 %v16845_v14 }
 0x591   :  { %1697 = vmatprep.subr.mxu0 %v16846_v15  ;;  %10319 = vmatprep.subr.mxu1 %v16822_v7 }
 0x592   :  { %1698 = vmatpush1.msra.mxu0 %v16847_v16  ;;  %10320 = vmatpush3.msra.mxu1 %v16848_v17 }
 0x593   :  { %1699 = vmatprep.subr.mxu0 %v16849_v48  ;;  %10321 = vmatprep.subr.mxu1 %v16822_v7 }
 0x594   :  { %1700 = vmatpush1.msra.mxu0 %v16850_v18  ;;  %1733 = vmatprep.mubr.f32.mxu0 %v16822_v7 }
 0x595   :  { %10322 = vmatpush3.msra.mxu1 %v16851_v52  ;;  %10323 = vmatprep.mubr.msk.f32.mxu1 %vm12483_vm0, %v16822_v7  ;;  %v1661_v52 = vrot.slane %v13259_v62, 7  ;;  %v13348_v62 = vld [vmem:[#allocation12 + $0x160] sm:$0xff] }
 0x596   :  { %1846 = vmatprep.subr.mxu0 %v16852_v55  ;;  %10326 = vmatprep.subr.mxu1 %v16822_v7 }
 0x635   :  { %v1558_v56 = vpop.f32.mrf.mxu0  ;;  %v1629_v57 = vpop.f32.mrf.mxu1 }
 0x636   :  { %v1559_v60 = vadd.f32 %v1558_v56, %v16853_v58  ;;  %v1630_v26 = vadd.f32 %v1629_v57, %v12953_v19 }
 0x637   :  { %v1560_v61 = vpop.f32.mrf.mxu0  ;;  %v10290_v20 = vpop.f32.mrf.mxu1 }
 0x638   :  { %v1634_v30 = vrot.slane %v1559_v60, 4  ;;  %v1561_v54 = vadd.f32 %v1560_v61, %v16828_v53  ;;  %v1654_v46 = vrot.slane %v1630_v26, 4  ;;  %v13408_v26 = vld [vmem:[#allocation12 + $0x70] sm:$0xff] }
 0x63a   :  { %v1636_v45 = vadd.f32 %v1634_v30, %v16829_v10  ;;  %v1644_v59 = vrot.slane %v1561_v54, 4  ;;  %v13342_v30 = vld [vmem:[#allocation12 + $0x178] sm:$0xff]  ;;  %v13354_v54 = vld [vmem:[#allocation12 + $0x148] sm:$0xff] }
 0x63c   :  { %v9199_v4 = vmul.f32 -1.442695, %v1636_v45  ;;  %v1646_v13 = vadd.f32 %v1644_v59, %v16830_v11  ;;  %v13360_v45 = vld [vmem:[#allocation12 + $0x130] sm:$0xff]  ;;  %v13372_v59 = vld [vmem:[#allocation12 + $0x100] sm:$0xff] }
 0x63e   :  { %11723 = vpow2.f32 %v9199_v4  ;;  %v9200_v50 = vmul.f32 -1.442695, %v1646_v13  ;;  %v13366_v4 = vld [vmem:[#allocation12 + $0x118] sm:$0xff]  ;;  %v13378_v13 = vld [vmem:[#allocation12 + $0xe8] sm:$0xff] }
 0x640   :  { %11725 = vpow2.f32 %v9200_v50  ;;  %v13384_v50 = vld [vmem:[#allocation12 + $0xd0] sm:$0xff] }
 0x64b   :  { %v11724_v51 = vpop.eup %11723 }
 0x64c   :  { %v1640_v9 = vadd.f32 1.0, %v11724_v51  ;;  %v13390_v51 = vld [vmem:[#allocation12 + $0xb8] sm:$0xff] }
 0x64d   :  { %v11726_v0 = vpop.eup %11725 }
 0x64e   :  { %11727 = vrcp.f32 %v1640_v9  ;;  %v1650_v49 = vadd.f32 1.0, %v11726_v0  ;;  %v13396_v9 = vld [vmem:[#allocation12 + $0xa0] sm:$0xff]  ;;  %v13402_v0 = vld [vmem:[#allocation12 + $0x88] sm:$0xff] }
 0x650   :  { %11729 = vrcp.f32 %v1650_v49  ;;  %v13414_v49 = vld [vmem:[#allocation12 + $0x58] sm:$0xff] }
 0x65b   :  { %v11728_v23 = vpop.eup %11727 }
 0x65c   :  { %v1656_v6 = vmul.f32 %v11728_v23, %v1654_v46  ;;  %v13420_v46 = vld [vmem:[#allocation12 + $0x40] sm:$0xff]  ;;  %v13426_v23 = vld [vmem:[#allocation12 + $0x28] sm:$0xff] }
 0x65d   :  { %v11730_v14 = vpop.eup %11729  ;;  %16854 = vst [vmem:[#allocation35_spill] sm:$0xff] %v13420_v46  ;;  %16855 = vst [vmem:[#allocation36_spill] sm:$0xff] %v13426_v23 }
 0x65e   :  { %v1657_v44 = vadd.f32 %v1656_v6, %v12957_v12  ;;  %v1659_v17 = vsub.f32 1.0, %v11730_v14  ;;  %v1663_v61 = vmul.f32 %v11730_v14, %v1661_v52  ;;  %v13433_v6 = vld [vmem:[#allocation12 + $0x10] sm:$0xff] }
 0x65f   :  { %16856 = vst [vmem:[#allocation32_spill] sm:$0xff] %v13433_v6 }
 0x660   :  { %11731 = vtanh.f32 %v1657_v44 }
 0x66d   :  { %v11732_v56 = vpop.eup %11731 }
 0x66e   :  { %v1660_v60 = vmul.f32 %v11732_v56, %v1659_v17 }
 0x670   :  { %v13337_v20 = vadd.f32 %v1663_v61, %v1660_v60 }
 0x672   :  { %1665 = vst [vmem:[#allocation2] sm:$0x10] %v13337_v20  ;;  %v1667_v57 = vrot.slane %v13337_v20, 4 }
 0x674   :  { %1734 = vmatmul.mubr.f32.vlgmr.msra.gmra.mxu0 %v1667_v57  ;;  %10324 = vmatmul.mubr.f32.vlgmr.msra.gmra.mxu1 %v1667_v57 }
 0x675   :  { %1847 = vmatpush1.msra.mxu0 %v13121_v3  ;;  %10327 = vmatpush3.msra.mxu1 %v13342_v30 }
 0x676   :  { %1848 = vmatprep.subr.mxu0 %v13125_v1  ;;  %10328 = vmatprep.subr.mxu1 %v16822_v7 }
 0x677   :  { %1849 = vmatpush1.msra.mxu0 %v13129_v2  ;;  %10329 = vmatpush3.msra.mxu1 %v13348_v62 }
 0x678   :  { %1850 = vmatprep.subr.mxu0 %v13133_v8  ;;  %10330 = vmatprep.subr.mxu1 %v16822_v7 }
 0x679   :  { %1851 = vmatpush1.msra.mxu0 %v13137_v5  ;;  %10331 = vmatpush3.msra.mxu1 %v13354_v54 }
 0x67a   :  { %1852 = vmatprep.subr.mxu0 %v13141_v63  ;;  %10332 = vmatprep.subr.mxu1 %v16822_v7 }
 0x67b   :  { %1853 = vmatpush1.msra.mxu0 %v13145_v47  ;;  %10333 = vmatpush3.msra.mxu1 %v13360_v45 }
 0x67c   :  { %1854 = vmatprep.subr.mxu0 %v13149_v21  ;;  %10334 = vmatprep.subr.mxu1 %v16822_v7 }
 0x67d   :  { %1855 = vmatpush1.msra.mxu0 %v13153_v22  ;;  %10335 = vmatpush3.msra.mxu1 %v13366_v4 }
 0x67e   :  { %1856 = vmatprep.subr.mxu0 %v13157_v24  ;;  %10336 = vmatprep.subr.mxu1 %v16822_v7 }
 0x67f   :  { %1857 = vmatpush1.msra.mxu0 %v13161_v25  ;;  %10337 = vmatpush3.msra.mxu1 %v13372_v59 }
 0x680   :  { %1858 = vmatprep.subr.mxu0 %v13165_v27  ;;  %10338 = vmatprep.subr.mxu1 %v16822_v7 }
 0x681   :  { %1859 = vmatpush1.msra.mxu0 %v13169_v28  ;;  %10339 = vmatpush3.msra.mxu1 %v13378_v13 }
 0x682   :  { %1860 = vmatprep.subr.mxu0 %v13173_v29  ;;  %10340 = vmatprep.subr.mxu1 %v16822_v7 }
 0x683   :  { %1861 = vmatpush1.msra.mxu0 %v13177_v31  ;;  %10341 = vmatpush3.msra.mxu1 %v13384_v50 }
 0x684   :  { %1862 = vmatprep.subr.mxu0 %v13181_v32  ;;  %10342 = vmatprep.subr.mxu1 %v16822_v7 }
 0x685   :  { %1863 = vmatpush1.msra.mxu0 %v13185_v33  ;;  %10343 = vmatpush3.msra.mxu1 %v13390_v51 }
 0x686   :  { %1864 = vmatprep.subr.mxu0 %v13189_v34  ;;  %10344 = vmatprep.subr.mxu1 %v16822_v7 }
 0x687   :  { %1865 = vmatpush1.msra.mxu0 %v13193_v35  ;;  %10345 = vmatpush3.msra.mxu1 %v13396_v9 }
 0x688   :  { %1866 = vmatprep.subr.mxu0 %v13197_v36  ;;  %10346 = vmatprep.subr.mxu1 %v16822_v7 }
 0x689   :  { %1867 = vmatpush1.msra.mxu0 %v13201_v37  ;;  %10347 = vmatpush3.msra.mxu1 %v13402_v0 }
 0x68a   :  { %1868 = vmatprep.subr.mxu0 %v13205_v38  ;;  %10348 = vmatprep.subr.mxu1 %v16822_v7 }
 0x68b   :  { %1869 = vmatpush1.msra.mxu0 %v13209_v39  ;;  %10349 = vmatpush3.msra.mxu1 %v13408_v26 }
 0x68c   :  { %1870 = vmatprep.subr.mxu0 %v13213_v40  ;;  %10350 = vmatprep.subr.mxu1 %v16822_v7 }
 0x68d   :  { %1871 = vmatpush1.msra.mxu0 %v13217_v41  ;;  %10351 = vmatpush3.msra.mxu1 %v13414_v49 }
 0x68e   :  { %1872 = vmatprep.subr.mxu0 %v13221_v42  ;;  %10352 = vmatprep.subr.mxu1 %v16822_v7 }
 0x68f   :  { %1873 = vmatpush1.msra.mxu0 %v13225_v43  ;;  %10353 = vmatpush3.msra.mxu1 %v13420_v46 }
 0x690   :  { %1874 = vmatprep.subr.mxu0 %v16846_v15  ;;  %10354 = vmatprep.subr.mxu1 %v16822_v7 }
 0x691   :  { %1875 = vmatpush1.msra.mxu0 %v16847_v16  ;;  %10355 = vmatpush3.msra.mxu1 %v13426_v23 }
 0x692   :  { %1876 = vmatprep.subr.mxu0 %v16849_v48  ;;  %10356 = vmatprep.subr.mxu1 %v16822_v7 }
 0x693   :  { %1877 = vmatpush1.msra.mxu0 %v16850_v18  ;;  %1910 = vmatprep.mubr.f32.mxu0 %v16822_v7 }
 0x694   :  { %10357 = vmatpush3.msra.mxu1 %v13433_v6  ;;  %10358 = vmatprep.mubr.msk.f32.mxu1 %vm12483_vm0, %v16822_v7 }
 0x695   :  { %2023 = vmatprep.subr.mxu0 %v16852_v55  ;;  %10361 = vmatprep.subr.mxu1 %v16822_v7 }
 0x734   :  { %v1735_v44 = vpop.f32.mrf.mxu0  ;;  %v1806_v14 = vpop.f32.mrf.mxu1 }
 0x735   :  { %v1736_v17 = vadd.f32 %v1735_v44, %v16853_v58  ;;  %v1807_v44 = vadd.f32 %v1806_v14, %v12953_v19  ;;  %v2346_v14 = vld [vmem:[#allocation10 + $0x250] sm:$0xff] }
 0x736   :  { %v1737_v52 = vpop.f32.mrf.mxu0  ;;  %v10325_v56 = vpop.f32.mrf.mxu1 }
 0x737   :  { %v1811_v60 = vrot.slane %v1736_v17, 3  ;;  %v1738_v61 = vadd.f32 %v1737_v52, %v16828_v53  ;;  %v1831_v56 = vrot.slane %v1807_v44, 3  ;;  %v2340_v44 = vld [vmem:[#allocation10 + $0x220] sm:$0xff] }
 0x739   :  { %v1813_v57 = vadd.f32 %v1811_v60, %v16829_v10  ;;  %v1821_v6 = vrot.slane %v1738_v61, 3 }
 0x73b   :  { %v9201_v18 = vmul.f32 -1.442695, %v1813_v57  ;;  %v1823_v48 = vadd.f32 %v1821_v6, %v16830_v11  ;;  %v1838_v6 = vrot.slane %v13337_v20, 7 }
 0x73d   :  { %11733 = vpow2.f32 %v9201_v18  ;;  %v9202_v23 = vmul.f32 -1.442695, %v1823_v48 }
 0x73f   :  { %11735 = vpow2.f32 %v9202_v23 }
 0x74a   :  { %v11734_v55 = vpop.eup %11733 }
 0x74b   :  { %v1817_v16 = vadd.f32 1.0, %v11734_v55  ;;  %v2343_v55 = vld [vmem:[#allocation10 + $0x238] sm:$0xff] }
 0x74c   :  { %v11736_v15 = vpop.eup %11735 }
 0x74d   :  { %11737 = vrcp.f32 %v1817_v16  ;;  %v1827_v58 = vadd.f32 1.0, %v11736_v15 }
 0x74f   :  { %11739 = vrcp.f32 %v1827_v58 }
 0x75a   :  { %v11738_v17 = vpop.eup %11737 }
 0x75b   :  { %v1833_v46 = vmul.f32 %v11738_v17, %v1831_v56  ;;  %v2337_v56 = vld [vmem:[#allocation10 + $0x208] sm:$0xff]  ;;  %v2334_v17 = vld [vmem:[#allocation10 + $0x1f0] sm:$0xff] }
 0x75c   :  { %v11740_v60 = vpop.eup %11739 }
 0x75d   :  { %v1834_v52 = vadd.f32 %v1833_v46, %v12957_v12  ;;  %v1836_v18 = vsub.f32 1.0, %v11740_v60  ;;  %v1840_v61 = vmul.f32 %v11740_v60, %v1838_v6  ;;  %v2349_v46 = vld [vmem:[#allocation10 + $0x268] sm:$0xff]  ;;  %v2328_v60 = vld [vmem:[#allocation10 + $0x1c0] sm:$0xff]  ;;  %v2322_v6 = vld [vmem:[#allocation10 + $0x190] sm:$0xff] }
 0x75f   :  { %11741 = vtanh.f32 %v1834_v52  ;;  %v2331_v52 = vld [vmem:[#allocation10 + $0x1d8] sm:$0xff] }
 0x76c   :  { %v11742_v48 = vpop.eup %11741 }
 0x76d   :  { %v1837_v23 = vmul.f32 %v11742_v48, %v1836_v18  ;;  %v2325_v18 = vld [vmem:[#allocation10 + $0x1a8] sm:$0xff]  ;;  %v13551_v48 = vld [vmem:[%s16804_s1] sm:$0xff] }
 0x76f   :  { %v13447_v57 = vadd.f32 %v1840_v61, %v1837_v23 }
 0x771   :  { %1842 = vst [vmem:[#allocation2] sm:$0x20] %v13447_v57  ;;  %v1844_v15 = vrot.slane %v13447_v57, 5 }
 0x773   :  { %1911 = vmatmul.mubr.f32.vlgmr.msra.gmra.mxu0 %v1844_v15  ;;  %10359 = vmatmul.mubr.f32.vlgmr.msra.gmra.mxu1 %v1844_v15 }
 0x774   :  { %2024 = vmatpush1.msra.mxu0 %v13121_v3  ;;  %10362 = vmatpush3.msra.mxu1 %v13342_v30  ;;  %v16857_v3 = vld [vmem:[#allocation35_spill] sm:$0xff] }
 0x775   :  { %2025 = vmatprep.subr.mxu0 %v13125_v1  ;;  %10363 = vmatprep.subr.mxu1 %v16822_v7  ;;  %v16858_v1 = vld [vmem:[#allocation46_spill] sm:$0xff] }
 0x776   :  { %2026 = vmatpush1.msra.mxu0 %v13129_v2  ;;  %10364 = vmatpush3.msra.mxu1 %v13348_v62  ;;  %v16859_v2 = vld [vmem:[#allocation44_spill] sm:$0xff]  ;;  %v2015_v62 = vrot.slane %v13447_v57, 7 }
 0x777   :  { %2027 = vmatprep.subr.mxu0 %v13133_v8  ;;  %10365 = vmatprep.subr.mxu1 %v16822_v7  ;;  %v16860_v8 = vld [vmem:[#allocation36_spill] sm:$0xff] }
 0x778   :  { %2028 = vmatpush1.msra.mxu0 %v13137_v5  ;;  %10366 = vmatpush3.msra.mxu1 %v13354_v54  ;;  %v16861_v5 = vld [vmem:[#allocation47_spill] sm:$0xff] }
 0x779   :  { %2029 = vmatprep.subr.mxu0 %v13141_v63  ;;  %10367 = vmatprep.subr.mxu1 %v16822_v7  ;;  %v16862_v63 = vld [vmem:[#allocation33_spill] sm:$0xff] }
 0x77a   :  { %2030 = vmatpush1.msra.mxu0 %v13145_v47  ;;  %10368 = vmatpush3.msra.mxu1 %v13360_v45  ;;  %v16863_v47 = vld [vmem:[#allocation32_spill] sm:$0xff] }
 0x77b   :  { %2031 = vmatprep.subr.mxu0 %v13149_v21  ;;  %10369 = vmatprep.subr.mxu1 %v16822_v7 }
 0x77c   :  { %2032 = vmatpush1.msra.mxu0 %v13153_v22  ;;  %10370 = vmatpush3.msra.mxu1 %v13366_v4 }
 0x77d   :  { %2033 = vmatprep.subr.mxu0 %v13157_v24  ;;  %10371 = vmatprep.subr.mxu1 %v16822_v7  ;;  %v16864_v24 = vld [vmem:[#allocation43_spill] sm:$0xff] }
 0x77e   :  { %2034 = vmatpush1.msra.mxu0 %v13161_v25  ;;  %10372 = vmatpush3.msra.mxu1 %v13372_v59 }
 0x77f   :  { %2035 = vmatprep.subr.mxu0 %v13165_v27  ;;  %10373 = vmatprep.subr.mxu1 %v16822_v7 }
 0x780   :  { %2036 = vmatpush1.msra.mxu0 %v13169_v28  ;;  %10374 = vmatpush3.msra.mxu1 %v13378_v13 }
 0x781   :  { %2037 = vmatprep.subr.mxu0 %v13173_v29  ;;  %10375 = vmatprep.subr.mxu1 %v16822_v7 }
 0x782   :  { %2038 = vmatpush1.msra.mxu0 %v13177_v31  ;;  %10376 = vmatpush3.msra.mxu1 %v13384_v50  ;;  %v2367_v50 = vld [vmem:[#allocation10 + $0x2f8] sm:$0xff] }
 0x783   :  { %2039 = vmatprep.subr.mxu0 %v13181_v32  ;;  %10377 = vmatprep.subr.mxu1 %v16822_v7 }
 0x784   :  { %2040 = vmatpush1.msra.mxu0 %v13185_v33  ;;  %10378 = vmatpush3.msra.mxu1 %v13390_v51  ;;  %v2364_v51 = vld [vmem:[#allocation10 + $0x2e0] sm:$0xff] }
 0x785   :  { %2041 = vmatprep.subr.mxu0 %v13189_v34  ;;  %10379 = vmatprep.subr.mxu1 %v16822_v7 }
 0x786   :  { %2042 = vmatpush1.msra.mxu0 %v13193_v35  ;;  %10380 = vmatpush3.msra.mxu1 %v13396_v9  ;;  %v2361_v9 = vld [vmem:[#allocation10 + $0x2c8] sm:$0xff] }
 0x787   :  { %2043 = vmatprep.subr.mxu0 %v13197_v36  ;;  %10381 = vmatprep.subr.mxu1 %v16822_v7 }
 0x788   :  { %2044 = vmatpush1.msra.mxu0 %v13201_v37  ;;  %10382 = vmatpush3.msra.mxu1 %v13402_v0  ;;  %v2358_v0 = vld [vmem:[#allocation10 + $0x2b0] sm:$0xff] }
 0x789   :  { %2045 = vmatprep.subr.mxu0 %v13205_v38  ;;  %10383 = vmatprep.subr.mxu1 %v16822_v7 }
 0x78a   :  { %2046 = vmatpush1.msra.mxu0 %v13209_v39  ;;  %10384 = vmatpush3.msra.mxu1 %v13408_v26  ;;  %v2355_v26 = vld [vmem:[#allocation10 + $0x298] sm:$0xff] }
 0x78b   :  { %2047 = vmatprep.subr.mxu0 %v13213_v40  ;;  %10385 = vmatprep.subr.mxu1 %v16822_v7 }
 0x78c   :  { %2048 = vmatpush1.msra.mxu0 %v13217_v41  ;;  %10386 = vmatpush3.msra.mxu1 %v13414_v49  ;;  %v2352_v49 = vld [vmem:[#allocation10 + $0x280] sm:$0xff] }
 0x78d   :  { %2049 = vmatprep.subr.mxu0 %v13221_v42  ;;  %10387 = vmatprep.subr.mxu1 %v16822_v7 }
 0x78e   :  { %2050 = vmatpush1.msra.mxu0 %v13225_v43  ;;  %10388 = vmatpush3.msra.mxu1 %v16857_v3 }
 0x78f   :  { %2051 = vmatprep.subr.mxu0 %v16858_v1  ;;  %10389 = vmatprep.subr.mxu1 %v16822_v7 }
 0x790   :  { %2052 = vmatpush1.msra.mxu0 %v16859_v2  ;;  %10390 = vmatpush3.msra.mxu1 %v16860_v8 }
 0x791   :  { %2053 = vmatprep.subr.mxu0 %v16861_v5  ;;  %10391 = vmatprep.subr.mxu1 %v16822_v7 }
 0x792   :  { %2054 = vmatpush1.msra.mxu0 %v16862_v63  ;;  %2087 = vmatprep.mubr.f32.mxu0 %v16822_v7 }
 0x793   :  { %10392 = vmatpush3.msra.mxu1 %v16863_v47  ;;  %10393 = vmatprep.mubr.msk.f32.mxu1 %vm12483_vm0, %v16822_v7 }
 0x794   :  { %10396 = vmatprep.subr.mxu1 %v16822_v7  ;;  %10401 = vmatprep.subr.mxu0 %v16822_v7 }
 0x833   :  { %v1912_v21 = vpop.f32.mrf.mxu0  ;;  %v1983_v22 = vpop.f32.mrf.mxu1 }
 0x834   :  { %v1913_v25 = vadd.f32 %v1912_v21, %v16864_v24  ;;  %v1984_v40 = vadd.f32 %v1983_v22, %v12953_v19 }
 0x835   :  { %v1914_v27 = vpop.f32.mrf.mxu0  ;;  %v10360_v28 = vpop.f32.mrf.mxu1 }
 0x836   :  { %v1988_v29 = vrot.slane %v1913_v25, 2  ;;  %v1915_v31 = vadd.f32 %v1914_v27, %v16828_v53  ;;  %v2008_v42 = vrot.slane %v1984_v40, 2  ;;  %v2363_v40 = vld [vmem:[#allocation10 + $0x2d8] sm:$0xff] }
 0x838   :  { %v1990_v32 = vadd.f32 %v1988_v29, %v16829_v10  ;;  %v1998_v34 = vrot.slane %v1915_v31, 2 }
 0x83a   :  { %v9203_v33 = vmul.f32 -1.442695, %v1990_v32  ;;  %v2000_v35 = vadd.f32 %v1998_v34, %v16830_v11 }
 0x83c   :  { %11743 = vpow2.f32 %v9203_v33  ;;  %v9204_v36 = vmul.f32 -1.442695, %v2000_v35 }
 0x83e   :  { %11745 = vpow2.f32 %v9204_v36 }
 0x849   :  { %v11744_v37 = vpop.eup %11743 }
 0x84a   :  { %v1994_v38 = vadd.f32 1.0, %v11744_v37 }
 0x84b   :  { %v11746_v39 = vpop.eup %11745 }
 0x84c   :  { %11747 = vrcp.f32 %v1994_v38  ;;  %v2004_v41 = vadd.f32 1.0, %v11746_v39  ;;  %v2366_v38 = vld [vmem:[#allocation10 + $0x2f0] sm:$0xff] }
 0x84e   :  { %11749 = vrcp.f32 %v2004_v41  ;;  %v16865_v41 = vld [vmem:[#allocation38_spill] sm:$0xff] }
 0x859   :  { %v11748_v43 = vpop.eup %11747 }
 0x85a   :  { %v2010_v16 = vmul.f32 %v11748_v43, %v2008_v42  ;;  %v2360_v42 = vld [vmem:[#allocation10 + $0x2c0] sm:$0xff]  ;;  %v2359_v43 = vld [vmem:[#allocation10 + $0x2b8] sm:$0xff] }
 0x85b   :  { %v11750_v20 = vpop.eup %11749 }
 0x85c   :  { %v2011_v58 = vadd.f32 %v2010_v16, %v12957_v12  ;;  %v2013_v30 = vsub.f32 1.0, %v11750_v20  ;;  %v2017_v4 = vmul.f32 %v11750_v20, %v2015_v62  ;;  %v2357_v16 = vld [vmem:[#allocation10 + $0x2a8] sm:$0xff]  ;;  %v2354_v20 = vld [vmem:[#allocation10 + $0x290] sm:$0xff]  ;;  %v2351_v62 = vld [vmem:[#allocation10 + $0x278] sm:$0xff] }
 0x85e   :  { %11751 = vtanh.f32 %v2011_v58  ;;  %v2356_v58 = vld [vmem:[#allocation10 + $0x2a0] sm:$0xff] }
 0x86b   :  { %v11752_v54 = vpop.eup %11751 }
 0x86c   :  { %v2014_v45 = vmul.f32 %v11752_v54, %v2013_v30  ;;  %v2353_v30 = vld [vmem:[#allocation10 + $0x288] sm:$0xff]  ;;  %v2350_v54 = vld [vmem:[#allocation10 + $0x270] sm:$0xff] }
 0x86e   :  { %v13525_v59 = vadd.f32 %v2017_v4, %v2014_v45  ;;  %v2348_v45 = vld [vmem:[#allocation10 + $0x260] sm:$0xff]  ;;  %v2347_v4 = vld [vmem:[#allocation10 + $0x258] sm:$0xff] }
 0x870   :  { %2019 = vst [vmem:[#allocation2] sm:$0x40] %v13525_v59  ;;  %v2021_v13 = vrot.slane %v13525_v59, 6  ;;  %v2192_v33 = vrot.slane %v13525_v59, 7  ;;  %v2345_v59 = vld [vmem:[#allocation10 + $0x248] sm:$0xff] }
 0x872   :  { %2088 = vmatmul.mubr.f32.vlgmr.msra.gmra.mxu0 %v2021_v13  ;;  %10394 = vmatmul.mubr.f32.vlgmr.msra.gmra.mxu1 %v2021_v13  ;;  %v2344_v13 = vld [vmem:[#allocation10 + $0x240] sm:$0xff] }
 0x873   :  { %10398 = vmatprep.mubr.msk.f32.mxu1 %vm12483_vm0, %v16822_v7  ;;  %10433 = vmatprep.mubr.msk.f32.mxu0 %vm12483_vm0, %v16822_v7 }
 0x874   :  { %10402 = vmatpush3.msra.mxu0 %v2367_v50  ;;  %v2342_v50 = vld [vmem:[#allocation10 + $0x230] sm:$0xff] }
 0x875   :  { %10403 = vmatprep.subr.mxu0 %v16822_v7 }
 0x876   :  { %10404 = vmatpush3.msra.mxu0 %v2364_v51  ;;  %v2341_v51 = vld [vmem:[#allocation10 + $0x228] sm:$0xff] }
 0x877   :  { %10405 = vmatprep.subr.mxu0 %v16822_v7 }
 0x878   :  { %10406 = vmatpush3.msra.mxu0 %v2361_v9  ;;  %v2339_v9 = vld [vmem:[#allocation10 + $0x218] sm:$0xff] }
 0x879   :  { %10407 = vmatprep.subr.mxu0 %v16822_v7 }
 0x87a   :  { %10408 = vmatpush3.msra.mxu0 %v2358_v0  ;;  %v2338_v0 = vld [vmem:[#allocation10 + $0x210] sm:$0xff] }
 0x87b   :  { %10409 = vmatprep.subr.mxu0 %v16822_v7 }
 0x87c   :  { %10410 = vmatpush3.msra.mxu0 %v2355_v26  ;;  %v2336_v26 = vld [vmem:[#allocation10 + $0x200] sm:$0xff] }
 0x87d   :  { %10411 = vmatprep.subr.mxu0 %v16822_v7 }
 0x87e   :  { %10412 = vmatpush3.msra.mxu0 %v2352_v49  ;;  %v2335_v49 = vld [vmem:[#allocation10 + $0x1f8] sm:$0xff] }
 0x87f   :  { %10413 = vmatprep.subr.mxu0 %v16822_v7 }
 0x880   :  { %10414 = vmatpush3.msra.mxu0 %v2349_v46  ;;  %v2333_v46 = vld [vmem:[#allocation10 + $0x1e8] sm:$0xff] }
 0x881   :  { %10415 = vmatprep.subr.mxu0 %v16822_v7 }
 0x882   :  { %10416 = vmatpush3.msra.mxu0 %v2346_v14  ;;  %v2332_v14 = vld [vmem:[#allocation10 + $0x1e0] sm:$0xff] }
 0x883   :  { %10417 = vmatprep.subr.mxu0 %v16822_v7 }
 0x884   :  { %10418 = vmatpush3.msra.mxu0 %v2343_v55  ;;  %v2330_v55 = vld [vmem:[#allocation10 + $0x1d0] sm:$0xff] }
 0x885   :  { %10419 = vmatprep.subr.mxu0 %v16822_v7 }
 0x886   :  { %10420 = vmatpush3.msra.mxu0 %v2340_v44  ;;  %v2329_v44 = vld [vmem:[#allocation10 + $0x1c8] sm:$0xff] }
 0x887   :  { %10421 = vmatprep.subr.mxu0 %v16822_v7 }
 0x888   :  { %10422 = vmatpush3.msra.mxu0 %v2337_v56  ;;  %v2327_v56 = vld [vmem:[#allocation10 + $0x1b8] sm:$0xff] }
 0x889   :  { %10423 = vmatprep.subr.mxu0 %v16822_v7 }
 0x88a   :  { %10424 = vmatpush3.msra.mxu0 %v2334_v17  ;;  %v2326_v17 = vld [vmem:[#allocation10 + $0x1b0] sm:$0xff] }
 0x88b   :  { %10425 = vmatprep.subr.mxu0 %v16822_v7 }
 0x88c   :  { %10426 = vmatpush3.msra.mxu0 %v2331_v52  ;;  %v2324_v52 = vld [vmem:[#allocation10 + $0x1a0] sm:$0xff] }
 0x88d   :  { %10427 = vmatprep.subr.mxu0 %v16822_v7 }
 0x88e   :  { %10428 = vmatpush3.msra.mxu0 %v2328_v60  ;;  %v2323_v60 = vld [vmem:[#allocation10 + $0x198] sm:$0xff] }
 0x88f   :  { %10429 = vmatprep.subr.mxu0 %v16822_v7 }
 0x890   :  { %10430 = vmatpush3.msra.mxu0 %v2325_v18  ;;  %v2321_v18 = vld [vmem:[#allocation10 + $0x188] sm:$0xff] }
 0x891   :  { %10431 = vmatprep.subr.mxu0 %v16822_v7 }
 0x892   :  { %10432 = vmatpush3.msra.mxu0 %v2322_v6  ;;  %v2320_v6 = vld [vmem:[#allocation10 + $0x180] sm:$0xff] }
 0x893   :  { %10434 = vmatmul.mubr.f32.vlgmr.msra.gmra.mxu0 %v13551_v48  ;;  %10436 = vmatprep.subr.mxu0 %v16822_v7 }
 0x894   :  { %10438 = vmatprep.mubr.msk.f32.mxu0 %vm12483_vm0, %v16822_v7 }
 0x932   :  { %v2089_v23 = vpop.f32.mrf.mxu0  ;;  %v2160_v61 = vpop.f32.mrf.mxu1 }
 0x933   :  { %v2090_v57 = vadd.f32 %v2089_v23, %v16864_v24  ;;  %v2161_v24 = vadd.f32 %v2160_v61, %v12953_v19  ;;  %v2365_v19 = vld [vmem:[#allocation10 + $0x2e8] sm:$0xff] }
 0x934   :  { %v2091_v15 = vpop.f32.mrf.mxu0  ;;  %v10395_v3 = vpop.f32.mrf.mxu1 }
 0x935   :  { %v2165_v1 = vrot.slane %v2090_v57, 1  ;;  %v2092_v2 = vadd.f32 %v2091_v15, %v16828_v53  ;;  %v2185_v29 = vrot.slane %v2161_v24, 1  ;;  %v2318_v57 = vld [vmem:[#allocation7 + $0x2f8] sm:$0xff]  ;;  %v2315_v15 = vld [vmem:[#allocation7 + $0x2e0] sm:$0xff]  ;;  %v2312_v3 = vld [vmem:[#allocation7 + $0x2c8] sm:$0xff] }
 0x936   :  { %v2279_v24 = vld [vmem:[#allocation7 + $0x1c0] sm:$0xff] }
 0x937   :  { %v2167_v8 = vadd.f32 %v2165_v1, %v16829_v10  ;;  %v2175_v63 = vrot.slane %v2092_v2, 1  ;;  %v2309_v1 = vld [vmem:[#allocation7 + $0x2b0] sm:$0xff]  ;;  %v2306_v2 = vld [vmem:[#allocation7 + $0x298] sm:$0xff] }
 0x939   :  { %v9205_v5 = vmul.f32 -1.442695, %v2167_v8  ;;  %v2177_v47 = vadd.f32 %v2175_v63, %v16830_v11  ;;  %v2303_v8 = vld [vmem:[#allocation7 + $0x280] sm:$0xff]  ;;  %v2297_v63 = vld [vmem:[#allocation7 + $0x250] sm:$0xff] }
 0x93b   :  { %11753 = vpow2.f32 %v9205_v5  ;;  %v9206_v21 = vmul.f32 -1.442695, %v2177_v47  ;;  %v2300_v5 = vld [vmem:[#allocation7 + $0x268] sm:$0xff]  ;;  %v2294_v47 = vld [vmem:[#allocation7 + $0x238] sm:$0xff] }
 0x93d   :  { %11755 = vpow2.f32 %v9206_v21  ;;  %v2291_v21 = vld [vmem:[#allocation7 + $0x220] sm:$0xff] }
 0x948   :  { %v11754_v22 = vpop.eup %11753 }
 0x949   :  { %v2171_v25 = vadd.f32 1.0, %v11754_v22  ;;  %v2288_v22 = vld [vmem:[#allocation7 + $0x208] sm:$0xff] }
 0x94a   :  { %v11756_v27 = vpop.eup %11755 }
 0x94b   :  { %11757 = vrcp.f32 %v2171_v25  ;;  %v2181_v28 = vadd.f32 1.0, %v11756_v27  ;;  %v2285_v25 = vld [vmem:[#allocation7 + $0x1f0] sm:$0xff]  ;;  %v2282_v27 = vld [vmem:[#allocation7 + $0x1d8] sm:$0xff] }
 0x94d   :  { %11759 = vrcp.f32 %v2181_v28  ;;  %v2276_v28 = vld [vmem:[#allocation7 + $0x1a8] sm:$0xff] }
 0x953   :  { %v2558_v23 = vpop.f32.mrf.mxu0 }
 0x954   :  { %10437 = vmatpush3.msra.mxu0 %v2558_v23  ;;  %v2310_v23 = vld [vmem:[#allocation7 + $0x2b8] sm:$0xff] }
 0x955   :  { %10441 = vmatprep.subr.mxu0 %v16822_v7  ;;  %10439 = vmatmul.mubr.msk.f32.vlgmr.msra.gmra.mxu0 %vm476_vm2, %v16865_v41  ;;  %v10435_v61 = vpop.f32.mrf.mxu0 }
 0x956   :  { %10473 = vmatprep.mubr.msk.f32.mxu0 %vm12483_vm0, %v16822_v7  ;;  %10442 = vmatpush3.msra.mxu0 %v2318_v57  ;;  %v2308_v61 = vld [vmem:[#allocation7 + $0x2a8] sm:$0xff]  ;;  %v2307_v57 = vld [vmem:[#allocation7 + $0x2a0] sm:$0xff] }
 0x957   :  { %10443 = vmatprep.subr.mxu0 %v16822_v7 }
 0x958   :  { %v11758_v31 = vpop.eup %11757  ;;  %10444 = vmatpush3.msra.mxu0 %v2315_v15  ;;  %v2305_v15 = vld [vmem:[#allocation7 + $0x290] sm:$0xff] }
 0x959   :  { %v2187_v32 = vmul.f32 %v11758_v31, %v2185_v29  ;;  %10445 = vmatprep.subr.mxu0 %v16822_v7  ;;  %v2273_v29 = vld [vmem:[#allocation7 + $0x190] sm:$0xff]  ;;  %v13596_v31 = vld [vmem:[#allocation12 + $0x2f8] sm:$0xff] }
 0x95a   :  { %v11760_v10 = vpop.eup %11759  ;;  %10446 = vmatpush3.msra.mxu0 %v2312_v3  ;;  %v2304_v3 = vld [vmem:[#allocation7 + $0x288] sm:$0xff] }
 0x95b   :  { %v2188_v53 = vadd.f32 %v2187_v32, %v12957_v12  ;;  %v2190_v11 = vsub.f32 1.0, %v11760_v10  ;;  %v2194_v36 = vmul.f32 %v11760_v10, %v2192_v33  ;;  %v2362_v12 = vld [vmem:[#allocation10 + $0x2d0] sm:$0xff]  ;;  %10447 = vmatprep.subr.mxu0 %v16822_v7  ;;  %v13598_v32 = vld [vmem:[#allocation12 + $0x2e0] sm:$0xff]  ;;  %v13610_v33 = vld [vmem:[#allocation12 + $0x298] sm:$0xff] }
 0x95c   :  { %10448 = vmatpush3.msra.mxu0 %v2309_v1  ;;  %v13606_v10 = vld [vmem:[#allocation12 + $0x2b0] sm:$0xff]  ;;  %v2302_v1 = vld [vmem:[#allocation7 + $0x278] sm:$0xff] }
 0x95d   :  { %11761 = vtanh.f32 %v2188_v53  ;;  %10449 = vmatprep.subr.mxu0 %v16822_v7  ;;  %v13602_v53 = vld [vmem:[#allocation12 + $0x2c8] sm:$0xff] }
 0x95e   :  { %10450 = vmatpush3.msra.mxu0 %v2306_v2  ;;  %v2301_v2 = vld [vmem:[#allocation7 + $0x270] sm:$0xff] }
 0x95f   :  { %10451 = vmatprep.subr.mxu0 %v16822_v7 }
 0x960   :  { %10452 = vmatpush3.msra.mxu0 %v2303_v8  ;;  %v2299_v8 = vld [vmem:[#allocation7 + $0x260] sm:$0xff] }
 0x961   :  { %10453 = vmatprep.subr.mxu0 %v16822_v7 }
 0x962   :  { %10454 = vmatpush3.msra.mxu0 %v2300_v5  ;;  %v2298_v5 = vld [vmem:[#allocation7 + $0x258] sm:$0xff] }
 0x963   :  { %10455 = vmatprep.subr.mxu0 %v16822_v7 }
 0x964   :  { %10456 = vmatpush3.msra.mxu0 %v2297_v63  ;;  %v2296_v63 = vld [vmem:[#allocation7 + $0x248] sm:$0xff] }
 0x965   :  { %10457 = vmatprep.subr.mxu0 %v16822_v7 }
 0x966   :  { %10458 = vmatpush3.msra.mxu0 %v2294_v47  ;;  %v2295_v47 = vld [vmem:[#allocation7 + $0x240] sm:$0xff] }
 0x967   :  { %10459 = vmatprep.subr.mxu0 %v16822_v7 }
 0x968   :  { %10460 = vmatpush3.msra.mxu0 %v2291_v21  ;;  %v2293_v21 = vld [vmem:[#allocation7 + $0x230] sm:$0xff] }
 0x969   :  { %10461 = vmatprep.subr.mxu0 %v16822_v7 }
 0x96a   :  { %v11762_v34 = vpop.eup %11761  ;;  %10462 = vmatpush3.msra.mxu0 %v2288_v22  ;;  %v2292_v22 = vld [vmem:[#allocation7 + $0x228] sm:$0xff] }
 0x96b   :  { %v2191_v35 = vmul.f32 %v11762_v34, %v2190_v11  ;;  %10463 = vmatprep.subr.mxu0 %v16822_v7  ;;  %v13614_v11 = vld [vmem:[#allocation12 + $0x280] sm:$0xff]  ;;  %v13618_v34 = vld [vmem:[#allocation12 + $0x268] sm:$0xff] }
 0x96c   :  { %10464 = vmatpush3.msra.mxu0 %v2285_v25  ;;  %v2290_v25 = vld [vmem:[#allocation7 + $0x218] sm:$0xff] }
 0x96d   :  { %v2195_v37 = vadd.f32 %v2194_v36, %v2191_v35  ;;  %10465 = vmatprep.subr.mxu0 %v16822_v7  ;;  %v13622_v35 = vld [vmem:[#allocation12 + $0x250] sm:$0xff]  ;;  %v13626_v36 = vld [vmem:[#allocation12 + $0x238] sm:$0xff] }
 0x96e   :  { %10466 = vmatpush3.msra.mxu0 %v2282_v27  ;;  %v2289_v27 = vld [vmem:[#allocation7 + $0x210] sm:$0xff] }
 0x96f   :  { %2196 = vst [vmem:[#allocation2] sm:$0x80] %v2195_v37  ;;  %10467 = vmatprep.subr.mxu0 %v16822_v7  ;;  %v13630_v37 = vld [vmem:[#allocation12 + $0x220] sm:$0xff] }
 0x970   :  { %10468 = vmatpush3.msra.mxu0 %v2279_v24  ;;  %v2287_v24 = vld [vmem:[#allocation7 + $0x200] sm:$0xff] }
 0x971   :  { %10469 = vmatprep.subr.mxu0 %v16822_v7 }
 0x972   :  { %10470 = vmatpush3.msra.mxu0 %v2276_v28  ;;  %v2286_v28 = vld [vmem:[#allocation7 + $0x1f8] sm:$0xff] }
 0x973   :  { %10471 = vmatprep.subr.mxu0 %v16822_v7 }
 0x974   :  { %10472 = vmatpush3.msra.mxu0 %v2273_v29  ;;  %v2284_v29 = vld [vmem:[#allocation7 + $0x1e8] sm:$0xff] }
 0x975   :  { %10474 = vmatmul.mubr.f32.vlgmr.msra.gmra.mxu0 %v13551_v48  ;;  %10476 = vmatprep.subr.mxu0 %v16822_v7 }
 0x976   :  { %v13564_v39 = vld [vmem:[#allocation2] sm:$0xff]  ;;  %10508 = vmatprep.mubr.msk.f32.mxu0 %vm12483_vm0, %v16822_v7  ;;  %10477 = vmatpush3.msra.mxu0 %v13596_v31 }
 0x977   :  { %10397 = vmatpush3.msra.mxu1 %v13564_v39  ;;  %10478 = vmatprep.subr.mxu0 %v16822_v7 }
 0x978   :  { %10399 = vmatmul.mubr.msk.f32.vlgmr.msra.gmra.mxu1 %vm476_vm2, %v16865_v41  ;;  %2421 = vmatprep.subr.mxu1 %v2366_v38  ;;  %v13634_v38 = vld [vmem:[#allocation12 + $0x208] sm:$0xff] }
 0x979   :  { %2422 = vmatpush1.msra.mxu1 %v2365_v19  ;;  %2485 = vmatprep.mubr.f32.mxu1 %v16822_v7  ;;  %v13638_v19 = vld [vmem:[#allocation12 + $0x1f0] sm:$0xff] }
 0x97a   :  { %2423 = vmatprep.subr.mxu1 %v2363_v40  ;;  %10479 = vmatpush3.msra.mxu0 %v13598_v32  ;;  %16866 = vst [vmem:[#allocation39_spill] sm:$0xff] %v13638_v19  ;;  %v13642_v40 = vld [vmem:[#allocation12 + $0x1d8] sm:$0xff] }
 0x97b   :  { %2424 = vmatpush1.msra.mxu1 %v2362_v12  ;;  %10480 = vmatprep.subr.mxu0 %v16822_v7  ;;  %v13646_v12 = vld [vmem:[#allocation12 + $0x1c0] sm:$0xff] }
 0x97c   :  { %2425 = vmatprep.subr.mxu1 %v2360_v42  ;;  %10481 = vmatpush3.msra.mxu0 %v13602_v53  ;;  %v16867_v42 = vld [vmem:[#allocation37_spill] sm:$0xff] }
 0x97d   :  { %2426 = vmatpush1.msra.mxu1 %v2359_v43  ;;  %10482 = vmatprep.subr.mxu0 %v16822_v7  ;;  %vm2268_vm3 = vcmp.lt.s32.totalorder %v16867_v42, 64  ;;  %v9228_v43 = vld [vmem:[%s16868_s20 + $0x10] sm:$0xff] }
 0x97e   :  { %2427 = vmatprep.subr.mxu1 %v2357_v16  ;;  %10483 = vmatpush3.msra.mxu0 %v13606_v10  ;;  %v4353_v16 = vld [vmem:[%s16868_s20] sm:$0xff] }
 0x97f   :  { %2428 = vmatpush1.msra.mxu1 %v2356_v58  ;;  %10484 = vmatprep.subr.mxu0 %v16822_v7  ;;  %v13657_v58 = vld [vmem:[#allocation12 + $0x1a8] sm:$0xff] }
 0x980   :  { %2429 = vmatprep.subr.mxu1 %v2354_v20  ;;  %10485 = vmatpush3.msra.mxu0 %v13610_v33  ;;  %16869 = vst [vmem:[#allocation40_spill] sm:$0xff] %v13657_v58 }
 0x981   :  { %2430 = vmatpush1.msra.mxu1 %v2353_v30  ;;  %10486 = vmatprep.subr.mxu0 %v16822_v7 }
 0x982   :  { %2431 = vmatprep.subr.mxu1 %v2351_v62  ;;  %10487 = vmatpush3.msra.mxu0 %v13614_v11 }
 0x983   :  { %2432 = vmatpush1.msra.mxu1 %v2350_v54  ;;  %10488 = vmatprep.subr.mxu0 %v16822_v7 }
 0x984   :  { %2433 = vmatprep.subr.mxu1 %v2348_v45  ;;  %10489 = vmatpush3.msra.mxu0 %v13618_v34 }
 0x985   :  { %2434 = vmatpush1.msra.mxu1 %v2347_v4  ;;  %10490 = vmatprep.subr.mxu0 %v16822_v7  ;;  %v13669_v4 = vld [vmem:[#allocation12 + $0x190] sm:$0xff] }
 0x986   :  { %2435 = vmatprep.subr.mxu1 %v2345_v59  ;;  %10491 = vmatpush3.msra.mxu0 %v13622_v35  ;;  %16871 = vst [vmem:[#allocation34_spill] sm:$0xff] %v13669_v4  ;;  %v9229_v59 = vld [vmem:[%s16868_s20 + $0x18] sm:$0xff] }
 0x987   :  { %2436 = vmatpush1.msra.mxu1 %v2344_v13  ;;  %10492 = vmatprep.subr.mxu0 %v16822_v7 }
 0x988   :  { %2437 = vmatprep.subr.mxu1 %v2342_v50  ;;  %10493 = vmatpush3.msra.mxu0 %v13626_v36 }
 0x989   :  { %2438 = vmatpush1.msra.mxu1 %v2341_v51  ;;  %10494 = vmatprep.subr.mxu0 %v16822_v7  ;;  %v9231_v51 = vld [vmem:[%s16868_s20 + $0x28] sm:$0xff] }
 0x98a   :  { %2439 = vmatprep.subr.mxu1 %v2339_v9  ;;  %10495 = vmatpush3.msra.mxu0 %v13630_v37  ;;  %v9230_v9 = vld [vmem:[%s16868_s20 + $0x20] sm:$0xff] }
 0x98b   :  { %2440 = vmatpush1.msra.mxu1 %v2338_v0  ;;  %10496 = vmatprep.subr.mxu0 %v16822_v7 }
 0x98c   :  { %2441 = vmatprep.subr.mxu1 %v2336_v26  ;;  %10497 = vmatpush3.msra.mxu0 %v13634_v38 }
 0x98d   :  { %2442 = vmatpush1.msra.mxu1 %v2335_v49  ;;  %10498 = vmatprep.subr.mxu0 %v16822_v7  ;;  %v9233_v49 = vld [vmem:[%s16868_s20 + $0x38] sm:$0xff] }
 0x98e   :  { %2443 = vmatprep.subr.mxu1 %v2333_v46  ;;  %10499 = vmatpush3.msra.mxu0 %v13638_v19  ;;  %v9232_v46 = vld [vmem:[%s16868_s20 + $0x30] sm:$0xff] }
 0x98f   :  { %2444 = vmatpush1.msra.mxu1 %v2332_v14  ;;  %10500 = vmatprep.subr.mxu0 %v16822_v7 }
 0x990   :  { %2445 = vmatprep.subr.mxu1 %v2330_v55  ;;  %10501 = vmatpush3.msra.mxu0 %v13642_v40 }
 0x991   :  { %2446 = vmatpush1.msra.mxu1 %v2329_v44  ;;  %10502 = vmatprep.subr.mxu0 %v16822_v7 }
 0x992   :  { %2447 = vmatprep.subr.mxu1 %v2327_v56  ;;  %10503 = vmatpush3.msra.mxu0 %v13646_v12 }
 0x993   :  { %2448 = vmatpush1.msra.mxu1 %v2326_v17  ;;  %10504 = vmatprep.subr.mxu0 %v16822_v7  ;;  %v2317_v17 = vld [vmem:[#allocation7 + $0x2f0] sm:$0xff] }
 0x994   :  { %2449 = vmatprep.subr.mxu1 %v2324_v52  ;;  %10505 = vmatpush3.msra.mxu0 %v13657_v58  ;;  %v2316_v52 = vld [vmem:[#allocation7 + $0x2e8] sm:$0xff] }
 0x995   :  { %2450 = vmatpush1.msra.mxu1 %v2323_v60  ;;  %10506 = vmatprep.subr.mxu0 %v16822_v7  ;;  %v2314_v60 = vld [vmem:[#allocation7 + $0x2d8] sm:$0xff] }
 0x996   :  { %2451 = vmatprep.subr.mxu1 %v2321_v18  ;;  %10507 = vmatpush3.msra.mxu0 %v13669_v4  ;;  %v2313_v18 = vld [vmem:[#allocation7 + $0x2d0] sm:$0xff] }
 0x997   :  { %2452 = vmatpush1.msra.mxu1 %v2320_v6  ;;  %10509 = vmatmul.mubr.f32.vlgmr.msra.gmra.mxu0 %v16822_v7  ;;  %v2311_v6 = vld [vmem:[#allocation7 + $0x2c0] sm:$0xff] }
 0x998   :  { %2486 = vmatmul.mubr.f32.vlgmr.msra.gmra.mxu1 %v13551_v48  ;;  %10511 = vmatprep.subr.mxu0 %v16822_v7 }
 0x999   :  { %2626 = vmatprep.mubr.f32.mxu1 %v16822_v7  ;;  %10512 = vmatpush3.msra.mxu0 %v13596_v31 }
 0x99a   :  { %10543 = vmatprep.mubr.msk.f32.mxu0 %vm12483_vm0, %v16822_v7  ;;  %10513 = vmatprep.subr.mxu0 %v16822_v7 }
 0x99b   :  { %10514 = vmatpush3.msra.mxu0 %v13598_v32 }
 0x99c   :  { %10515 = vmatprep.subr.mxu0 %v16822_v7 }
 0x99d   :  { %10516 = vmatpush3.msra.mxu0 %v13602_v53 }
 0x99e   :  { %10517 = vmatprep.subr.mxu0 %v16822_v7 }
 0x99f   :  { %10518 = vmatpush3.msra.mxu0 %v13606_v10 }
 0x9a0   :  { %10519 = vmatprep.subr.mxu0 %v16822_v7 }
 0x9a1   :  { %10520 = vmatpush3.msra.mxu0 %v13610_v33 }
 0x9a2   :  { %10521 = vmatprep.subr.mxu0 %v16822_v7 }
 0x9a3   :  { %10522 = vmatpush3.msra.mxu0 %v13614_v11 }
 0x9a4   :  { %10523 = vmatprep.subr.mxu0 %v16822_v7 }
 0x9a5   :  { %10524 = vmatpush3.msra.mxu0 %v13618_v34 }
 0x9a6   :  { %10525 = vmatprep.subr.mxu0 %v16822_v7 }
 0x9a7   :  { %10526 = vmatpush3.msra.mxu0 %v13622_v35 }
 0x9a8   :  { %10527 = vmatprep.subr.mxu0 %v16822_v7 }
 0x9a9   :  { %10528 = vmatpush3.msra.mxu0 %v13626_v36 }
 0x9aa   :  { %10529 = vmatprep.subr.mxu0 %v16822_v7 }
 0x9ab   :  { %10530 = vmatpush3.msra.mxu0 %v13630_v37 }
 0x9ac   :  { %10531 = vmatprep.subr.mxu0 %v16822_v7 }
 0x9ad   :  { %10532 = vmatpush3.msra.mxu0 %v13634_v38 }
 0x9ae   :  { %10533 = vmatprep.subr.mxu0 %v16822_v7 }
 0x9af   :  { %10534 = vmatpush3.msra.mxu0 %v13638_v19 }
 0x9b0   :  { %10535 = vmatprep.subr.mxu0 %v16822_v7 }
 0x9b1   :  { %10536 = vmatpush3.msra.mxu0 %v13642_v40  ;;  %v2283_v40 = vld [vmem:[#allocation7 + $0x1e0] sm:$0xff] }
 0x9b2   :  { %10537 = vmatprep.subr.mxu0 %v16822_v7 }
 0x9b3   :  { %10538 = vmatpush3.msra.mxu0 %v13646_v12  ;;  %v2281_v12 = vld [vmem:[#allocation7 + $0x1d0] sm:$0xff] }
 0x9b4   :  { %10539 = vmatprep.subr.mxu0 %v16822_v7 }
 0x9b5   :  { %10540 = vmatpush3.msra.mxu0 %v13657_v58 }
 0x9b6   :  { %10541 = vmatprep.subr.mxu0 %v16822_v7 }
 0x9b7   :  { %10542 = vmatpush3.msra.mxu0 %v13669_v4 }
 0x9b8   :  { %10546 = vmatprep.subr.mxu0 %v16822_v7 }
 0xa38   :  { %v2264_v20 = vpop.f32.mrf.mxu1 }
 0xa39   :  { %v13663_v30 = vsel %vm2268_vm3, %v13564_v39, %v2264_v20  ;;  %v9227_v39 = vld [vmem:[%s16868_s20 + $0x8] sm:$0xff]  ;;  %v2277_v20 = vld [vmem:[#allocation7 + $0x1b0] sm:$0xff] }
 0xa3a   :  { %16870 = vst [vmem:[#allocation41_spill] sm:$0xff] %v13663_v30  ;;  %v10400_v62 = vpop.f32.mrf.mxu1  ;;  %v4382_v54 = vmul.f32 %v9228_v43, %v13663_v30  ;;  %v4354_v45 = vmul.f32 %v4353_v16, %v13663_v30  ;;  %v4396_v13 = vmul.f32 %v9229_v59, %v13663_v30  ;;  %v4368_v50 = vmul.f32 %v9227_v39, %v13663_v30  ;;  %v2280_v43 = vld [vmem:[#allocation7 + $0x1c8] sm:$0xff]  ;;  %v2278_v16 = vld [vmem:[#allocation7 + $0x1b8] sm:$0xff]  ;;  %v2271_v59 = vld [vmem:[#allocation7 + $0x180] sm:$0xff] }
 0xa3b   :  { %v4424_v0 = vmul.f32 %v9231_v51, %v13663_v30  ;;  %v4410_v26 = vmul.f32 %v9230_v9, %v13663_v30  ;;  %v4452_v14 = vmul.f32 %v9233_v49, %v13663_v30  ;;  %v4438_v55 = vmul.f32 %v9232_v46, %v13663_v30  ;;  %v2275_v62 = vld [vmem:[#allocation7 + $0x1a0] sm:$0xff]  ;;  %v13736_v39 = vld [vmem:[#allocation12 + $0x2f0] sm:$0xff]  ;;  %v13763_v46 = vld [vmem:[#allocation12 + $0x288] sm:$0xff] }
 0xa3c   :  { %4383 = vadd.xlane.f32.xlu1 %v4382_v54  ;;  %4355 = vadd.xlane.f32.xlu0 %v4354_v45  ;;  %v2274_v54 = vld [vmem:[#allocation7 + $0x198] sm:$0xff]  ;;  %v2272_v45 = vld [vmem:[#allocation7 + $0x188] sm:$0xff]  ;;  %16872 = vst [vmem:[#allocation35_spill] sm:$0xff] %v13736_v39  ;;  %v13744_v51 = vld [vmem:[#allocation12 + $0x2d0] sm:$0xff] }
 0xa3d   :  { %v13747_v9 = vld [vmem:[#allocation12 + $0x2c0] sm:$0xff]  ;;  %v13760_v49 = vld [vmem:[#allocation12 + $0x290] sm:$0xff] }
 0xa40   :  { %4397 = vadd.xlane.f32.xlu1 %v4396_v13  ;;  %4369 = vadd.xlane.f32.xlu0 %v4368_v50  ;;  %v13738_v13 = vld [vmem:[#allocation12 + $0x2e8] sm:$0xff]  ;;  %v13740_v50 = vld [vmem:[#allocation12 + $0x2d8] sm:$0xff] }
 0xa44   :  { %4425 = vadd.xlane.f32.xlu1 %v4424_v0  ;;  %4411 = vadd.xlane.f32.xlu0 %v4410_v26  ;;  %v13751_v0 = vld [vmem:[#allocation12 + $0x2b8] sm:$0xff]  ;;  %v13754_v26 = vld [vmem:[#allocation12 + $0x2a8] sm:$0xff] }
 0xa48   :  { %4453 = vadd.xlane.f32.xlu1 %v4452_v14  ;;  %4439 = vadd.xlane.f32.xlu0 %v4438_v55  ;;  %v13766_v14 = vld [vmem:[#allocation12 + $0x278] sm:$0xff]  ;;  %v13769_v55 = vld [vmem:[#allocation12 + $0x270] sm:$0xff] }
 0xa58   :  { %v2487_v44 = vpop.f32.mrf.mxu1 }
 0xa5a   :  { %v2489_v56 = vpop.f32.mrf.mxu1 }
 0xa5b   :  { %2592 = vmatprep.subr.mxu1 %v2489_v56  ;;  %v13775_v56 = vld [vmem:[#allocation12 + $0x258] sm:$0xff] }
 0xa5c   :  { %2593 = vmatpush1.msra.mxu1 %v2487_v44  ;;  %v13772_v44 = vld [vmem:[#allocation12 + $0x260] sm:$0xff] }
 0xa5d   :  { %9208 = vmatmul.mubr.msk.f32.vlgmr.msra.gmra.mxu1 %vm476_vm2, %v16865_v41  ;;  %2703 = vmatprep.subr.mxu1 %v2317_v17  ;;  %v13778_v17 = vld [vmem:[#allocation12 + $0x248] sm:$0xff] }
 0xa5e   :  { %2704 = vmatpush1.msra.mxu1 %v2316_v52  ;;  %2767 = vmatprep.mubr.f32.mxu1 %v16822_v7  ;;  %v13781_v52 = vld [vmem:[#allocation12 + $0x240] sm:$0xff] }
 0xa5f   :  { %2705 = vmatprep.subr.mxu1 %v2314_v60  ;;  %v13784_v60 = vld [vmem:[#allocation12 + $0x230] sm:$0xff] }
 0xa60   :  { %2706 = vmatpush1.msra.mxu1 %v2313_v18  ;;  %v13787_v18 = vld [vmem:[#allocation12 + $0x228] sm:$0xff] }
 0xa61   :  { %2707 = vmatprep.subr.mxu1 %v2311_v6  ;;  %v13790_v6 = vld [vmem:[#allocation12 + $0x218] sm:$0xff] }
 0xa62   :  { %2708 = vmatpush1.msra.mxu1 %v2310_v23  ;;  %v13793_v23 = vld [vmem:[#allocation12 + $0x210] sm:$0xff] }
 0xa63   :  { %2709 = vmatprep.subr.mxu1 %v2308_v61  ;;  %v13796_v61 = vld [vmem:[#allocation12 + $0x200] sm:$0xff] }
 0xa64   :  { %2710 = vmatpush1.msra.mxu1 %v2307_v57  ;;  %v13799_v57 = vld [vmem:[#allocation12 + $0x1f8] sm:$0xff] }
 0xa65   :  { %2711 = vmatprep.subr.mxu1 %v2305_v15  ;;  %v13802_v15 = vld [vmem:[#allocation12 + $0x1e8] sm:$0xff] }
 0xa66   :  { %2712 = vmatpush1.msra.mxu1 %v2304_v3  ;;  %16873 = vst [vmem:[#allocation46_spill] sm:$0xff] %v13802_v15  ;;  %v13805_v3 = vld [vmem:[#allocation12 + $0x1e0] sm:$0xff] }
 0xa67   :  { %2713 = vmatprep.subr.mxu1 %v2302_v1  ;;  %16874 = vst [vmem:[#allocation44_spill] sm:$0xff] %v13805_v3  ;;  %v13808_v1 = vld [vmem:[#allocation12 + $0x1d0] sm:$0xff] }
 0xa68   :  { %2714 = vmatpush1.msra.mxu1 %v2301_v2  ;;  %16875 = vst [vmem:[#allocation36_spill] sm:$0xff] %v13808_v1  ;;  %v13811_v2 = vld [vmem:[#allocation12 + $0x1c8] sm:$0xff] }
 0xa69   :  { %2715 = vmatprep.subr.mxu1 %v2299_v8  ;;  %16876 = vst [vmem:[#allocation47_spill] sm:$0xff] %v13811_v2  ;;  %v13814_v8 = vld [vmem:[#allocation12 + $0x1b8] sm:$0xff] }
 0xa6a   :  { %2716 = vmatpush1.msra.mxu1 %v2298_v5  ;;  %16877 = vst [vmem:[#allocation33_spill] sm:$0xff] %v13814_v8  ;;  %v13817_v5 = vld [vmem:[#allocation12 + $0x1b0] sm:$0xff] }
 0xa6b   :  { %2717 = vmatprep.subr.mxu1 %v2296_v63  ;;  %16878 = vst [vmem:[#allocation32_spill] sm:$0xff] %v13817_v5  ;;  %v13820_v63 = vld [vmem:[#allocation12 + $0x1a0] sm:$0xff] }
 0xa6c   :  { %2718 = vmatpush1.msra.mxu1 %v2295_v47  ;;  %16879 = vst [vmem:[#allocation43_spill] sm:$0xff] %v13820_v63  ;;  %v13823_v47 = vld [vmem:[#allocation12 + $0x198] sm:$0xff] }
 0xa6d   :  { %2719 = vmatprep.subr.mxu1 %v2293_v21  ;;  %16880 = vst [vmem:[#allocation49_spill] sm:$0xff] %v13823_v47  ;;  %v13826_v21 = vld [vmem:[#allocation12 + $0x188] sm:$0xff] }
 0xa6e   :  { %2720 = vmatpush1.msra.mxu1 %v2292_v22  ;;  %16881 = vst [vmem:[#allocation50_spill] sm:$0xff] %v13826_v21  ;;  %v13829_v22 = vld [vmem:[#allocation12 + $0x180] sm:$0xff] }
 0xa6f   :  { %2721 = vmatprep.subr.mxu1 %v2290_v25  ;;  %16882 = vst [vmem:[#allocation51_spill] sm:$0xff] %v13829_v22  ;;  %v2699_v25 = vpop.f32.mrf.mxu0 }
 0xa70   :  { %2722 = vmatpush1.msra.mxu1 %v2289_v27 }
 0xa71   :  { %2723 = vmatprep.subr.mxu1 %v2287_v24  ;;  %v10440_v27 = vpop.f32.mrf.mxu0 }
 0xa72   :  { %2724 = vmatpush1.msra.mxu1 %v2286_v28 }
 0xa73   :  { %2725 = vmatprep.subr.mxu1 %v2284_v29  ;;  %v2840_v24 = vpop.f32.mrf.mxu0 }
 0xa74   :  { %2726 = vmatpush1.msra.mxu1 %v2283_v40  ;;  %v13869_v28 = vadd.f32 %v2840_v24, %v2699_v25 }
 0xa75   :  { %2727 = vmatprep.subr.mxu1 %v2281_v12  ;;  %v10475_v29 = vpop.f32.mrf.mxu0 }
 0xa76   :  { %2728 = vmatpush1.msra.mxu1 %v2280_v43 }
 0xa77   :  { %2729 = vmatprep.subr.mxu1 %v2278_v16 }
 0xa78   :  { %2730 = vmatpush1.msra.mxu1 %v2277_v20 }
 0xa79   :  { %2731 = vmatprep.subr.mxu1 %v2275_v62 }
 0xa7a   :  { %2732 = vmatpush1.msra.mxu1 %v2274_v54 }
 0xa7b   :  { %2733 = vmatprep.subr.mxu1 %v2272_v45 }
 0xa7c   :  { %2734 = vmatpush1.msra.mxu1 %v2271_v59 }
 0xa7d   :  { %2768 = vmatmul.mubr.f32.vlgmr.msra.gmra.mxu1 %v13551_v48  ;;  %2879 = vmatprep.subr.mxu1 %v13736_v39  ;;  %v13757_v48 = vld [vmem:[#allocation12 + $0x2a0] sm:$0xff] }
 0xa7e   :  { %2880 = vmatpush1.msra.mxu1 %v13738_v13  ;;  %2943 = vmatprep.mubr.f32.mxu1 %v16822_v7 }
 0xa7f   :  { %2881 = vmatprep.subr.mxu1 %v13740_v50 }
 0xa80   :  { %2882 = vmatpush1.msra.mxu1 %v13744_v51 }
 0xa81   :  { %2883 = vmatprep.subr.mxu1 %v13747_v9 }
 0xa82   :  { %2884 = vmatpush1.msra.mxu1 %v13751_v0 }
 0xa83   :  { %2885 = vmatprep.subr.mxu1 %v13754_v26 }
 0xa84   :  { %2886 = vmatpush1.msra.mxu1 %v13757_v48 }
 0xa85   :  { %2887 = vmatprep.subr.mxu1 %v13760_v49 }
 0xa86   :  { %2888 = vmatpush1.msra.mxu1 %v13763_v46 }
 0xa87   :  { %2889 = vmatprep.subr.mxu1 %v13766_v14 }
 0xa88   :  { %2890 = vmatpush1.msra.mxu1 %v13769_v55 }
 0xa89   :  { %2891 = vmatprep.subr.mxu1 %v13772_v44 }
 0xa8a   :  { %2892 = vmatpush1.msra.mxu1 %v13775_v56 }
 0xa8b   :  { %2893 = vmatprep.subr.mxu1 %v13778_v17 }
 0xa8c   :  { %2894 = vmatpush1.msra.mxu1 %v13781_v52 }
 0xa8d   :  { %2895 = vmatprep.subr.mxu1 %v13784_v60 }
 0xa8e   :  { %2896 = vmatpush1.msra.mxu1 %v13787_v18 }
 0xa8f   :  { %2897 = vmatprep.subr.mxu1 %v13790_v6 }
 0xa90   :  { %2898 = vmatpush1.msra.mxu1 %v13793_v23 }
 0xa91   :  { %2899 = vmatprep.subr.mxu1 %v13796_v61 }
 0xa92   :  { %2900 = vmatpush1.msra.mxu1 %v13799_v57 }
 0xa93   :  { %2901 = vmatprep.subr.mxu1 %v13802_v15 }
 0xa94   :  { %2902 = vmatpush1.msra.mxu1 %v13805_v3 }
 0xa95   :  { %2903 = vmatprep.subr.mxu1 %v13808_v1 }
 0xa96   :  { %2904 = vmatpush1.msra.mxu1 %v13811_v2 }
 0xa97   :  { %2905 = vmatprep.subr.mxu1 %v13814_v8 }
 0xa98   :  { %2906 = vmatpush1.msra.mxu1 %v13817_v5 }
 0xa99   :  { %2907 = vmatprep.subr.mxu1 %v13820_v63 }
 0xa9a   :  { %2908 = vmatpush1.msra.mxu1 %v13823_v47 }
 0xa9b   :  { %2909 = vmatprep.subr.mxu1 %v13826_v21 }
 0xa9c   :  { %2910 = vmatpush1.msra.mxu1 %v13829_v22 }
 0xa9d   :  { %2944 = vmatmul.mubr.f32.vlgmr.msra.gmra.mxu1 %v16822_v7  ;;  %3042 = vmatprep.subr.mxu1 %v13736_v39 }
 0xa9e   :  { %3043 = vmatpush1.msra.mxu1 %v13738_v13  ;;  %3106 = vmatprep.mubr.f32.mxu1 %v16822_v7 }
 0xa9f   :  { %3044 = vmatprep.subr.mxu1 %v13740_v50 }
 0xaa0   :  { %3045 = vmatpush1.msra.mxu1 %v13744_v51 }
 0xaa1   :  { %3046 = vmatprep.subr.mxu1 %v13747_v9 }
 0xaa2   :  { %3047 = vmatpush1.msra.mxu1 %v13751_v0 }
 0xaa3   :  { %3048 = vmatprep.subr.mxu1 %v13754_v26 }
 0xaa4   :  { %3049 = vmatpush1.msra.mxu1 %v13757_v48 }
 0xaa5   :  { %3050 = vmatprep.subr.mxu1 %v13760_v49 }
 0xaa6   :  { %3051 = vmatpush1.msra.mxu1 %v13763_v46 }
 0xaa7   :  { %3052 = vmatprep.subr.mxu1 %v13766_v14 }
 0xaa8   :  { %3053 = vmatpush1.msra.mxu1 %v13769_v55 }
 0xaa9   :  { %3054 = vmatprep.subr.mxu1 %v13772_v44 }
 0xaaa   :  { %3055 = vmatpush1.msra.mxu1 %v13775_v56 }
 0xaab   :  { %3056 = vmatprep.subr.mxu1 %v13778_v17 }
 0xaac   :  { %3057 = vmatpush1.msra.mxu1 %v13781_v52 }
 0xaad   :  { %3058 = vmatprep.subr.mxu1 %v13784_v60 }
 0xaae   :  { %3059 = vmatpush1.msra.mxu1 %v13787_v18 }
 0xaaf   :  { %3060 = vmatprep.subr.mxu1 %v13790_v6 }
 0xab0   :  { %3061 = vmatpush1.msra.mxu1 %v13793_v23 }
 0xab1   :  { %3062 = vmatprep.subr.mxu1 %v13796_v61 }
 0xab2   :  { %3063 = vmatpush1.msra.mxu1 %v13799_v57 }
 0xab3   :  { %3064 = vmatprep.subr.mxu1 %v13802_v15 }
 0xab4   :  { %3065 = vmatpush1.msra.mxu1 %v13805_v3 }
 0xab5   :  { %3066 = vmatprep.subr.mxu1 %v13808_v1 }
 0xab6   :  { %3067 = vmatpush1.msra.mxu1 %v13811_v2 }
 0xab7   :  { %3068 = vmatprep.subr.mxu1 %v13814_v8 }
 0xab8   :  { %3069 = vmatpush1.msra.mxu1 %v13817_v5 }
 0xab9   :  { %3070 = vmatprep.subr.mxu1 %v13820_v63 }
 0xaba   :  { %3071 = vmatpush1.msra.mxu1 %v13823_v47 }
 0xabb   :  { %3072 = vmatprep.subr.mxu1 %v13826_v21 }
 0xabc   :  { %3073 = vmatpush1.msra.mxu1 %v13829_v22 }
 0xabd   :  { %3220 = vmatprep.subr.mxu1 %v13736_v39 }
 0xac5   :  { %v4384_v40 = vpop.xlane.xlu1 %4383  ;;  %v4356_v12 = vpop.xlane.xlu0 %4355 }
 0xac6   :  { %v4385_v43 = vrot.slane %v4384_v40, 4  ;;  %v4357_v16 = vrot.slane %v4356_v12, 4 }
 0xac8   :  { %v4386_v20 = vadd.f32 %v4385_v43, %v4384_v40  ;;  %v4358_v62 = vadd.f32 %v4357_v16, %v4356_v12 }
 0xac9   :  { %v4398_v54 = vpop.xlane.xlu1 %4397  ;;  %v4370_v45 = vpop.xlane.xlu0 %4369 }
 0xaca   :  { %v4387_v59 = vrot.slane %v4386_v20, 2  ;;  %v4359_v27 = vrot.slane %v4358_v62, 2  ;;  %v4399_v42 = vrot.slane %v4398_v54, 4  ;;  %v4371_v41 = vrot.slane %v4370_v45, 4 }
 0xacc   :  { %v4400_v30 = vadd.f32 %v4399_v42, %v4398_v54  ;;  %v4372_v4 = vadd.f32 %v4371_v41, %v4370_v45  ;;  %v4360_v22 = vadd.f32 %v4359_v27, %v4358_v62  ;;  %v4388_v25 = vadd.f32 %v4387_v59, %v4386_v20 }
 0xacd   :  { %v4426_v39 = vpop.xlane.xlu1 %4425  ;;  %v4412_v21 = vpop.xlane.xlu0 %4411 }
 0xace   :  { %v4401_v24 = vrot.slane %v4400_v30, 2  ;;  %v4373_v29 = vrot.slane %v4372_v4, 2  ;;  %v4427_v58 = vrot.slane %v4426_v39, 4  ;;  %v4413_v47 = vrot.slane %v4412_v21, 4 }
 0xacf   :  { %v4361_v63 = vrot.slane %v4360_v22, 1  ;;  %v4389_v1 = vrot.slane %v4388_v25, 1 }
 0xad0   :  { %v4428_v5 = vadd.f32 %v4427_v58, %v4426_v39  ;;  %v4414_v40 = vadd.f32 %v4413_v47, %v4412_v21  ;;  %v4374_v12 = vadd.f32 %v4373_v29, %v4372_v4  ;;  %v4402_v43 = vadd.f32 %v4401_v24, %v4400_v30 }
 0xad1   :  { %v4454_v16 = vpop.xlane.xlu1 %4453  ;;  %v4440_v8 = vpop.xlane.xlu0 %4439  ;;  %v4362_v2 = vadd.f32 %v4361_v63, %v4360_v22  ;;  %v4390_v58 = vadd.f32 %v4389_v1, %v4388_v25 }
 0xad2   :  { %v4429_v19 = vrot.slane %v4428_v5, 2  ;;  %v4415_v42 = vrot.slane %v4414_v40, 2  ;;  %v4455_v41 = vrot.slane %v4454_v16, 4  ;;  %v4441_v62 = vrot.slane %v4440_v8, 4  ;;  %v13871_v1 = vpop.f32.mrf.mxu0 }
 0xad3   :  { %11621 = vpush %v4362_v2  ;;  %v4375_v54 = vrot.slane %v4374_v12, 1  ;;  %v4403_v20 = vrot.slane %v4402_v43, 1 }
 0xad4   :  { %v4456_v45 = vadd.f32 %v4455_v41, %v4454_v16  ;;  %v4442_v59 = vadd.f32 %v4441_v62, %v4440_v8  ;;  %v4416_v27 = vadd.f32 %v4415_v42, %v4414_v40  ;;  %v4430_v3 = vadd.f32 %v4429_v19, %v4428_v5  ;;  %v10510_v5 = vpop.f32.mrf.mxu0 }
 0xad5   :  { %v4376_v15 = vadd.f32 %v4375_v54, %v4374_v12  ;;  %v4404_v39 = vadd.f32 %v4403_v20, %v4402_v43  ;;  %v2420_v5 = vld [vmem:[#allocation15 + $0x3] sm:$0x7] }
 0xad6   :  { %v4457_v4 = vrot.slane %v4456_v45, 2  ;;  %v4443_v30 = vrot.slane %v4442_v59, 2  ;;  %v4417_v47 = vrot.slane %v4416_v27, 1  ;;  %v4431_v21 = vrot.slane %v4430_v3, 1 }
 0xad7   :  { %11623 = vpush %v4376_v15 }
 0xad8   :  { %11625 = vpush %v4390_v58  ;;  %v4418_v63 = vadd.f32 %v4417_v47, %v4416_v27  ;;  %v4432_v22 = vadd.f32 %v4431_v21, %v4430_v3  ;;  %v4444_v24 = vadd.f32 %v4443_v30, %v4442_v59  ;;  %v4458_v29 = vadd.f32 %v4457_v4, %v4456_v45 }
 0xad9   :  { %11627 = vpush %v4404_v39 }
 0xada   :  { %11629 = vpush %v4418_v63  ;;  %v4445_v2 = vrot.slane %v4444_v24, 1  ;;  %v4459_v16 = vrot.slane %v4458_v29, 1 }
 0xadb   :  { %11631 = vpush %v4432_v22 }
 0xadc   :  { %v4446_v8 = vadd.f32 %v4445_v2, %v4444_v24  ;;  %v4460_v19 = vadd.f32 %v4459_v16, %v4458_v29 }
 0xade   :  { %11633 = vpush %v4446_v8  ;;  %v2418_v8 = vld [vmem:[#allocation13 + $0x3] sm:$0x7] }
 0xadf   :  { %11635 = vpush %v4460_v19 }
 0xb04   :  { %s11622_s16 = spop %11621 }
 0xb05   :  { %s17052_s16 = smov (!%p4364_p3, %s11622_s16), -1e+30 }
 0xb08   :  { %s11624_s22 = spop %11623 }
 0xb09   :  { %s17054_s22 = smov (!%p4378_p4, %s11624_s22), -1e+30  ;;  %s11626_s13 = spop %11625 }
 0xb0a   :  { %s4464_s3 = smax.f32 %s17054_s22, %s17052_s16  ;;  %s11628_s26 = spop %11627 }
 0xb0b   :  { %s17056_s13 = smov (!%p4392_p5, %s11626_s13), -1e+30  ;;  %s17058_s26 = smov (!%p4406_p6, %s11628_s26), -1e+30 }
 0xb0c   :  { %s4465_s23 = smax.f32 %s4464_s3, %s17056_s13  ;;  %s11630_s24 = spop %11629 }
 0xb0d   :  { %s4466_s15 = smax.f32 %s4465_s23, %s17058_s26  ;;  %s11632_s30 = spop %11631 }
 0xb0e   :  { %s17060_s24 = smov (!%p4420_p7, %s11630_s24), -1e+30  ;;  %s17062_s30 = smov (!%p4434_p8, %s11632_s30), -1e+30 }
 0xb0f   :  { %s4467_s27 = smax.f32 %s4466_s15, %s17060_s24  ;;  %s11634_s28 = spop %11633 }
 0xb10   :  { %s4468_s29 = smax.f32 %s4467_s27, %s17062_s30  ;;  %s11636_s7 = spop %11635 }
 0xb11   :  { %s17064_s28 = smov (!%p4448_p9, %s11634_s28), -1e+30  ;;  %s17066_s7 = smov (!%p4462_p10, %s11636_s7), -1e+30 }
 0xb12   :  { %s4469_s3 = smax.f32 %s4468_s29, %s17064_s28 }
 0xb13   :  { %s4470_s23 = smax.f32 %s4469_s3, %s17066_s7 }
 0xb14   :  { %s4506_s15 = ssub.f32 %s17066_s7, %s4470_s23 }
 0xb15   :  { %s4471_s25 = ssub.f32 %s17052_s16, %s4470_s23 }
 0xb16   :  { %v4507_v15 = vstv %s4506_s15  ;;  %s4476_s5 = ssub.f32 %s17054_s22, %s4470_s23 }
 0xb17   :  { %v4508_v3 = vmul.f32 1.442695, %v4507_v15  ;;  %v4472_v25 = vstv %s4471_s25  ;;  %s4481_s8 = ssub.f32 %s17056_s13, %s4470_s23 }
 0xb18   :  { %v4473_v40 = vmul.f32 1.442695, %v4472_v25  ;;  %v4477_v12 = vstv %s4476_s5  ;;  %s4486_s21 = ssub.f32 %s17058_s26, %s4470_s23 }
 0xb19   :  { %11763 = vpow2.f32 %v4508_v3  ;;  %v4478_v43 = vmul.f32 1.442695, %v4477_v12  ;;  %v4482_v42 = vstv %s4481_s8  ;;  %s4491_s27 = ssub.f32 %s17060_s24, %s4470_s23  ;;  %v16884_v3 = vld [vmem:[#allocation42_spill] sm:$0xff] }
 0xb1a   :  { %11765 = vpow2.f32 %v4473_v40  ;;  %v4483_v41 = vmul.f32 1.442695, %v4482_v42  ;;  %v4487_v62 = vstv %s4486_s21  ;;  %s4496_s29 = ssub.f32 %s17062_s30, %s4470_s23  ;;  %v2848_v25 = vrot.slane %v2418_v8, %v16884_v3  ;;  %v16886_v42 = vld [vmem:[#allocation45_spill] sm:$0xff] }
 0xb1b   :  { %11767 = vpow2.f32 %v4478_v43  ;;  %v4488_v54 = vmul.f32 1.442695, %v4487_v62  ;;  %v4492_v20 = vstv %s4491_s27  ;;  %s4501_s16 = ssub.f32 %s17064_s28, %s4470_s23  ;;  %v13943_v40 = vrot.slane %v2420_v5, %v16884_v3 }
 0xb1c   :  { %11769 = vpow2.f32 %v4483_v41  ;;  %v4493_v45 = vmul.f32 1.442695, %v4492_v20  ;;  %v4497_v59 = vstv %s4496_s29  ;;  %v13948_v41 = vrot.slane %v2420_v5, %v16886_v42 }
 0xb1d   :  { %11771 = vpow2.f32 %v4488_v54  ;;  %v4498_v27 = vmul.f32 1.442695, %v4497_v59  ;;  %v4502_v58 = vstv %s4501_s16  ;;  %v2628_v2 = vpop.f32.mrf.mxu1  ;;  %16885 = vst [vmem:[#allocation52_spill] sm:$0xff] %v13943_v40 }
 0xb1e   :  { %11773 = vpow2.f32 %v4493_v45  ;;  %v4503_v39 = vmul.f32 1.442695, %v4502_v58  ;;  %v2852_v45 = vrot.slane %v2418_v8, %v16886_v42 }
 0xb1f   :  { %11775 = vpow2.f32 %v4498_v27  ;;  %v2630_v16 = vpop.f32.mrf.mxu1 }
 0xb20   :  { %11777 = vpow2.f32 %v4503_v39 }
 0xb26   :  { %v11764_v4 = vpop.eup %11763 }
 0xb27   :  { %v11766_v30 = vpop.eup %11765 }
 0xb28   :  { %v11768_v47 = vpop.eup %11767  ;;  %11637 = vpush %v11766_v30 }
 0xb29   :  { %v11770_v21 = vpop.eup %11769  ;;  %11639 = vpush %v11768_v47 }
 0xb2a   :  { %v11772_v63 = vpop.eup %11771  ;;  %11641 = vpush %v11770_v21 }
 0xb2b   :  { %v11774_v22 = vpop.eup %11773  ;;  %11643 = vpush %v11772_v63 }
 0xb2c   :  { %v11776_v24 = vpop.eup %11775  ;;  %11645 = vpush %v11774_v22 }
 0xb2d   :  { %v11778_v29 = vpop.eup %11777  ;;  %11647 = vpush %v11776_v24 }
 0xb2e   :  { %11649 = vpush %v11778_v29  ;;  %v16887_v29 = vld [vmem:[#allocation48_spill] sm:$0xff] }
 0xb2f   :  { %11651 = vpush %v11764_v4 }
 0xb3d   :  { %v2769_v19 = vpop.f32.mrf.mxu1 }
 0xb3e   :  { %v2770_v15 = vadd.f32 %v2769_v19, %v2628_v2  ;;  %v13982_v2 = vrot.slane %v2420_v5, %v16887_v29  ;;  %v2856_v19 = vrot.slane %v2418_v8, %v16887_v29  ;;  %v16900_v8 = vld [vmem:[#allocation51_spill] sm:$0xff] }
 0xb3f   :  { %v2771_v12 = vpop.f32.mrf.mxu1 }
 0xb40   :  { %v13950_v62 = vadd.f32 %v2848_v25, %v2770_v15  ;;  %v2772_v20 = vadd.f32 %v2771_v12, %v2630_v16  ;;  %v3017_v25 = vadd.f32 %v13871_v1, %v13982_v2  ;;  %v16899_v1 = vld [vmem:[#allocation50_spill] sm:$0xff] }
 0xb42   :  { %v13965_v4 = vadd.f32 %v2852_v45, %v2772_v20 }
 0xb59   :  { %s13945_s22 = spop %11637 }
 0xb5a   :  { %s13952_s13 = spop %11639 }
 0xb5b   :  { %s4511_s26 = sadd.f32 %s13952_s13, %s13945_s22  ;;  %s13958_s24 = spop %11641 }
 0xb5c   :  { %s13963_s28 = spop %11643 }
 0xb5d   :  { %v2945_v43 = vpop.f32.mrf.mxu1  ;;  %s4512_s30 = sadd.f32 %s13958_s24, %s4511_s26  ;;  %s13968_s2 = spop %11645 }
 0xb5e   :  { %v2946_v54 = vadd.f32 %v2945_v43, %v13943_v40  ;;  %s13972_s0 = spop %11647  ;;  %v13988_v43 = vadd.f32 %v2856_v19, %v13869_v28  ;;  %v16898_v28 = vld [vmem:[#allocation40_spill] sm:$0xff] }
 0xb5f   :  { %v2947_v59 = vpop.f32.mrf.mxu1  ;;  %s4513_s7 = sadd.f32 %s13963_s28, %s4512_s30  ;;  %s13975_s3 = spop %11649 }
 0xb60   :  { %v3020_v27 = vadd.f32 %v2946_v54, %v13950_v62  ;;  %v2948_v58 = vadd.f32 %v2947_v59, %v13948_v41  ;;  %s13978_s15 = spop %11651 }
 0xb61   :  { %s4514_s6 = sadd.f32 %s13968_s2, %s4513_s7 }
 0xb62   :  { %v9210_v39 = vmul.f32 -1.442695, %v3020_v27  ;;  %v3027_v30 = vadd.f32 %v2948_v58, %v13965_v4 }
 0xb63   :  { %s4515_s9 = sadd.f32 %s13972_s0, %s4514_s6 }
 0xb64   :  { %11779 = vpow2.f32 %v9210_v39  ;;  %v9211_v47 = vmul.f32 -1.442695, %v3027_v30  ;;  %v16901_v30 = vld [vmem:[#allocation34_spill] sm:$0xff] }
 0xb65   :  { %s4516_s23 = sadd.f32 %s13975_s3, %s4515_s9 }
 0xb66   :  { %11781 = vpow2.f32 %v9211_v47  ;;  %v16902_v47 = vld [vmem:[#allocation35_spill] sm:$0xff] }
 0xb67   :  { %s4517_s25 = sadd.f32 %s13978_s15, %s4516_s23 }
 0xb68   :  { %s17049_s23 = sld [smem:[#allocation56_spill]] }
 0xb69   :  { %v4518_v21 = vstv %s4517_s25 }
 0xb6a   :  { %11783 = vrcp.f32 %v4518_v21 }
 0xb71   :  { %v11780_v63 = vpop.eup %11779 }
 0xb72   :  { %v3024_v22 = vadd.f32 1.0, %v11780_v63 }
 0xb73   :  { %v11782_v24 = vpop.eup %11781 }
 0xb74   :  { %11785 = vrcp.f32 %v3024_v22  ;;  %v3031_v15 = vadd.f32 1.0, %v11782_v24 }
 0xb76   :  { %11787 = vrcp.f32 %v3031_v15 }
 0xb77   :  { %v11784_v16 = vpop.eup %11783 }
 0xb78   :  { %11653 = vpush %v11784_v16 }
 0xb81   :  { %v11786_v12 = vpop.eup %11785 }
 0xb82   :  { %v3034_v54 = vmul.f32 %v11786_v12, %v3017_v25 }
 0xb83   :  { %v11788_v45 = vpop.eup %11787 }
 0xb84   :  { %v3035_v20 = vadd.f32 %v3034_v54, %v13988_v43  ;;  %v3037_v5 = vsub.f32 1.0, %v11788_v45  ;;  %v3039_v58 = vmul.f32 0.0, %v11788_v45 }
 0xb86   :  { %11789 = vtanh.f32 %v3035_v20 }
 0xb93   :  { %v11790_v59 = vpop.eup %11789 }
 0xb94   :  { %v3038_v27 = vmul.f32 %v11790_v59, %v3037_v5 }
 0xb96   :  { %v13991_v39 = vadd.f32 %v3039_v58, %v3038_v27 }
 0xb98   :  { %3041 = vst [vmem:[#allocation3] sm:$0x1] %v13991_v39  ;;  %3107 = vmatmul.mubr.f32.vlgmr.msra.gmra.mxu1 %v13991_v39  ;;  %10544 = vmatmul.mubr.f32.vlgmr.msra.gmra.mxu0 %v13991_v39 }
 0xb99   :  { %3221 = vmatpush1.msra.mxu1 %v13738_v13  ;;  %10547 = vmatpush3.msra.mxu0 %v13596_v31  ;;  %v16888_v31 = vld [vmem:[#allocation46_spill] sm:$0xff] }
 0xb9a   :  { %3222 = vmatprep.subr.mxu1 %v13740_v50  ;;  %10548 = vmatprep.subr.mxu0 %v16822_v7 }
 0xb9b   :  { %3223 = vmatpush1.msra.mxu1 %v13744_v51  ;;  %10549 = vmatpush3.msra.mxu0 %v13598_v32  ;;  %v16889_v32 = vld [vmem:[#allocation44_spill] sm:$0xff] }
 0xb9c   :  { %3224 = vmatprep.subr.mxu1 %v13747_v9  ;;  %10550 = vmatprep.subr.mxu0 %v16822_v7 }
 0xb9d   :  { %3225 = vmatpush1.msra.mxu1 %v13751_v0  ;;  %10551 = vmatpush3.msra.mxu0 %v13602_v53  ;;  %v16890_v53 = vld [vmem:[#allocation39_spill] sm:$0xff] }
 0xb9e   :  { %3226 = vmatprep.subr.mxu1 %v13754_v26  ;;  %10552 = vmatprep.subr.mxu0 %v16822_v7 }
 0xb9f   :  { %3227 = vmatpush1.msra.mxu1 %v13757_v48  ;;  %10553 = vmatpush3.msra.mxu0 %v13606_v10  ;;  %v16891_v10 = vld [vmem:[#allocation36_spill] sm:$0xff] }
 0xba0   :  { %3228 = vmatprep.subr.mxu1 %v13760_v49  ;;  %10554 = vmatprep.subr.mxu0 %v16822_v7 }
 0xba1   :  { %3229 = vmatpush1.msra.mxu1 %v13763_v46  ;;  %10555 = vmatpush3.msra.mxu0 %v13610_v33  ;;  %v16892_v33 = vld [vmem:[#allocation47_spill] sm:$0xff] }
 0xba2   :  { %3230 = vmatprep.subr.mxu1 %v13766_v14  ;;  %10556 = vmatprep.subr.mxu0 %v16822_v7 }
 0xba3   :  { %3231 = vmatpush1.msra.mxu1 %v13769_v55  ;;  %10557 = vmatpush3.msra.mxu0 %v13614_v11  ;;  %v14045_v11 = vld [vmem:[#allocation12 + $0x1d8] sm:$0xff] }
 0xba4   :  { %3232 = vmatprep.subr.mxu1 %v13772_v44  ;;  %10558 = vmatprep.subr.mxu0 %v16822_v7 }
 0xba5   :  { %3233 = vmatpush1.msra.mxu1 %v13775_v56  ;;  %10559 = vmatpush3.msra.mxu0 %v13618_v34  ;;  %v16893_v34 = vld [vmem:[#allocation33_spill] sm:$0xff] }
 0xba6   :  { %3234 = vmatprep.subr.mxu1 %v13778_v17  ;;  %10560 = vmatprep.subr.mxu0 %v16822_v7 }
 0xba7   :  { %3235 = vmatpush1.msra.mxu1 %v13781_v52  ;;  %10561 = vmatpush3.msra.mxu0 %v13622_v35  ;;  %v16894_v35 = vld [vmem:[#allocation32_spill] sm:$0xff] }
 0xba8   :  { %3236 = vmatprep.subr.mxu1 %v13784_v60  ;;  %10562 = vmatprep.subr.mxu0 %v16822_v7 }
 0xba9   :  { %3237 = vmatpush1.msra.mxu1 %v13787_v18  ;;  %10563 = vmatpush3.msra.mxu0 %v13626_v36  ;;  %v14051_v36 = vld [vmem:[#allocation12 + $0x1c0] sm:$0xff] }
 0xbaa   :  { %3238 = vmatprep.subr.mxu1 %v13790_v6  ;;  %10564 = vmatprep.subr.mxu0 %v16822_v7  ;;  %16895 = vst [vmem:[#allocation46_spill] sm:$0xff] %v14051_v36 }
 0xbab   :  { %3239 = vmatpush1.msra.mxu1 %v13793_v23  ;;  %10565 = vmatpush3.msra.mxu0 %v13630_v37  ;;  %v16896_v37 = vld [vmem:[#allocation43_spill] sm:$0xff] }
 0xbac   :  { %3240 = vmatprep.subr.mxu1 %v13796_v61  ;;  %10566 = vmatprep.subr.mxu0 %v16822_v7 }
 0xbad   :  { %3241 = vmatpush1.msra.mxu1 %v13799_v57  ;;  %10567 = vmatpush3.msra.mxu0 %v13634_v38  ;;  %v16897_v38 = vld [vmem:[#allocation49_spill] sm:$0xff] }
 0xbae   :  { %3242 = vmatprep.subr.mxu1 %v16888_v31  ;;  %10568 = vmatprep.subr.mxu0 %v16822_v7 }
 0xbaf   :  { %3243 = vmatpush1.msra.mxu1 %v16889_v32  ;;  %10569 = vmatpush3.msra.mxu0 %v16890_v53 }
 0xbb0   :  { %3244 = vmatprep.subr.mxu1 %v16891_v10  ;;  %10570 = vmatprep.subr.mxu0 %v16822_v7 }
 0xbb1   :  { %3245 = vmatpush1.msra.mxu1 %v16892_v33  ;;  %10571 = vmatpush3.msra.mxu0 %v14045_v11 }
 0xbb2   :  { %3246 = vmatprep.subr.mxu1 %v16893_v34  ;;  %10572 = vmatprep.subr.mxu0 %v16822_v7 }
 0xbb3   :  { %3247 = vmatpush1.msra.mxu1 %v16894_v35  ;;  %10573 = vmatpush3.msra.mxu0 %v14051_v36 }
 0xbb4   :  { %3248 = vmatprep.subr.mxu1 %v16896_v37  ;;  %10574 = vmatprep.subr.mxu0 %v16822_v7 }
 0xbb5   :  { %3249 = vmatpush1.msra.mxu1 %v16897_v38  ;;  %10575 = vmatpush3.msra.mxu0 %v16898_v28 }
 0xbb6   :  { %3250 = vmatprep.subr.mxu1 %v16899_v1  ;;  %10576 = vmatprep.subr.mxu0 %v16822_v7 }
 0xbb7   :  { %3251 = vmatpush1.msra.mxu1 %v16900_v8  ;;  %3284 = vmatprep.mubr.f32.mxu1 %v16822_v7 }
 0xbb8   :  { %10577 = vmatpush3.msra.mxu0 %v16901_v30  ;;  %10578 = vmatprep.mubr.msk.f32.mxu0 %vm12483_vm0, %v16822_v7 }
 0xbb9   :  { %3397 = vmatprep.subr.mxu1 %v16902_v47  ;;  %10581 = vmatprep.subr.mxu0 %v16822_v7 }
 0xc58   :  { %v3108_v21 = vpop.f32.mrf.mxu1  ;;  %v3179_v63 = vpop.f32.mrf.mxu0 }
 0xc59   :  { %v3109_v22 = vadd.f32 %v3108_v21, %v13943_v40  ;;  %v3180_v58 = vadd.f32 %v3179_v63, %v13982_v2 }
 0xc5a   :  { %v3110_v24 = vpop.f32.mrf.mxu1  ;;  %v10545_v16 = vpop.f32.mrf.mxu0 }
 0xc5b   :  { %v3184_v19 = vrot.slane %v3109_v22, 7  ;;  %v3111_v15 = vadd.f32 %v3110_v24, %v13948_v41  ;;  %v3204_v28 = vrot.slane %v3180_v58, 7  ;;  %v3212_v16 = vrot.slane %v13991_v39, 7  ;;  %v14085_v39 = vld [vmem:[#allocation12 + $0x2e0] sm:$0xff] }
 0xc5d   :  { %v3186_v25 = vadd.f32 %v3184_v19, %v13950_v62  ;;  %v3194_v54 = vrot.slane %v3111_v15, 7 }
 0xc5f   :  { %v9212_v12 = vmul.f32 -1.442695, %v3186_v25  ;;  %v3196_v20 = vadd.f32 %v3194_v54, %v13965_v4 }
 0xc61   :  { %11791 = vpow2.f32 %v9212_v12  ;;  %v9213_v45 = vmul.f32 -1.442695, %v3196_v20  ;;  %v14079_v20 = vld [vmem:[#allocation12 + $0x2f8] sm:$0xff] }
 0xc63   :  { %11793 = vpow2.f32 %v9213_v45 }
 0xc6e   :  { %v11792_v5 = vpop.eup %11791 }
 0xc6f   :  { %v3190_v59 = vadd.f32 1.0, %v11792_v5 }
 0xc70   :  { %v11794_v27 = vpop.eup %11793 }
 0xc71   :  { %11795 = vrcp.f32 %v3190_v59  ;;  %v3200_v53 = vadd.f32 1.0, %v11794_v27 }
 0xc73   :  { %11797 = vrcp.f32 %v3200_v53 }
 0xc7e   :  { %v11796_v30 = vpop.eup %11795 }
 0xc7f   :  { %v3206_v21 = vmul.f32 %v11796_v30, %v3204_v28 }
 0xc80   :  { %v11798_v24 = vpop.eup %11797 }
 0xc81   :  { %v3207_v22 = vadd.f32 %v3206_v21, %v13988_v43  ;;  %v3209_v19 = vsub.f32 1.0, %v11798_v24  ;;  %v3214_v12 = vmul.f32 %v11798_v24, %v3212_v16  ;;  %v14188_v24 = vld [vmem:[#allocation12 + $0x2d8] sm:$0xff]  ;;  %v14192_v16 = vld [vmem:[#allocation12 + $0x2d0] sm:$0xff] }
 0xc83   :  { %11799 = vtanh.f32 %v3207_v22  ;;  %v14184_v22 = vld [vmem:[#allocation12 + $0x2e8] sm:$0xff] }
 0xc90   :  { %v11800_v15 = vpop.eup %11799 }
 0xc91   :  { %v3210_v25 = vmul.f32 %v11800_v15, %v3209_v19  ;;  %v14196_v19 = vld [vmem:[#allocation12 + $0x2c0] sm:$0xff]  ;;  %v14200_v15 = vld [vmem:[#allocation12 + $0x2b8] sm:$0xff] }
 0xc93   :  { %v14074_v54 = vadd.f32 %v3214_v12, %v3210_v25  ;;  %v14204_v25 = vld [vmem:[#allocation12 + $0x2a8] sm:$0xff]  ;;  %v14208_v12 = vld [vmem:[#allocation12 + $0x2a0] sm:$0xff] }
 0xc95   :  { %3216 = vst [vmem:[#allocation3] sm:$0x2] %v14074_v54  ;;  %v3218_v63 = vrot.slane %v14074_v54, 1  ;;  %v3389_v27 = vrot.slane %v14074_v54, 7  ;;  %v14212_v54 = vld [vmem:[#allocation12 + $0x290] sm:$0xff] }
 0xc97   :  { %3285 = vmatmul.mubr.f32.vlgmr.msra.gmra.mxu1 %v3218_v63  ;;  %10579 = vmatmul.mubr.f32.vlgmr.msra.gmra.mxu0 %v3218_v63  ;;  %v14216_v63 = vld [vmem:[#allocation12 + $0x288] sm:$0xff] }
 0xc98   :  { %3398 = vmatpush1.msra.mxu1 %v13738_v13  ;;  %10582 = vmatpush3.msra.mxu0 %v14079_v20  ;;  %v14091_v13 = vld [vmem:[#allocation12 + $0x2c8] sm:$0xff] }
 0xc99   :  { %3399 = vmatprep.subr.mxu1 %v13740_v50  ;;  %10583 = vmatprep.subr.mxu0 %v16822_v7  ;;  %v14097_v50 = vld [vmem:[#allocation12 + $0x2b0] sm:$0xff] }
 0xc9a   :  { %3400 = vmatpush1.msra.mxu1 %v13744_v51  ;;  %10584 = vmatpush3.msra.mxu0 %v14085_v39  ;;  %v14103_v51 = vld [vmem:[#allocation12 + $0x298] sm:$0xff] }
 0xc9b   :  { %3401 = vmatprep.subr.mxu1 %v13747_v9  ;;  %10585 = vmatprep.subr.mxu0 %v16822_v7  ;;  %v14109_v9 = vld [vmem:[#allocation12 + $0x280] sm:$0xff] }
 0xc9c   :  { %3402 = vmatpush1.msra.mxu1 %v13751_v0  ;;  %10586 = vmatpush3.msra.mxu0 %v14091_v13  ;;  %v14115_v0 = vld [vmem:[#allocation12 + $0x268] sm:$0xff] }
 0xc9d   :  { %3403 = vmatprep.subr.mxu1 %v13754_v26  ;;  %10587 = vmatprep.subr.mxu0 %v16822_v7  ;;  %v14121_v26 = vld [vmem:[#allocation12 + $0x250] sm:$0xff] }
 0xc9e   :  { %3404 = vmatpush1.msra.mxu1 %v13757_v48  ;;  %10588 = vmatpush3.msra.mxu0 %v14097_v50  ;;  %v14127_v48 = vld [vmem:[#allocation12 + $0x238] sm:$0xff] }
 0xc9f   :  { %3405 = vmatprep.subr.mxu1 %v13760_v49  ;;  %10589 = vmatprep.subr.mxu0 %v16822_v7  ;;  %v14133_v49 = vld [vmem:[#allocation12 + $0x220] sm:$0xff] }
 0xca0   :  { %3406 = vmatpush1.msra.mxu1 %v13763_v46  ;;  %10590 = vmatpush3.msra.mxu0 %v14103_v51  ;;  %v14139_v46 = vld [vmem:[#allocation12 + $0x208] sm:$0xff] }
 0xca1   :  { %3407 = vmatprep.subr.mxu1 %v13766_v14  ;;  %10591 = vmatprep.subr.mxu0 %v16822_v7  ;;  %v14145_v14 = vld [vmem:[#allocation12 + $0x1f0] sm:$0xff] }
 0xca2   :  { %3408 = vmatpush1.msra.mxu1 %v13769_v55  ;;  %10592 = vmatpush3.msra.mxu0 %v14109_v9  ;;  %v14159_v55 = vld [vmem:[#allocation12 + $0x1a8] sm:$0xff] }
 0xca3   :  { %3409 = vmatprep.subr.mxu1 %v13772_v44  ;;  %10593 = vmatprep.subr.mxu0 %v16822_v7  ;;  %16903 = vst [vmem:[#allocation44_spill] sm:$0xff] %v14159_v55  ;;  %v14166_v44 = vld [vmem:[#allocation12 + $0x190] sm:$0xff] }
 0xca4   :  { %3410 = vmatpush1.msra.mxu1 %v13775_v56  ;;  %10594 = vmatpush3.msra.mxu0 %v14115_v0  ;;  %16904 = vst [vmem:[#allocation39_spill] sm:$0xff] %v14166_v44 }
 0xca5   :  { %3411 = vmatprep.subr.mxu1 %v13778_v17  ;;  %10595 = vmatprep.subr.mxu0 %v16822_v7 }
 0xca6   :  { %3412 = vmatpush1.msra.mxu1 %v13781_v52  ;;  %10596 = vmatpush3.msra.mxu0 %v14121_v26 }
 0xca7   :  { %3413 = vmatprep.subr.mxu1 %v13784_v60  ;;  %10597 = vmatprep.subr.mxu0 %v16822_v7 }
 0xca8   :  { %3414 = vmatpush1.msra.mxu1 %v13787_v18  ;;  %10598 = vmatpush3.msra.mxu0 %v14127_v48 }
 0xca9   :  { %3415 = vmatprep.subr.mxu1 %v13790_v6  ;;  %10599 = vmatprep.subr.mxu0 %v16822_v7 }
 0xcaa   :  { %3416 = vmatpush1.msra.mxu1 %v13793_v23  ;;  %10600 = vmatpush3.msra.mxu0 %v14133_v49 }
 0xcab   :  { %3417 = vmatprep.subr.mxu1 %v13796_v61  ;;  %10601 = vmatprep.subr.mxu0 %v16822_v7 }
 0xcac   :  { %3418 = vmatpush1.msra.mxu1 %v13799_v57  ;;  %10602 = vmatpush3.msra.mxu0 %v14139_v46 }
 0xcad   :  { %3419 = vmatprep.subr.mxu1 %v16888_v31  ;;  %10603 = vmatprep.subr.mxu0 %v16822_v7 }
 0xcae   :  { %3420 = vmatpush1.msra.mxu1 %v16889_v32  ;;  %10604 = vmatpush3.msra.mxu0 %v14145_v14 }
 0xcaf   :  { %3421 = vmatprep.subr.mxu1 %v16891_v10  ;;  %10605 = vmatprep.subr.mxu0 %v16822_v7 }
 0xcb0   :  { %3422 = vmatpush1.msra.mxu1 %v16892_v33  ;;  %10606 = vmatpush3.msra.mxu0 %v14045_v11 }
 0xcb1   :  { %3423 = vmatprep.subr.mxu1 %v16893_v34  ;;  %10607 = vmatprep.subr.mxu0 %v16822_v7 }
 0xcb2   :  { %3424 = vmatpush1.msra.mxu1 %v16894_v35  ;;  %10608 = vmatpush3.msra.mxu0 %v14051_v36 }
 0xcb3   :  { %3425 = vmatprep.subr.mxu1 %v16896_v37  ;;  %10609 = vmatprep.subr.mxu0 %v16822_v7 }
 0xcb4   :  { %3426 = vmatpush1.msra.mxu1 %v16897_v38  ;;  %10610 = vmatpush3.msra.mxu0 %v14159_v55 }
 0xcb5   :  { %3427 = vmatprep.subr.mxu1 %v16899_v1  ;;  %10611 = vmatprep.subr.mxu0 %v16822_v7 }
 0xcb6   :  { %3428 = vmatpush1.msra.mxu1 %v16900_v8  ;;  %3461 = vmatprep.mubr.f32.mxu1 %v16822_v7 }
 0xcb7   :  { %10612 = vmatpush3.msra.mxu0 %v14166_v44  ;;  %10613 = vmatprep.mubr.msk.f32.mxu0 %vm12483_vm0, %v16822_v7 }
 0xcb8   :  { %3574 = vmatprep.subr.mxu1 %v16902_v47  ;;  %10616 = vmatprep.subr.mxu0 %v16822_v7 }
 0xd57   :  { %v3286_v56 = vpop.f32.mrf.mxu1  ;;  %v3357_v17 = vpop.f32.mrf.mxu0 }
 0xd58   :  { %v3287_v52 = vadd.f32 %v3286_v56, %v13943_v40  ;;  %v3358_v37 = vadd.f32 %v3357_v17, %v13982_v2  ;;  %v14220_v56 = vld [vmem:[#allocation12 + $0x278] sm:$0xff]  ;;  %v14224_v17 = vld [vmem:[#allocation12 + $0x270] sm:$0xff] }
 0xd59   :  { %v3288_v60 = vpop.f32.mrf.mxu1  ;;  %v10580_v18 = vpop.f32.mrf.mxu0 }
 0xd5a   :  { %v3362_v6 = vrot.slane %v3287_v52, 6  ;;  %v3289_v23 = vadd.f32 %v3288_v60, %v13948_v41  ;;  %v3382_v1 = vrot.slane %v3358_v37, 6  ;;  %v14228_v52 = vld [vmem:[#allocation12 + $0x260] sm:$0xff]  ;;  %v14232_v60 = vld [vmem:[#allocation12 + $0x258] sm:$0xff]  ;;  %v14236_v18 = vld [vmem:[#allocation12 + $0x248] sm:$0xff] }
 0xd5b   :  { %v14280_v37 = vld [vmem:[#allocation12 + $0x1c8] sm:$0xff] }
 0xd5c   :  { %v3364_v61 = vadd.f32 %v3362_v6, %v13950_v62  ;;  %v3372_v31 = vrot.slane %v3289_v23, 6  ;;  %v14240_v6 = vld [vmem:[#allocation12 + $0x240] sm:$0xff]  ;;  %v14244_v23 = vld [vmem:[#allocation12 + $0x230] sm:$0xff] }
 0xd5e   :  { %v9214_v57 = vmul.f32 -1.442695, %v3364_v61  ;;  %v3374_v32 = vadd.f32 %v3372_v31, %v13965_v4  ;;  %v14248_v61 = vld [vmem:[#allocation12 + $0x228] sm:$0xff]  ;;  %v14256_v31 = vld [vmem:[#allocation12 + $0x210] sm:$0xff] }
 0xd60   :  { %11801 = vpow2.f32 %v9214_v57  ;;  %v9215_v10 = vmul.f32 -1.442695, %v3374_v32  ;;  %v14252_v57 = vld [vmem:[#allocation12 + $0x218] sm:$0xff]  ;;  %v14260_v32 = vld [vmem:[#allocation12 + $0x200] sm:$0xff] }
 0xd62   :  { %11803 = vpow2.f32 %v9215_v10  ;;  %v14264_v10 = vld [vmem:[#allocation12 + $0x1f8] sm:$0xff] }
 0xd6d   :  { %v11802_v33 = vpop.eup %11801 }
 0xd6e   :  { %v3368_v34 = vadd.f32 1.0, %v11802_v33  ;;  %v14268_v33 = vld [vmem:[#allocation12 + $0x1e8] sm:$0xff] }
 0xd6f   :  { %v11804_v35 = vpop.eup %11803 }
 0xd70   :  { %11805 = vrcp.f32 %v3368_v34  ;;  %v3378_v38 = vadd.f32 1.0, %v11804_v35  ;;  %v14272_v34 = vld [vmem:[#allocation12 + $0x1e0] sm:$0xff]  ;;  %v14276_v35 = vld [vmem:[#allocation12 + $0x1d0] sm:$0xff] }
 0xd72   :  { %11807 = vrcp.f32 %v3378_v38  ;;  %v14284_v38 = vld [vmem:[#allocation12 + $0x1b8] sm:$0xff] }
 0xd7d   :  { %v11806_v8 = vpop.eup %11805 }
 0xd7e   :  { %v3384_v47 = vmul.f32 %v11806_v8, %v3382_v1  ;;  %v14288_v1 = vld [vmem:[#allocation12 + $0x1b0] sm:$0xff]  ;;  %v14292_v8 = vld [vmem:[#allocation12 + $0x1a0] sm:$0xff] }
 0xd7f   :  { %v11808_v5 = vpop.eup %11807  ;;  %16905 = vst [vmem:[#allocation36_spill] sm:$0xff] %v14292_v8 }
 0xd80   :  { %v3385_v45 = vadd.f32 %v3384_v47, %v13988_v43  ;;  %v3387_v59 = vsub.f32 1.0, %v11808_v5  ;;  %v3391_v28 = vmul.f32 %v11808_v5, %v3389_v27  ;;  %v14296_v47 = vld [vmem:[#allocation12 + $0x198] sm:$0xff]  ;;  %v14304_v5 = vld [vmem:[#allocation12 + $0x180] sm:$0xff] }
 0xd81   :  { %16906 = vst [vmem:[#allocation47_spill] sm:$0xff] %v14296_v47  ;;  %16908 = vst [vmem:[#allocation32_spill] sm:$0xff] %v14304_v5 }
 0xd82   :  { %11809 = vtanh.f32 %v3385_v45  ;;  %v14300_v45 = vld [vmem:[#allocation12 + $0x188] sm:$0xff] }
 0xd83   :  { %16907 = vst [vmem:[#allocation33_spill] sm:$0xff] %v14300_v45 }
 0xd8f   :  { %v11810_v58 = vpop.eup %11809 }
 0xd90   :  { %v3388_v53 = vmul.f32 %v11810_v58, %v3387_v59  ;;  %v14311_v59 = vld [vmem:[#allocation12 + $0x2f0] sm:$0xff] }
 0xd91   :  { %16909 = vst [vmem:[#allocation43_spill] sm:$0xff] %v14311_v59 }
 0xd92   :  { %v14180_v30 = vadd.f32 %v3391_v28, %v3388_v53 }
 0xd94   :  { %3393 = vst [vmem:[#allocation3] sm:$0x4] %v14180_v30  ;;  %v3395_v21 = vrot.slane %v14180_v30, 2 }
 0xd96   :  { %3462 = vmatmul.mubr.f32.vlgmr.msra.gmra.mxu1 %v3395_v21  ;;  %10614 = vmatmul.mubr.f32.vlgmr.msra.gmra.mxu0 %v3395_v21 }
 0xd97   :  { %3575 = vmatpush1.msra.mxu1 %v14184_v22  ;;  %10617 = vmatpush3.msra.mxu0 %v14079_v20 }
 0xd98   :  { %3576 = vmatprep.subr.mxu1 %v14188_v24  ;;  %10618 = vmatprep.subr.mxu0 %v16822_v7 }
 0xd99   :  { %3577 = vmatpush1.msra.mxu1 %v14192_v16  ;;  %10619 = vmatpush3.msra.mxu0 %v14085_v39 }
 0xd9a   :  { %3578 = vmatprep.subr.mxu1 %v14196_v19  ;;  %10620 = vmatprep.subr.mxu0 %v16822_v7 }
 0xd9b   :  { %3579 = vmatpush1.msra.mxu1 %v14200_v15  ;;  %10621 = vmatpush3.msra.mxu0 %v14091_v13 }
 0xd9c   :  { %3580 = vmatprep.subr.mxu1 %v14204_v25  ;;  %10622 = vmatprep.subr.mxu0 %v16822_v7 }
 0xd9d   :  { %3581 = vmatpush1.msra.mxu1 %v14208_v12  ;;  %10623 = vmatpush3.msra.mxu0 %v14097_v50 }
 0xd9e   :  { %3582 = vmatprep.subr.mxu1 %v14212_v54  ;;  %10624 = vmatprep.subr.mxu0 %v16822_v7 }
 0xd9f   :  { %3583 = vmatpush1.msra.mxu1 %v14216_v63  ;;  %10625 = vmatpush3.msra.mxu0 %v14103_v51 }
 0xda0   :  { %3584 = vmatprep.subr.mxu1 %v14220_v56  ;;  %10626 = vmatprep.subr.mxu0 %v16822_v7 }
 0xda1   :  { %3585 = vmatpush1.msra.mxu1 %v14224_v17  ;;  %10627 = vmatpush3.msra.mxu0 %v14109_v9 }
 0xda2   :  { %3586 = vmatprep.subr.mxu1 %v14228_v52  ;;  %10628 = vmatprep.subr.mxu0 %v16822_v7 }
 0xda3   :  { %3587 = vmatpush1.msra.mxu1 %v14232_v60  ;;  %10629 = vmatpush3.msra.mxu0 %v14115_v0 }
 0xda4   :  { %3588 = vmatprep.subr.mxu1 %v14236_v18  ;;  %10630 = vmatprep.subr.mxu0 %v16822_v7 }
 0xda5   :  { %3589 = vmatpush1.msra.mxu1 %v14240_v6  ;;  %10631 = vmatpush3.msra.mxu0 %v14121_v26 }
 0xda6   :  { %3590 = vmatprep.subr.mxu1 %v14244_v23  ;;  %10632 = vmatprep.subr.mxu0 %v16822_v7 }
 0xda7   :  { %3591 = vmatpush1.msra.mxu1 %v14248_v61  ;;  %10633 = vmatpush3.msra.mxu0 %v14127_v48 }
 0xda8   :  { %3592 = vmatprep.subr.mxu1 %v14252_v57  ;;  %10634 = vmatprep.subr.mxu0 %v16822_v7 }
 0xda9   :  { %3593 = vmatpush1.msra.mxu1 %v14256_v31  ;;  %10635 = vmatpush3.msra.mxu0 %v14133_v49 }
 0xdaa   :  { %3594 = vmatprep.subr.mxu1 %v14260_v32  ;;  %10636 = vmatprep.subr.mxu0 %v16822_v7 }
 0xdab   :  { %3595 = vmatpush1.msra.mxu1 %v14264_v10  ;;  %10637 = vmatpush3.msra.mxu0 %v14139_v46 }
 0xdac   :  { %3596 = vmatprep.subr.mxu1 %v14268_v33  ;;  %10638 = vmatprep.subr.mxu0 %v16822_v7 }
 0xdad   :  { %3597 = vmatpush1.msra.mxu1 %v14272_v34  ;;  %10639 = vmatpush3.msra.mxu0 %v14145_v14 }
 0xdae   :  { %3598 = vmatprep.subr.mxu1 %v14276_v35  ;;  %10640 = vmatprep.subr.mxu0 %v16822_v7 }
 0xdaf   :  { %3599 = vmatpush1.msra.mxu1 %v14280_v37  ;;  %10641 = vmatpush3.msra.mxu0 %v14045_v11 }
 0xdb0   :  { %3600 = vmatprep.subr.mxu1 %v14284_v38  ;;  %10642 = vmatprep.subr.mxu0 %v16822_v7 }
 0xdb1   :  { %3601 = vmatpush1.msra.mxu1 %v14288_v1  ;;  %10643 = vmatpush3.msra.mxu0 %v14051_v36 }
 0xdb2   :  { %3602 = vmatprep.subr.mxu1 %v14292_v8  ;;  %10644 = vmatprep.subr.mxu0 %v16822_v7 }
 0xdb3   :  { %3603 = vmatpush1.msra.mxu1 %v14296_v47  ;;  %10645 = vmatpush3.msra.mxu0 %v14159_v55 }
 0xdb4   :  { %3604 = vmatprep.subr.mxu1 %v14300_v45  ;;  %10646 = vmatprep.subr.mxu0 %v16822_v7 }
 0xdb5   :  { %3605 = vmatpush1.msra.mxu1 %v14304_v5  ;;  %3638 = vmatprep.mubr.f32.mxu1 %v16822_v7 }
 0xdb6   :  { %10647 = vmatpush3.msra.mxu0 %v14166_v44  ;;  %10648 = vmatprep.mubr.msk.f32.mxu0 %vm12483_vm0, %v16822_v7 }
 0xdb7   :  { %3751 = vmatprep.subr.mxu1 %v14311_v59  ;;  %10651 = vmatprep.subr.mxu0 %v16822_v7 }
 0xe56   :  { %v3463_v27 = vpop.f32.mrf.mxu1  ;;  %v3534_v58 = vpop.f32.mrf.mxu0 }
 0xe57   :  { %v3464_v53 = vadd.f32 %v3463_v27, %v13943_v40  ;;  %v3535_v27 = vadd.f32 %v3534_v58, %v13982_v2  ;;  %v16914_v58 = vld [vmem:[#allocation33_spill] sm:$0xff] }
 0xe58   :  { %v3465_v28 = vpop.f32.mrf.mxu1  ;;  %v10615_v21 = vpop.f32.mrf.mxu0 }
 0xe59   :  { %v3539_v29 = vrot.slane %v3464_v53, 5  ;;  %v3466_v42 = vadd.f32 %v3465_v28, %v13948_v41  ;;  %v3559_v21 = vrot.slane %v3535_v27, 5  ;;  %v16915_v28 = vld [vmem:[#allocation32_spill] sm:$0xff]  ;;  %v16916_v27 = vld [vmem:[#allocation39_spill] sm:$0xff] }
 0xe5b   :  { %v3541_v3 = vadd.f32 %v3539_v29, %v13950_v62  ;;  %v3549_v5 = vrot.slane %v3466_v42, 5 }
 0xe5d   :  { %v9216_v44 = vmul.f32 -1.442695, %v3541_v3  ;;  %v3551_v45 = vadd.f32 %v3549_v5, %v13965_v4 }
 0xe5f   :  { %11811 = vpow2.f32 %v9216_v44  ;;  %v9217_v55 = vmul.f32 -1.442695, %v3551_v45  ;;  %v3566_v44 = vrot.slane %v14180_v30, 7  ;;  %v16912_v30 = vld [vmem:[#allocation47_spill] sm:$0xff] }
 0xe61   :  { %11813 = vpow2.f32 %v9217_v55 }
 0xe6c   :  { %v11812_v59 = vpop.eup %11811 }
 0xe6d   :  { %v3545_v47 = vadd.f32 1.0, %v11812_v59 }
 0xe6e   :  { %v11814_v8 = vpop.eup %11813 }
 0xe6f   :  { %11815 = vrcp.f32 %v3545_v47  ;;  %v3555_v40 = vadd.f32 1.0, %v11814_v8  ;;  %v16913_v47 = vld [vmem:[#allocation44_spill] sm:$0xff] }
 0xe71   :  { %11817 = vrcp.f32 %v3555_v40  ;;  %v16910_v40 = vld [vmem:[#allocation46_spill] sm:$0xff] }
 0xe7c   :  { %v11816_v53 = vpop.eup %11815 }
 0xe7d   :  { %v3561_v36 = vmul.f32 %v11816_v53, %v3559_v21  ;;  %v16917_v21 = vld [vmem:[#allocation43_spill] sm:$0xff] }
 0xe7e   :  { %v11818_v3 = vpop.eup %11817 }
 0xe7f   :  { %v3562_v29 = vadd.f32 %v3561_v36, %v13988_v43  ;;  %v3564_v42 = vsub.f32 1.0, %v11818_v3  ;;  %v3568_v5 = vmul.f32 %v11818_v3, %v3566_v44  ;;  %v16911_v36 = vld [vmem:[#allocation36_spill] sm:$0xff] }
 0xe80   :  { %v16918_v3 = vld [vmem:[#allocation52_spill] sm:$0xff] }
 0xe81   :  { %11819 = vtanh.f32 %v3562_v29 }
 0xe8e   :  { %v11820_v45 = vpop.eup %11819 }
 0xe8f   :  { %v3565_v55 = vmul.f32 %v11820_v45, %v3564_v42 }
 0xe91   :  { %v14322_v59 = vadd.f32 %v3568_v5, %v3565_v55 }
 0xe93   :  { %3570 = vst [vmem:[#allocation3] sm:$0x8] %v14322_v59  ;;  %v3572_v8 = vrot.slane %v14322_v59, 3 }
 0xe95   :  { %3639 = vmatmul.mubr.f32.vlgmr.msra.gmra.mxu1 %v3572_v8  ;;  %10649 = vmatmul.mubr.f32.vlgmr.msra.gmra.mxu0 %v3572_v8 }
 0xe96   :  { %3752 = vmatpush1.msra.mxu1 %v14184_v22  ;;  %10652 = vmatpush3.msra.mxu0 %v14079_v20 }
 0xe97   :  { %3753 = vmatprep.subr.mxu1 %v14188_v24  ;;  %10653 = vmatprep.subr.mxu0 %v16822_v7 }
 0xe98   :  { %3754 = vmatpush1.msra.mxu1 %v14192_v16  ;;  %10654 = vmatpush3.msra.mxu0 %v14085_v39 }
 0xe99   :  { %3755 = vmatprep.subr.mxu1 %v14196_v19  ;;  %10655 = vmatprep.subr.mxu0 %v16822_v7 }
 0xe9a   :  { %3756 = vmatpush1.msra.mxu1 %v14200_v15  ;;  %10656 = vmatpush3.msra.mxu0 %v14091_v13 }
 0xe9b   :  { %3757 = vmatprep.subr.mxu1 %v14204_v25  ;;  %10657 = vmatprep.subr.mxu0 %v16822_v7 }
 0xe9c   :  { %3758 = vmatpush1.msra.mxu1 %v14208_v12  ;;  %10658 = vmatpush3.msra.mxu0 %v14097_v50 }
 0xe9d   :  { %3759 = vmatprep.subr.mxu1 %v14212_v54  ;;  %10659 = vmatprep.subr.mxu0 %v16822_v7 }
 0xe9e   :  { %3760 = vmatpush1.msra.mxu1 %v14216_v63  ;;  %10660 = vmatpush3.msra.mxu0 %v14103_v51 }
 0xe9f   :  { %3761 = vmatprep.subr.mxu1 %v14220_v56  ;;  %10661 = vmatprep.subr.mxu0 %v16822_v7 }
 0xea0   :  { %3762 = vmatpush1.msra.mxu1 %v14224_v17  ;;  %10662 = vmatpush3.msra.mxu0 %v14109_v9 }
 0xea1   :  { %3763 = vmatprep.subr.mxu1 %v14228_v52  ;;  %10663 = vmatprep.subr.mxu0 %v16822_v7 }
 0xea2   :  { %3764 = vmatpush1.msra.mxu1 %v14232_v60  ;;  %10664 = vmatpush3.msra.mxu0 %v14115_v0 }
 0xea3   :  { %3765 = vmatprep.subr.mxu1 %v14236_v18  ;;  %10665 = vmatprep.subr.mxu0 %v16822_v7 }
 0xea4   :  { %3766 = vmatpush1.msra.mxu1 %v14240_v6  ;;  %10666 = vmatpush3.msra.mxu0 %v14121_v26 }
 0xea5   :  { %3767 = vmatprep.subr.mxu1 %v14244_v23  ;;  %10667 = vmatprep.subr.mxu0 %v16822_v7 }
 0xea6   :  { %3768 = vmatpush1.msra.mxu1 %v14248_v61  ;;  %10668 = vmatpush3.msra.mxu0 %v14127_v48 }
 0xea7   :  { %3769 = vmatprep.subr.mxu1 %v14252_v57  ;;  %10669 = vmatprep.subr.mxu0 %v16822_v7 }
 0xea8   :  { %3770 = vmatpush1.msra.mxu1 %v14256_v31  ;;  %10670 = vmatpush3.msra.mxu0 %v14133_v49 }
 0xea9   :  { %3771 = vmatprep.subr.mxu1 %v14260_v32  ;;  %10671 = vmatprep.subr.mxu0 %v16822_v7 }
 0xeaa   :  { %3772 = vmatpush1.msra.mxu1 %v14264_v10  ;;  %10672 = vmatpush3.msra.mxu0 %v14139_v46 }
 0xeab   :  { %3773 = vmatprep.subr.mxu1 %v14268_v33  ;;  %10673 = vmatprep.subr.mxu0 %v16822_v7 }
 0xeac   :  { %3774 = vmatpush1.msra.mxu1 %v14272_v34  ;;  %10674 = vmatpush3.msra.mxu0 %v14145_v14 }
 0xead   :  { %3775 = vmatprep.subr.mxu1 %v14276_v35  ;;  %10675 = vmatprep.subr.mxu0 %v16822_v7 }
 0xeae   :  { %3776 = vmatpush1.msra.mxu1 %v14280_v37  ;;  %10676 = vmatpush3.msra.mxu0 %v14045_v11 }
 0xeaf   :  { %3777 = vmatprep.subr.mxu1 %v14284_v38  ;;  %10677 = vmatprep.subr.mxu0 %v16822_v7 }
 0xeb0   :  { %3778 = vmatpush1.msra.mxu1 %v14288_v1  ;;  %10678 = vmatpush3.msra.mxu0 %v16910_v40 }
 0xeb1   :  { %3779 = vmatprep.subr.mxu1 %v16911_v36  ;;  %10679 = vmatprep.subr.mxu0 %v16822_v7 }
 0xeb2   :  { %3780 = vmatpush1.msra.mxu1 %v16912_v30  ;;  %10680 = vmatpush3.msra.mxu0 %v16913_v47 }
 0xeb3   :  { %3781 = vmatprep.subr.mxu1 %v16914_v58  ;;  %10681 = vmatprep.subr.mxu0 %v16822_v7 }
 0xeb4   :  { %3782 = vmatpush1.msra.mxu1 %v16915_v28  ;;  %3815 = vmatprep.mubr.f32.mxu1 %v16822_v7 }
 0xeb5   :  { %10682 = vmatpush3.msra.mxu0 %v16916_v27  ;;  %10683 = vmatprep.mubr.msk.f32.mxu0 %vm12483_vm0, %v16822_v7 }
 0xeb6   :  { %3928 = vmatprep.subr.mxu1 %v16917_v21  ;;  %10686 = vmatprep.subr.mxu0 %v16822_v7 }
 0xf55   :  { %v3640_v53 = vpop.f32.mrf.mxu1  ;;  %v3711_v29 = vpop.f32.mrf.mxu0 }
 0xf56   :  { %v3641_v42 = vadd.f32 %v3640_v53, %v16918_v3  ;;  %v3712_v53 = vadd.f32 %v3711_v29, %v13982_v2  ;;  %v16922_v29 = vld [vmem:[#allocation44_spill] sm:$0xff] }
 0xf57   :  { %v3642_v44 = vpop.f32.mrf.mxu1  ;;  %v10650_v45 = vpop.f32.mrf.mxu0 }
 0xf58   :  { %v3716_v55 = vrot.slane %v3641_v42, 4  ;;  %v3643_v5 = vadd.f32 %v3642_v44, %v13948_v41  ;;  %v3736_v45 = vrot.slane %v3712_v53, 4  ;;  %v16926_v53 = vld [vmem:[#allocation43_spill] sm:$0xff] }
 0xf5a   :  { %v3718_v8 = vadd.f32 %v3716_v55, %v13950_v62  ;;  %v3726_v27 = vrot.slane %v3643_v5, 4 }
 0xf5c   :  { %v9218_v28 = vmul.f32 -1.442695, %v3718_v8  ;;  %v3728_v58 = vadd.f32 %v3726_v27, %v13965_v4  ;;  %v3743_v27 = vrot.slane %v14322_v59, 7  ;;  %v16919_v59 = vld [vmem:[#allocation46_spill] sm:$0xff]  ;;  %v16925_v8 = vld [vmem:[#allocation39_spill] sm:$0xff] }
 0xf5e   :  { %11821 = vpow2.f32 %v9218_v28  ;;  %v9219_v47 = vmul.f32 -1.442695, %v3728_v58 }
 0xf60   :  { %11823 = vpow2.f32 %v9219_v47 }
 0xf6b   :  { %v11822_v21 = vpop.eup %11821 }
 0xf6c   :  { %v3722_v30 = vadd.f32 1.0, %v11822_v21 }
 0xf6d   :  { %v11824_v36 = vpop.eup %11823 }
 0xf6e   :  { %11825 = vrcp.f32 %v3722_v30  ;;  %v3732_v3 = vadd.f32 1.0, %v11824_v36  ;;  %v16921_v30 = vld [vmem:[#allocation47_spill] sm:$0xff] }
 0xf70   :  { %11827 = vrcp.f32 %v3732_v3  ;;  %v16923_v3 = vld [vmem:[#allocation33_spill] sm:$0xff] }
 0xf7b   :  { %v11826_v42 = vpop.eup %11825 }
 0xf7c   :  { %v3738_v40 = vmul.f32 %v11826_v42, %v3736_v45 }
 0xf7d   :  { %v11828_v55 = vpop.eup %11827 }
 0xf7e   :  { %v3739_v44 = vadd.f32 %v3738_v40, %v13988_v43  ;;  %v3741_v28 = vsub.f32 1.0, %v11828_v55  ;;  %v3745_v5 = vmul.f32 %v11828_v55, %v3743_v27  ;;  %v16920_v40 = vld [vmem:[#allocation36_spill] sm:$0xff] }
 0xf80   :  { %11829 = vtanh.f32 %v3739_v44  ;;  %v16927_v44 = vld [vmem:[#allocation52_spill] sm:$0xff] }
 0xf8d   :  { %v11830_v58 = vpop.eup %11829 }
 0xf8e   :  { %v3742_v47 = vmul.f32 %v11830_v58, %v3741_v28 }
 0xf90   :  { %v14400_v21 = vadd.f32 %v3745_v5, %v3742_v47 }
 0xf92   :  { %3747 = vst [vmem:[#allocation3] sm:$0x10] %v14400_v21  ;;  %v3749_v36 = vrot.slane %v14400_v21, 4 }
 0xf94   :  { %3816 = vmatmul.mubr.f32.vlgmr.msra.gmra.mxu1 %v3749_v36  ;;  %10684 = vmatmul.mubr.f32.vlgmr.msra.gmra.mxu0 %v3749_v36 }
 0xf95   :  { %3929 = vmatpush1.msra.mxu1 %v14184_v22  ;;  %10687 = vmatpush3.msra.mxu0 %v14079_v20 }
 0xf96   :  { %3930 = vmatprep.subr.mxu1 %v14188_v24  ;;  %10688 = vmatprep.subr.mxu0 %v16822_v7 }
 0xf97   :  { %3931 = vmatpush1.msra.mxu1 %v14192_v16  ;;  %10689 = vmatpush3.msra.mxu0 %v14085_v39 }
 0xf98   :  { %3932 = vmatprep.subr.mxu1 %v14196_v19  ;;  %10690 = vmatprep.subr.mxu0 %v16822_v7 }
 0xf99   :  { %3933 = vmatpush1.msra.mxu1 %v14200_v15  ;;  %10691 = vmatpush3.msra.mxu0 %v14091_v13 }
 0xf9a   :  { %3934 = vmatprep.subr.mxu1 %v14204_v25  ;;  %10692 = vmatprep.subr.mxu0 %v16822_v7 }
 0xf9b   :  { %3935 = vmatpush1.msra.mxu1 %v14208_v12  ;;  %10693 = vmatpush3.msra.mxu0 %v14097_v50 }
 0xf9c   :  { %3936 = vmatprep.subr.mxu1 %v14212_v54  ;;  %10694 = vmatprep.subr.mxu0 %v16822_v7 }
 0xf9d   :  { %3937 = vmatpush1.msra.mxu1 %v14216_v63  ;;  %10695 = vmatpush3.msra.mxu0 %v14103_v51 }
 0xf9e   :  { %3938 = vmatprep.subr.mxu1 %v14220_v56  ;;  %10696 = vmatprep.subr.mxu0 %v16822_v7 }
 0xf9f   :  { %3939 = vmatpush1.msra.mxu1 %v14224_v17  ;;  %10697 = vmatpush3.msra.mxu0 %v14109_v9 }
 0xfa0   :  { %3940 = vmatprep.subr.mxu1 %v14228_v52  ;;  %10698 = vmatprep.subr.mxu0 %v16822_v7 }
 0xfa1   :  { %3941 = vmatpush1.msra.mxu1 %v14232_v60  ;;  %10699 = vmatpush3.msra.mxu0 %v14115_v0 }
 0xfa2   :  { %3942 = vmatprep.subr.mxu1 %v14236_v18  ;;  %10700 = vmatprep.subr.mxu0 %v16822_v7 }
 0xfa3   :  { %3943 = vmatpush1.msra.mxu1 %v14240_v6  ;;  %10701 = vmatpush3.msra.mxu0 %v14121_v26 }
 0xfa4   :  { %3944 = vmatprep.subr.mxu1 %v14244_v23  ;;  %10702 = vmatprep.subr.mxu0 %v16822_v7 }
 0xfa5   :  { %3945 = vmatpush1.msra.mxu1 %v14248_v61  ;;  %10703 = vmatpush3.msra.mxu0 %v14127_v48 }
 0xfa6   :  { %3946 = vmatprep.subr.mxu1 %v14252_v57  ;;  %10704 = vmatprep.subr.mxu0 %v16822_v7 }
 0xfa7   :  { %3947 = vmatpush1.msra.mxu1 %v14256_v31  ;;  %10705 = vmatpush3.msra.mxu0 %v14133_v49 }
 0xfa8   :  { %3948 = vmatprep.subr.mxu1 %v14260_v32  ;;  %10706 = vmatprep.subr.mxu0 %v16822_v7 }
 0xfa9   :  { %3949 = vmatpush1.msra.mxu1 %v14264_v10  ;;  %10707 = vmatpush3.msra.mxu0 %v14139_v46 }
 0xfaa   :  { %3950 = vmatprep.subr.mxu1 %v14268_v33  ;;  %10708 = vmatprep.subr.mxu0 %v16822_v7 }
 0xfab   :  { %3951 = vmatpush1.msra.mxu1 %v14272_v34  ;;  %10709 = vmatpush3.msra.mxu0 %v14145_v14 }
 0xfac   :  { %3952 = vmatprep.subr.mxu1 %v14276_v35  ;;  %10710 = vmatprep.subr.mxu0 %v16822_v7 }
 0xfad   :  { %3953 = vmatpush1.msra.mxu1 %v14280_v37  ;;  %10711 = vmatpush3.msra.mxu0 %v14045_v11  ;;  %v16924_v11 = vld [vmem:[#allocation32_spill] sm:$0xff] }
 0xfae   :  { %3954 = vmatprep.subr.mxu1 %v14284_v38  ;;  %10712 = vmatprep.subr.mxu0 %v16822_v7 }
 0xfaf   :  { %3955 = vmatpush1.msra.mxu1 %v14288_v1  ;;  %10713 = vmatpush3.msra.mxu0 %v16919_v59 }
 0xfb0   :  { %3956 = vmatprep.subr.mxu1 %v16920_v40  ;;  %10714 = vmatprep.subr.mxu0 %v16822_v7 }
 0xfb1   :  { %3957 = vmatpush1.msra.mxu1 %v16921_v30  ;;  %10715 = vmatpush3.msra.mxu0 %v16922_v29 }
 0xfb2   :  { %3958 = vmatprep.subr.mxu1 %v16923_v3  ;;  %10716 = vmatprep.subr.mxu0 %v16822_v7 }
 0xfb3   :  { %3959 = vmatpush1.msra.mxu1 %v16924_v11  ;;  %3992 = vmatprep.mubr.f32.mxu1 %v16822_v7 }
 0xfb4   :  { %10717 = vmatpush3.msra.mxu0 %v16925_v8  ;;  %10718 = vmatprep.mubr.msk.f32.mxu0 %vm12483_vm0, %v16822_v7 }
 0xfb5   :  { %10721 = vmatprep.subr.mxu0 %v16822_v7  ;;  %4105 = vmatprep.subr.mxu1 %v16926_v53 }
0x1054   :  { %v3817_v45 = vpop.f32.mrf.mxu1  ;;  %v3888_v42 = vpop.f32.mrf.mxu0 }
0x1055   :  { %v3818_v55 = vadd.f32 %v3817_v45, %v16927_v44  ;;  %v3889_v45 = vadd.f32 %v3888_v42, %v13982_v2  ;;  %v4578_v42 = vld [vmem:[%s16612_s11 + $0x50] sm:$0xff] }
0x1056   :  { %v3819_v28 = vpop.f32.mrf.mxu1  ;;  %v10685_v27 = vpop.f32.mrf.mxu0 }
0x1057   :  { %v3893_v58 = vrot.slane %v3818_v55, 3  ;;  %v3820_v47 = vadd.f32 %v3819_v28, %v13948_v41  ;;  %v3913_v27 = vrot.slane %v3889_v45, 3  ;;  %v4574_v45 = vld [vmem:[%s16612_s11 + $0x30] sm:$0xff] }
0x1059   :  { %v3895_v5 = vadd.f32 %v3893_v58, %v13950_v62  ;;  %v3903_v59 = vrot.slane %v3820_v47, 3 }
0x105b   :  { %v9220_v36 = vmul.f32 -1.442695, %v3895_v5  ;;  %v3905_v11 = vadd.f32 %v3903_v59, %v13965_v4  ;;  %v3920_v5 = vrot.slane %v14400_v21, 7  ;;  %v4581_v21 = vld [vmem:[%s16612_s11 + $0x68] sm:$0xff]  ;;  %v4576_v59 = vld [vmem:[%s16612_s11 + $0x40] sm:$0xff] }
0x105d   :  { %11831 = vpow2.f32 %v9220_v36  ;;  %v9221_v8 = vmul.f32 -1.442695, %v3905_v11 }
0x105f   :  { %11833 = vpow2.f32 %v9221_v8 }
0x106a   :  { %v11832_v3 = vpop.eup %11831 }
0x106b   :  { %v3899_v53 = vadd.f32 1.0, %v11832_v3 }
0x106c   :  { %v11834_v30 = vpop.eup %11833 }
0x106d   :  { %11835 = vrcp.f32 %v3899_v53  ;;  %v3909_v44 = vadd.f32 1.0, %v11834_v30  ;;  %v4575_v53 = vld [vmem:[%s16612_s11 + $0x38] sm:$0xff] }
0x106f   :  { %11837 = vrcp.f32 %v3909_v44  ;;  %v4577_v44 = vld [vmem:[%s16612_s11 + $0x48] sm:$0xff] }
0x107a   :  { %v11836_v55 = vpop.eup %11835 }
0x107b   :  { %v3915_v29 = vmul.f32 %v11836_v55, %v3913_v27  ;;  %v4573_v27 = vld [vmem:[%s16612_s11 + $0x28] sm:$0xff]  ;;  %v4572_v55 = vld [vmem:[%s16612_s11 + $0x20] sm:$0xff] }
0x107c   :  { %v11838_v58 = vpop.eup %11837 }
0x107d   :  { %v3916_v28 = vadd.f32 %v3915_v29, %v13988_v43  ;;  %v3918_v47 = vsub.f32 1.0, %v11838_v58  ;;  %v3922_v36 = vmul.f32 %v11838_v58, %v3920_v5  ;;  %v4579_v29 = vld [vmem:[%s16612_s11 + $0x58] sm:$0xff]  ;;  %v4570_v58 = vld [vmem:[%s16612_s11 + $0x10] sm:$0xff]  ;;  %v4568_v5 = vld [vmem:[%s16612_s11] sm:$0xff] }
0x107f   :  { %11839 = vtanh.f32 %v3916_v28  ;;  %v4571_v28 = vld [vmem:[%s16612_s11 + $0x18] sm:$0xff] }
0x108c   :  { %v11840_v11 = vpop.eup %11839 }
0x108d   :  { %v3919_v8 = vmul.f32 %v11840_v11, %v3918_v47  ;;  %v4569_v47 = vld [vmem:[%s16612_s11 + $0x8] sm:$0xff] }
0x108e   :  { %v16934_v11 = vld [vmem:[#allocation41_spill] sm:$0xff] }
0x108f   :  { %v14478_v3 = vadd.f32 %v3922_v36, %v3919_v8 }
0x1091   :  { %3924 = vst [vmem:[#allocation3] sm:$0x20] %v14478_v3  ;;  %v3926_v30 = vrot.slane %v14478_v3, 5 }
0x1093   :  { %3993 = vmatmul.mubr.f32.vlgmr.msra.gmra.mxu1 %v3926_v30  ;;  %10719 = vmatmul.mubr.f32.vlgmr.msra.gmra.mxu0 %v3926_v30 }
0x1094   :  { %10722 = vmatpush3.msra.mxu0 %v14079_v20  ;;  %4106 = vmatpush1.msra.mxu1 %v14184_v22  ;;  %v12126_v20 = vld [vmem:[#allocation12 + $0x1d8] sm:$0xff] }
0x1095   :  { %10723 = vmatprep.subr.mxu0 %v16822_v7  ;;  %4107 = vmatprep.subr.mxu1 %v14188_v24 }
0x1096   :  { %10724 = vmatpush3.msra.mxu0 %v14085_v39  ;;  %4108 = vmatpush1.msra.mxu1 %v14192_v16  ;;  %v12127_v39 = vld [vmem:[#allocation12 + $0x1c0] sm:$0xff] }
0x1097   :  { %10725 = vmatprep.subr.mxu0 %v16822_v7  ;;  %4109 = vmatprep.subr.mxu1 %v14196_v19 }
0x1098   :  { %10726 = vmatpush3.msra.mxu0 %v14091_v13  ;;  %4110 = vmatpush1.msra.mxu1 %v14200_v15  ;;  %v16928_v13 = vld [vmem:[#allocation44_spill] sm:$0xff] }
0x1099   :  { %10727 = vmatprep.subr.mxu0 %v16822_v7  ;;  %4111 = vmatprep.subr.mxu1 %v14204_v25 }
0x109a   :  { %10728 = vmatpush3.msra.mxu0 %v14097_v50  ;;  %4112 = vmatpush1.msra.mxu1 %v14208_v12  ;;  %v16929_v50 = vld [vmem:[#allocation47_spill] sm:$0xff] }
0x109b   :  { %10729 = vmatprep.subr.mxu0 %v16822_v7  ;;  %4113 = vmatprep.subr.mxu1 %v14212_v54 }
0x109c   :  { %10730 = vmatpush3.msra.mxu0 %v14103_v51  ;;  %4114 = vmatpush1.msra.mxu1 %v14216_v63  ;;  %v16930_v51 = vld [vmem:[#allocation33_spill] sm:$0xff] }
0x109d   :  { %10731 = vmatprep.subr.mxu0 %v16822_v7  ;;  %4115 = vmatprep.subr.mxu1 %v14220_v56 }
0x109e   :  { %10732 = vmatpush3.msra.mxu0 %v14109_v9  ;;  %4116 = vmatpush1.msra.mxu1 %v14224_v17  ;;  %v16931_v9 = vld [vmem:[#allocation39_spill] sm:$0xff] }
0x109f   :  { %10733 = vmatprep.subr.mxu0 %v16822_v7  ;;  %4117 = vmatprep.subr.mxu1 %v14228_v52 }
0x10a0   :  { %10734 = vmatpush3.msra.mxu0 %v14115_v0  ;;  %4118 = vmatpush1.msra.mxu1 %v14232_v60  ;;  %v16932_v0 = vld [vmem:[#allocation32_spill] sm:$0xff] }
0x10a1   :  { %10735 = vmatprep.subr.mxu0 %v16822_v7  ;;  %4119 = vmatprep.subr.mxu1 %v14236_v18 }
0x10a2   :  { %10736 = vmatpush3.msra.mxu0 %v14121_v26  ;;  %4120 = vmatpush1.msra.mxu1 %v14240_v6 }
0x10a3   :  { %10737 = vmatprep.subr.mxu0 %v16822_v7  ;;  %4121 = vmatprep.subr.mxu1 %v14244_v23 }
0x10a4   :  { %10738 = vmatpush3.msra.mxu0 %v14127_v48  ;;  %4122 = vmatpush1.msra.mxu1 %v14248_v61 }
0x10a5   :  { %10739 = vmatprep.subr.mxu0 %v16822_v7  ;;  %4123 = vmatprep.subr.mxu1 %v14252_v57 }
0x10a6   :  { %10740 = vmatpush3.msra.mxu0 %v14133_v49  ;;  %4124 = vmatpush1.msra.mxu1 %v14256_v31  ;;  %v16933_v49 = vld [vmem:[#allocation52_spill] sm:$0xff] }
0x10a7   :  { %10741 = vmatprep.subr.mxu0 %v16822_v7  ;;  %4125 = vmatprep.subr.mxu1 %v14260_v32  ;;  %v4097_v32 = vrot.slane %v14478_v3, 7 }
0x10a8   :  { %10742 = vmatpush3.msra.mxu0 %v14139_v46  ;;  %4126 = vmatpush1.msra.mxu1 %v14264_v10 }
0x10a9   :  { %10743 = vmatprep.subr.mxu0 %v16822_v7  ;;  %4127 = vmatprep.subr.mxu1 %v14268_v33 }
0x10aa   :  { %10744 = vmatpush3.msra.mxu0 %v14145_v14  ;;  %4128 = vmatpush1.msra.mxu1 %v14272_v34 }
0x10ab   :  { %10745 = vmatprep.subr.mxu0 %v16822_v7  ;;  %4129 = vmatprep.subr.mxu1 %v14276_v35 }
0x10ac   :  { %10746 = vmatpush3.msra.mxu0 %v12126_v20  ;;  %4130 = vmatpush1.msra.mxu1 %v14280_v37 }
0x10ad   :  { %10747 = vmatprep.subr.mxu0 %v16822_v7  ;;  %4131 = vmatprep.subr.mxu1 %v14284_v38  ;;  %v4583_v38 = vld [vmem:[%s16612_s11 + $0x78] sm:$0xff] }
0x10ae   :  { %10748 = vmatpush3.msra.mxu0 %v12127_v39  ;;  %4132 = vmatpush1.msra.mxu1 %v14288_v1  ;;  %v4582_v1 = vld [vmem:[%s16612_s11 + $0x70] sm:$0xff] }
0x10af   :  { %10749 = vmatprep.subr.mxu0 %v16822_v7  ;;  %4133 = vmatprep.subr.mxu1 %v16920_v40  ;;  %v4580_v40 = vld [vmem:[%s16612_s11 + $0x60] sm:$0xff]  ;;  %s14636_s11 = spop %11653 }
0x10b0   :  { %10750 = vmatpush3.msra.mxu0 %v16928_v13  ;;  %4134 = vmatpush1.msra.mxu1 %v16929_v50  ;;  %s4521_s26 = smul.f32 %s14636_s11, %s13945_s22 }
0x10b1   :  { %10751 = vmatprep.subr.mxu0 %v16822_v7  ;;  %4135 = vmatprep.subr.mxu1 %v16930_v51  ;;  %s4524_s30 = smul.f32 %s14636_s11, %s13952_s13 }
0x10b2   :  { %10752 = vmatpush3.msra.mxu0 %v16931_v9  ;;  %4136 = vmatpush1.msra.mxu1 %v16932_v0  ;;  %s4528_s22 = smul.f32 %s14636_s11, %s13958_s24 }
0x10b3   :  { %4169 = vmatprep.mubr.f32.mxu1 %v16822_v7  ;;  %10753 = vmatprep.mubr.msk.f32.mxu0 %vm12483_vm0, %v16822_v7  ;;  %s4532_s16 = smul.f32 %s14636_s11, %s13963_s28 }
0x10b4   :  { %10761 = vmatprep.subr.mxu0 %v16822_v7  ;;  %10756 = vmatprep.subr.mxu1 %v16822_v7  ;;  %s4536_s28 = smul.f32 %s14636_s11, %s13968_s2 }
0x10b5   :  { %s4540_s2 = smul.f32 %s14636_s11, %s13972_s0 }
0x10b6   :  { %s4544_s0 = smul.f32 %s14636_s11, %s13975_s3 }
0x10b7   :  { %s4548_s3 = smul.f32 %s14636_s11, %s13978_s15 }
0x1153   :  { %v3994_v26 = vpop.f32.mrf.mxu1  ;;  %v4065_v48 = vpop.f32.mrf.mxu0 }
0x1154   :  { %v3995_v46 = vadd.f32 %v3994_v26, %v16933_v49  ;;  %v4066_v52 = vadd.f32 %v4065_v48, %v13982_v2 }
0x1155   :  { %v3996_v14 = vpop.f32.mrf.mxu1  ;;  %v10720_v22 = vpop.f32.mrf.mxu0 }
0x1156   :  { %v4070_v24 = vrot.slane %v3995_v46, 2  ;;  %v3997_v16 = vadd.f32 %v3996_v14, %v13948_v41  ;;  %v4090_v18 = vrot.slane %v4066_v52, 2  ;;  %v4522_v52 = vstv %s4521_s26 }
0x1158   :  { %v4072_v19 = vadd.f32 %v4070_v24, %v13950_v62  ;;  %v4080_v25 = vrot.slane %v3997_v16, 2 }
0x115a   :  { %v9222_v15 = vmul.f32 -1.442695, %v4072_v19  ;;  %v4082_v12 = vadd.f32 %v4080_v25, %v13965_v4 }
0x115c   :  { %11841 = vpow2.f32 %v9222_v15  ;;  %v9223_v54 = vmul.f32 -1.442695, %v4082_v12 }
0x115e   :  { %11843 = vpow2.f32 %v9223_v54 }
0x1169   :  { %v11842_v63 = vpop.eup %11841 }
0x116a   :  { %v4076_v56 = vadd.f32 1.0, %v11842_v63 }
0x116b   :  { %v11844_v17 = vpop.eup %11843 }
0x116c   :  { %11845 = vrcp.f32 %v4076_v56  ;;  %v4086_v60 = vadd.f32 1.0, %v11844_v17 }
0x116e   :  { %11847 = vrcp.f32 %v4086_v60  ;;  %v4525_v60 = vstv %s4524_s30 }
0x1179   :  { %v11846_v6 = vpop.eup %11845 }
0x117a   :  { %v4092_v23 = vmul.f32 %v11846_v6, %v4090_v18  ;;  %v16935_v18 = vld [vmem:[#allocation38_spill] sm:$0xff] }
0x117b   :  { %v11848_v57 = vpop.eup %11847  ;;  %v4566_v6 = vld [vmem:[%s16611_s10 + $0x70] sm:$0xff] }
0x117c   :  { %v4093_v61 = vadd.f32 %v4092_v23, %v13988_v43  ;;  %v4095_v31 = vsub.f32 1.0, %v11848_v57  ;;  %v4099_v34 = vmul.f32 %v11848_v57, %v4097_v32  ;;  %v12128_v23 = vld [vmem:[%s16868_s20] sm:$0xff]  ;;  %v12129_v57 = vld [vmem:[%s16868_s20 + $0x8] sm:$0xff] }
0x117d   :  { %v4565_v32 = vld [vmem:[%s16611_s10 + $0x68] sm:$0xff] }
0x117e   :  { %11849 = vtanh.f32 %v4093_v61  ;;  %v4523_v61 = vmul.f32 %v12128_v23, %v4522_v52  ;;  %v4817_v52 = vld [vmem:[#allocation10 + $0x418] sm:$0xff]  ;;  %v4814_v23 = vld [vmem:[#allocation10 + $0x400] sm:$0xff] }
0x118b   :  { %v11850_v10 = vpop.eup %11849 }
0x118c   :  { %v4096_v33 = vmul.f32 %v11850_v10, %v4095_v31  ;;  %v4526_v31 = vmul.f32 %v12129_v57, %v4525_v60  ;;  %v4564_v10 = vld [vmem:[%s16611_s10 + $0x60] sm:$0xff]  ;;  %v4815_v60 = vld [vmem:[#allocation10 + $0x408] sm:$0xff] }
0x118d   :  { %v4810_v57 = vld [vmem:[#allocation10 + $0x3e0] sm:$0xff] }
0x118e   :  { %v14554_v35 = vadd.f32 %v4099_v34, %v4096_v33  ;;  %v4529_v33 = vstv %s4528_s22  ;;  %v4563_v34 = vld [vmem:[%s16611_s10 + $0x58] sm:$0xff] }
0x1190   :  { %4101 = vst [vmem:[#allocation3] sm:$0x40] %v14554_v35  ;;  %v4103_v37 = vrot.slane %v14554_v35, 6  ;;  %v4274_v25 = vrot.slane %v14554_v35, 7  ;;  %v4527_v35 = vadd.f32 %v4526_v31, %v4523_v61  ;;  %v4812_v61 = vld [vmem:[#allocation10 + $0x3f0] sm:$0xff]  ;;  %v4811_v31 = vld [vmem:[#allocation10 + $0x3e8] sm:$0xff] }
0x1192   :  { %4170 = vmatmul.mubr.f32.vlgmr.msra.gmra.mxu1 %v4103_v37  ;;  %10754 = vmatmul.mubr.f32.vlgmr.msra.gmra.mxu0 %v4103_v37  ;;  %v4562_v37 = vld [vmem:[%s16611_s10 + $0x50] sm:$0xff] }
0x1193   :  { %10762 = vmatpush3.msra.mxu0 %v4583_v38  ;;  %10793 = vmatprep.mubr.msk.f32.mxu0 %vm12483_vm0, %v16822_v7  ;;  %v12130_v38 = vld [vmem:[%s16868_s20 + $0x10] sm:$0xff] }
0x1194   :  { %10763 = vmatprep.subr.mxu0 %v16822_v7  ;;  %10758 = vmatprep.mubr.msk.f32.mxu1 %vm12483_vm0, %v16822_v7 }
0x1195   :  { %10764 = vmatpush3.msra.mxu0 %v4582_v1  ;;  %v4530_v1 = vmul.f32 %v12130_v38, %v4529_v33  ;;  %v4808_v33 = vld [vmem:[#allocation10 + $0x3d0] sm:$0xff]  ;;  %v4803_v38 = vld [vmem:[#allocation10 + $0x3a8] sm:$0xff] }
0x1196   :  { %10765 = vmatprep.subr.mxu0 %v16822_v7 }
0x1197   :  { %10766 = vmatpush3.msra.mxu0 %v4581_v21  ;;  %v4533_v21 = vstv %s4532_s16 }
0x1198   :  { %10767 = vmatprep.subr.mxu0 %v16822_v7 }
0x1199   :  { %10768 = vmatpush3.msra.mxu0 %v4580_v40  ;;  %v4561_v40 = vld [vmem:[%s16611_s10 + $0x48] sm:$0xff] }
0x119a   :  { %10769 = vmatprep.subr.mxu0 %v16822_v7 }
0x119b   :  { %10770 = vmatpush3.msra.mxu0 %v4579_v29  ;;  %v4531_v29 = vadd.f32 %v4530_v1, %v4527_v35  ;;  %v4804_v35 = vld [vmem:[#allocation10 + $0x3b0] sm:$0xff]  ;;  %v4801_v1 = vld [vmem:[#allocation10 + $0x398] sm:$0xff] }
0x119c   :  { %10771 = vmatprep.subr.mxu0 %v16822_v7 }
0x119d   :  { %10772 = vmatpush3.msra.mxu0 %v4578_v42  ;;  %v4560_v42 = vld [vmem:[%s16611_s10 + $0x40] sm:$0xff] }
0x119e   :  { %10773 = vmatprep.subr.mxu0 %v16822_v7 }
0x119f   :  { %10774 = vmatpush3.msra.mxu0 %v4577_v44  ;;  %v12131_v44 = vld [vmem:[%s16868_s20 + $0x18] sm:$0xff] }
0x11a0   :  { %10775 = vmatprep.subr.mxu0 %v16822_v7 }
0x11a1   :  { %10776 = vmatpush3.msra.mxu0 %v4576_v59  ;;  %v4534_v59 = vmul.f32 %v12131_v44, %v4533_v21  ;;  %v4802_v21 = vld [vmem:[#allocation10 + $0x3a0] sm:$0xff]  ;;  %v4797_v44 = vld [vmem:[#allocation10 + $0x378] sm:$0xff] }
0x11a2   :  { %10777 = vmatprep.subr.mxu0 %v16822_v7 }
0x11a3   :  { %10778 = vmatpush3.msra.mxu0 %v4575_v53  ;;  %v4537_v53 = vstv %s4536_s28 }
0x11a4   :  { %10779 = vmatprep.subr.mxu0 %v16822_v7 }
0x11a5   :  { %10780 = vmatpush3.msra.mxu0 %v4574_v45  ;;  %v4559_v45 = vld [vmem:[%s16611_s10 + $0x38] sm:$0xff] }
0x11a6   :  { %10781 = vmatprep.subr.mxu0 %v16822_v7 }
0x11a7   :  { %10782 = vmatpush3.msra.mxu0 %v4573_v27  ;;  %v4535_v27 = vadd.f32 %v4534_v59, %v4531_v29  ;;  %v4798_v29 = vld [vmem:[#allocation10 + $0x380] sm:$0xff]  ;;  %v4795_v59 = vld [vmem:[#allocation10 + $0x368] sm:$0xff] }
0x11a8   :  { %10783 = vmatprep.subr.mxu0 %v16822_v7 }
0x11a9   :  { %10784 = vmatpush3.msra.mxu0 %v4572_v55  ;;  %v4558_v55 = vld [vmem:[%s16611_s10 + $0x30] sm:$0xff] }
0x11aa   :  { %10785 = vmatprep.subr.mxu0 %v16822_v7 }
0x11ab   :  { %10786 = vmatpush3.msra.mxu0 %v4571_v28  ;;  %v12132_v28 = vld [vmem:[%s16868_s20 + $0x20] sm:$0xff] }
0x11ac   :  { %10787 = vmatprep.subr.mxu0 %v16822_v7 }
0x11ad   :  { %10788 = vmatpush3.msra.mxu0 %v4570_v58  ;;  %v4538_v58 = vmul.f32 %v12132_v28, %v4537_v53  ;;  %v4796_v53 = vld [vmem:[#allocation10 + $0x370] sm:$0xff]  ;;  %v4791_v28 = vld [vmem:[#allocation10 + $0x348] sm:$0xff] }
0x11ae   :  { %10789 = vmatprep.subr.mxu0 %v16822_v7 }
0x11af   :  { %10790 = vmatpush3.msra.mxu0 %v4569_v47  ;;  %v4541_v47 = vstv %s4540_s2 }
0x11b0   :  { %10791 = vmatprep.subr.mxu0 %v16822_v7 }
0x11b1   :  { %10792 = vmatpush3.msra.mxu0 %v4568_v5  ;;  %v4557_v5 = vld [vmem:[%s16611_s10 + $0x28] sm:$0xff] }
0x11b2   :  { %10794 = vmatmul.mubr.f32.vlgmr.msra.gmra.mxu0 %v16934_v11 }
0x11b3   :  { %4947 = vmatprep.mubr.f32.mxu0 %v16822_v7 }
0x1252   :  { %v4171_v8 = vpop.f32.mrf.mxu1  ;;  %v4242_v36 = vpop.f32.mrf.mxu0 }
0x1253   :  { %v4172_v3 = vadd.f32 %v4171_v8, %v16933_v49  ;;  %v4243_v49 = vadd.f32 %v4242_v36, %v13982_v2  ;;  %v4539_v8 = vadd.f32 %v4538_v58, %v4535_v27  ;;  %v4556_v36 = vld [vmem:[%s16611_s10 + $0x20] sm:$0xff]  ;;  %v4792_v27 = vld [vmem:[#allocation10 + $0x350] sm:$0xff]  ;;  %v4789_v58 = vld [vmem:[#allocation10 + $0x338] sm:$0xff] }
0x1254   :  { %v4173_v30 = vpop.f32.mrf.mxu1  ;;  %v10755_v20 = vpop.f32.mrf.mxu0 }
0x1255   :  { %v4247_v39 = vrot.slane %v4172_v3, 1  ;;  %v4174_v13 = vadd.f32 %v4173_v30, %v13948_v41  ;;  %v4267_v41 = vrot.slane %v4243_v49, 1  ;;  %v12133_v3 = vld [vmem:[%s16868_s20 + $0x28] sm:$0xff]  ;;  %v4545_v20 = vstv %s4544_s0  ;;  %s6813_s0 = scalar_select %p4364_p3, 1, 0 }
0x1256   :  { %v4542_v30 = vmul.f32 %v12133_v3, %v4541_v47  ;;  %v4788_v47 = vld [vmem:[#allocation10 + $0x330] sm:$0xff]  ;;  %v4787_v3 = vld [vmem:[#allocation10 + $0x328] sm:$0xff] }
0x1257   :  { %v4249_v50 = vadd.f32 %v4247_v39, %v13950_v62  ;;  %v4257_v9 = vrot.slane %v4174_v13, 1  ;;  %v4555_v39 = vld [vmem:[%s16611_s10 + $0x18] sm:$0xff]  ;;  %s6814_s7 = scvt.s32.f32 %s6813_s0 }
0x1258   :  { %v4543_v13 = vadd.f32 %v4542_v30, %v4539_v8  ;;  %v4786_v8 = vld [vmem:[#allocation10 + $0x320] sm:$0xff]  ;;  %v4783_v30 = vld [vmem:[#allocation10 + $0x308] sm:$0xff] }
0x1259   :  { %v9224_v51 = vmul.f32 -1.442695, %v4249_v50  ;;  %v4259_v0 = vadd.f32 %v4257_v9, %v13965_v4  ;;  %v4554_v50 = vld [vmem:[%s16611_s10 + $0x10] sm:$0xff] }
0x125b   :  { %11851 = vpow2.f32 %v9224_v51  ;;  %v9225_v26 = vmul.f32 -1.442695, %v4259_v0  ;;  %v12134_v51 = vld [vmem:[%s16868_s20 + $0x30] sm:$0xff]  ;;  %v4549_v0 = vstv %s4548_s3 }
0x125c   :  { %v4546_v9 = vmul.f32 %v12134_v51, %v4545_v20  ;;  %v4782_v20 = vld [vmem:[#allocation10 + $0x300] sm:$0xff] }
0x125d   :  { %11853 = vpow2.f32 %v9225_v26  ;;  %v4553_v26 = vld [vmem:[%s16611_s10 + $0x8] sm:$0xff] }
0x1268   :  { %v11852_v48 = vpop.eup %11851 }
0x1269   :  { %v4253_v46 = vadd.f32 1.0, %v11852_v48  ;;  %v4547_v48 = vadd.f32 %v4546_v9, %v4543_v13 }
0x126a   :  { %v11854_v14 = vpop.eup %11853 }
0x126b   :  { %11855 = vrcp.f32 %v4253_v46  ;;  %v4263_v16 = vadd.f32 1.0, %v11854_v14  ;;  %v4552_v46 = vld [vmem:[%s16611_s10] sm:$0xff]  ;;  %v12135_v14 = vld [vmem:[%s16868_s20 + $0x38] sm:$0xff] }
0x126c   :  { %v4550_v49 = vmul.f32 %v12135_v14, %v4549_v0 }
0x126d   :  { %11857 = vrcp.f32 %v4263_v16  ;;  %v4828_v16 = vld [vmem:[#allocation10 + $0x470] sm:$0xff] }
0x126e   :  { %4883 = vmatprep.subr.mxu0 %v4828_v16 }
0x1272   :  { %v14631_v22 = vpop.f32.mrf.mxu0 }
0x1274   :  { %v10795_v24 = vpop.f32.mrf.mxu0 }
0x1275   :  { %v4551_v24 = vadd.f32 %v4550_v49, %v4547_v48 }
0x1278   :  { %v11856_v62 = vpop.eup %11855 }
0x1279   :  { %v4269_v19 = vmul.f32 %v11856_v62, %v4267_v41  ;;  %v4827_v41 = vld [vmem:[#allocation10 + $0x468] sm:$0xff]  ;;  %v4829_v62 = vld [vmem:[#allocation10 + $0x478] sm:$0xff] }
0x127a   :  { %v11858_v15 = vpop.eup %11857  ;;  %4884 = vmatpush1.msra.mxu0 %v4827_v41 }
0x127b   :  { %v4270_v4 = vadd.f32 %v4269_v19, %v13988_v43  ;;  %v4272_v12 = vsub.f32 1.0, %v11858_v15  ;;  %v4276_v56 = vmul.f32 %v11858_v15, %v4274_v25  ;;  %v4567_v43 = vld [vmem:[%s16611_s10 + $0x78] sm:$0xff]  ;;  %v4826_v15 = vld [vmem:[#allocation10 + $0x460] sm:$0xff] }
0x127c   :  { %v4825_v19 = vld [vmem:[#allocation10 + $0x458] sm:$0xff]  ;;  %v4822_v25 = vld [vmem:[#allocation10 + $0x440] sm:$0xff] }
0x127d   :  { %11859 = vtanh.f32 %v4270_v4  ;;  %v4824_v4 = vld [vmem:[#allocation10 + $0x450] sm:$0xff]  ;;  %4885 = vmatprep.subr.mxu0 %v4825_v19  ;;  %v4778_v19 = vld [vmem:[#allocation7 + $0x468] sm:$0xff] }
0x127e   :  { %4886 = vmatpush1.msra.mxu0 %v4824_v4  ;;  %v4776_v4 = vld [vmem:[#allocation7 + $0x458] sm:$0xff] }
0x127f   :  { %4887 = vmatprep.subr.mxu0 %v4822_v25  ;;  %v4775_v25 = vld [vmem:[#allocation7 + $0x450] sm:$0xff] }
0x128a   :  { %v11860_v54 = vpop.eup %11859 }
0x128b   :  { %v4273_v63 = vmul.f32 %v11860_v54, %v4272_v12  ;;  %v4823_v12 = vld [vmem:[#allocation10 + $0x448] sm:$0xff]  ;;  %v4821_v54 = vld [vmem:[#allocation10 + $0x438] sm:$0xff] }
0x128c   :  { %4888 = vmatpush1.msra.mxu0 %v4821_v54  ;;  %v4771_v54 = vld [vmem:[#allocation7 + $0x430] sm:$0xff] }
0x128d   :  { %v4277_v2 = vadd.f32 %v4276_v56, %v4273_v63  ;;  %v4819_v63 = vld [vmem:[#allocation10 + $0x428] sm:$0xff]  ;;  %v4820_v56 = vld [vmem:[#allocation10 + $0x430] sm:$0xff] }
0x128e   :  { %4889 = vmatprep.subr.mxu0 %v4819_v63  ;;  %v4772_v63 = vld [vmem:[#allocation7 + $0x438] sm:$0xff] }
0x128f   :  { %4278 = vst [vmem:[#allocation3] sm:$0x80] %v4277_v2  ;;  %v4818_v2 = vld [vmem:[#allocation10 + $0x420] sm:$0xff] }
0x1290   :  { %4890 = vmatpush1.msra.mxu0 %v4818_v2  ;;  %v4768_v2 = vld [vmem:[#allocation7 + $0x418] sm:$0xff] }
0x1296   :  { %v14642_v17 = vld [vmem:[#allocation3] sm:$0xff] }
0x1297   :  { %10757 = vmatpush3.msra.mxu1 %v14642_v17 }
0x1298   :  { %10759 = vmatmul.mubr.msk.f32.vlgmr.msra.gmra.mxu1 %vm476_vm2, %v16935_v18  ;;  %10796 = vmatprep.subr.mxu1 %v16822_v7 }
0x1299   :  { %10797 = vmatpush3.msra.mxu1 %v4567_v43  ;;  %10828 = vmatprep.mubr.msk.f32.mxu1 %vm12483_vm0, %v16822_v7  ;;  %v4816_v43 = vld [vmem:[#allocation10 + $0x410] sm:$0xff] }
0x129a   :  { %10798 = vmatprep.subr.mxu1 %v16822_v7  ;;  %4891 = vmatprep.subr.mxu0 %v4816_v43  ;;  %v4769_v43 = vld [vmem:[#allocation7 + $0x420] sm:$0xff] }
0x129b   :  { %10799 = vmatpush3.msra.mxu1 %v4566_v6  ;;  %v4813_v6 = vld [vmem:[#allocation10 + $0x3f8] sm:$0xff]  ;;  %4892 = vmatpush1.msra.mxu0 %v4815_v60  ;;  %v4765_v60 = vld [vmem:[#allocation7 + $0x400] sm:$0xff] }
0x129c   :  { %10800 = vmatprep.subr.mxu1 %v16822_v7  ;;  %4893 = vmatprep.subr.mxu0 %v4813_v6  ;;  %v4766_v6 = vld [vmem:[#allocation7 + $0x408] sm:$0xff] }
0x129d   :  { %10801 = vmatpush3.msra.mxu1 %v4565_v32  ;;  %v4809_v32 = vld [vmem:[#allocation10 + $0x3d8] sm:$0xff]  ;;  %4894 = vmatpush1.msra.mxu0 %v4812_v61  ;;  %v4762_v61 = vld [vmem:[#allocation7 + $0x3e8] sm:$0xff] }
0x129e   :  { %10802 = vmatprep.subr.mxu1 %v16822_v7  ;;  %4895 = vmatprep.subr.mxu0 %v4810_v57  ;;  %v4763_v57 = vld [vmem:[#allocation7 + $0x3f0] sm:$0xff] }
0x129f   :  { %10803 = vmatpush3.msra.mxu1 %v4564_v10  ;;  %v4807_v10 = vld [vmem:[#allocation10 + $0x3c8] sm:$0xff]  ;;  %4896 = vmatpush1.msra.mxu0 %v4809_v32  ;;  %v4759_v32 = vld [vmem:[#allocation7 + $0x3d0] sm:$0xff] }
0x12a0   :  { %10804 = vmatprep.subr.mxu1 %v16822_v7  ;;  %4897 = vmatprep.subr.mxu0 %v4807_v10  ;;  %v4760_v10 = vld [vmem:[#allocation7 + $0x3d8] sm:$0xff] }
0x12a1   :  { %10805 = vmatpush3.msra.mxu1 %v4563_v34  ;;  %v4806_v34 = vld [vmem:[#allocation10 + $0x3c0] sm:$0xff] }
0x12a2   :  { %10806 = vmatprep.subr.mxu1 %v16822_v7  ;;  %4898 = vmatpush1.msra.mxu0 %v4806_v34  ;;  %v4756_v34 = vld [vmem:[#allocation7 + $0x3b8] sm:$0xff] }
0x12a3   :  { %10807 = vmatpush3.msra.mxu1 %v4562_v37  ;;  %v4805_v37 = vld [vmem:[#allocation10 + $0x3b8] sm:$0xff]  ;;  %4899 = vmatprep.subr.mxu0 %v4804_v35  ;;  %v4757_v35 = vld [vmem:[#allocation7 + $0x3c0] sm:$0xff] }
0x12a4   :  { %10808 = vmatprep.subr.mxu1 %v16822_v7  ;;  %4900 = vmatpush1.msra.mxu0 %v4803_v38  ;;  %v4753_v38 = vld [vmem:[#allocation7 + $0x3a0] sm:$0xff] }
0x12a5   :  { %10809 = vmatpush3.msra.mxu1 %v4561_v40  ;;  %v4800_v40 = vld [vmem:[#allocation10 + $0x390] sm:$0xff]  ;;  %4901 = vmatprep.subr.mxu0 %v4801_v1  ;;  %v4754_v1 = vld [vmem:[#allocation7 + $0x3a8] sm:$0xff] }
0x12a6   :  { %10810 = vmatprep.subr.mxu1 %v16822_v7  ;;  %4902 = vmatpush1.msra.mxu0 %v4800_v40  ;;  %v4750_v40 = vld [vmem:[#allocation7 + $0x388] sm:$0xff] }
0x12a7   :  { %10811 = vmatpush3.msra.mxu1 %v4560_v42  ;;  %v4799_v42 = vld [vmem:[#allocation10 + $0x388] sm:$0xff]  ;;  %4903 = vmatprep.subr.mxu0 %v4798_v29  ;;  %v4751_v29 = vld [vmem:[#allocation7 + $0x390] sm:$0xff] }
0x12a8   :  { %10812 = vmatprep.subr.mxu1 %v16822_v7  ;;  %4904 = vmatpush1.msra.mxu0 %v4797_v44  ;;  %v4747_v44 = vld [vmem:[#allocation7 + $0x370] sm:$0xff] }
0x12a9   :  { %10813 = vmatpush3.msra.mxu1 %v4559_v45  ;;  %v4794_v45 = vld [vmem:[#allocation10 + $0x360] sm:$0xff]  ;;  %4905 = vmatprep.subr.mxu0 %v4795_v59  ;;  %v4748_v59 = vld [vmem:[#allocation7 + $0x378] sm:$0xff] }
0x12aa   :  { %10814 = vmatprep.subr.mxu1 %v16822_v7  ;;  %4906 = vmatpush1.msra.mxu0 %v4794_v45  ;;  %v4744_v45 = vld [vmem:[#allocation7 + $0x358] sm:$0xff] }
0x12ab   :  { %10815 = vmatpush3.msra.mxu1 %v4558_v55  ;;  %v4793_v55 = vld [vmem:[#allocation10 + $0x358] sm:$0xff]  ;;  %4907 = vmatprep.subr.mxu0 %v4792_v27  ;;  %v4745_v27 = vld [vmem:[#allocation7 + $0x360] sm:$0xff] }
0x12ac   :  { %10816 = vmatprep.subr.mxu1 %v16822_v7  ;;  %4908 = vmatpush1.msra.mxu0 %v4791_v28  ;;  %v4741_v28 = vld [vmem:[#allocation7 + $0x340] sm:$0xff] }
0x12ad   :  { %10817 = vmatpush3.msra.mxu1 %v4557_v5  ;;  %4909 = vmatprep.subr.mxu0 %v4789_v58  ;;  %v4790_v5 = vld [vmem:[#allocation10 + $0x340] sm:$0xff]  ;;  %v4742_v58 = vld [vmem:[#allocation7 + $0x348] sm:$0xff] }
0x12ae   :  { %10818 = vmatprep.subr.mxu1 %v16822_v7  ;;  %4910 = vmatpush1.msra.mxu0 %v4788_v47  ;;  %v4740_v47 = vld [vmem:[#allocation7 + $0x338] sm:$0xff] }
0x12af   :  { %10819 = vmatpush3.msra.mxu1 %v4556_v36  ;;  %v4785_v36 = vld [vmem:[#allocation10 + $0x318] sm:$0xff]  ;;  %4911 = vmatprep.subr.mxu0 %v4786_v8  ;;  %v4739_v8 = vld [vmem:[#allocation7 + $0x330] sm:$0xff] }
0x12b0   :  { %10820 = vmatprep.subr.mxu1 %v16822_v7  ;;  %4912 = vmatpush1.msra.mxu0 %v4785_v36  ;;  %v4737_v36 = vld [vmem:[#allocation7 + $0x320] sm:$0xff] }
0x12b1   :  { %10821 = vmatpush3.msra.mxu1 %v4555_v39  ;;  %v4784_v39 = vld [vmem:[#allocation10 + $0x310] sm:$0xff]  ;;  %4913 = vmatprep.subr.mxu0 %v4783_v30  ;;  %v4736_v30 = vld [vmem:[#allocation7 + $0x318] sm:$0xff] }
0x12b2   :  { %10822 = vmatprep.subr.mxu1 %v16822_v7  ;;  %4914 = vmatpush1.msra.mxu0 %v4782_v20  ;;  %v4734_v20 = vld [vmem:[#allocation7 + $0x308] sm:$0xff] }
0x12b3   :  { %10823 = vmatpush3.msra.mxu1 %v4554_v50 }
0x12b4   :  { %10824 = vmatprep.subr.mxu1 %v16822_v7 }
0x12b5   :  { %10825 = vmatpush3.msra.mxu1 %v4553_v26  ;;  %v9234_v26 = vld [vmem:[%s16613_s12] ss:$0 sm:$0xff] }
0x12b6   :  { %10826 = vmatprep.subr.mxu1 %v16822_v7 }
0x12b7   :  { %10827 = vmatpush3.msra.mxu1 %v4552_v46 }
0x12b8   :  { %10829 = vmatmul.mubr.f32.vlgmr.msra.gmra.mxu1 %v4551_v24  ;;  %10831 = vmatprep.subr.mxu1 %v16822_v7  ;;  %v4780_v24 = vld [vmem:[#allocation7 + $0x478] sm:$0xff] }
0x12b9   :  { %10863 = vmatprep.mubr.msk.f32.mxu1 %vm12483_vm0, %v16822_v7  ;;  %10832 = vmatpush3.msra.mxu1 %v4829_v62  ;;  %v4777_v62 = vld [vmem:[#allocation7 + $0x460] sm:$0xff] }
0x12ba   :  { %10833 = vmatprep.subr.mxu1 %v16822_v7 }
0x12bb   :  { %10834 = vmatpush3.msra.mxu1 %v4826_v15  ;;  %v4774_v15 = vld [vmem:[#allocation7 + $0x448] sm:$0xff] }
0x12bc   :  { %10835 = vmatprep.subr.mxu1 %v16822_v7 }
0x12bd   :  { %10836 = vmatpush3.msra.mxu1 %v4823_v12  ;;  %v4773_v12 = vld [vmem:[#allocation7 + $0x440] sm:$0xff] }
0x12be   :  { %10837 = vmatprep.subr.mxu1 %v16822_v7 }
0x12bf   :  { %10838 = vmatpush3.msra.mxu1 %v4820_v56  ;;  %v4770_v56 = vld [vmem:[#allocation7 + $0x428] sm:$0xff] }
0x12c0   :  { %10839 = vmatprep.subr.mxu1 %v16822_v7 }
0x12c1   :  { %10840 = vmatpush3.msra.mxu1 %v4817_v52  ;;  %v4767_v52 = vld [vmem:[#allocation7 + $0x410] sm:$0xff] }
0x12c2   :  { %10841 = vmatprep.subr.mxu1 %v16822_v7 }
0x12c3   :  { %10842 = vmatpush3.msra.mxu1 %v4814_v23  ;;  %v4764_v23 = vld [vmem:[#allocation7 + $0x3f8] sm:$0xff] }
0x12c4   :  { %10843 = vmatprep.subr.mxu1 %v16822_v7 }
0x12c5   :  { %10844 = vmatpush3.msra.mxu1 %v4811_v31  ;;  %v4761_v31 = vld [vmem:[#allocation7 + $0x3e0] sm:$0xff] }
0x12c6   :  { %10845 = vmatprep.subr.mxu1 %v16822_v7 }
0x12c7   :  { %10846 = vmatpush3.msra.mxu1 %v4808_v33  ;;  %v4758_v33 = vld [vmem:[#allocation7 + $0x3c8] sm:$0xff] }
0x12c8   :  { %10847 = vmatprep.subr.mxu1 %v16822_v7 }
0x12c9   :  { %10848 = vmatpush3.msra.mxu1 %v4805_v37  ;;  %v4755_v37 = vld [vmem:[#allocation7 + $0x3b0] sm:$0xff] }
0x12ca   :  { %10849 = vmatprep.subr.mxu1 %v16822_v7 }
0x12cb   :  { %10850 = vmatpush3.msra.mxu1 %v4802_v21  ;;  %v4752_v21 = vld [vmem:[#allocation7 + $0x398] sm:$0xff] }
0x12cc   :  { %10851 = vmatprep.subr.mxu1 %v16822_v7 }
0x12cd   :  { %10852 = vmatpush3.msra.mxu1 %v4799_v42  ;;  %v4749_v42 = vld [vmem:[#allocation7 + $0x380] sm:$0xff] }
0x12ce   :  { %10853 = vmatprep.subr.mxu1 %v16822_v7 }
0x12cf   :  { %10854 = vmatpush3.msra.mxu1 %v4796_v53  ;;  %v4746_v53 = vld [vmem:[#allocation7 + $0x368] sm:$0xff] }
0x12d0   :  { %10855 = vmatprep.subr.mxu1 %v16822_v7 }
0x12d1   :  { %10856 = vmatpush3.msra.mxu1 %v4793_v55  ;;  %v4743_v55 = vld [vmem:[#allocation7 + $0x350] sm:$0xff] }
0x12d2   :  { %10857 = vmatprep.subr.mxu1 %v16822_v7 }
0x12d3   :  { %10858 = vmatpush3.msra.mxu1 %v4790_v5  ;;  %v4738_v5 = vld [vmem:[#allocation7 + $0x328] sm:$0xff] }
0x12d4   :  { %10859 = vmatprep.subr.mxu1 %v16822_v7 }
0x12d5   :  { %10860 = vmatpush3.msra.mxu1 %v4787_v3  ;;  %v4735_v3 = vld [vmem:[#allocation7 + $0x310] sm:$0xff] }
0x12d6   :  { %10861 = vmatprep.subr.mxu1 %v16822_v7 }
0x12d7   :  { %10862 = vmatpush3.msra.mxu1 %v4784_v39  ;;  %v4733_v39 = vld [vmem:[#allocation7 + $0x300] sm:$0xff] }
0x12d8   :  { %10866 = vmatprep.subr.mxu1 %v16822_v7 }
0x1358   :  { %v4346_v13 = vpop.f32.mrf.mxu1 }
0x1359   :  { %v4350_v51 = vsel %vm2268_vm3, %v14642_v17, %v4346_v13  ;;  %v14808_v13 = vld [vmem:[#allocation12 + $0x470] sm:$0xff] }
0x135a   :  { %4351 = vst [vmem:[%s16620_s19] sm:$0xff] %v4350_v51  ;;  %v10760_v9 = vpop.f32.mrf.mxu1  ;;  %16937 = vst [vmem:[#allocation49_spill] sm:$0xff] %v14808_v13  ;;  %v14811_v51 = vld [vmem:[#allocation12 + $0x468] sm:$0xff] }
0x135b   :  { %v14813_v9 = vld [vmem:[#allocation12 + $0x458] sm:$0xff] }
0x1378   :  { %v4720_v0 = vpop.f32.mrf.mxu1 }
0x1379   :  { %v4721_v48 = vadd.f32 %v4720_v0, %v14631_v22  ;;  %v4779_v22 = vld [vmem:[#allocation7 + $0x470] sm:$0xff]  ;;  %v14816_v0 = vld [vmem:[#allocation12 + $0x478] sm:$0xff] }
0x137a   :  { %v10830_v46 = vpop.f32.mrf.mxu1 }
0x137b   :  { %v14778_v14 = vadd.f32 %v9234_v26, %v4721_v48  ;;  %v14820_v26 = vld [vmem:[#allocation12 + $0x450] sm:$0xff]  ;;  %v14823_v48 = vld [vmem:[#allocation12 + $0x440] sm:$0xff] }
0x137c   :  { %v14826_v46 = vld [vmem:[#allocation12 + $0x460] sm:$0xff] }
0x137d   :  { %4948 = vmatmul.mubr.f32.vlgmr.msra.gmra.mxu0 %v14778_v14  ;;  %10864 = vmatmul.mubr.f32.vlgmr.msra.gmra.mxu1 %v14778_v14 }
0x137e   :  { %10868 = vmatprep.mubr.msk.f32.mxu1 %vm12483_vm0, %v16822_v7  ;;  %5088 = vmatprep.mubr.f32.mxu0 %v16822_v7 }
0x143d   :  { %v4949_v17 = vpop.f32.mrf.mxu0  ;;  %v5020_v49 = vpop.f32.mrf.mxu1 }
0x143e   :  { %10867 = vmatpush3.msra.mxu1 %v5020_v49  ;;  %v14836_v49 = vld [vmem:[#allocation12 + $0x448] sm:$0xff] }
0x143f   :  { %v4951_v16 = vpop.f32.mrf.mxu0  ;;  %v10865_v41 = vpop.f32.mrf.mxu1  ;;  %10871 = vmatprep.subr.mxu1 %v16822_v7  ;;  %10869 = vmatmul.mubr.msk.f32.vlgmr.msra.gmra.mxu1 %vm476_vm2, %v16935_v18 }
0x1440   :  { %5054 = vmatprep.subr.mxu0 %v4951_v16  ;;  %10872 = vmatpush3.msra.mxu1 %v4780_v24  ;;  %v14839_v24 = vld [vmem:[#allocation12 + $0x420] sm:$0xff]  ;;  %v14843_v16 = vld [vmem:[#allocation12 + $0x410] sm:$0xff] }
0x1441   :  { %5055 = vmatpush1.msra.mxu0 %v4949_v17  ;;  %10873 = vmatprep.subr.mxu1 %v16822_v7  ;;  %v14829_v17 = vld [vmem:[#allocation12 + $0x438] sm:$0xff]  ;;  %v14846_v41 = vld [vmem:[#allocation12 + $0x430] sm:$0xff] }
0x1442   :  { %9235 = vmatmul.mubr.msk.f32.vlgmr.msra.gmra.mxu0 %vm476_vm2, %v16935_v18  ;;  %5165 = vmatprep.subr.mxu0 %v4779_v22  ;;  %v14849_v22 = vld [vmem:[#allocation12 + $0x408] sm:$0xff] }
0x1443   :  { %10874 = vmatpush3.msra.mxu1 %v4777_v62  ;;  %5166 = vmatpush1.msra.mxu0 %v4778_v19  ;;  %v14853_v62 = vld [vmem:[#allocation12 + $0x3f8] sm:$0xff] }
0x1444   :  { %10875 = vmatprep.subr.mxu1 %v16822_v7  ;;  %5167 = vmatprep.subr.mxu0 %v4776_v4  ;;  %v14856_v19 = vld [vmem:[#allocation12 + $0x418] sm:$0xff]  ;;  %v14859_v4 = vld [vmem:[#allocation12 + $0x3f0] sm:$0xff] }
0x1445   :  { %10876 = vmatpush3.msra.mxu1 %v4774_v15  ;;  %5168 = vmatpush1.msra.mxu0 %v4775_v25  ;;  %v14863_v15 = vld [vmem:[#allocation12 + $0x3e0] sm:$0xff] }
0x1446   :  { %10877 = vmatprep.subr.mxu1 %v16822_v7  ;;  %5169 = vmatprep.subr.mxu0 %v4773_v12  ;;  %v14866_v25 = vld [vmem:[#allocation12 + $0x400] sm:$0xff]  ;;  %v14869_v12 = vld [vmem:[#allocation12 + $0x3d8] sm:$0xff] }
0x1447   :  { %10878 = vmatpush3.msra.mxu1 %v4771_v54  ;;  %5170 = vmatpush1.msra.mxu0 %v4772_v63  ;;  %v14873_v54 = vld [vmem:[#allocation12 + $0x3c8] sm:$0xff] }
0x1448   :  { %10879 = vmatprep.subr.mxu1 %v16822_v7  ;;  %5171 = vmatprep.subr.mxu0 %v4770_v56  ;;  %v14876_v63 = vld [vmem:[#allocation12 + $0x3e8] sm:$0xff]  ;;  %v14879_v56 = vld [vmem:[#allocation12 + $0x3c0] sm:$0xff] }
0x1449   :  { %10880 = vmatpush3.msra.mxu1 %v4768_v2  ;;  %5172 = vmatpush1.msra.mxu0 %v4769_v43  ;;  %v14883_v2 = vld [vmem:[#allocation12 + $0x3b0] sm:$0xff] }
0x144a   :  { %10881 = vmatprep.subr.mxu1 %v16822_v7  ;;  %5173 = vmatprep.subr.mxu0 %v4767_v52  ;;  %v14886_v43 = vld [vmem:[#allocation12 + $0x3d0] sm:$0xff]  ;;  %v14889_v52 = vld [vmem:[#allocation12 + $0x3a8] sm:$0xff] }
0x144b   :  { %10882 = vmatpush3.msra.mxu1 %v4765_v60  ;;  %5174 = vmatpush1.msra.mxu0 %v4766_v6  ;;  %v14893_v60 = vld [vmem:[#allocation12 + $0x398] sm:$0xff] }
0x144c   :  { %10883 = vmatprep.subr.mxu1 %v16822_v7  ;;  %5175 = vmatprep.subr.mxu0 %v4764_v23  ;;  %v14896_v6 = vld [vmem:[#allocation12 + $0x3b8] sm:$0xff]  ;;  %v14899_v23 = vld [vmem:[#allocation12 + $0x390] sm:$0xff] }
0x144d   :  { %10884 = vmatpush3.msra.mxu1 %v4762_v61  ;;  %5176 = vmatpush1.msra.mxu0 %v4763_v57  ;;  %v14903_v61 = vld [vmem:[#allocation12 + $0x380] sm:$0xff] }
0x144e   :  { %10885 = vmatprep.subr.mxu1 %v16822_v7  ;;  %5177 = vmatprep.subr.mxu0 %v4761_v31  ;;  %v14906_v57 = vld [vmem:[#allocation12 + $0x3a0] sm:$0xff]  ;;  %v14909_v31 = vld [vmem:[#allocation12 + $0x378] sm:$0xff] }
0x144f   :  { %10886 = vmatpush3.msra.mxu1 %v4759_v32  ;;  %5178 = vmatpush1.msra.mxu0 %v4760_v10  ;;  %v14913_v32 = vld [vmem:[#allocation12 + $0x368] sm:$0xff] }
0x1450   :  { %10887 = vmatprep.subr.mxu1 %v16822_v7  ;;  %5179 = vmatprep.subr.mxu0 %v4758_v33  ;;  %v14916_v10 = vld [vmem:[#allocation12 + $0x388] sm:$0xff]  ;;  %v14919_v33 = vld [vmem:[#allocation12 + $0x360] sm:$0xff] }
0x1451   :  { %10888 = vmatpush3.msra.mxu1 %v4756_v34  ;;  %5180 = vmatpush1.msra.mxu0 %v4757_v35  ;;  %v14923_v34 = vld [vmem:[#allocation12 + $0x350] sm:$0xff] }
0x1452   :  { %10889 = vmatprep.subr.mxu1 %v16822_v7  ;;  %5181 = vmatprep.subr.mxu0 %v4755_v37  ;;  %v14926_v35 = vld [vmem:[#allocation12 + $0x370] sm:$0xff]  ;;  %v14929_v37 = vld [vmem:[#allocation12 + $0x348] sm:$0xff] }
0x1453   :  { %10890 = vmatpush3.msra.mxu1 %v4753_v38  ;;  %5182 = vmatpush1.msra.mxu0 %v4754_v1  ;;  %v14933_v38 = vld [vmem:[#allocation12 + $0x338] sm:$0xff] }
0x1454   :  { %10891 = vmatprep.subr.mxu1 %v16822_v7  ;;  %5183 = vmatprep.subr.mxu0 %v4752_v21  ;;  %v14936_v1 = vld [vmem:[#allocation12 + $0x358] sm:$0xff]  ;;  %v14939_v21 = vld [vmem:[#allocation12 + $0x330] sm:$0xff] }
0x1455   :  { %10892 = vmatpush3.msra.mxu1 %v4750_v40  ;;  %5184 = vmatpush1.msra.mxu0 %v4751_v29  ;;  %v14943_v40 = vld [vmem:[#allocation12 + $0x320] sm:$0xff] }
0x1456   :  { %10893 = vmatprep.subr.mxu1 %v16822_v7  ;;  %5185 = vmatprep.subr.mxu0 %v4749_v42  ;;  %16938 = vst [vmem:[#allocation40_spill] sm:$0xff] %v14943_v40  ;;  %v14946_v29 = vld [vmem:[#allocation12 + $0x340] sm:$0xff]  ;;  %v14949_v42 = vld [vmem:[#allocation12 + $0x318] sm:$0xff] }
0x1457   :  { %10894 = vmatpush3.msra.mxu1 %v4747_v44  ;;  %5186 = vmatpush1.msra.mxu0 %v4748_v59  ;;  %16939 = vst [vmem:[#allocation50_spill] sm:$0xff] %v14946_v29  ;;  %16940 = vst [vmem:[#allocation51_spill] sm:$0xff] %v14949_v42  ;;  %v14953_v44 = vld [vmem:[#allocation12 + $0x308] sm:$0xff] }
0x1458   :  { %10895 = vmatprep.subr.mxu1 %v16822_v7  ;;  %5187 = vmatprep.subr.mxu0 %v4746_v53  ;;  %16941 = vst [vmem:[#allocation34_spill] sm:$0xff] %v14953_v44  ;;  %v14956_v59 = vld [vmem:[#allocation12 + $0x328] sm:$0xff]  ;;  %v14959_v53 = vld [vmem:[#allocation12 + $0x300] sm:$0xff] }
0x1459   :  { %10896 = vmatpush3.msra.mxu1 %v4744_v45  ;;  %5188 = vmatpush1.msra.mxu0 %v4745_v27  ;;  %16942 = vst [vmem:[#allocation35_spill] sm:$0xff] %v14956_v59  ;;  %16943 = vst [vmem:[#allocation46_spill] sm:$0xff] %v14959_v53  ;;  %v14964_v45 = vld [vmem:[#allocation12 + $0x310] sm:$0xff] }
0x145a   :  { %10897 = vmatprep.subr.mxu1 %v16822_v7  ;;  %5189 = vmatprep.subr.mxu0 %v4743_v55  ;;  %16944 = vst [vmem:[#allocation36_spill] sm:$0xff] %v14964_v45 }
0x145b   :  { %10898 = vmatpush3.msra.mxu1 %v4741_v28  ;;  %5190 = vmatpush1.msra.mxu0 %v4742_v58 }
0x145c   :  { %10899 = vmatprep.subr.mxu1 %v16822_v7  ;;  %5191 = vmatprep.subr.mxu0 %v4740_v47 }
0x145d   :  { %10900 = vmatpush3.msra.mxu1 %v4738_v5  ;;  %5192 = vmatpush1.msra.mxu0 %v4739_v8 }
0x145e   :  { %10901 = vmatprep.subr.mxu1 %v16822_v7  ;;  %5193 = vmatprep.subr.mxu0 %v4737_v36 }
0x145f   :  { %10902 = vmatpush3.msra.mxu1 %v4735_v3  ;;  %10903 = vmatprep.mubr.msk.f32.mxu1 %vm12483_vm0, %v16822_v7  ;;  %v4882_v3 = vld [vmem:[#allocation15 + $0x6] sm:$0x7] }
0x1460   :  { %5194 = vmatpush1.msra.mxu0 %v4736_v30  ;;  %10904 = vmatmul.mubr.f32.vlgmr.msra.gmra.mxu1 %v14778_v14  ;;  %v4880_v30 = vld [vmem:[#allocation13 + $0x6] sm:$0x7] }
0x1461   :  { %5195 = vmatprep.subr.mxu0 %v4734_v20  ;;  %5229 = vmatprep.mubr.f32.mxu0 %v16822_v7 }
0x1462   :  { %5196 = vmatpush1.msra.mxu0 %v4733_v39  ;;  %10906 = vmatprep.subr.mxu1 %v16822_v7  ;;  %v16945_v39 = vld [vmem:[#allocation42_spill] sm:$0xff] }
0x1463   :  { %5230 = vmatmul.mubr.f32.vlgmr.msra.gmra.mxu0 %v14778_v14  ;;  %5341 = vmatprep.subr.mxu0 %v14808_v13  ;;  %v14833_v14 = vld [vmem:[#allocation12 + $0x428] sm:$0xff]  ;;  %v5310_v11 = vrot.slane %v4880_v30, %v16945_v39  ;;  %v15046_v50 = vrot.slane %v4882_v3, %v16945_v39 }
0x1464   :  { %5342 = vmatpush1.msra.mxu0 %v14811_v51  ;;  %5405 = vmatprep.mubr.f32.mxu0 %v16822_v7 }
0x1465   :  { %5343 = vmatprep.subr.mxu0 %v14813_v9  ;;  %10907 = vmatpush3.msra.mxu1 %v14816_v0  ;;  %16946 = vst [vmem:[#allocation43_spill] sm:$0xff] %v15046_v50 }
0x1466   :  { %5344 = vmatpush1.msra.mxu0 %v14820_v26  ;;  %10908 = vmatprep.subr.mxu1 %v16822_v7 }
0x1467   :  { %5345 = vmatprep.subr.mxu0 %v14823_v48  ;;  %10909 = vmatpush3.msra.mxu1 %v14826_v46 }
0x1468   :  { %5346 = vmatpush1.msra.mxu0 %v14829_v17  ;;  %10910 = vmatprep.subr.mxu1 %v16822_v7 }
0x1469   :  { %5347 = vmatprep.subr.mxu0 %v14833_v14  ;;  %10911 = vmatpush3.msra.mxu1 %v14836_v49 }
0x146a   :  { %5348 = vmatpush1.msra.mxu0 %v14839_v24  ;;  %10912 = vmatprep.subr.mxu1 %v16822_v7 }
0x146b   :  { %5349 = vmatprep.subr.mxu0 %v14843_v16  ;;  %10913 = vmatpush3.msra.mxu1 %v14846_v41 }
0x146c   :  { %5350 = vmatpush1.msra.mxu0 %v14849_v22  ;;  %10914 = vmatprep.subr.mxu1 %v16822_v7 }
0x146d   :  { %5351 = vmatprep.subr.mxu0 %v14853_v62  ;;  %10915 = vmatpush3.msra.mxu1 %v14856_v19 }
0x146e   :  { %5352 = vmatpush1.msra.mxu0 %v14859_v4  ;;  %10916 = vmatprep.subr.mxu1 %v16822_v7 }
0x146f   :  { %5353 = vmatprep.subr.mxu0 %v14863_v15  ;;  %10917 = vmatpush3.msra.mxu1 %v14866_v25 }
0x1470   :  { %5354 = vmatpush1.msra.mxu0 %v14869_v12  ;;  %10918 = vmatprep.subr.mxu1 %v16822_v7 }
0x1471   :  { %5355 = vmatprep.subr.mxu0 %v14873_v54  ;;  %10919 = vmatpush3.msra.mxu1 %v14876_v63 }
0x1472   :  { %5356 = vmatpush1.msra.mxu0 %v14879_v56  ;;  %10920 = vmatprep.subr.mxu1 %v16822_v7 }
0x1473   :  { %5357 = vmatprep.subr.mxu0 %v14883_v2  ;;  %10921 = vmatpush3.msra.mxu1 %v14886_v43 }
0x1474   :  { %5358 = vmatpush1.msra.mxu0 %v14889_v52  ;;  %10922 = vmatprep.subr.mxu1 %v16822_v7 }
0x1475   :  { %5359 = vmatprep.subr.mxu0 %v14893_v60  ;;  %10923 = vmatpush3.msra.mxu1 %v14896_v6 }
0x1476   :  { %5360 = vmatpush1.msra.mxu0 %v14899_v23  ;;  %10924 = vmatprep.subr.mxu1 %v16822_v7 }
0x1477   :  { %5361 = vmatprep.subr.mxu0 %v14903_v61  ;;  %10925 = vmatpush3.msra.mxu1 %v14906_v57 }
0x1478   :  { %5362 = vmatpush1.msra.mxu0 %v14909_v31  ;;  %10926 = vmatprep.subr.mxu1 %v16822_v7 }
0x1479   :  { %5363 = vmatprep.subr.mxu0 %v14913_v32  ;;  %10927 = vmatpush3.msra.mxu1 %v14916_v10 }
0x147a   :  { %5364 = vmatpush1.msra.mxu0 %v14919_v33  ;;  %10928 = vmatprep.subr.mxu1 %v16822_v7 }
0x147b   :  { %5365 = vmatprep.subr.mxu0 %v14923_v34  ;;  %10929 = vmatpush3.msra.mxu1 %v14926_v35 }
0x147c   :  { %5366 = vmatpush1.msra.mxu0 %v14929_v37  ;;  %10930 = vmatprep.subr.mxu1 %v16822_v7 }
0x147d   :  { %5367 = vmatprep.subr.mxu0 %v14933_v38  ;;  %10931 = vmatpush3.msra.mxu1 %v14936_v1 }
0x147e   :  { %5368 = vmatpush1.msra.mxu0 %v14939_v21  ;;  %10932 = vmatprep.subr.mxu1 %v16822_v7 }
0x147f   :  { %5369 = vmatprep.subr.mxu0 %v14943_v40  ;;  %10933 = vmatpush3.msra.mxu1 %v14946_v29 }
0x1480   :  { %5370 = vmatpush1.msra.mxu0 %v14949_v42  ;;  %10934 = vmatprep.subr.mxu1 %v16822_v7 }
0x1481   :  { %5371 = vmatprep.subr.mxu0 %v14953_v44  ;;  %10935 = vmatpush3.msra.mxu1 %v14956_v59 }
0x1482   :  { %5372 = vmatpush1.msra.mxu0 %v14959_v53  ;;  %10936 = vmatprep.subr.mxu1 %v16822_v7 }
0x1483   :  { %5406 = vmatmul.mubr.f32.vlgmr.msra.gmra.mxu0 %v16822_v7  ;;  %10937 = vmatpush3.msra.mxu1 %v14964_v45 }
0x1484   :  { %10938 = vmatprep.mubr.msk.f32.mxu1 %vm12483_vm0, %v16822_v7  ;;  %5504 = vmatprep.subr.mxu0 %v14808_v13 }
0x1485   :  { %10939 = vmatmul.mubr.f32.vlgmr.msra.gmra.mxu1 %v16822_v7  ;;  %10941 = vmatprep.subr.mxu1 %v16822_v7 }
0x1486   :  { %5505 = vmatpush1.msra.mxu0 %v14811_v51  ;;  %10942 = vmatpush3.msra.mxu1 %v14816_v0 }
0x1487   :  { %5506 = vmatprep.subr.mxu0 %v14813_v9  ;;  %10943 = vmatprep.subr.mxu1 %v16822_v7 }
0x1488   :  { %5507 = vmatpush1.msra.mxu0 %v14820_v26  ;;  %10944 = vmatpush3.msra.mxu1 %v14826_v46 }
0x1489   :  { %5508 = vmatprep.subr.mxu0 %v14823_v48  ;;  %10945 = vmatprep.subr.mxu1 %v16822_v7 }
0x148a   :  { %5509 = vmatpush1.msra.mxu0 %v14829_v17  ;;  %10946 = vmatpush3.msra.mxu1 %v14836_v49 }
0x148b   :  { %5510 = vmatprep.subr.mxu0 %v14833_v14  ;;  %10947 = vmatprep.subr.mxu1 %v16822_v7 }
0x148c   :  { %5511 = vmatpush1.msra.mxu0 %v14839_v24  ;;  %10948 = vmatpush3.msra.mxu1 %v14846_v41 }
0x148d   :  { %5512 = vmatprep.subr.mxu0 %v14843_v16  ;;  %10949 = vmatprep.subr.mxu1 %v16822_v7 }
0x148e   :  { %5513 = vmatpush1.msra.mxu0 %v14849_v22  ;;  %10950 = vmatpush3.msra.mxu1 %v14856_v19 }
0x148f   :  { %5514 = vmatprep.subr.mxu0 %v14853_v62  ;;  %10951 = vmatprep.subr.mxu1 %v16822_v7 }
0x1490   :  { %5515 = vmatpush1.msra.mxu0 %v14859_v4  ;;  %10952 = vmatpush3.msra.mxu1 %v14866_v25 }
0x1491   :  { %5516 = vmatprep.subr.mxu0 %v14863_v15  ;;  %10953 = vmatprep.subr.mxu1 %v16822_v7 }
0x1492   :  { %5517 = vmatpush1.msra.mxu0 %v14869_v12  ;;  %10954 = vmatpush3.msra.mxu1 %v14876_v63 }
0x1493   :  { %5518 = vmatprep.subr.mxu0 %v14873_v54  ;;  %10955 = vmatprep.subr.mxu1 %v16822_v7 }
0x1494   :  { %5519 = vmatpush1.msra.mxu0 %v14879_v56  ;;  %10956 = vmatpush3.msra.mxu1 %v14886_v43 }
0x1495   :  { %5520 = vmatprep.subr.mxu0 %v14883_v2  ;;  %10957 = vmatprep.subr.mxu1 %v16822_v7 }
0x1496   :  { %5521 = vmatpush1.msra.mxu0 %v14889_v52  ;;  %10958 = vmatpush3.msra.mxu1 %v14896_v6 }
0x1497   :  { %5522 = vmatprep.subr.mxu0 %v14893_v60  ;;  %10959 = vmatprep.subr.mxu1 %v16822_v7 }
0x1498   :  { %5523 = vmatpush1.msra.mxu0 %v14899_v23  ;;  %10960 = vmatpush3.msra.mxu1 %v14906_v57 }
0x1499   :  { %5524 = vmatprep.subr.mxu0 %v14903_v61  ;;  %10961 = vmatprep.subr.mxu1 %v16822_v7 }
0x149a   :  { %5525 = vmatpush1.msra.mxu0 %v14909_v31  ;;  %10962 = vmatpush3.msra.mxu1 %v14916_v10 }
0x149b   :  { %5526 = vmatprep.subr.mxu0 %v14913_v32  ;;  %10963 = vmatprep.subr.mxu1 %v16822_v7 }
0x149c   :  { %5527 = vmatpush1.msra.mxu0 %v14919_v33  ;;  %10964 = vmatpush3.msra.mxu1 %v14926_v35 }
0x149d   :  { %5528 = vmatprep.subr.mxu0 %v14923_v34  ;;  %10965 = vmatprep.subr.mxu1 %v16822_v7 }
0x149e   :  { %5529 = vmatpush1.msra.mxu0 %v14929_v37  ;;  %10966 = vmatpush3.msra.mxu1 %v14936_v1 }
0x149f   :  { %5530 = vmatprep.subr.mxu0 %v14933_v38  ;;  %10967 = vmatprep.subr.mxu1 %v16822_v7 }
0x14a0   :  { %5531 = vmatpush1.msra.mxu0 %v14939_v21  ;;  %10968 = vmatpush3.msra.mxu1 %v14946_v29  ;;  %v16948_v29 = vld [vmem:[#allocation48_spill] sm:$0xff] }
0x14a1   :  { %5532 = vmatprep.subr.mxu0 %v14943_v40  ;;  %10969 = vmatprep.subr.mxu1 %v16822_v7 }
0x14a2   :  { %5533 = vmatpush1.msra.mxu0 %v14949_v42  ;;  %10970 = vmatpush3.msra.mxu1 %v14956_v59 }
0x14a3   :  { %5534 = vmatprep.subr.mxu0 %v14953_v44  ;;  %10971 = vmatprep.subr.mxu1 %v16822_v7 }
0x14a4   :  { %5535 = vmatpush1.msra.mxu0 %v14959_v53  ;;  %5568 = vmatprep.mubr.f32.mxu0 %v16822_v7  ;;  %v16947_v53 = vld [vmem:[#allocation45_spill] sm:$0xff] }
0x14a5   :  { %10972 = vmatpush3.msra.mxu1 %v14964_v45  ;;  %10973 = vmatprep.mubr.msk.f32.mxu1 %vm12483_vm0, %v16822_v7  ;;  %v5314_v59 = vrot.slane %v4880_v30, %v16947_v53 }
0x14a6   :  { %5682 = vmatprep.subr.mxu0 %v14808_v13  ;;  %10976 = vmatprep.subr.mxu1 %v16822_v7 }
0x14ff   :  { %v5161_v27 = vpop.f32.mrf.mxu1 }
0x1501   :  { %v10870_v55 = vpop.f32.mrf.mxu1 }
0x1502   :  { %v5090_v5 = vpop.f32.mrf.mxu0 }
0x1504   :  { %v5092_v8 = vpop.f32.mrf.mxu0 }
0x1520   :  { %v5302_v28 = vpop.f32.mrf.mxu1 }
0x1521   :  { %v5303_v58 = vadd.f32 %v5302_v28, %v5161_v27  ;;  %v15052_v27 = vrot.slane %v4882_v3, %v16947_v53 }
0x1522   :  { %v10905_v47 = vpop.f32.mrf.mxu1 }
0x1523   :  { %v5231_v36 = vpop.f32.mrf.mxu0 }
0x1524   :  { %v5232_v20 = vadd.f32 %v5231_v36, %v5090_v5 }
0x1525   :  { %v5233_v18 = vpop.f32.mrf.mxu0 }
0x1526   :  { %v15048_v45 = vadd.f32 %v5310_v11, %v5232_v20  ;;  %v5234_v44 = vadd.f32 %v5233_v18, %v5092_v8  ;;  %v15061_v18 = vrot.slane %v4882_v3, %v16948_v29 }
0x1528   :  { %v15057_v40 = vadd.f32 %v5314_v59, %v5234_v44 }
0x1543   :  { %v5407_v13 = vpop.f32.mrf.mxu0 }
0x1544   :  { %v5408_v55 = vadd.f32 %v5407_v13, %v15046_v50 }
0x1545   :  { %v5409_v28 = vpop.f32.mrf.mxu0  ;;  %v5478_v47 = vpop.f32.mrf.mxu1 }
0x1546   :  { %v5482_v5 = vadd.f32 %v5408_v55, %v15048_v45  ;;  %v5410_v39 = vadd.f32 %v5409_v28, %v15052_v27  ;;  %v5318_v55 = vrot.slane %v4880_v30, %v16948_v29  ;;  %v16950_v30 = vld [vmem:[#allocation40_spill] sm:$0xff] }
0x1547   :  { %v10940_v36 = vpop.f32.mrf.mxu1 }
0x1548   :  { %v9237_v42 = vmul.f32 -1.442695, %v5482_v5  ;;  %v5489_v11 = vadd.f32 %v5410_v39, %v15057_v40  ;;  %v5479_v5 = vadd.f32 %v5478_v47, %v15061_v18  ;;  %v15065_v44 = vadd.f32 %v5318_v55, %v5303_v58  ;;  %v16949_v58 = vld [vmem:[#allocation50_spill] sm:$0xff]  ;;  %v16951_v47 = vld [vmem:[#allocation51_spill] sm:$0xff] }
0x1549   :  { %v16953_v55 = vld [vmem:[#allocation34_spill] sm:$0xff] }
0x154a   :  { %11861 = vpow2.f32 %v9237_v42  ;;  %v9238_v13 = vmul.f32 -1.442695, %v5489_v11 }
0x154c   :  { %11863 = vpow2.f32 %v9238_v13 }
0x1557   :  { %v11862_v20 = vpop.eup %11861 }
0x1558   :  { %v5486_v50 = vadd.f32 1.0, %v11862_v20 }
0x1559   :  { %v11864_v8 = vpop.eup %11863 }
0x155a   :  { %11865 = vrcp.f32 %v5486_v50  ;;  %v5493_v36 = vadd.f32 1.0, %v11864_v8  ;;  %v16952_v8 = vld [vmem:[#allocation35_spill] sm:$0xff] }
0x155c   :  { %11867 = vrcp.f32 %v5493_v36  ;;  %v16954_v36 = vld [vmem:[#allocation46_spill] sm:$0xff] }
0x1567   :  { %v11866_v28 = vpop.eup %11865 }
0x1568   :  { %v5496_v42 = vmul.f32 %v11866_v28, %v5479_v5  ;;  %v16955_v5 = vld [vmem:[#allocation36_spill] sm:$0xff]  ;;  %v16956_v28 = vld [vmem:[#allocation49_spill] sm:$0xff] }
0x1569   :  { %v11868_v39 = vpop.eup %11867 }
0x156a   :  { %v5497_v59 = vadd.f32 %v5496_v42, %v15065_v44  ;;  %v5499_v11 = vsub.f32 1.0, %v11868_v39  ;;  %v5501_v3 = vmul.f32 0.0, %v11868_v39  ;;  %v16957_v39 = vld [vmem:[#allocation43_spill] sm:$0xff] }
0x156c   :  { %11869 = vtanh.f32 %v5497_v59 }
0x1579   :  { %v11870_v50 = vpop.eup %11869 }
0x157a   :  { %v5500_v13 = vmul.f32 %v11870_v50, %v5499_v11 }
0x157c   :  { %v15068_v20 = vadd.f32 %v5501_v3, %v5500_v13 }
0x157e   :  { %5503 = vst [vmem:[#allocation4] sm:$0x1] %v15068_v20  ;;  %5569 = vmatmul.mubr.f32.vlgmr.msra.gmra.mxu0 %v15068_v20  ;;  %10974 = vmatmul.mubr.f32.vlgmr.msra.gmra.mxu1 %v15068_v20 }
0x157f   :  { %5683 = vmatpush1.msra.mxu0 %v14811_v51  ;;  %10977 = vmatpush3.msra.mxu1 %v14816_v0 }
0x1580   :  { %5684 = vmatprep.subr.mxu0 %v14813_v9  ;;  %10978 = vmatprep.subr.mxu1 %v16822_v7 }
0x1581   :  { %5685 = vmatpush1.msra.mxu0 %v14820_v26  ;;  %10979 = vmatpush3.msra.mxu1 %v14826_v46 }
0x1582   :  { %5686 = vmatprep.subr.mxu0 %v14823_v48  ;;  %10980 = vmatprep.subr.mxu1 %v16822_v7 }
0x1583   :  { %5687 = vmatpush1.msra.mxu0 %v14829_v17  ;;  %10981 = vmatpush3.msra.mxu1 %v14836_v49 }
0x1584   :  { %5688 = vmatprep.subr.mxu0 %v14833_v14  ;;  %10982 = vmatprep.subr.mxu1 %v16822_v7 }
0x1585   :  { %5689 = vmatpush1.msra.mxu0 %v14839_v24  ;;  %10983 = vmatpush3.msra.mxu1 %v14846_v41 }
0x1586   :  { %5690 = vmatprep.subr.mxu0 %v14843_v16  ;;  %10984 = vmatprep.subr.mxu1 %v16822_v7 }
0x1587   :  { %5691 = vmatpush1.msra.mxu0 %v14849_v22  ;;  %10985 = vmatpush3.msra.mxu1 %v14856_v19 }
0x1588   :  { %5692 = vmatprep.subr.mxu0 %v14853_v62  ;;  %10986 = vmatprep.subr.mxu1 %v16822_v7 }
0x1589   :  { %5693 = vmatpush1.msra.mxu0 %v14859_v4  ;;  %10987 = vmatpush3.msra.mxu1 %v14866_v25 }
0x158a   :  { %5694 = vmatprep.subr.mxu0 %v14863_v15  ;;  %10988 = vmatprep.subr.mxu1 %v16822_v7 }
0x158b   :  { %5695 = vmatpush1.msra.mxu0 %v14869_v12  ;;  %10989 = vmatpush3.msra.mxu1 %v14876_v63 }
0x158c   :  { %5696 = vmatprep.subr.mxu0 %v14873_v54  ;;  %10990 = vmatprep.subr.mxu1 %v16822_v7 }
0x158d   :  { %5697 = vmatpush1.msra.mxu0 %v14879_v56  ;;  %10991 = vmatpush3.msra.mxu1 %v14886_v43 }
0x158e   :  { %5698 = vmatprep.subr.mxu0 %v14883_v2  ;;  %10992 = vmatprep.subr.mxu1 %v16822_v7 }
0x158f   :  { %5699 = vmatpush1.msra.mxu0 %v14889_v52  ;;  %10993 = vmatpush3.msra.mxu1 %v14896_v6 }
0x1590   :  { %5700 = vmatprep.subr.mxu0 %v14893_v60  ;;  %10994 = vmatprep.subr.mxu1 %v16822_v7 }
0x1591   :  { %5701 = vmatpush1.msra.mxu0 %v14899_v23  ;;  %10995 = vmatpush3.msra.mxu1 %v14906_v57 }
0x1592   :  { %5702 = vmatprep.subr.mxu0 %v14903_v61  ;;  %10996 = vmatprep.subr.mxu1 %v16822_v7 }
0x1593   :  { %5703 = vmatpush1.msra.mxu0 %v14909_v31  ;;  %10997 = vmatpush3.msra.mxu1 %v14916_v10 }
0x1594   :  { %5704 = vmatprep.subr.mxu0 %v14913_v32  ;;  %10998 = vmatprep.subr.mxu1 %v16822_v7 }
0x1595   :  { %5705 = vmatpush1.msra.mxu0 %v14919_v33  ;;  %10999 = vmatpush3.msra.mxu1 %v14926_v35 }
0x1596   :  { %5706 = vmatprep.subr.mxu0 %v14923_v34  ;;  %11000 = vmatprep.subr.mxu1 %v16822_v7 }
0x1597   :  { %5707 = vmatpush1.msra.mxu0 %v14929_v37  ;;  %11001 = vmatpush3.msra.mxu1 %v14936_v1 }
0x1598   :  { %5708 = vmatprep.subr.mxu0 %v14933_v38  ;;  %11002 = vmatprep.subr.mxu1 %v16822_v7 }
0x1599   :  { %5709 = vmatpush1.msra.mxu0 %v14939_v21  ;;  %11003 = vmatpush3.msra.mxu1 %v16949_v58 }
0x159a   :  { %5710 = vmatprep.subr.mxu0 %v16950_v30  ;;  %11004 = vmatprep.subr.mxu1 %v16822_v7 }
0x159b   :  { %5711 = vmatpush1.msra.mxu0 %v16951_v47  ;;  %11005 = vmatpush3.msra.mxu1 %v16952_v8 }
0x159c   :  { %5712 = vmatprep.subr.mxu0 %v16953_v55  ;;  %11006 = vmatprep.subr.mxu1 %v16822_v7 }
0x159d   :  { %5713 = vmatpush1.msra.mxu0 %v16954_v36  ;;  %5746 = vmatprep.mubr.f32.mxu0 %v16822_v7 }
0x159e   :  { %11007 = vmatpush3.msra.mxu1 %v16955_v5  ;;  %11008 = vmatprep.mubr.msk.f32.mxu1 %vm12483_vm0, %v16822_v7 }
0x159f   :  { %5859 = vmatprep.subr.mxu0 %v16956_v28  ;;  %11011 = vmatprep.subr.mxu1 %v16822_v7 }
0x163e   :  { %v5570_v42 = vpop.f32.mrf.mxu0  ;;  %v5641_v59 = vpop.f32.mrf.mxu1 }
0x163f   :  { %v5571_v11 = vadd.f32 %v5570_v42, %v16957_v39  ;;  %v5642_v42 = vadd.f32 %v5641_v59, %v15061_v18  ;;  %v16961_v59 = vld [vmem:[#allocation35_spill] sm:$0xff] }
0x1640   :  { %v5572_v50 = vpop.f32.mrf.mxu0  ;;  %v10975_v13 = vpop.f32.mrf.mxu1 }
0x1641   :  { %v5646_v3 = vrot.slane %v5571_v11, 7  ;;  %v5573_v29 = vadd.f32 %v5572_v50, %v15052_v27  ;;  %v5666_v13 = vrot.slane %v5642_v42, 7  ;;  %v16964_v42 = vld [vmem:[#allocation36_spill] sm:$0xff] }
0x1643   :  { %v5648_v53 = vadd.f32 %v5646_v3, %v15048_v45  ;;  %v5656_v5 = vrot.slane %v5573_v29, 7  ;;  %v16963_v3 = vld [vmem:[#allocation46_spill] sm:$0xff] }
0x1645   :  { %v9239_v36 = vmul.f32 -1.442695, %v5648_v53  ;;  %v5658_v55 = vadd.f32 %v5656_v5, %v15057_v40  ;;  %v5674_v53 = vrot.slane %v15068_v20, 7  ;;  %v16958_v20 = vld [vmem:[#allocation50_spill] sm:$0xff] }
0x1647   :  { %11871 = vpow2.f32 %v9239_v36  ;;  %v9240_v8 = vmul.f32 -1.442695, %v5658_v55 }
0x1649   :  { %11873 = vpow2.f32 %v9240_v8 }
0x1654   :  { %v11872_v28 = vpop.eup %11871 }
0x1655   :  { %v5652_v47 = vadd.f32 1.0, %v11872_v28 }
0x1656   :  { %v11874_v30 = vpop.eup %11873 }
0x1657   :  { %11875 = vrcp.f32 %v5652_v47  ;;  %v5662_v39 = vadd.f32 1.0, %v11874_v30  ;;  %v16960_v47 = vld [vmem:[#allocation51_spill] sm:$0xff] }
0x1659   :  { %11877 = vrcp.f32 %v5662_v39  ;;  %v16962_v39 = vld [vmem:[#allocation34_spill] sm:$0xff] }
0x1664   :  { %v11876_v11 = vpop.eup %11875 }
0x1665   :  { %v5668_v58 = vmul.f32 %v11876_v11, %v5666_v13  ;;  %v16965_v13 = vld [vmem:[#allocation49_spill] sm:$0xff] }
0x1666   :  { %v11878_v29 = vpop.eup %11877 }
0x1667   :  { %v5669_v50 = vadd.f32 %v5668_v58, %v15065_v44  ;;  %v5671_v36 = vsub.f32 1.0, %v11878_v29  ;;  %v5676_v5 = vmul.f32 %v11878_v29, %v5674_v53  ;;  %v16959_v58 = vld [vmem:[#allocation40_spill] sm:$0xff]  ;;  %v16966_v29 = vld [vmem:[#allocation43_spill] sm:$0xff] }
0x1669   :  { %11879 = vtanh.f32 %v5669_v50 }
0x1676   :  { %v11880_v55 = vpop.eup %11879 }
0x1677   :  { %v5672_v8 = vmul.f32 %v11880_v55, %v5671_v36 }
0x1679   :  { %v15147_v28 = vadd.f32 %v5676_v5, %v5672_v8 }
0x167b   :  { %5678 = vst [vmem:[#allocation4] sm:$0x2] %v15147_v28  ;;  %v5680_v30 = vrot.slane %v15147_v28, 1 }
0x167d   :  { %5747 = vmatmul.mubr.f32.vlgmr.msra.gmra.mxu0 %v5680_v30  ;;  %11009 = vmatmul.mubr.f32.vlgmr.msra.gmra.mxu1 %v5680_v30 }
0x167e   :  { %5860 = vmatpush1.msra.mxu0 %v14811_v51  ;;  %11012 = vmatpush3.msra.mxu1 %v14816_v0 }
0x167f   :  { %5861 = vmatprep.subr.mxu0 %v14813_v9  ;;  %11013 = vmatprep.subr.mxu1 %v16822_v7 }
0x1680   :  { %5862 = vmatpush1.msra.mxu0 %v14820_v26  ;;  %11014 = vmatpush3.msra.mxu1 %v14826_v46 }
0x1681   :  { %5863 = vmatprep.subr.mxu0 %v14823_v48  ;;  %11015 = vmatprep.subr.mxu1 %v16822_v7 }
0x1682   :  { %5864 = vmatpush1.msra.mxu0 %v14829_v17  ;;  %11016 = vmatpush3.msra.mxu1 %v14836_v49 }
0x1683   :  { %5865 = vmatprep.subr.mxu0 %v14833_v14  ;;  %11017 = vmatprep.subr.mxu1 %v16822_v7 }
0x1684   :  { %5866 = vmatpush1.msra.mxu0 %v14839_v24  ;;  %11018 = vmatpush3.msra.mxu1 %v14846_v41 }
0x1685   :  { %5867 = vmatprep.subr.mxu0 %v14843_v16  ;;  %11019 = vmatprep.subr.mxu1 %v16822_v7 }
0x1686   :  { %5868 = vmatpush1.msra.mxu0 %v14849_v22  ;;  %11020 = vmatpush3.msra.mxu1 %v14856_v19 }
0x1687   :  { %5869 = vmatprep.subr.mxu0 %v14853_v62  ;;  %11021 = vmatprep.subr.mxu1 %v16822_v7 }
0x1688   :  { %5870 = vmatpush1.msra.mxu0 %v14859_v4  ;;  %11022 = vmatpush3.msra.mxu1 %v14866_v25 }
0x1689   :  { %5871 = vmatprep.subr.mxu0 %v14863_v15  ;;  %11023 = vmatprep.subr.mxu1 %v16822_v7 }
0x168a   :  { %5872 = vmatpush1.msra.mxu0 %v14869_v12  ;;  %11024 = vmatpush3.msra.mxu1 %v14876_v63 }
0x168b   :  { %5873 = vmatprep.subr.mxu0 %v14873_v54  ;;  %11025 = vmatprep.subr.mxu1 %v16822_v7 }
0x168c   :  { %5874 = vmatpush1.msra.mxu0 %v14879_v56  ;;  %11026 = vmatpush3.msra.mxu1 %v14886_v43 }
0x168d   :  { %5875 = vmatprep.subr.mxu0 %v14883_v2  ;;  %11027 = vmatprep.subr.mxu1 %v16822_v7 }
0x168e   :  { %5876 = vmatpush1.msra.mxu0 %v14889_v52  ;;  %11028 = vmatpush3.msra.mxu1 %v14896_v6 }
0x168f   :  { %5877 = vmatprep.subr.mxu0 %v14893_v60  ;;  %11029 = vmatprep.subr.mxu1 %v16822_v7 }
0x1690   :  { %5878 = vmatpush1.msra.mxu0 %v14899_v23  ;;  %11030 = vmatpush3.msra.mxu1 %v14906_v57 }
0x1691   :  { %5879 = vmatprep.subr.mxu0 %v14903_v61  ;;  %11031 = vmatprep.subr.mxu1 %v16822_v7 }
0x1692   :  { %5880 = vmatpush1.msra.mxu0 %v14909_v31  ;;  %11032 = vmatpush3.msra.mxu1 %v14916_v10 }
0x1693   :  { %5881 = vmatprep.subr.mxu0 %v14913_v32  ;;  %11033 = vmatprep.subr.mxu1 %v16822_v7 }
0x1694   :  { %5882 = vmatpush1.msra.mxu0 %v14919_v33  ;;  %11034 = vmatpush3.msra.mxu1 %v14926_v35 }
0x1695   :  { %5883 = vmatprep.subr.mxu0 %v14923_v34  ;;  %11035 = vmatprep.subr.mxu1 %v16822_v7 }
0x1696   :  { %5884 = vmatpush1.msra.mxu0 %v14929_v37  ;;  %11036 = vmatpush3.msra.mxu1 %v14936_v1 }
0x1697   :  { %5885 = vmatprep.subr.mxu0 %v14933_v38  ;;  %11037 = vmatprep.subr.mxu1 %v16822_v7 }
0x1698   :  { %5886 = vmatpush1.msra.mxu0 %v14939_v21  ;;  %11038 = vmatpush3.msra.mxu1 %v16958_v20 }
0x1699   :  { %5887 = vmatprep.subr.mxu0 %v16959_v58  ;;  %11039 = vmatprep.subr.mxu1 %v16822_v7 }
0x169a   :  { %5888 = vmatpush1.msra.mxu0 %v16960_v47  ;;  %11040 = vmatpush3.msra.mxu1 %v16961_v59 }
0x169b   :  { %5889 = vmatprep.subr.mxu0 %v16962_v39  ;;  %11041 = vmatprep.subr.mxu1 %v16822_v7 }
0x169c   :  { %5890 = vmatpush1.msra.mxu0 %v16963_v3  ;;  %5923 = vmatprep.mubr.f32.mxu0 %v16822_v7 }
0x169d   :  { %11042 = vmatpush3.msra.mxu1 %v16964_v42  ;;  %11043 = vmatprep.mubr.msk.f32.mxu1 %vm12483_vm0, %v16822_v7 }
0x169e   :  { %6036 = vmatprep.subr.mxu0 %v16965_v13  ;;  %11046 = vmatprep.subr.mxu1 %v16822_v7 }
0x173d   :  { %v5748_v11 = vpop.f32.mrf.mxu0  ;;  %v5819_v50 = vpop.f32.mrf.mxu1 }
0x173e   :  { %v5749_v53 = vadd.f32 %v5748_v11, %v16966_v29  ;;  %v5820_v11 = vadd.f32 %v5819_v50, %v15061_v18  ;;  %v15319_v50 = vld [vmem:[#allocation12 + $0x450] sm:$0xff] }
0x173f   :  { %v5750_v36 = vpop.f32.mrf.mxu0  ;;  %v11010_v55 = vpop.f32.mrf.mxu1 }
0x1740   :  { %v5824_v8 = vrot.slane %v5749_v53, 6  ;;  %v5751_v5 = vadd.f32 %v5750_v36, %v15052_v27  ;;  %v5844_v55 = vrot.slane %v5820_v11, 6  ;;  %v15329_v11 = vld [vmem:[#allocation12 + $0x438] sm:$0xff] }
0x1742   :  { %v5826_v30 = vadd.f32 %v5824_v8, %v15048_v45  ;;  %v5834_v42 = vrot.slane %v5751_v5, 6 }
0x1744   :  { %v9241_v3 = vmul.f32 -1.442695, %v5826_v30  ;;  %v5836_v39 = vadd.f32 %v5834_v42, %v15057_v40  ;;  %v5851_v42 = vrot.slane %v15147_v28, 7  ;;  %v15309_v28 = vld [vmem:[#allocation12 + $0x468] sm:$0xff] }
0x1746   :  { %11881 = vpow2.f32 %v9241_v3  ;;  %v9242_v59 = vmul.f32 -1.442695, %v5836_v39 }
0x1748   :  { %11883 = vpow2.f32 %v9242_v59 }
0x1753   :  { %v11882_v13 = vpop.eup %11881 }
0x1754   :  { %v5830_v47 = vadd.f32 1.0, %v11882_v13  ;;  %v15325_v13 = vld [vmem:[#allocation12 + $0x440] sm:$0xff] }
0x1755   :  { %v11884_v58 = vpop.eup %11883 }
0x1756   :  { %11885 = vrcp.f32 %v5830_v47  ;;  %v5840_v29 = vadd.f32 1.0, %v11884_v58  ;;  %v15315_v47 = vld [vmem:[#allocation12 + $0x458] sm:$0xff] }
0x1758   :  { %11887 = vrcp.f32 %v5840_v29  ;;  %v15322_v29 = vld [vmem:[#allocation12 + $0x460] sm:$0xff] }
0x1763   :  { %v11886_v53 = vpop.eup %11885 }
0x1764   :  { %v5846_v20 = vmul.f32 %v11886_v53, %v5844_v55  ;;  %v15332_v55 = vld [vmem:[#allocation12 + $0x448] sm:$0xff] }
0x1765   :  { %v11888_v8 = vpop.eup %11887  ;;  %v15335_v53 = vld [vmem:[#allocation12 + $0x428] sm:$0xff] }
0x1766   :  { %v5847_v36 = vadd.f32 %v5846_v20, %v15065_v44  ;;  %v5849_v3 = vsub.f32 1.0, %v11888_v8  ;;  %v5853_v5 = vmul.f32 %v11888_v8, %v5851_v42  ;;  %v15312_v20 = vld [vmem:[#allocation12 + $0x478] sm:$0xff]  ;;  %v15342_v8 = vld [vmem:[#allocation12 + $0x430] sm:$0xff]  ;;  %v15349_v42 = vld [vmem:[#allocation12 + $0x408] sm:$0xff] }
0x1768   :  { %11889 = vtanh.f32 %v5847_v36  ;;  %v15339_v36 = vld [vmem:[#allocation12 + $0x420] sm:$0xff] }
0x1775   :  { %v11890_v39 = vpop.eup %11889 }
0x1776   :  { %v5850_v59 = vmul.f32 %v11890_v39, %v5849_v3  ;;  %v15345_v3 = vld [vmem:[#allocation12 + $0x410] sm:$0xff]  ;;  %v15352_v39 = vld [vmem:[#allocation12 + $0x418] sm:$0xff] }
0x1778   :  { %v15225_v30 = vadd.f32 %v5853_v5, %v5850_v59  ;;  %v15355_v59 = vld [vmem:[#allocation12 + $0x3f8] sm:$0xff]  ;;  %v15359_v5 = vld [vmem:[#allocation12 + $0x3f0] sm:$0xff] }
0x177a   :  { %5855 = vst [vmem:[#allocation4] sm:$0x4] %v15225_v30  ;;  %v5857_v58 = vrot.slane %v15225_v30, 2 }
0x177c   :  { %5924 = vmatmul.mubr.f32.vlgmr.msra.gmra.mxu0 %v5857_v58  ;;  %11044 = vmatmul.mubr.f32.vlgmr.msra.gmra.mxu1 %v5857_v58  ;;  %v15365_v58 = vld [vmem:[#allocation12 + $0x3e0] sm:$0xff] }
0x177d   :  { %6037 = vmatpush1.msra.mxu0 %v14811_v51  ;;  %11047 = vmatpush3.msra.mxu1 %v14816_v0  ;;  %v16967_v51 = vld [vmem:[#allocation50_spill] sm:$0xff]  ;;  %v16969_v0 = vld [vmem:[#allocation51_spill] sm:$0xff] }
0x177e   :  { %6038 = vmatprep.subr.mxu0 %v14813_v9  ;;  %11048 = vmatprep.subr.mxu1 %v16822_v7  ;;  %v16968_v9 = vld [vmem:[#allocation40_spill] sm:$0xff] }
0x177f   :  { %6039 = vmatpush1.msra.mxu0 %v14820_v26  ;;  %11049 = vmatpush3.msra.mxu1 %v14826_v46  ;;  %v16970_v26 = vld [vmem:[#allocation35_spill] sm:$0xff]  ;;  %v16972_v46 = vld [vmem:[#allocation46_spill] sm:$0xff] }
0x1780   :  { %6040 = vmatprep.subr.mxu0 %v14823_v48  ;;  %11050 = vmatprep.subr.mxu1 %v16822_v7  ;;  %v16971_v48 = vld [vmem:[#allocation34_spill] sm:$0xff] }
0x1781   :  { %6041 = vmatpush1.msra.mxu0 %v14829_v17  ;;  %11051 = vmatpush3.msra.mxu1 %v14836_v49  ;;  %v16973_v17 = vld [vmem:[#allocation36_spill] sm:$0xff] }
0x1782   :  { %6042 = vmatprep.subr.mxu0 %v14833_v14  ;;  %11052 = vmatprep.subr.mxu1 %v16822_v7  ;;  %v15294_v14 = vld [vmem:[#allocation12 + $0x470] sm:$0xff] }
0x1783   :  { %6043 = vmatpush1.msra.mxu0 %v14839_v24  ;;  %11053 = vmatpush3.msra.mxu1 %v14846_v41 }
0x1784   :  { %6044 = vmatprep.subr.mxu0 %v14843_v16  ;;  %11054 = vmatprep.subr.mxu1 %v16822_v7  ;;  %v16974_v16 = vld [vmem:[#allocation43_spill] sm:$0xff] }
0x1785   :  { %6045 = vmatpush1.msra.mxu0 %v14849_v22  ;;  %11055 = vmatpush3.msra.mxu1 %v14856_v19 }
0x1786   :  { %6046 = vmatprep.subr.mxu0 %v14853_v62  ;;  %11056 = vmatprep.subr.mxu1 %v16822_v7 }
0x1787   :  { %6047 = vmatpush1.msra.mxu0 %v14859_v4  ;;  %11057 = vmatpush3.msra.mxu1 %v14866_v25 }
0x1788   :  { %6048 = vmatprep.subr.mxu0 %v14863_v15  ;;  %11058 = vmatprep.subr.mxu1 %v16822_v7 }
0x1789   :  { %6049 = vmatpush1.msra.mxu0 %v14869_v12  ;;  %11059 = vmatpush3.msra.mxu1 %v14876_v63 }
0x178a   :  { %6050 = vmatprep.subr.mxu0 %v14873_v54  ;;  %11060 = vmatprep.subr.mxu1 %v16822_v7 }
0x178b   :  { %6051 = vmatpush1.msra.mxu0 %v14879_v56  ;;  %11061 = vmatpush3.msra.mxu1 %v14886_v43 }
0x178c   :  { %6052 = vmatprep.subr.mxu0 %v14883_v2  ;;  %11062 = vmatprep.subr.mxu1 %v16822_v7 }
0x178d   :  { %6053 = vmatpush1.msra.mxu0 %v14889_v52  ;;  %11063 = vmatpush3.msra.mxu1 %v14896_v6 }
0x178e   :  { %6054 = vmatprep.subr.mxu0 %v14893_v60  ;;  %11064 = vmatprep.subr.mxu1 %v16822_v7 }
0x178f   :  { %6055 = vmatpush1.msra.mxu0 %v14899_v23  ;;  %11065 = vmatpush3.msra.mxu1 %v14906_v57 }
0x1790   :  { %6056 = vmatprep.subr.mxu0 %v14903_v61  ;;  %11066 = vmatprep.subr.mxu1 %v16822_v7 }
0x1791   :  { %6057 = vmatpush1.msra.mxu0 %v14909_v31  ;;  %11067 = vmatpush3.msra.mxu1 %v14916_v10  ;;  %v6028_v10 = vrot.slane %v15225_v30, 7  ;;  %v15362_v30 = vld [vmem:[#allocation12 + $0x400] sm:$0xff] }
0x1792   :  { %6058 = vmatprep.subr.mxu0 %v14913_v32  ;;  %11068 = vmatprep.subr.mxu1 %v16822_v7 }
0x1793   :  { %6059 = vmatpush1.msra.mxu0 %v14919_v33  ;;  %11069 = vmatpush3.msra.mxu1 %v14926_v35 }
0x1794   :  { %6060 = vmatprep.subr.mxu0 %v14923_v34  ;;  %11070 = vmatprep.subr.mxu1 %v16822_v7 }
0x1795   :  { %6061 = vmatpush1.msra.mxu0 %v14929_v37  ;;  %11071 = vmatpush3.msra.mxu1 %v14936_v1 }
0x1796   :  { %6062 = vmatprep.subr.mxu0 %v14933_v38  ;;  %11072 = vmatprep.subr.mxu1 %v16822_v7 }
0x1797   :  { %6063 = vmatpush1.msra.mxu0 %v14939_v21  ;;  %11073 = vmatpush3.msra.mxu1 %v16967_v51 }
0x1798   :  { %6064 = vmatprep.subr.mxu0 %v16968_v9  ;;  %11074 = vmatprep.subr.mxu1 %v16822_v7 }
0x1799   :  { %6065 = vmatpush1.msra.mxu0 %v16969_v0  ;;  %11075 = vmatpush3.msra.mxu1 %v16970_v26 }
0x179a   :  { %6066 = vmatprep.subr.mxu0 %v16971_v48  ;;  %11076 = vmatprep.subr.mxu1 %v16822_v7 }
0x179b   :  { %6067 = vmatpush1.msra.mxu0 %v16972_v46  ;;  %6100 = vmatprep.mubr.f32.mxu0 %v16822_v7 }
0x179c   :  { %11077 = vmatpush3.msra.mxu1 %v16973_v17  ;;  %11078 = vmatprep.mubr.msk.f32.mxu1 %vm12483_vm0, %v16822_v7 }
0x179d   :  { %6213 = vmatprep.subr.mxu0 %v15294_v14  ;;  %11081 = vmatprep.subr.mxu1 %v16822_v7 }
0x183c   :  { %v5925_v49 = vpop.f32.mrf.mxu0  ;;  %v5996_v24 = vpop.f32.mrf.mxu1 }
0x183d   :  { %v5926_v41 = vadd.f32 %v5925_v49, %v16974_v16  ;;  %v5997_v52 = vadd.f32 %v5996_v24, %v15061_v18  ;;  %v15369_v49 = vld [vmem:[#allocation12 + $0x3d8] sm:$0xff]  ;;  %v15372_v24 = vld [vmem:[#allocation12 + $0x3e8] sm:$0xff] }
0x183e   :  { %v5927_v22 = vpop.f32.mrf.mxu0  ;;  %v11045_v62 = vpop.f32.mrf.mxu1 }
0x183f   :  { %v6001_v19 = vrot.slane %v5926_v41, 5  ;;  %v5928_v4 = vadd.f32 %v5927_v22, %v15052_v27  ;;  %v6021_v6 = vrot.slane %v5997_v52, 5  ;;  %v15375_v41 = vld [vmem:[#allocation12 + $0x3c8] sm:$0xff]  ;;  %v15379_v22 = vld [vmem:[#allocation12 + $0x3c0] sm:$0xff]  ;;  %v15382_v62 = vld [vmem:[#allocation12 + $0x3d0] sm:$0xff] }
0x1840   :  { %v15419_v52 = vld [vmem:[#allocation12 + $0x360] sm:$0xff] }
0x1841   :  { %v6003_v15 = vadd.f32 %v6001_v19, %v15048_v45  ;;  %v6011_v12 = vrot.slane %v5928_v4, 5  ;;  %v15385_v19 = vld [vmem:[#allocation12 + $0x3b0] sm:$0xff]  ;;  %v15389_v4 = vld [vmem:[#allocation12 + $0x3a8] sm:$0xff] }
0x1843   :  { %v9243_v25 = vmul.f32 -1.442695, %v6003_v15  ;;  %v6013_v54 = vadd.f32 %v6011_v12, %v15057_v40  ;;  %v15392_v15 = vld [vmem:[#allocation12 + $0x3b8] sm:$0xff]  ;;  %v15399_v12 = vld [vmem:[#allocation12 + $0x390] sm:$0xff] }
0x1845   :  { %11891 = vpow2.f32 %v9243_v25  ;;  %v9244_v63 = vmul.f32 -1.442695, %v6013_v54  ;;  %v15395_v25 = vld [vmem:[#allocation12 + $0x398] sm:$0xff]  ;;  %v15402_v54 = vld [vmem:[#allocation12 + $0x3a0] sm:$0xff] }
0x1847   :  { %11893 = vpow2.f32 %v9244_v63  ;;  %v15405_v63 = vld [vmem:[#allocation12 + $0x380] sm:$0xff] }
0x1852   :  { %v11892_v56 = vpop.eup %11891 }
0x1853   :  { %v6007_v2 = vadd.f32 1.0, %v11892_v56  ;;  %v15409_v56 = vld [vmem:[#allocation12 + $0x378] sm:$0xff] }
0x1854   :  { %v11894_v43 = vpop.eup %11893 }
0x1855   :  { %11895 = vrcp.f32 %v6007_v2  ;;  %v6017_v60 = vadd.f32 1.0, %v11894_v43  ;;  %v15412_v2 = vld [vmem:[#allocation12 + $0x388] sm:$0xff] }
0x1856   :  { %v15415_v43 = vld [vmem:[#allocation12 + $0x368] sm:$0xff] }
0x1857   :  { %11897 = vrcp.f32 %v6017_v60  ;;  %v15422_v60 = vld [vmem:[#allocation12 + $0x370] sm:$0xff] }
0x1862   :  { %v11896_v23 = vpop.eup %11895 }
0x1863   :  { %v6023_v61 = vmul.f32 %v11896_v23, %v6021_v6  ;;  %v15425_v6 = vld [vmem:[#allocation12 + $0x350] sm:$0xff]  ;;  %v15429_v23 = vld [vmem:[#allocation12 + $0x348] sm:$0xff] }
0x1864   :  { %v11898_v31 = vpop.eup %11897 }
0x1865   :  { %v6024_v57 = vadd.f32 %v6023_v61, %v15065_v44  ;;  %v6026_v32 = vsub.f32 1.0, %v11898_v31  ;;  %v6030_v35 = vmul.f32 %v11898_v31, %v6028_v10  ;;  %v15433_v61 = vld [vmem:[#allocation12 + $0x338] sm:$0xff] }
0x1867   :  { %11899 = vtanh.f32 %v6024_v57 }
0x1874   :  { %v11900_v33 = vpop.eup %11899 }
0x1875   :  { %v6027_v34 = vmul.f32 %v11900_v33, %v6026_v32 }
0x1877   :  { %v15305_v37 = vadd.f32 %v6030_v35, %v6027_v34 }
0x1879   :  { %6032 = vst [vmem:[#allocation4] sm:$0x8] %v15305_v37  ;;  %v6034_v38 = vrot.slane %v15305_v37, 3 }
0x187b   :  { %6101 = vmatmul.mubr.f32.vlgmr.msra.gmra.mxu0 %v6034_v38  ;;  %11079 = vmatmul.mubr.f32.vlgmr.msra.gmra.mxu1 %v6034_v38 }
0x187c   :  { %6214 = vmatpush1.msra.mxu0 %v15309_v28  ;;  %11082 = vmatpush3.msra.mxu1 %v15312_v20 }
0x187d   :  { %6215 = vmatprep.subr.mxu0 %v15315_v47  ;;  %11083 = vmatprep.subr.mxu1 %v16822_v7 }
0x187e   :  { %6216 = vmatpush1.msra.mxu0 %v15319_v50  ;;  %11084 = vmatpush3.msra.mxu1 %v15322_v29 }
0x187f   :  { %6217 = vmatprep.subr.mxu0 %v15325_v13  ;;  %11085 = vmatprep.subr.mxu1 %v16822_v7 }
0x1880   :  { %6218 = vmatpush1.msra.mxu0 %v15329_v11  ;;  %11086 = vmatpush3.msra.mxu1 %v15332_v55 }
0x1881   :  { %6219 = vmatprep.subr.mxu0 %v15335_v53  ;;  %11087 = vmatprep.subr.mxu1 %v16822_v7 }
0x1882   :  { %6220 = vmatpush1.msra.mxu0 %v15339_v36  ;;  %11088 = vmatpush3.msra.mxu1 %v15342_v8 }
0x1883   :  { %6221 = vmatprep.subr.mxu0 %v15345_v3  ;;  %11089 = vmatprep.subr.mxu1 %v16822_v7 }
0x1884   :  { %6222 = vmatpush1.msra.mxu0 %v15349_v42  ;;  %11090 = vmatpush3.msra.mxu1 %v15352_v39 }
0x1885   :  { %6223 = vmatprep.subr.mxu0 %v15355_v59  ;;  %11091 = vmatprep.subr.mxu1 %v16822_v7 }
0x1886   :  { %6224 = vmatpush1.msra.mxu0 %v15359_v5  ;;  %11092 = vmatpush3.msra.mxu1 %v15362_v30 }
0x1887   :  { %6225 = vmatprep.subr.mxu0 %v15365_v58  ;;  %11093 = vmatprep.subr.mxu1 %v16822_v7 }
0x1888   :  { %6226 = vmatpush1.msra.mxu0 %v15369_v49  ;;  %11094 = vmatpush3.msra.mxu1 %v15372_v24 }
0x1889   :  { %6227 = vmatprep.subr.mxu0 %v15375_v41  ;;  %11095 = vmatprep.subr.mxu1 %v16822_v7 }
0x188a   :  { %6228 = vmatpush1.msra.mxu0 %v15379_v22  ;;  %11096 = vmatpush3.msra.mxu1 %v15382_v62 }
0x188b   :  { %6229 = vmatprep.subr.mxu0 %v15385_v19  ;;  %11097 = vmatprep.subr.mxu1 %v16822_v7 }
0x188c   :  { %6230 = vmatpush1.msra.mxu0 %v15389_v4  ;;  %11098 = vmatpush3.msra.mxu1 %v15392_v15 }
0x188d   :  { %6231 = vmatprep.subr.mxu0 %v15395_v25  ;;  %11099 = vmatprep.subr.mxu1 %v16822_v7 }
0x188e   :  { %6232 = vmatpush1.msra.mxu0 %v15399_v12  ;;  %11100 = vmatpush3.msra.mxu1 %v15402_v54 }
0x188f   :  { %6233 = vmatprep.subr.mxu0 %v15405_v63  ;;  %11101 = vmatprep.subr.mxu1 %v16822_v7 }
0x1890   :  { %6234 = vmatpush1.msra.mxu0 %v15409_v56  ;;  %11102 = vmatpush3.msra.mxu1 %v15412_v2 }
0x1891   :  { %6235 = vmatprep.subr.mxu0 %v15415_v43  ;;  %11103 = vmatprep.subr.mxu1 %v16822_v7 }
0x1892   :  { %6236 = vmatpush1.msra.mxu0 %v15419_v52  ;;  %11104 = vmatpush3.msra.mxu1 %v15422_v60 }
0x1893   :  { %6237 = vmatprep.subr.mxu0 %v15425_v6  ;;  %11105 = vmatprep.subr.mxu1 %v16822_v7 }
0x1894   :  { %6238 = vmatpush1.msra.mxu0 %v15429_v23  ;;  %11106 = vmatpush3.msra.mxu1 %v14936_v1 }
0x1895   :  { %6239 = vmatprep.subr.mxu0 %v15433_v61  ;;  %11107 = vmatprep.subr.mxu1 %v16822_v7 }
0x1896   :  { %6240 = vmatpush1.msra.mxu0 %v14939_v21  ;;  %11108 = vmatpush3.msra.mxu1 %v16967_v51 }
0x1897   :  { %6241 = vmatprep.subr.mxu0 %v16968_v9  ;;  %11109 = vmatprep.subr.mxu1 %v16822_v7 }
0x1898   :  { %6242 = vmatpush1.msra.mxu0 %v16969_v0  ;;  %11110 = vmatpush3.msra.mxu1 %v16970_v26 }
0x1899   :  { %6243 = vmatprep.subr.mxu0 %v16971_v48  ;;  %11111 = vmatprep.subr.mxu1 %v16822_v7 }
0x189a   :  { %6244 = vmatpush1.msra.mxu0 %v16972_v46  ;;  %6277 = vmatprep.mubr.f32.mxu0 %v16822_v7 }
0x189b   :  { %11112 = vmatpush3.msra.mxu1 %v16973_v17  ;;  %11113 = vmatprep.mubr.msk.f32.mxu1 %vm12483_vm0, %v16822_v7 }
0x189c   :  { %6390 = vmatprep.subr.mxu0 %v15294_v14  ;;  %11116 = vmatprep.subr.mxu1 %v16822_v7 }
0x193b   :  { %v6102_v1 = vpop.f32.mrf.mxu0  ;;  %v6173_v21 = vpop.f32.mrf.mxu1 }
0x193c   :  { %v6103_v51 = vadd.f32 %v6102_v1, %v16974_v16  ;;  %v6174_v35 = vadd.f32 %v6173_v21, %v15061_v18 }
0x193d   :  { %v6104_v9 = vpop.f32.mrf.mxu0  ;;  %v11080_v0 = vpop.f32.mrf.mxu1 }
0x193e   :  { %v6178_v26 = vrot.slane %v6103_v51, 4  ;;  %v6105_v48 = vadd.f32 %v6104_v9, %v15052_v27  ;;  %v6198_v1 = vrot.slane %v6174_v35, 4  ;;  %v15527_v35 = vld [vmem:[#allocation12 + $0x318] sm:$0xff] }
0x193f   :  { %16977 = vst [vmem:[#allocation33_spill] sm:$0xff] %v15527_v35 }
0x1940   :  { %v6180_v46 = vadd.f32 %v6178_v26, %v15048_v45  ;;  %v6188_v17 = vrot.slane %v6105_v48, 4 }
0x1942   :  { %v9245_v57 = vmul.f32 -1.442695, %v6180_v46  ;;  %v6190_v31 = vadd.f32 %v6188_v17, %v15057_v40  ;;  %v6205_v46 = vrot.slane %v15305_v37, 7  ;;  %v15512_v37 = vld [vmem:[#allocation12 + $0x358] sm:$0xff] }
0x1944   :  { %11901 = vpow2.f32 %v9245_v57  ;;  %v9246_v32 = vmul.f32 -1.442695, %v6190_v31 }
0x1946   :  { %11903 = vpow2.f32 %v9246_v32 }
0x1951   :  { %v11902_v10 = vpop.eup %11901 }
0x1952   :  { %v6184_v33 = vadd.f32 1.0, %v11902_v10  ;;  %v15517_v10 = vld [vmem:[#allocation12 + $0x330] sm:$0xff] }
0x1953   :  { %v11904_v34 = vpop.eup %11903 }
0x1954   :  { %11905 = vrcp.f32 %v6184_v33  ;;  %v6194_v38 = vadd.f32 1.0, %v11904_v34  ;;  %v15520_v33 = vld [vmem:[#allocation12 + $0x340] sm:$0xff] }
0x1955   :  { %16975 = vst [vmem:[#allocation44_spill] sm:$0xff] %v15520_v33  ;;  %v15523_v34 = vld [vmem:[#allocation12 + $0x320] sm:$0xff] }
0x1956   :  { %11907 = vrcp.f32 %v6194_v38  ;;  %16976 = vst [vmem:[#allocation47_spill] sm:$0xff] %v15523_v34  ;;  %v15530_v38 = vld [vmem:[#allocation12 + $0x328] sm:$0xff] }
0x1957   :  { %16978 = vst [vmem:[#allocation39_spill] sm:$0xff] %v15530_v38 }
0x1961   :  { %v11906_v51 = vpop.eup %11905 }
0x1962   :  { %v6200_v0 = vmul.f32 %v11906_v51, %v6198_v1  ;;  %v15533_v1 = vld [vmem:[#allocation12 + $0x308] sm:$0xff]  ;;  %v15537_v51 = vld [vmem:[#allocation12 + $0x300] sm:$0xff] }
0x1963   :  { %v11908_v26 = vpop.eup %11907  ;;  %16979 = vst [vmem:[#allocation32_spill] sm:$0xff] %v15533_v1  ;;  %16980 = vst [vmem:[#allocation52_spill] sm:$0xff] %v15537_v51 }
0x1964   :  { %v6201_v9 = vadd.f32 %v6200_v0, %v15065_v44  ;;  %v6203_v48 = vsub.f32 1.0, %v11908_v26  ;;  %v6207_v31 = vmul.f32 %v11908_v26, %v6205_v46  ;;  %v15541_v0 = vld [vmem:[#allocation12 + $0x310] sm:$0xff] }
0x1965   :  { %16981 = vst [vmem:[#allocation49_spill] sm:$0xff] %v15541_v0 }
0x1966   :  { %11909 = vtanh.f32 %v6201_v9 }
0x1973   :  { %v11910_v57 = vpop.eup %11909 }
0x1974   :  { %v6204_v17 = vmul.f32 %v11910_v57, %v6203_v48 }
0x1976   :  { %v15459_v32 = vadd.f32 %v6207_v31, %v6204_v17 }
0x1978   :  { %6209 = vst [vmem:[#allocation4] sm:$0x10] %v15459_v32  ;;  %v6211_v21 = vrot.slane %v15459_v32, 4 }
0x197a   :  { %6278 = vmatmul.mubr.f32.vlgmr.msra.gmra.mxu0 %v6211_v21  ;;  %11114 = vmatmul.mubr.f32.vlgmr.msra.gmra.mxu1 %v6211_v21 }
0x197b   :  { %6391 = vmatpush1.msra.mxu0 %v15309_v28  ;;  %11117 = vmatpush3.msra.mxu1 %v15312_v20 }
0x197c   :  { %6392 = vmatprep.subr.mxu0 %v15315_v47  ;;  %11118 = vmatprep.subr.mxu1 %v16822_v7 }
0x197d   :  { %6393 = vmatpush1.msra.mxu0 %v15319_v50  ;;  %11119 = vmatpush3.msra.mxu1 %v15322_v29 }
0x197e   :  { %6394 = vmatprep.subr.mxu0 %v15325_v13  ;;  %11120 = vmatprep.subr.mxu1 %v16822_v7 }
0x197f   :  { %6395 = vmatpush1.msra.mxu0 %v15329_v11  ;;  %11121 = vmatpush3.msra.mxu1 %v15332_v55 }
0x1980   :  { %6396 = vmatprep.subr.mxu0 %v15335_v53  ;;  %11122 = vmatprep.subr.mxu1 %v16822_v7 }
0x1981   :  { %6397 = vmatpush1.msra.mxu0 %v15339_v36  ;;  %11123 = vmatpush3.msra.mxu1 %v15342_v8 }
0x1982   :  { %6398 = vmatprep.subr.mxu0 %v15345_v3  ;;  %11124 = vmatprep.subr.mxu1 %v16822_v7 }
0x1983   :  { %6399 = vmatpush1.msra.mxu0 %v15349_v42  ;;  %11125 = vmatpush3.msra.mxu1 %v15352_v39 }
0x1984   :  { %6400 = vmatprep.subr.mxu0 %v15355_v59  ;;  %11126 = vmatprep.subr.mxu1 %v16822_v7 }
0x1985   :  { %6401 = vmatpush1.msra.mxu0 %v15359_v5  ;;  %11127 = vmatpush3.msra.mxu1 %v15362_v30 }
0x1986   :  { %6402 = vmatprep.subr.mxu0 %v15365_v58  ;;  %11128 = vmatprep.subr.mxu1 %v16822_v7 }
0x1987   :  { %6403 = vmatpush1.msra.mxu0 %v15369_v49  ;;  %11129 = vmatpush3.msra.mxu1 %v15372_v24 }
0x1988   :  { %6404 = vmatprep.subr.mxu0 %v15375_v41  ;;  %11130 = vmatprep.subr.mxu1 %v16822_v7 }
0x1989   :  { %6405 = vmatpush1.msra.mxu0 %v15379_v22  ;;  %11131 = vmatpush3.msra.mxu1 %v15382_v62 }
0x198a   :  { %6406 = vmatprep.subr.mxu0 %v15385_v19  ;;  %11132 = vmatprep.subr.mxu1 %v16822_v7 }
0x198b   :  { %6407 = vmatpush1.msra.mxu0 %v15389_v4  ;;  %11133 = vmatpush3.msra.mxu1 %v15392_v15 }
0x198c   :  { %6408 = vmatprep.subr.mxu0 %v15395_v25  ;;  %11134 = vmatprep.subr.mxu1 %v16822_v7 }
0x198d   :  { %6409 = vmatpush1.msra.mxu0 %v15399_v12  ;;  %11135 = vmatpush3.msra.mxu1 %v15402_v54 }
0x198e   :  { %6410 = vmatprep.subr.mxu0 %v15405_v63  ;;  %11136 = vmatprep.subr.mxu1 %v16822_v7 }
0x198f   :  { %6411 = vmatpush1.msra.mxu0 %v15409_v56  ;;  %11137 = vmatpush3.msra.mxu1 %v15412_v2 }
0x1990   :  { %6412 = vmatprep.subr.mxu0 %v15415_v43  ;;  %11138 = vmatprep.subr.mxu1 %v16822_v7 }
0x1991   :  { %6413 = vmatpush1.msra.mxu0 %v15419_v52  ;;  %11139 = vmatpush3.msra.mxu1 %v15422_v60 }
0x1992   :  { %6414 = vmatprep.subr.mxu0 %v15425_v6  ;;  %11140 = vmatprep.subr.mxu1 %v16822_v7 }
0x1993   :  { %6415 = vmatpush1.msra.mxu0 %v15429_v23  ;;  %11141 = vmatpush3.msra.mxu1 %v15512_v37 }
0x1994   :  { %6416 = vmatprep.subr.mxu0 %v15433_v61  ;;  %11142 = vmatprep.subr.mxu1 %v16822_v7 }
0x1995   :  { %6417 = vmatpush1.msra.mxu0 %v15517_v10  ;;  %11143 = vmatpush3.msra.mxu1 %v15520_v33 }
0x1996   :  { %6418 = vmatprep.subr.mxu0 %v15523_v34  ;;  %11144 = vmatprep.subr.mxu1 %v16822_v7 }
0x1997   :  { %6419 = vmatpush1.msra.mxu0 %v15527_v35  ;;  %11145 = vmatpush3.msra.mxu1 %v15530_v38 }
0x1998   :  { %6420 = vmatprep.subr.mxu0 %v15533_v1  ;;  %11146 = vmatprep.subr.mxu1 %v16822_v7 }
0x1999   :  { %6421 = vmatpush1.msra.mxu0 %v15537_v51  ;;  %6454 = vmatprep.mubr.f32.mxu0 %v16822_v7 }
0x199a   :  { %11147 = vmatpush3.msra.mxu1 %v15541_v0  ;;  %11148 = vmatprep.mubr.msk.f32.mxu1 %vm12483_vm0, %v16822_v7 }
0x199b   :  { %6567 = vmatprep.subr.mxu0 %v15294_v14  ;;  %11151 = vmatprep.subr.mxu1 %v16822_v7 }
0x1a3a   :  { %v6279_v9 = vpop.f32.mrf.mxu0  ;;  %v6350_v26 = vpop.f32.mrf.mxu1 }
0x1a3b   :  { %v6280_v48 = vadd.f32 %v6279_v9, %v16974_v16  ;;  %v6351_v9 = vadd.f32 %v6350_v26, %v15061_v18  ;;  %v6826_v26 = vld [vmem:[#allocation16 + $0x40] sm:$0xff] }
0x1a3c   :  { %v6281_v46 = vpop.f32.mrf.mxu0  ;;  %v11115_v57 = vpop.f32.mrf.mxu1 }
0x1a3d   :  { %v6355_v17 = vrot.slane %v6280_v48, 3  ;;  %v6282_v31 = vadd.f32 %v6281_v46, %v15052_v27  ;;  %v6375_v57 = vrot.slane %v6351_v9, 3  ;;  %v6824_v9 = vld [vmem:[#allocation16 + $0x30] sm:$0xff] }
0x1a3f   :  { %v6357_v21 = vadd.f32 %v6355_v17, %v15048_v45  ;;  %v6365_v0 = vrot.slane %v6282_v31, 3 }
0x1a41   :  { %v9247_v51 = vmul.f32 -1.442695, %v6357_v21  ;;  %v6367_v1 = vadd.f32 %v6365_v0, %v15057_v40  ;;  %v6382_v0 = vrot.slane %v15459_v32, 7  ;;  %v6831_v32 = vld [vmem:[#allocation16 + $0x68] sm:$0xff] }
0x1a43   :  { %11911 = vpow2.f32 %v9247_v51  ;;  %v9248_v38 = vmul.f32 -1.442695, %v6367_v1 }
0x1a45   :  { %11913 = vpow2.f32 %v9248_v38 }
0x1a50   :  { %v11912_v14 = vpop.eup %11911 }
0x1a51   :  { %v6361_v35 = vadd.f32 1.0, %v11912_v14  ;;  %v6825_v14 = vld [vmem:[#allocation16 + $0x38] sm:$0xff] }
0x1a52   :  { %v11914_v34 = vpop.eup %11913 }
0x1a53   :  { %11915 = vrcp.f32 %v6361_v35  ;;  %v6371_v16 = vadd.f32 1.0, %v11914_v34  ;;  %v6827_v35 = vld [vmem:[#allocation16 + $0x48] sm:$0xff] }
0x1a55   :  { %11917 = vrcp.f32 %v6371_v16  ;;  %v16982_v16 = vld [vmem:[#allocation44_spill] sm:$0xff] }
0x1a60   :  { %v11916_v48 = vpop.eup %11915 }
0x1a61   :  { %v6377_v33 = vmul.f32 %v11916_v48, %v6375_v57  ;;  %v6823_v57 = vld [vmem:[#allocation16 + $0x28] sm:$0xff]  ;;  %v6822_v48 = vld [vmem:[#allocation16 + $0x20] sm:$0xff] }
0x1a62   :  { %v11918_v17 = vpop.eup %11917 }
0x1a63   :  { %v6378_v46 = vadd.f32 %v6377_v33, %v15065_v44  ;;  %v6380_v51 = vsub.f32 1.0, %v11918_v17  ;;  %v6384_v31 = vmul.f32 %v11918_v17, %v6382_v0  ;;  %v6828_v33 = vld [vmem:[#allocation16 + $0x50] sm:$0xff] }
0x1a65   :  { %11919 = vtanh.f32 %v6378_v46  ;;  %v6821_v46 = vld [vmem:[#allocation16 + $0x18] sm:$0xff] }
0x1a72   :  { %v11920_v1 = vpop.eup %11919 }
0x1a73   :  { %v6381_v38 = vmul.f32 %v11920_v1, %v6380_v51 }
0x1a75   :  { %v15555_v21 = vadd.f32 %v6384_v31, %v6381_v38 }
0x1a77   :  { %6386 = vst [vmem:[#allocation4] sm:$0x20] %v15555_v21  ;;  %v6388_v34 = vrot.slane %v15555_v21, 5 }
0x1a79   :  { %6455 = vmatmul.mubr.f32.vlgmr.msra.gmra.mxu0 %v6388_v34  ;;  %11149 = vmatmul.mubr.f32.vlgmr.msra.gmra.mxu1 %v6388_v34 }
0x1a7a   :  { %6568 = vmatpush1.msra.mxu0 %v15309_v28  ;;  %11152 = vmatpush3.msra.mxu1 %v15312_v20  ;;  %v16983_v28 = vld [vmem:[#allocation47_spill] sm:$0xff]  ;;  %v16984_v20 = vld [vmem:[#allocation33_spill] sm:$0xff] }
0x1a7b   :  { %6569 = vmatprep.subr.mxu0 %v15315_v47  ;;  %11153 = vmatprep.subr.mxu1 %v16822_v7  ;;  %v16985_v47 = vld [vmem:[#allocation39_spill] sm:$0xff] }
0x1a7c   :  { %6570 = vmatpush1.msra.mxu0 %v15319_v50  ;;  %11154 = vmatpush3.msra.mxu1 %v15322_v29  ;;  %v16986_v50 = vld [vmem:[#allocation32_spill] sm:$0xff] }
0x1a7d   :  { %6571 = vmatprep.subr.mxu0 %v15325_v13  ;;  %11155 = vmatprep.subr.mxu1 %v16822_v7  ;;  %v16987_v29 = vld [vmem:[#allocation52_spill] sm:$0xff]  ;;  %v16988_v13 = vld [vmem:[#allocation49_spill] sm:$0xff] }
0x1a7e   :  { %6572 = vmatpush1.msra.mxu0 %v15329_v11  ;;  %11156 = vmatpush3.msra.mxu1 %v15332_v55 }
0x1a7f   :  { %6573 = vmatprep.subr.mxu0 %v15335_v53  ;;  %11157 = vmatprep.subr.mxu1 %v16822_v7  ;;  %v16989_v53 = vld [vmem:[#allocation43_spill] sm:$0xff] }
0x1a80   :  { %6574 = vmatpush1.msra.mxu0 %v15339_v36  ;;  %11158 = vmatpush3.msra.mxu1 %v15342_v8 }
0x1a81   :  { %6575 = vmatprep.subr.mxu0 %v15345_v3  ;;  %11159 = vmatprep.subr.mxu1 %v16822_v7 }
0x1a82   :  { %6576 = vmatpush1.msra.mxu0 %v15349_v42  ;;  %11160 = vmatpush3.msra.mxu1 %v15352_v39 }
0x1a83   :  { %6577 = vmatprep.subr.mxu0 %v15355_v59  ;;  %11161 = vmatprep.subr.mxu1 %v16822_v7 }
0x1a84   :  { %6578 = vmatpush1.msra.mxu0 %v15359_v5  ;;  %11162 = vmatpush3.msra.mxu1 %v15362_v30 }
0x1a85   :  { %6579 = vmatprep.subr.mxu0 %v15365_v58  ;;  %11163 = vmatprep.subr.mxu1 %v16822_v7 }
0x1a86   :  { %6580 = vmatpush1.msra.mxu0 %v15369_v49  ;;  %11164 = vmatpush3.msra.mxu1 %v15372_v24 }
0x1a87   :  { %6581 = vmatprep.subr.mxu0 %v15375_v41  ;;  %11165 = vmatprep.subr.mxu1 %v16822_v7 }
0x1a88   :  { %6582 = vmatpush1.msra.mxu0 %v15379_v22  ;;  %11166 = vmatpush3.msra.mxu1 %v15382_v62 }
0x1a89   :  { %6583 = vmatprep.subr.mxu0 %v15385_v19  ;;  %11167 = vmatprep.subr.mxu1 %v16822_v7 }
0x1a8a   :  { %6584 = vmatpush1.msra.mxu0 %v15389_v4  ;;  %11168 = vmatpush3.msra.mxu1 %v15392_v15 }
0x1a8b   :  { %6585 = vmatprep.subr.mxu0 %v15395_v25  ;;  %11169 = vmatprep.subr.mxu1 %v16822_v7 }
0x1a8c   :  { %6586 = vmatpush1.msra.mxu0 %v15399_v12  ;;  %11170 = vmatpush3.msra.mxu1 %v15402_v54 }
0x1a8d   :  { %6587 = vmatprep.subr.mxu0 %v15405_v63  ;;  %11171 = vmatprep.subr.mxu1 %v16822_v7 }
0x1a8e   :  { %6588 = vmatpush1.msra.mxu0 %v15409_v56  ;;  %11172 = vmatpush3.msra.mxu1 %v15412_v2  ;;  %v6559_v56 = vrot.slane %v15555_v21, 7 }
0x1a8f   :  { %6589 = vmatprep.subr.mxu0 %v15415_v43  ;;  %11173 = vmatprep.subr.mxu1 %v16822_v7 }
0x1a90   :  { %6590 = vmatpush1.msra.mxu0 %v15419_v52  ;;  %11174 = vmatpush3.msra.mxu1 %v15422_v60 }
0x1a91   :  { %6591 = vmatprep.subr.mxu0 %v15425_v6  ;;  %11175 = vmatprep.subr.mxu1 %v16822_v7 }
0x1a92   :  { %6592 = vmatpush1.msra.mxu0 %v15429_v23  ;;  %11176 = vmatpush3.msra.mxu1 %v15512_v37  ;;  %v6833_v23 = vld [vmem:[#allocation16 + $0x78] sm:$0xff]  ;;  %v6830_v37 = vld [vmem:[#allocation16 + $0x60] sm:$0xff] }
0x1a93   :  { %6593 = vmatprep.subr.mxu0 %v15433_v61  ;;  %11177 = vmatprep.subr.mxu1 %v16822_v7  ;;  %v6832_v61 = vld [vmem:[#allocation16 + $0x70] sm:$0xff] }
0x1a94   :  { %6594 = vmatpush1.msra.mxu0 %v15517_v10  ;;  %11178 = vmatpush3.msra.mxu1 %v16982_v16  ;;  %v6829_v10 = vld [vmem:[#allocation16 + $0x58] sm:$0xff] }
0x1a95   :  { %6595 = vmatprep.subr.mxu0 %v16983_v28  ;;  %11179 = vmatprep.subr.mxu1 %v16822_v7 }
0x1a96   :  { %6596 = vmatpush1.msra.mxu0 %v16984_v20  ;;  %11180 = vmatpush3.msra.mxu1 %v16985_v47 }
0x1a97   :  { %6597 = vmatprep.subr.mxu0 %v16986_v50  ;;  %11181 = vmatprep.subr.mxu1 %v16822_v7 }
0x1a98   :  { %6598 = vmatpush1.msra.mxu0 %v16987_v29  ;;  %6631 = vmatprep.mubr.f32.mxu0 %v16822_v7 }
0x1a99   :  { %11182 = vmatpush3.msra.mxu1 %v16988_v13  ;;  %11183 = vmatprep.mubr.msk.f32.mxu1 %vm12483_vm0, %v16822_v7 }
0x1a9a   :  { %11186 = vmatprep.subr.mxu0 %v16822_v7  ;;  %11191 = vmatprep.subr.mxu1 %v16822_v7 }
0x1b39   :  { %v6456_v11 = vpop.f32.mrf.mxu0  ;;  %v6527_v55 = vpop.f32.mrf.mxu1 }
0x1b3a   :  { %v6457_v36 = vadd.f32 %v6456_v11, %v16989_v53  ;;  %v6528_v62 = vadd.f32 %v6527_v55, %v15061_v18 }
0x1b3b   :  { %v6458_v8 = vpop.f32.mrf.mxu0  ;;  %v11150_v3 = vpop.f32.mrf.mxu1 }
0x1b3c   :  { %v6532_v42 = vrot.slane %v6457_v36, 2  ;;  %v6459_v39 = vadd.f32 %v6458_v8, %v15052_v27  ;;  %v6552_v4 = vrot.slane %v6528_v62, 2  ;;  %v7004_v62 = vld [vmem:[#allocation10 + $0x5d0] sm:$0xff] }
0x1b3e   :  { %v6534_v59 = vadd.f32 %v6532_v42, %v15048_v45  ;;  %v6542_v30 = vrot.slane %v6459_v39, 2 }
0x1b40   :  { %v9249_v5 = vmul.f32 -1.442695, %v6534_v59  ;;  %v6544_v58 = vadd.f32 %v6542_v30, %v15057_v40 }
0x1b42   :  { %11921 = vpow2.f32 %v9249_v5  ;;  %v9250_v49 = vmul.f32 -1.442695, %v6544_v58  ;;  %v6819_v58 = vld [vmem:[#allocation16 + $0x8] sm:$0xff] }
0x1b44   :  { %11923 = vpow2.f32 %v9250_v49  ;;  %v6818_v49 = vld [vmem:[#allocation16] sm:$0xff] }
0x1b4f   :  { %v11922_v24 = vpop.eup %11921 }
0x1b50   :  { %v6538_v41 = vadd.f32 1.0, %v11922_v24  ;;  %v7008_v24 = vld [vmem:[#allocation10 + $0x5f0] sm:$0xff] }
0x1b51   :  { %v11924_v22 = vpop.eup %11923 }
0x1b52   :  { %11925 = vrcp.f32 %v6538_v41  ;;  %v6548_v19 = vadd.f32 1.0, %v11924_v22  ;;  %v7007_v41 = vld [vmem:[#allocation10 + $0x5e8] sm:$0xff]  ;;  %v7005_v22 = vld [vmem:[#allocation10 + $0x5d8] sm:$0xff] }
0x1b54   :  { %11927 = vrcp.f32 %v6548_v19  ;;  %v7002_v19 = vld [vmem:[#allocation10 + $0x5c0] sm:$0xff] }
0x1b5f   :  { %v11926_v15 = vpop.eup %11925 }
0x1b60   :  { %v6554_v25 = vmul.f32 %v11926_v15, %v6552_v4  ;;  %v7001_v4 = vld [vmem:[#allocation10 + $0x5b8] sm:$0xff]  ;;  %v6999_v15 = vld [vmem:[#allocation10 + $0x5a8] sm:$0xff] }
0x1b61   :  { %v11928_v54 = vpop.eup %11927 }
0x1b62   :  { %v6555_v12 = vadd.f32 %v6554_v25, %v15065_v44  ;;  %v6557_v63 = vsub.f32 1.0, %v11928_v54  ;;  %v6561_v52 = vmul.f32 %v11928_v54, %v6559_v56  ;;  %v6998_v25 = vld [vmem:[#allocation10 + $0x5a0] sm:$0xff]  ;;  %v6995_v54 = vld [vmem:[#allocation10 + $0x588] sm:$0xff]  ;;  %v6992_v56 = vld [vmem:[#allocation10 + $0x570] sm:$0xff] }
0x1b64   :  { %11929 = vtanh.f32 %v6555_v12  ;;  %v6996_v12 = vld [vmem:[#allocation10 + $0x590] sm:$0xff] }
0x1b71   :  { %v11930_v2 = vpop.eup %11929 }
0x1b72   :  { %v6558_v43 = vmul.f32 %v11930_v2, %v6557_v63  ;;  %v6993_v63 = vld [vmem:[#allocation10 + $0x578] sm:$0xff]  ;;  %v6990_v2 = vld [vmem:[#allocation10 + $0x560] sm:$0xff] }
0x1b74   :  { %v15633_v60 = vadd.f32 %v6561_v52, %v6558_v43  ;;  %v6989_v43 = vld [vmem:[#allocation10 + $0x558] sm:$0xff]  ;;  %v6987_v52 = vld [vmem:[#allocation10 + $0x548] sm:$0xff] }
0x1b76   :  { %6563 = vst [vmem:[#allocation4] sm:$0x40] %v15633_v60  ;;  %v6565_v6 = vrot.slane %v15633_v60, 6  ;;  %v6736_v3 = vrot.slane %v15633_v60, 7  ;;  %v6986_v60 = vld [vmem:[#allocation10 + $0x540] sm:$0xff] }
0x1b78   :  { %6632 = vmatmul.mubr.f32.vlgmr.msra.gmra.mxu0 %v6565_v6  ;;  %11184 = vmatmul.mubr.f32.vlgmr.msra.gmra.mxu1 %v6565_v6  ;;  %v6984_v6 = vld [vmem:[#allocation10 + $0x530] sm:$0xff] }
0x1b79   :  { %11188 = vmatprep.mubr.msk.f32.mxu0 %vm12483_vm0, %v16822_v7  ;;  %11223 = vmatprep.mubr.msk.f32.mxu1 %vm12483_vm0, %v16822_v7 }
0x1b7a   :  { %11192 = vmatpush3.msra.mxu1 %v6833_v23  ;;  %v6983_v23 = vld [vmem:[#allocation10 + $0x528] sm:$0xff] }
0x1b7b   :  { %11193 = vmatprep.subr.mxu1 %v16822_v7 }
0x1b7c   :  { %11194 = vmatpush3.msra.mxu1 %v6832_v61  ;;  %v6981_v61 = vld [vmem:[#allocation10 + $0x518] sm:$0xff] }
0x1b7d   :  { %11195 = vmatprep.subr.mxu1 %v16822_v7 }
0x1b7e   :  { %11196 = vmatpush3.msra.mxu1 %v6831_v32  ;;  %v6980_v32 = vld [vmem:[#allocation10 + $0x510] sm:$0xff] }
0x1b7f   :  { %11197 = vmatprep.subr.mxu1 %v16822_v7 }
0x1b80   :  { %11198 = vmatpush3.msra.mxu1 %v6830_v37  ;;  %v6978_v37 = vld [vmem:[#allocation10 + $0x500] sm:$0xff] }
0x1b81   :  { %11199 = vmatprep.subr.mxu1 %v16822_v7 }
0x1b82   :  { %11200 = vmatpush3.msra.mxu1 %v6829_v10  ;;  %v6977_v10 = vld [vmem:[#allocation10 + $0x4f8] sm:$0xff] }
0x1b83   :  { %11201 = vmatprep.subr.mxu1 %v16822_v7 }
0x1b84   :  { %11202 = vmatpush3.msra.mxu1 %v6828_v33  ;;  %v6975_v33 = vld [vmem:[#allocation10 + $0x4e8] sm:$0xff] }
0x1b85   :  { %11203 = vmatprep.subr.mxu1 %v16822_v7 }
0x1b86   :  { %11204 = vmatpush3.msra.mxu1 %v6827_v35  ;;  %v6974_v35 = vld [vmem:[#allocation10 + $0x4e0] sm:$0xff] }
0x1b87   :  { %11205 = vmatprep.subr.mxu1 %v16822_v7 }
0x1b88   :  { %11206 = vmatpush3.msra.mxu1 %v6826_v26  ;;  %v6972_v26 = vld [vmem:[#allocation10 + $0x4d0] sm:$0xff] }
0x1b89   :  { %11207 = vmatprep.subr.mxu1 %v16822_v7 }
0x1b8a   :  { %11208 = vmatpush3.msra.mxu1 %v6825_v14  ;;  %v6971_v14 = vld [vmem:[#allocation10 + $0x4c8] sm:$0xff] }
0x1b8b   :  { %11209 = vmatprep.subr.mxu1 %v16822_v7 }
0x1b8c   :  { %11210 = vmatpush3.msra.mxu1 %v6824_v9  ;;  %v6969_v9 = vld [vmem:[#allocation10 + $0x4b8] sm:$0xff] }
0x1b8d   :  { %11211 = vmatprep.subr.mxu1 %v16822_v7 }
0x1b8e   :  { %11212 = vmatpush3.msra.mxu1 %v6823_v57  ;;  %v6815_v57 = vstv %s6814_s7 }
0x1b8f   :  { %11213 = vmatprep.subr.mxu1 %v16822_v7 }
0x1b90   :  { %11214 = vmatpush3.msra.mxu1 %v6822_v48 }
0x1b91   :  { %11215 = vmatprep.subr.mxu1 %v16822_v7 }
0x1b92   :  { %11216 = vmatpush3.msra.mxu1 %v6821_v46 }
0x1b93   :  { %11217 = vmatprep.subr.mxu1 %v16822_v7 }
0x1c38   :  { %v6633_v17 = vpop.f32.mrf.mxu0  ;;  %v6704_v51 = vpop.f32.mrf.mxu1 }
0x1c39   :  { %v6634_v0 = vadd.f32 %v6633_v17, %v16989_v53  ;;  %v6705_v11 = vadd.f32 %v6704_v51, %v15061_v18  ;;  %v16990_v18 = vld [vmem:[#allocation38_spill] sm:$0xff] }
0x1c3a   :  { %v6635_v1 = vpop.f32.mrf.mxu0  ;;  %v11185_v38 = vpop.f32.mrf.mxu1 }
0x1c3b   :  { %v6709_v31 = vrot.slane %v6634_v0, 1  ;;  %v6636_v21 = vadd.f32 %v6635_v1, %v15052_v27  ;;  %v6729_v53 = vrot.slane %v6705_v11, 1  ;;  %v16992_v1 = vld [vmem:[#allocation41_spill] sm:$0xff] }
0x1c3c   :  { %v6979_v11 = vld [vmem:[#allocation10 + $0x508] sm:$0xff] }
0x1c3d   :  { %v6711_v34 = vadd.f32 %v6709_v31, %v15048_v45  ;;  %v6719_v28 = vrot.slane %v6636_v21, 1  ;;  %v7009_v31 = vld [vmem:[#allocation10 + $0x5f8] sm:$0xff]  ;;  %v7006_v21 = vld [vmem:[#allocation10 + $0x5e0] sm:$0xff] }
0x1c3f   :  { %v9251_v16 = vmul.f32 -1.442695, %v6711_v34  ;;  %v6721_v20 = vadd.f32 %v6719_v28, %v15057_v40  ;;  %v7003_v34 = vld [vmem:[#allocation10 + $0x5c8] sm:$0xff]  ;;  %v6997_v28 = vld [vmem:[#allocation10 + $0x598] sm:$0xff] }
0x1c41   :  { %11931 = vpow2.f32 %v9251_v16  ;;  %v9252_v47 = vmul.f32 -1.442695, %v6721_v20  ;;  %v7000_v16 = vld [vmem:[#allocation10 + $0x5b0] sm:$0xff]  ;;  %v6994_v20 = vld [vmem:[#allocation10 + $0x580] sm:$0xff] }
0x1c43   :  { %11933 = vpow2.f32 %v9252_v47  ;;  %v6991_v47 = vld [vmem:[#allocation10 + $0x568] sm:$0xff] }
0x1c4e   :  { %v11932_v50 = vpop.eup %11931 }
0x1c4f   :  { %v6715_v29 = vadd.f32 1.0, %v11932_v50  ;;  %v6988_v50 = vld [vmem:[#allocation10 + $0x550] sm:$0xff] }
0x1c50   :  { %v11934_v13 = vpop.eup %11933 }
0x1c51   :  { %11935 = vrcp.f32 %v6715_v29  ;;  %v6725_v55 = vadd.f32 1.0, %v11934_v13  ;;  %v6985_v29 = vld [vmem:[#allocation10 + $0x538] sm:$0xff]  ;;  %v6982_v13 = vld [vmem:[#allocation10 + $0x520] sm:$0xff] }
0x1c53   :  { %11937 = vrcp.f32 %v6725_v55  ;;  %v6976_v55 = vld [vmem:[#allocation10 + $0x4f0] sm:$0xff] }
0x1c5e   :  { %v11936_v36 = vpop.eup %11935 }
0x1c5f   :  { %v6731_v8 = vmul.f32 %v11936_v36, %v6729_v53  ;;  %v6973_v53 = vld [vmem:[#allocation10 + $0x4d8] sm:$0xff]  ;;  %v6970_v36 = vld [vmem:[#allocation10 + $0x4c0] sm:$0xff] }
0x1c60   :  { %v11938_v27 = vpop.eup %11937 }
0x1c61   :  { %v6732_v45 = vadd.f32 %v6731_v8, %v15065_v44  ;;  %v6734_v40 = vsub.f32 1.0, %v11938_v27  ;;  %v6738_v59 = vmul.f32 %v11938_v27, %v6736_v3  ;;  %v6820_v44 = vld [vmem:[#allocation16 + $0x10] sm:$0xff]  ;;  %v6968_v8 = vld [vmem:[#allocation10 + $0x4b0] sm:$0xff]  ;;  %v6965_v3 = vld [vmem:[#allocation10 + $0x498] sm:$0xff] }
0x1c62   :  { %11218 = vmatpush3.msra.mxu1 %v6820_v44  ;;  %v6967_v27 = vld [vmem:[#allocation10 + $0x4a8] sm:$0xff] }
0x1c63   :  { %11939 = vtanh.f32 %v6732_v45  ;;  %11219 = vmatprep.subr.mxu1 %v16822_v7  ;;  %v6966_v45 = vld [vmem:[#allocation10 + $0x4a0] sm:$0xff] }
0x1c64   :  { %11220 = vmatpush3.msra.mxu1 %v6819_v58  ;;  %v12184_v58 = vld [vmem:[%s16804_s1] sm:$0xff] }
0x1c65   :  { %11221 = vmatprep.subr.mxu1 %v16822_v7 }
0x1c66   :  { %11222 = vmatpush3.msra.mxu1 %v6818_v49 }
0x1c67   :  { %11226 = vmatprep.subr.mxu1 %v16822_v7 }
0x1c70   :  { %v11940_v42 = vpop.eup %11939 }
0x1c71   :  { %v6735_v39 = vmul.f32 %v11940_v42, %v6734_v40  ;;  %v6963_v40 = vld [vmem:[#allocation10 + $0x488] sm:$0xff]  ;;  %v6964_v42 = vld [vmem:[#allocation10 + $0x490] sm:$0xff] }
0x1c73   :  { %v6739_v5 = vadd.f32 %v6738_v59, %v6735_v39  ;;  %v6962_v39 = vld [vmem:[#allocation10 + $0x480] sm:$0xff]  ;;  %v9254_v59 = vld [vmem:[#allocation18] ss:$0 sm:$0xff] }
0x1c75   :  { %6740 = vst [vmem:[#allocation4] sm:$0x80] %v6739_v5 }
0x1c7c   :  { %v15661_v30 = vld [vmem:[#allocation4] sm:$0xff] }
0x1c7d   :  { %11187 = vmatpush3.msra.mxu0 %v15661_v30 }
0x1c7e   :  { %11189 = vmatmul.mubr.msk.f32.vlgmr.msra.gmra.mxu0 %vm476_vm2, %v16990_v18  ;;  %7063 = vmatprep.subr.mxu0 %v7008_v24  ;;  %v6960_v24 = vld [vmem:[#allocation7 + $0x5f8] sm:$0xff] }
0x1c7f   :  { %7127 = vmatprep.mubr.f32.mxu0 %v16822_v7  ;;  %7064 = vmatpush1.msra.mxu0 %v7007_v41  ;;  %v6957_v41 = vld [vmem:[#allocation7 + $0x5e0] sm:$0xff] }
0x1c80   :  { %7065 = vmatprep.subr.mxu0 %v7005_v22  ;;  %v6954_v22 = vld [vmem:[#allocation7 + $0x5c8] sm:$0xff] }
0x1c81   :  { %7066 = vmatpush1.msra.mxu0 %v7004_v62  ;;  %v6951_v62 = vld [vmem:[#allocation7 + $0x5b0] sm:$0xff] }
0x1c82   :  { %7067 = vmatprep.subr.mxu0 %v7002_v19  ;;  %v6948_v19 = vld [vmem:[#allocation7 + $0x598] sm:$0xff] }
0x1c83   :  { %7068 = vmatpush1.msra.mxu0 %v7001_v4  ;;  %v6945_v4 = vld [vmem:[#allocation7 + $0x580] sm:$0xff] }
0x1c84   :  { %7069 = vmatprep.subr.mxu0 %v6999_v15  ;;  %v6942_v15 = vld [vmem:[#allocation7 + $0x568] sm:$0xff] }
0x1c85   :  { %7070 = vmatpush1.msra.mxu0 %v6998_v25  ;;  %v6939_v25 = vld [vmem:[#allocation7 + $0x550] sm:$0xff] }
0x1c86   :  { %7071 = vmatprep.subr.mxu0 %v6996_v12  ;;  %v6936_v12 = vld [vmem:[#allocation7 + $0x538] sm:$0xff] }
0x1c87   :  { %7072 = vmatpush1.msra.mxu0 %v6995_v54  ;;  %v6933_v54 = vld [vmem:[#allocation7 + $0x520] sm:$0xff] }
0x1c88   :  { %7073 = vmatprep.subr.mxu0 %v6993_v63  ;;  %v6930_v63 = vld [vmem:[#allocation7 + $0x508] sm:$0xff] }
0x1c89   :  { %7074 = vmatpush1.msra.mxu0 %v6992_v56  ;;  %v6927_v56 = vld [vmem:[#allocation7 + $0x4f0] sm:$0xff] }
0x1c8a   :  { %7075 = vmatprep.subr.mxu0 %v6990_v2  ;;  %v6924_v2 = vld [vmem:[#allocation7 + $0x4d8] sm:$0xff] }
0x1c8b   :  { %7076 = vmatpush1.msra.mxu0 %v6989_v43  ;;  %v6921_v43 = vld [vmem:[#allocation7 + $0x4c0] sm:$0xff] }
0x1c8c   :  { %7077 = vmatprep.subr.mxu0 %v6987_v52  ;;  %v6918_v52 = vld [vmem:[#allocation7 + $0x4a8] sm:$0xff] }
0x1c8d   :  { %7078 = vmatpush1.msra.mxu0 %v6986_v60  ;;  %v6915_v60 = vld [vmem:[#allocation7 + $0x490] sm:$0xff] }
0x1c8e   :  { %7079 = vmatprep.subr.mxu0 %v6984_v6  ;;  %v15725_v6 = vld [vmem:[#allocation12 + $0x5f8] sm:$0xff] }
0x1c8f   :  { %7080 = vmatpush1.msra.mxu0 %v6983_v23  ;;  %v15727_v23 = vld [vmem:[#allocation12 + $0x5e0] sm:$0xff] }
0x1c90   :  { %7081 = vmatprep.subr.mxu0 %v6981_v61  ;;  %v15731_v61 = vld [vmem:[#allocation12 + $0x5c8] sm:$0xff] }
0x1c91   :  { %7082 = vmatpush1.msra.mxu0 %v6980_v32  ;;  %v15735_v32 = vld [vmem:[#allocation12 + $0x5b0] sm:$0xff] }
0x1c92   :  { %7083 = vmatprep.subr.mxu0 %v6978_v37  ;;  %v15739_v37 = vld [vmem:[#allocation12 + $0x598] sm:$0xff] }
0x1c93   :  { %7084 = vmatpush1.msra.mxu0 %v6977_v10  ;;  %v15743_v10 = vld [vmem:[#allocation12 + $0x580] sm:$0xff] }
0x1c94   :  { %7085 = vmatprep.subr.mxu0 %v6975_v33  ;;  %v15747_v33 = vld [vmem:[#allocation12 + $0x568] sm:$0xff] }
0x1c95   :  { %7086 = vmatpush1.msra.mxu0 %v6974_v35  ;;  %v15751_v35 = vld [vmem:[#allocation12 + $0x550] sm:$0xff] }
0x1c96   :  { %7087 = vmatprep.subr.mxu0 %v6972_v26  ;;  %v15755_v26 = vld [vmem:[#allocation12 + $0x538] sm:$0xff] }
0x1c97   :  { %7088 = vmatpush1.msra.mxu0 %v6971_v14  ;;  %v15759_v14 = vld [vmem:[#allocation12 + $0x520] sm:$0xff] }
0x1c98   :  { %7089 = vmatprep.subr.mxu0 %v6969_v9  ;;  %v15763_v9 = vld [vmem:[#allocation12 + $0x508] sm:$0xff] }
0x1c99   :  { %7090 = vmatpush1.msra.mxu0 %v6968_v8  ;;  %v6941_v8 = vld [vmem:[#allocation7 + $0x560] sm:$0xff] }
0x1c9a   :  { %7091 = vmatprep.subr.mxu0 %v6966_v45  ;;  %v6940_v45 = vld [vmem:[#allocation7 + $0x558] sm:$0xff] }
0x1c9b   :  { %7092 = vmatpush1.msra.mxu0 %v6965_v3  ;;  %v6937_v3 = vld [vmem:[#allocation7 + $0x540] sm:$0xff] }
0x1c9c   :  { %7093 = vmatprep.subr.mxu0 %v6963_v40  ;;  %v6935_v40 = vld [vmem:[#allocation7 + $0x530] sm:$0xff] }
0x1c9d   :  { %7094 = vmatpush1.msra.mxu0 %v6962_v39  ;;  %v6932_v39 = vld [vmem:[#allocation7 + $0x518] sm:$0xff] }
0x1d3e   :  { %v6808_v48 = vpop.f32.mrf.mxu0 }
0x1d3f   :  { %v6812_v17 = vsel %vm2268_vm3, %v15661_v30, %v6808_v48  ;;  %v15771_v48 = vld [vmem:[#allocation12 + $0x4d8] sm:$0xff] }
0x1d40   :  { %v6816_v51 = vmul.f32 %v6815_v57, %v6812_v17  ;;  %v11190_v0 = vpop.f32.mrf.mxu0  ;;  %v15767_v57 = vld [vmem:[#allocation12 + $0x4f0] sm:$0xff]  ;;  %v15775_v17 = vld [vmem:[#allocation12 + $0x4c0] sm:$0xff] }
0x1d41   :  { %16993 = vst [vmem:[#allocation50_spill] sm:$0xff] %v15775_v17  ;;  %v15783_v0 = vld [vmem:[#allocation12 + $0x490] sm:$0xff] }
0x1d42   :  { %v6817_v38 = vadd.f32 %v6816_v51, %v16992_v1  ;;  %v15779_v51 = vld [vmem:[#allocation12 + $0x4a8] sm:$0xff]  ;;  %16995 = vst [vmem:[#allocation51_spill] sm:$0xff] %v15783_v0 }
0x1d43   :  { %16994 = vst [vmem:[#allocation40_spill] sm:$0xff] %v15779_v51 }
0x1d44   :  { %11224 = vmatmul.mubr.f32.vlgmr.msra.gmra.mxu1 %v6817_v38 }
0x1d45   :  { %11227 = vmatpush3.msra.mxu1 %v7009_v31  ;;  %11258 = vmatprep.mubr.msk.f32.mxu1 %vm12483_vm0, %v16822_v7 }
0x1d46   :  { %11228 = vmatprep.subr.mxu1 %v16822_v7 }
0x1d47   :  { %11229 = vmatpush3.msra.mxu1 %v7006_v21 }
0x1d48   :  { %11230 = vmatprep.subr.mxu1 %v16822_v7 }
0x1d49   :  { %11231 = vmatpush3.msra.mxu1 %v7003_v34  ;;  %v6959_v34 = vld [vmem:[#allocation7 + $0x5f0] sm:$0xff] }
0x1d4a   :  { %11232 = vmatprep.subr.mxu1 %v16822_v7 }
0x1d4b   :  { %11233 = vmatpush3.msra.mxu1 %v7000_v16  ;;  %v6958_v16 = vld [vmem:[#allocation7 + $0x5e8] sm:$0xff] }
0x1d4c   :  { %11234 = vmatprep.subr.mxu1 %v16822_v7 }
0x1d4d   :  { %11235 = vmatpush3.msra.mxu1 %v6997_v28  ;;  %v6956_v28 = vld [vmem:[#allocation7 + $0x5d8] sm:$0xff] }
0x1d4e   :  { %11236 = vmatprep.subr.mxu1 %v16822_v7 }
0x1d4f   :  { %11237 = vmatpush3.msra.mxu1 %v6994_v20  ;;  %v6955_v20 = vld [vmem:[#allocation7 + $0x5d0] sm:$0xff] }
0x1d50   :  { %11238 = vmatprep.subr.mxu1 %v16822_v7 }
0x1d51   :  { %11239 = vmatpush3.msra.mxu1 %v6991_v47  ;;  %v6953_v47 = vld [vmem:[#allocation7 + $0x5c0] sm:$0xff] }
0x1d52   :  { %11240 = vmatprep.subr.mxu1 %v16822_v7 }
0x1d53   :  { %11241 = vmatpush3.msra.mxu1 %v6988_v50  ;;  %v6952_v50 = vld [vmem:[#allocation7 + $0x5b8] sm:$0xff] }
0x1d54   :  { %11242 = vmatprep.subr.mxu1 %v16822_v7 }
0x1d55   :  { %11243 = vmatpush3.msra.mxu1 %v6985_v29  ;;  %v6950_v29 = vld [vmem:[#allocation7 + $0x5a8] sm:$0xff] }
0x1d56   :  { %11244 = vmatprep.subr.mxu1 %v16822_v7 }
0x1d57   :  { %11245 = vmatpush3.msra.mxu1 %v6982_v13  ;;  %v6949_v13 = vld [vmem:[#allocation7 + $0x5a0] sm:$0xff] }
0x1d58   :  { %11246 = vmatprep.subr.mxu1 %v16822_v7 }
0x1d59   :  { %11247 = vmatpush3.msra.mxu1 %v6979_v11  ;;  %v6947_v11 = vld [vmem:[#allocation7 + $0x590] sm:$0xff] }
0x1d5a   :  { %11248 = vmatprep.subr.mxu1 %v16822_v7 }
0x1d5b   :  { %11249 = vmatpush3.msra.mxu1 %v6976_v55  ;;  %v6946_v55 = vld [vmem:[#allocation7 + $0x588] sm:$0xff] }
0x1d5c   :  { %11250 = vmatprep.subr.mxu1 %v16822_v7 }
0x1d5d   :  { %11251 = vmatpush3.msra.mxu1 %v6973_v53  ;;  %v6944_v53 = vld [vmem:[#allocation7 + $0x578] sm:$0xff] }
0x1d5e   :  { %11252 = vmatprep.subr.mxu1 %v16822_v7 }
0x1d5f   :  { %11253 = vmatpush3.msra.mxu1 %v6970_v36  ;;  %v6943_v36 = vld [vmem:[#allocation7 + $0x570] sm:$0xff] }
0x1d60   :  { %11254 = vmatprep.subr.mxu1 %v16822_v7 }
0x1d61   :  { %11255 = vmatpush3.msra.mxu1 %v6967_v27  ;;  %v6938_v27 = vld [vmem:[#allocation7 + $0x548] sm:$0xff] }
0x1d62   :  { %11256 = vmatprep.subr.mxu1 %v16822_v7 }
0x1d63   :  { %11257 = vmatpush3.msra.mxu1 %v6964_v42  ;;  %v6934_v42 = vld [vmem:[#allocation7 + $0x528] sm:$0xff] }
0x1d64   :  { %11266 = vmatprep.subr.mxu1 %v16822_v7 }
0x1e04   :  { %v6907_v5 = vpop.f32.mrf.mxu1 }
0x1e05   :  { %v6908_v30 = vadd.f32 %v9254_v59, %v6907_v5  ;;  %v6931_v59 = vld [vmem:[#allocation7 + $0x510] sm:$0xff]  ;;  %v6929_v5 = vld [vmem:[#allocation7 + $0x500] sm:$0xff] }
0x1e06   :  { %v11225_v44 = vpop.f32.mrf.mxu1 }
0x1e07   :  { %v15699_v49 = vadd.f32 %v12184_v58, %v6908_v30  ;;  %v6928_v30 = vld [vmem:[#allocation7 + $0x4f8] sm:$0xff]  ;;  %v6926_v44 = vld [vmem:[#allocation7 + $0x4e8] sm:$0xff]  ;;  %v6925_v58 = vld [vmem:[#allocation7 + $0x4e0] sm:$0xff] }
0x1e09   :  { %7128 = vmatmul.mubr.f32.vlgmr.msra.gmra.mxu0 %v15699_v49  ;;  %11259 = vmatmul.mubr.f32.vlgmr.msra.gmra.mxu1 %v15699_v49 }
0x1e0a   :  { %11267 = vmatpush3.msra.mxu1 %v6960_v24  ;;  %11298 = vmatprep.mubr.msk.f32.mxu1 %vm12483_vm0, %v16822_v7  ;;  %v6923_v24 = vld [vmem:[#allocation7 + $0x4d0] sm:$0xff] }
0x1e0b   :  { %11268 = vmatprep.subr.mxu1 %v16822_v7  ;;  %7268 = vmatprep.mubr.f32.mxu0 %v16822_v7 }
0x1e0c   :  { %11269 = vmatpush3.msra.mxu1 %v6957_v41  ;;  %v6922_v41 = vld [vmem:[#allocation7 + $0x4c8] sm:$0xff] }
0x1e0d   :  { %11270 = vmatprep.subr.mxu1 %v16822_v7 }
0x1e0e   :  { %11271 = vmatpush3.msra.mxu1 %v6954_v22 }
0x1e0f   :  { %11272 = vmatprep.subr.mxu1 %v16822_v7 }
0x1e10   :  { %11273 = vmatpush3.msra.mxu1 %v6951_v62  ;;  %v6920_v62 = vld [vmem:[#allocation7 + $0x4b8] sm:$0xff] }
0x1e11   :  { %11274 = vmatprep.subr.mxu1 %v16822_v7 }
0x1e12   :  { %11275 = vmatpush3.msra.mxu1 %v6948_v19  ;;  %v6919_v19 = vld [vmem:[#allocation7 + $0x4b0] sm:$0xff] }
0x1e13   :  { %11276 = vmatprep.subr.mxu1 %v16822_v7 }
0x1e14   :  { %11277 = vmatpush3.msra.mxu1 %v6945_v4 }
0x1e15   :  { %11278 = vmatprep.subr.mxu1 %v16822_v7 }
0x1e16   :  { %11279 = vmatpush3.msra.mxu1 %v6942_v15  ;;  %v6917_v15 = vld [vmem:[#allocation7 + $0x4a0] sm:$0xff] }
0x1e17   :  { %11280 = vmatprep.subr.mxu1 %v16822_v7 }
0x1e18   :  { %11281 = vmatpush3.msra.mxu1 %v6939_v25  ;;  %v6916_v25 = vld [vmem:[#allocation7 + $0x498] sm:$0xff] }
0x1e19   :  { %11282 = vmatprep.subr.mxu1 %v16822_v7 }
0x1e1a   :  { %11283 = vmatpush3.msra.mxu1 %v6936_v12  ;;  %v6914_v12 = vld [vmem:[#allocation7 + $0x488] sm:$0xff] }
0x1e1b   :  { %11284 = vmatprep.subr.mxu1 %v16822_v7 }
0x1e1c   :  { %11285 = vmatpush3.msra.mxu1 %v6933_v54  ;;  %v6913_v54 = vld [vmem:[#allocation7 + $0x480] sm:$0xff] }
0x1e1d   :  { %11286 = vmatprep.subr.mxu1 %v16822_v7 }
0x1e1e   :  { %11287 = vmatpush3.msra.mxu1 %v6930_v63  ;;  %v15834_v63 = vld [vmem:[#allocation12 + $0x5f0] sm:$0xff] }
0x1e1f   :  { %11288 = vmatprep.subr.mxu1 %v16822_v7  ;;  %16996 = vst [vmem:[#allocation35_spill] sm:$0xff] %v15834_v63 }
0x1e20   :  { %11289 = vmatpush3.msra.mxu1 %v6927_v56  ;;  %v15836_v56 = vld [vmem:[#allocation12 + $0x5e8] sm:$0xff] }
0x1e21   :  { %11290 = vmatprep.subr.mxu1 %v16822_v7 }
0x1e22   :  { %11291 = vmatpush3.msra.mxu1 %v6924_v2  ;;  %v15838_v2 = vld [vmem:[#allocation12 + $0x5d8] sm:$0xff] }
0x1e23   :  { %11292 = vmatprep.subr.mxu1 %v16822_v7 }
0x1e24   :  { %11293 = vmatpush3.msra.mxu1 %v6921_v43  ;;  %v15842_v43 = vld [vmem:[#allocation12 + $0x5d0] sm:$0xff] }
0x1e25   :  { %11294 = vmatprep.subr.mxu1 %v16822_v7 }
0x1e26   :  { %11295 = vmatpush3.msra.mxu1 %v6918_v52  ;;  %v15845_v52 = vld [vmem:[#allocation12 + $0x5c0] sm:$0xff] }
0x1e27   :  { %11296 = vmatprep.subr.mxu1 %v16822_v7 }
0x1e28   :  { %11297 = vmatpush3.msra.mxu1 %v6915_v60  ;;  %v15849_v60 = vld [vmem:[#allocation12 + $0x5b8] sm:$0xff] }
0x1e29   :  { %11299 = vmatmul.mubr.f32.vlgmr.msra.gmra.mxu1 %v15699_v49  ;;  %11301 = vmatprep.subr.mxu1 %v16822_v7 }
0x1e2a   :  { %11333 = vmatprep.mubr.msk.f32.mxu1 %vm12483_vm0, %v16822_v7  ;;  %11302 = vmatpush3.msra.mxu1 %v15725_v6 }
0x1e2b   :  { %11303 = vmatprep.subr.mxu1 %v16822_v7 }
0x1e2c   :  { %11304 = vmatpush3.msra.mxu1 %v15727_v23 }
0x1e2d   :  { %11305 = vmatprep.subr.mxu1 %v16822_v7 }
0x1e2e   :  { %11306 = vmatpush3.msra.mxu1 %v15731_v61 }
0x1e2f   :  { %11307 = vmatprep.subr.mxu1 %v16822_v7 }
0x1e30   :  { %11308 = vmatpush3.msra.mxu1 %v15735_v32 }
0x1e31   :  { %11309 = vmatprep.subr.mxu1 %v16822_v7 }
0x1e32   :  { %11310 = vmatpush3.msra.mxu1 %v15739_v37 }
0x1e33   :  { %11311 = vmatprep.subr.mxu1 %v16822_v7 }
0x1e34   :  { %11312 = vmatpush3.msra.mxu1 %v15743_v10 }
0x1e35   :  { %11313 = vmatprep.subr.mxu1 %v16822_v7 }
0x1e36   :  { %11314 = vmatpush3.msra.mxu1 %v15747_v33 }
0x1e37   :  { %11315 = vmatprep.subr.mxu1 %v16822_v7 }
0x1e38   :  { %11316 = vmatpush3.msra.mxu1 %v15751_v35 }
0x1e39   :  { %11317 = vmatprep.subr.mxu1 %v16822_v7 }
0x1e3a   :  { %11318 = vmatpush3.msra.mxu1 %v15755_v26 }
0x1e3b   :  { %11319 = vmatprep.subr.mxu1 %v16822_v7 }
0x1e3c   :  { %11320 = vmatpush3.msra.mxu1 %v15759_v14 }
0x1e3d   :  { %11321 = vmatprep.subr.mxu1 %v16822_v7 }
0x1e3e   :  { %11322 = vmatpush3.msra.mxu1 %v15763_v9 }
0x1e3f   :  { %11323 = vmatprep.subr.mxu1 %v16822_v7 }
0x1e40   :  { %11324 = vmatpush3.msra.mxu1 %v15767_v57 }
0x1e41   :  { %11325 = vmatprep.subr.mxu1 %v16822_v7 }
0x1e42   :  { %11326 = vmatpush3.msra.mxu1 %v15771_v48 }
0x1e43   :  { %11327 = vmatprep.subr.mxu1 %v16822_v7 }
0x1e44   :  { %11328 = vmatpush3.msra.mxu1 %v15775_v17 }
0x1e45   :  { %11329 = vmatprep.subr.mxu1 %v16822_v7 }
0x1e46   :  { %11330 = vmatpush3.msra.mxu1 %v15779_v51 }
0x1e47   :  { %11331 = vmatprep.subr.mxu1 %v16822_v7 }
0x1e48   :  { %11332 = vmatpush3.msra.mxu1 %v15783_v0 }
0x1e49   :  { %11334 = vmatmul.mubr.f32.vlgmr.msra.gmra.mxu1 %v16822_v7  ;;  %11336 = vmatprep.subr.mxu1 %v16822_v7 }
0x1e4a   :  { %11337 = vmatpush3.msra.mxu1 %v15725_v6  ;;  %11368 = vmatprep.mubr.msk.f32.mxu1 %vm12483_vm0, %v16822_v7 }
0x1e4b   :  { %11338 = vmatprep.subr.mxu1 %v16822_v7 }
0x1e4c   :  { %11339 = vmatpush3.msra.mxu1 %v15727_v23 }
0x1e4d   :  { %11340 = vmatprep.subr.mxu1 %v16822_v7 }
0x1e4e   :  { %11341 = vmatpush3.msra.mxu1 %v15731_v61 }
0x1e4f   :  { %11342 = vmatprep.subr.mxu1 %v16822_v7 }
0x1e50   :  { %11343 = vmatpush3.msra.mxu1 %v15735_v32 }
0x1e51   :  { %11344 = vmatprep.subr.mxu1 %v16822_v7 }
0x1e52   :  { %11345 = vmatpush3.msra.mxu1 %v15739_v37 }
0x1e53   :  { %11346 = vmatprep.subr.mxu1 %v16822_v7 }
0x1e54   :  { %11347 = vmatpush3.msra.mxu1 %v15743_v10 }
0x1e55   :  { %11348 = vmatprep.subr.mxu1 %v16822_v7 }
0x1e56   :  { %11349 = vmatpush3.msra.mxu1 %v15747_v33 }
0x1e57   :  { %11350 = vmatprep.subr.mxu1 %v16822_v7 }
0x1e58   :  { %11351 = vmatpush3.msra.mxu1 %v15751_v35 }
0x1e59   :  { %11352 = vmatprep.subr.mxu1 %v16822_v7 }
0x1e5a   :  { %11353 = vmatpush3.msra.mxu1 %v15755_v26 }
0x1e5b   :  { %11354 = vmatprep.subr.mxu1 %v16822_v7 }
0x1e5c   :  { %11355 = vmatpush3.msra.mxu1 %v15759_v14 }
0x1e5d   :  { %11356 = vmatprep.subr.mxu1 %v16822_v7 }
0x1e5e   :  { %11357 = vmatpush3.msra.mxu1 %v15763_v9 }
0x1e5f   :  { %11358 = vmatprep.subr.mxu1 %v16822_v7 }
0x1e60   :  { %11359 = vmatpush3.msra.mxu1 %v15767_v57 }
0x1e61   :  { %11360 = vmatprep.subr.mxu1 %v16822_v7 }
0x1e62   :  { %11361 = vmatpush3.msra.mxu1 %v15771_v48 }
0x1e63   :  { %11362 = vmatprep.subr.mxu1 %v16822_v7 }
0x1e64   :  { %11363 = vmatpush3.msra.mxu1 %v15775_v17  ;;  %v17005_v17 = vld [vmem:[#allocation48_spill] sm:$0xff] }
0x1e65   :  { %11364 = vmatprep.subr.mxu1 %v16822_v7 }
0x1e66   :  { %11365 = vmatpush3.msra.mxu1 %v15779_v51 }
0x1e67   :  { %11366 = vmatprep.subr.mxu1 %v16822_v7 }
0x1e68   :  { %11367 = vmatpush3.msra.mxu1 %v15783_v0 }
0x1e69   :  { %11371 = vmatprep.subr.mxu1 %v16822_v7 }
0x1ec9   :  { %v7129_v1 = vpop.f32.mrf.mxu0  ;;  %v7200_v38 = vpop.f32.mrf.mxu1 }
0x1ecb   :  { %v7131_v31 = vpop.f32.mrf.mxu0  ;;  %v11260_v21 = vpop.f32.mrf.mxu1 }
0x1ecc   :  { %7234 = vmatprep.subr.mxu0 %v7131_v31  ;;  %v15861_v31 = vld [vmem:[#allocation12 + $0x588] sm:$0xff]  ;;  %v15864_v21 = vld [vmem:[#allocation12 + $0x578] sm:$0xff] }
0x1ecd   :  { %7235 = vmatpush1.msra.mxu0 %v7129_v1  ;;  %v15852_v1 = vld [vmem:[#allocation12 + $0x5a8] sm:$0xff] }
0x1ece   :  { %9255 = vmatmul.mubr.msk.f32.vlgmr.msra.gmra.mxu0 %vm476_vm2, %v16990_v18  ;;  %11261 = vmatprep.subr.mxu0 %v16822_v7 }
0x1ecf   :  { %11262 = vmatpush3.msra.mxu0 %v7200_v38  ;;  %11263 = vmatprep.mubr.msk.f32.mxu0 %vm12483_vm0, %v16822_v7  ;;  %v15858_v38 = vld [vmem:[#allocation12 + $0x590] sm:$0xff] }
0x1ed0   :  { %7345 = vmatprep.subr.mxu0 %v6959_v34  ;;  %v15867_v34 = vld [vmem:[#allocation12 + $0x570] sm:$0xff] }
0x1ed2   :  { %11264 = vmatmul.mubr.msk.f32.vlgmr.msra.gmra.mxu0 %vm476_vm2, %v16990_v18 }
0x1ed3   :  { %7346 = vmatpush1.msra.mxu0 %v6958_v16  ;;  %7409 = vmatprep.mubr.f32.mxu0 %v16822_v7  ;;  %v15870_v16 = vld [vmem:[#allocation12 + $0x560] sm:$0xff] }
0x1ed4   :  { %7347 = vmatprep.subr.mxu0 %v6956_v28  ;;  %v15873_v28 = vld [vmem:[#allocation12 + $0x558] sm:$0xff] }
0x1ed5   :  { %7348 = vmatpush1.msra.mxu0 %v6955_v20  ;;  %v15876_v20 = vld [vmem:[#allocation12 + $0x548] sm:$0xff] }
0x1ed6   :  { %7349 = vmatprep.subr.mxu0 %v6953_v47  ;;  %v15879_v47 = vld [vmem:[#allocation12 + $0x540] sm:$0xff] }
0x1ed7   :  { %7350 = vmatpush1.msra.mxu0 %v6952_v50  ;;  %v15882_v50 = vld [vmem:[#allocation12 + $0x530] sm:$0xff] }
0x1ed8   :  { %7351 = vmatprep.subr.mxu0 %v6950_v29  ;;  %v15885_v29 = vld [vmem:[#allocation12 + $0x528] sm:$0xff] }
0x1ed9   :  { %7352 = vmatpush1.msra.mxu0 %v6949_v13  ;;  %v15888_v13 = vld [vmem:[#allocation12 + $0x518] sm:$0xff] }
0x1eda   :  { %7353 = vmatprep.subr.mxu0 %v6947_v11  ;;  %v15891_v11 = vld [vmem:[#allocation12 + $0x510] sm:$0xff] }
0x1edb   :  { %7354 = vmatpush1.msra.mxu0 %v6946_v55  ;;  %v15894_v55 = vld [vmem:[#allocation12 + $0x500] sm:$0xff] }
0x1edc   :  { %7355 = vmatprep.subr.mxu0 %v6944_v53  ;;  %v15897_v53 = vld [vmem:[#allocation12 + $0x4f8] sm:$0xff] }
0x1edd   :  { %7356 = vmatpush1.msra.mxu0 %v6943_v36  ;;  %v15900_v36 = vld [vmem:[#allocation12 + $0x4e8] sm:$0xff] }
0x1ede   :  { %7357 = vmatprep.subr.mxu0 %v6941_v8  ;;  %v15903_v8 = vld [vmem:[#allocation12 + $0x4e0] sm:$0xff] }
0x1edf   :  { %7358 = vmatpush1.msra.mxu0 %v6940_v45  ;;  %v15906_v45 = vld [vmem:[#allocation12 + $0x4d0] sm:$0xff] }
0x1ee0   :  { %7359 = vmatprep.subr.mxu0 %v6938_v27  ;;  %v15909_v27 = vld [vmem:[#allocation12 + $0x4c8] sm:$0xff] }
0x1ee1   :  { %7360 = vmatpush1.msra.mxu0 %v6937_v3  ;;  %v15912_v3 = vld [vmem:[#allocation12 + $0x4b8] sm:$0xff] }
0x1ee2   :  { %7361 = vmatprep.subr.mxu0 %v6935_v40  ;;  %v15915_v40 = vld [vmem:[#allocation12 + $0x4b0] sm:$0xff] }
0x1ee3   :  { %7362 = vmatpush1.msra.mxu0 %v6934_v42  ;;  %16997 = vst [vmem:[#allocation34_spill] sm:$0xff] %v15915_v40  ;;  %v15918_v42 = vld [vmem:[#allocation12 + $0x4a0] sm:$0xff] }
0x1ee4   :  { %7363 = vmatprep.subr.mxu0 %v6932_v39  ;;  %16998 = vst [vmem:[#allocation46_spill] sm:$0xff] %v15918_v42  ;;  %v15921_v39 = vld [vmem:[#allocation12 + $0x498] sm:$0xff] }
0x1ee5   :  { %7364 = vmatpush1.msra.mxu0 %v6931_v59  ;;  %16999 = vst [vmem:[#allocation36_spill] sm:$0xff] %v15921_v39  ;;  %v15924_v59 = vld [vmem:[#allocation12 + $0x488] sm:$0xff] }
0x1ee6   :  { %7365 = vmatprep.subr.mxu0 %v6929_v5  ;;  %17000 = vst [vmem:[#allocation44_spill] sm:$0xff] %v15924_v59  ;;  %v15927_v5 = vld [vmem:[#allocation12 + $0x480] sm:$0xff] }
0x1ee7   :  { %7366 = vmatpush1.msra.mxu0 %v6928_v30  ;;  %17001 = vst [vmem:[#allocation47_spill] sm:$0xff] %v15927_v5 }
0x1ee8   :  { %7367 = vmatprep.subr.mxu0 %v6926_v44 }
0x1ee9   :  { %7368 = vmatpush1.msra.mxu0 %v6925_v58  ;;  %v15832_v22 = vpop.f32.mrf.mxu1 }
0x1eea   :  { %7369 = vmatprep.subr.mxu0 %v6923_v24 }
0x1eeb   :  { %7370 = vmatpush1.msra.mxu0 %v6922_v41  ;;  %v11300_v4 = vpop.f32.mrf.mxu1 }
0x1eec   :  { %7371 = vmatprep.subr.mxu0 %v6920_v62  ;;  %v7062_v4 = vld [vmem:[#allocation15 + $0x9] sm:$0x7] }
0x1eed   :  { %7372 = vmatpush1.msra.mxu0 %v6919_v19 }
0x1eee   :  { %7373 = vmatprep.subr.mxu0 %v6917_v15  ;;  %v7060_v15 = vld [vmem:[#allocation13 + $0x9] sm:$0x7] }
0x1eef   :  { %7374 = vmatpush1.msra.mxu0 %v6916_v25 }
0x1ef0   :  { %7375 = vmatprep.subr.mxu0 %v6914_v12  ;;  %v17002_v12 = vld [vmem:[#allocation42_spill] sm:$0xff] }
0x1ef1   :  { %7376 = vmatpush1.msra.mxu0 %v6913_v54  ;;  %v7490_v54 = vrot.slane %v7060_v15, %v17002_v12  ;;  %v15969_v46 = vrot.slane %v7062_v4, %v17002_v12 }
0x1ef2   :  { %7410 = vmatmul.mubr.f32.vlgmr.msra.gmra.mxu0 %v15699_v49  ;;  %7521 = vmatprep.subr.mxu0 %v15834_v63  ;;  %v15855_v49 = vld [vmem:[#allocation12 + $0x5a0] sm:$0xff] }
0x1ef3   :  { %7522 = vmatpush1.msra.mxu0 %v15836_v56  ;;  %7585 = vmatprep.mubr.f32.mxu0 %v16822_v7  ;;  %17003 = vst [vmem:[#allocation33_spill] sm:$0xff] %v15969_v46 }
0x1ef4   :  { %7523 = vmatprep.subr.mxu0 %v15838_v2 }
0x1ef5   :  { %7524 = vmatpush1.msra.mxu0 %v15842_v43 }
0x1ef6   :  { %7525 = vmatprep.subr.mxu0 %v15845_v52 }
0x1ef7   :  { %7526 = vmatpush1.msra.mxu0 %v15849_v60 }
0x1ef8   :  { %7527 = vmatprep.subr.mxu0 %v15852_v1 }
0x1ef9   :  { %7528 = vmatpush1.msra.mxu0 %v15855_v49 }
0x1efa   :  { %7529 = vmatprep.subr.mxu0 %v15858_v38 }
0x1efb   :  { %7530 = vmatpush1.msra.mxu0 %v15861_v31 }
0x1efc   :  { %7531 = vmatprep.subr.mxu0 %v15864_v21 }
0x1efd   :  { %7532 = vmatpush1.msra.mxu0 %v15867_v34 }
0x1efe   :  { %7533 = vmatprep.subr.mxu0 %v15870_v16 }
0x1eff   :  { %7534 = vmatpush1.msra.mxu0 %v15873_v28 }
0x1f00   :  { %7535 = vmatprep.subr.mxu0 %v15876_v20 }
0x1f01   :  { %7536 = vmatpush1.msra.mxu0 %v15879_v47 }
0x1f02   :  { %7537 = vmatprep.subr.mxu0 %v15882_v50 }
0x1f03   :  { %7538 = vmatpush1.msra.mxu0 %v15885_v29 }
0x1f04   :  { %7539 = vmatprep.subr.mxu0 %v15888_v13 }
0x1f05   :  { %7540 = vmatpush1.msra.mxu0 %v15891_v11 }
0x1f06   :  { %7541 = vmatprep.subr.mxu0 %v15894_v55 }
0x1f07   :  { %7542 = vmatpush1.msra.mxu0 %v15897_v53 }
0x1f08   :  { %7543 = vmatprep.subr.mxu0 %v15900_v36 }
0x1f09   :  { %7544 = vmatpush1.msra.mxu0 %v15903_v8  ;;  %v7658_v30 = vpop.f32.mrf.mxu1 }
0x1f0a   :  { %7545 = vmatprep.subr.mxu0 %v15906_v45 }
0x1f0b   :  { %7546 = vmatpush1.msra.mxu0 %v15909_v27  ;;  %v11335_v44 = vpop.f32.mrf.mxu1 }
0x1f0c   :  { %7547 = vmatprep.subr.mxu0 %v15912_v3  ;;  %v17004_v44 = vld [vmem:[#allocation45_spill] sm:$0xff] }
0x1f0d   :  { %7548 = vmatpush1.msra.mxu0 %v15915_v40 }
0x1f0e   :  { %7549 = vmatprep.subr.mxu0 %v15918_v42 }
0x1f0f   :  { %7550 = vmatpush1.msra.mxu0 %v15921_v39 }
0x1f10   :  { %7551 = vmatprep.subr.mxu0 %v15924_v59 }
0x1f11   :  { %7552 = vmatpush1.msra.mxu0 %v15927_v5 }
0x1f12   :  { %7586 = vmatmul.mubr.f32.vlgmr.msra.gmra.mxu0 %v16822_v7  ;;  %7684 = vmatprep.subr.mxu0 %v15834_v63 }
0x1f13   :  { %7685 = vmatpush1.msra.mxu0 %v15836_v56  ;;  %7748 = vmatprep.mubr.f32.mxu0 %v16822_v7 }
0x1f14   :  { %7686 = vmatprep.subr.mxu0 %v15838_v2 }
0x1f15   :  { %7687 = vmatpush1.msra.mxu0 %v15842_v43 }
0x1f16   :  { %7688 = vmatprep.subr.mxu0 %v15845_v52 }
0x1f17   :  { %7689 = vmatpush1.msra.mxu0 %v15849_v60 }
0x1f18   :  { %7690 = vmatprep.subr.mxu0 %v15852_v1 }
0x1f19   :  { %7691 = vmatpush1.msra.mxu0 %v15855_v49 }
0x1f1a   :  { %7692 = vmatprep.subr.mxu0 %v15858_v38 }
0x1f1b   :  { %7693 = vmatpush1.msra.mxu0 %v15861_v31 }
0x1f1c   :  { %7694 = vmatprep.subr.mxu0 %v15864_v21 }
0x1f1d   :  { %7695 = vmatpush1.msra.mxu0 %v15867_v34 }
0x1f1e   :  { %7696 = vmatprep.subr.mxu0 %v15870_v16 }
0x1f1f   :  { %7697 = vmatpush1.msra.mxu0 %v15873_v28 }
0x1f20   :  { %7698 = vmatprep.subr.mxu0 %v15876_v20 }
0x1f21   :  { %7699 = vmatpush1.msra.mxu0 %v15879_v47 }
0x1f22   :  { %7700 = vmatprep.subr.mxu0 %v15882_v50 }
0x1f23   :  { %7701 = vmatpush1.msra.mxu0 %v15885_v29 }
0x1f24   :  { %7702 = vmatprep.subr.mxu0 %v15888_v13 }
0x1f25   :  { %7703 = vmatpush1.msra.mxu0 %v15891_v11 }
0x1f26   :  { %7704 = vmatprep.subr.mxu0 %v15894_v55 }
0x1f27   :  { %7705 = vmatpush1.msra.mxu0 %v15897_v53 }
0x1f28   :  { %7706 = vmatprep.subr.mxu0 %v15900_v36 }
0x1f29   :  { %7707 = vmatpush1.msra.mxu0 %v15903_v8 }
0x1f2a   :  { %7708 = vmatprep.subr.mxu0 %v15906_v45 }
0x1f2b   :  { %7709 = vmatpush1.msra.mxu0 %v15909_v27 }
0x1f2c   :  { %7710 = vmatprep.subr.mxu0 %v15912_v3 }
0x1f2d   :  { %7711 = vmatpush1.msra.mxu0 %v15915_v40  ;;  %v15984_v40 = vrot.slane %v7062_v4, %v17005_v17 }
0x1f2e   :  { %7712 = vmatprep.subr.mxu0 %v15918_v42 }
0x1f2f   :  { %7713 = vmatpush1.msra.mxu0 %v15921_v39  ;;  %v7494_v39 = vrot.slane %v7060_v15, %v17004_v44 }
0x1f30   :  { %7714 = vmatprep.subr.mxu0 %v15924_v59  ;;  %v15975_v59 = vrot.slane %v7062_v4, %v17004_v44 }
0x1f31   :  { %7715 = vmatpush1.msra.mxu0 %v15927_v5 }
0x1f32   :  { %7862 = vmatprep.subr.mxu0 %v15834_v63 }
0x1f8e   :  { %v7270_v58 = vpop.f32.mrf.mxu0 }
0x1f90   :  { %v7272_v24 = vpop.f32.mrf.mxu0 }
0x1f92   :  { %v7341_v41 = vpop.f32.mrf.mxu0 }
0x1f94   :  { %v11265_v62 = vpop.f32.mrf.mxu0 }
0x1fb2   :  { %v7411_v19 = vpop.f32.mrf.mxu0 }
0x1fb3   :  { %v7412_v25 = vadd.f32 %v7411_v19, %v7270_v58 }
0x1fb4   :  { %v7413_v18 = vpop.f32.mrf.mxu0 }
0x1fb5   :  { %v15971_v5 = vadd.f32 %v7490_v54, %v7412_v25  ;;  %v7414_v62 = vadd.f32 %v7413_v18, %v7272_v24  ;;  %v7483_v24 = vadd.f32 %v15832_v22, %v7341_v41  ;;  %v17007_v22 = vld [vmem:[#allocation50_spill] sm:$0xff]  ;;  %v17009_v41 = vld [vmem:[#allocation36_spill] sm:$0xff] }
0x1fb7   :  { %v15980_v12 = vadd.f32 %v7494_v39, %v7414_v62 }
0x1fd2   :  { %v7587_v0 = vpop.f32.mrf.mxu0 }
0x1fd3   :  { %v7588_v63 = vadd.f32 %v7587_v0, %v15969_v46 }
0x1fd4   :  { %v7589_v51 = vpop.f32.mrf.mxu0 }
0x1fd5   :  { %v7662_v58 = vadd.f32 %v7588_v63, %v15971_v5  ;;  %v7590_v42 = vadd.f32 %v7589_v51, %v15975_v59  ;;  %v7498_v63 = vrot.slane %v7060_v15, %v17005_v17  ;;  %v7659_v51 = vadd.f32 %v7658_v30, %v15984_v40  ;;  %v17006_v17 = vld [vmem:[#allocation34_spill] sm:$0xff]  ;;  %v17010_v15 = vld [vmem:[#allocation40_spill] sm:$0xff] }
0x1fd6   :  { %v17008_v30 = vld [vmem:[#allocation46_spill] sm:$0xff] }
0x1fd7   :  { %v9257_v19 = vmul.f32 -1.442695, %v7662_v58  ;;  %v7669_v25 = vadd.f32 %v7590_v42, %v15980_v12  ;;  %v15989_v62 = vadd.f32 %v7498_v63, %v7483_v24  ;;  %v17012_v24 = vld [vmem:[#allocation47_spill] sm:$0xff] }
0x1fd8   :  { %v17013_v63 = vld [vmem:[#allocation51_spill] sm:$0xff] }
0x1fd9   :  { %11941 = vpow2.f32 %v9257_v19  ;;  %v9258_v54 = vmul.f32 -1.442695, %v7669_v25 }
0x1fdb   :  { %11943 = vpow2.f32 %v9258_v54 }
0x1fe6   :  { %v11942_v0 = vpop.eup %11941 }
0x1fe7   :  { %v7666_v46 = vadd.f32 1.0, %v11942_v0 }
0x1fe8   :  { %v11944_v18 = vpop.eup %11943 }
0x1fe9   :  { %11945 = vrcp.f32 %v7666_v46  ;;  %v7673_v44 = vadd.f32 1.0, %v11944_v18  ;;  %v17011_v18 = vld [vmem:[#allocation44_spill] sm:$0xff] }
0x1feb   :  { %11947 = vrcp.f32 %v7673_v44  ;;  %v17014_v44 = vld [vmem:[#allocation35_spill] sm:$0xff] }
0x1ff6   :  { %v11946_v39 = vpop.eup %11945 }
0x1ff7   :  { %v7676_v42 = vmul.f32 %v11946_v39, %v7659_v51 }
0x1ff8   :  { %v11948_v46 = vpop.eup %11947 }
0x1ff9   :  { %v7677_v58 = vadd.f32 %v7676_v42, %v15989_v62  ;;  %v7679_v19 = vsub.f32 1.0, %v11948_v46  ;;  %v7681_v54 = vmul.f32 0.0, %v11948_v46  ;;  %v17015_v42 = vld [vmem:[#allocation33_spill] sm:$0xff] }
0x1ffb   :  { %11949 = vtanh.f32 %v7677_v58 }
0x2008   :  { %v11950_v4 = vpop.eup %11949 }
0x2009   :  { %v7680_v25 = vmul.f32 %v11950_v4, %v7679_v19 }
0x200b   :  { %v15992_v0 = vadd.f32 %v7681_v54, %v7680_v25 }
0x200d   :  { %7683 = vst [vmem:[#allocation5] sm:$0x1] %v15992_v0  ;;  %7749 = vmatmul.mubr.f32.vlgmr.msra.gmra.mxu0 %v15992_v0  ;;  %11369 = vmatmul.mubr.f32.vlgmr.msra.gmra.mxu1 %v15992_v0 }
0x200e   :  { %7863 = vmatpush1.msra.mxu0 %v15836_v56  ;;  %11372 = vmatpush3.msra.mxu1 %v15725_v6 }
0x200f   :  { %7864 = vmatprep.subr.mxu0 %v15838_v2  ;;  %11373 = vmatprep.subr.mxu1 %v16822_v7 }
0x2010   :  { %7865 = vmatpush1.msra.mxu0 %v15842_v43  ;;  %11374 = vmatpush3.msra.mxu1 %v15727_v23 }
0x2011   :  { %7866 = vmatprep.subr.mxu0 %v15845_v52  ;;  %11375 = vmatprep.subr.mxu1 %v16822_v7 }
0x2012   :  { %7867 = vmatpush1.msra.mxu0 %v15849_v60  ;;  %11376 = vmatpush3.msra.mxu1 %v15731_v61 }
0x2013   :  { %7868 = vmatprep.subr.mxu0 %v15852_v1  ;;  %11377 = vmatprep.subr.mxu1 %v16822_v7 }
0x2014   :  { %7869 = vmatpush1.msra.mxu0 %v15855_v49  ;;  %11378 = vmatpush3.msra.mxu1 %v15735_v32 }
0x2015   :  { %7870 = vmatprep.subr.mxu0 %v15858_v38  ;;  %11379 = vmatprep.subr.mxu1 %v16822_v7 }
0x2016   :  { %7871 = vmatpush1.msra.mxu0 %v15861_v31  ;;  %11380 = vmatpush3.msra.mxu1 %v15739_v37 }
0x2017   :  { %7872 = vmatprep.subr.mxu0 %v15864_v21  ;;  %11381 = vmatprep.subr.mxu1 %v16822_v7 }
0x2018   :  { %7873 = vmatpush1.msra.mxu0 %v15867_v34  ;;  %11382 = vmatpush3.msra.mxu1 %v15743_v10 }
0x2019   :  { %7874 = vmatprep.subr.mxu0 %v15870_v16  ;;  %11383 = vmatprep.subr.mxu1 %v16822_v7 }
0x201a   :  { %7875 = vmatpush1.msra.mxu0 %v15873_v28  ;;  %11384 = vmatpush3.msra.mxu1 %v15747_v33 }
0x201b   :  { %7876 = vmatprep.subr.mxu0 %v15876_v20  ;;  %11385 = vmatprep.subr.mxu1 %v16822_v7 }
0x201c   :  { %7877 = vmatpush1.msra.mxu0 %v15879_v47  ;;  %11386 = vmatpush3.msra.mxu1 %v15751_v35 }
0x201d   :  { %7878 = vmatprep.subr.mxu0 %v15882_v50  ;;  %11387 = vmatprep.subr.mxu1 %v16822_v7 }
0x201e   :  { %7879 = vmatpush1.msra.mxu0 %v15885_v29  ;;  %11388 = vmatpush3.msra.mxu1 %v15755_v26 }
0x201f   :  { %7880 = vmatprep.subr.mxu0 %v15888_v13  ;;  %11389 = vmatprep.subr.mxu1 %v16822_v7 }
0x2020   :  { %7881 = vmatpush1.msra.mxu0 %v15891_v11  ;;  %11390 = vmatpush3.msra.mxu1 %v15759_v14 }
0x2021   :  { %7882 = vmatprep.subr.mxu0 %v15894_v55  ;;  %11391 = vmatprep.subr.mxu1 %v16822_v7 }
0x2022   :  { %7883 = vmatpush1.msra.mxu0 %v15897_v53  ;;  %11392 = vmatpush3.msra.mxu1 %v15763_v9 }
0x2023   :  { %7884 = vmatprep.subr.mxu0 %v15900_v36  ;;  %11393 = vmatprep.subr.mxu1 %v16822_v7 }
0x2024   :  { %7885 = vmatpush1.msra.mxu0 %v15903_v8  ;;  %11394 = vmatpush3.msra.mxu1 %v15767_v57 }
0x2025   :  { %7886 = vmatprep.subr.mxu0 %v15906_v45  ;;  %11395 = vmatprep.subr.mxu1 %v16822_v7 }
0x2026   :  { %7887 = vmatpush1.msra.mxu0 %v15909_v27  ;;  %11396 = vmatpush3.msra.mxu1 %v15771_v48 }
0x2027   :  { %7888 = vmatprep.subr.mxu0 %v15912_v3  ;;  %11397 = vmatprep.subr.mxu1 %v16822_v7 }
0x2028   :  { %7889 = vmatpush1.msra.mxu0 %v17006_v17  ;;  %11398 = vmatpush3.msra.mxu1 %v17007_v22 }
0x2029   :  { %7890 = vmatprep.subr.mxu0 %v17008_v30  ;;  %11399 = vmatprep.subr.mxu1 %v16822_v7 }
0x202a   :  { %7891 = vmatpush1.msra.mxu0 %v17009_v41  ;;  %11400 = vmatpush3.msra.mxu1 %v17010_v15 }
0x202b   :  { %7892 = vmatprep.subr.mxu0 %v17011_v18  ;;  %11401 = vmatprep.subr.mxu1 %v16822_v7 }
0x202c   :  { %7893 = vmatpush1.msra.mxu0 %v17012_v24  ;;  %7926 = vmatprep.mubr.f32.mxu0 %v16822_v7 }
0x202d   :  { %11402 = vmatpush3.msra.mxu1 %v17013_v63  ;;  %11403 = vmatprep.mubr.msk.f32.mxu1 %vm12483_vm0, %v16822_v7 }
0x202e   :  { %8039 = vmatprep.subr.mxu0 %v17014_v44  ;;  %11406 = vmatprep.subr.mxu1 %v16822_v7 }
0x20cd   :  { %v7750_v51 = vpop.f32.mrf.mxu0  ;;  %v7821_v39 = vpop.f32.mrf.mxu1 }
0x20ce   :  { %v7751_v58 = vadd.f32 %v7750_v51, %v17015_v42  ;;  %v7822_v51 = vadd.f32 %v7821_v39, %v15984_v40 }
0x20cf   :  { %v7752_v46 = vpop.f32.mrf.mxu0  ;;  %v11370_v19 = vpop.f32.mrf.mxu1 }
0x20d0   :  { %v7826_v4 = vrot.slane %v7751_v58, 7  ;;  %v7753_v25 = vadd.f32 %v7752_v46, %v15975_v59  ;;  %v7846_v19 = vrot.slane %v7822_v51, 7 }
0x20d2   :  { %v7828_v54 = vadd.f32 %v7826_v4, %v15971_v5  ;;  %v7836_v63 = vrot.slane %v7753_v25, 7 }
0x20d4   :  { %v9259_v24 = vmul.f32 -1.442695, %v7828_v54  ;;  %v7838_v18 = vadd.f32 %v7836_v63, %v15980_v12 }
0x20d6   :  { %11951 = vpow2.f32 %v9259_v24  ;;  %v9260_v15 = vmul.f32 -1.442695, %v7838_v18  ;;  %v7854_v24 = vrot.slane %v15992_v0, 7 }
0x20d8   :  { %11953 = vpow2.f32 %v9260_v15 }
0x20e3   :  { %v11952_v44 = vpop.eup %11951 }
0x20e4   :  { %v7832_v41 = vadd.f32 1.0, %v11952_v44 }
0x20e5   :  { %v11954_v30 = vpop.eup %11953 }
0x20e6   :  { %11955 = vrcp.f32 %v7832_v41  ;;  %v7842_v42 = vadd.f32 1.0, %v11954_v30 }
0x20e8   :  { %11957 = vrcp.f32 %v7842_v42 }
0x20f3   :  { %v11956_v58 = vpop.eup %11955 }
0x20f4   :  { %v7848_v22 = vmul.f32 %v11956_v58, %v7846_v19 }
0x20f5   :  { %v11958_v4 = vpop.eup %11957 }
0x20f6   :  { %v7849_v46 = vadd.f32 %v7848_v22, %v15989_v62  ;;  %v7851_v63 = vsub.f32 1.0, %v11958_v4  ;;  %v7856_v25 = vmul.f32 %v11958_v4, %v7854_v24 }
0x20f8   :  { %11959 = vtanh.f32 %v7849_v46 }
0x2105   :  { %v11960_v18 = vpop.eup %11959 }
0x2106   :  { %v7852_v15 = vmul.f32 %v11960_v18, %v7851_v63 }
0x2108   :  { %v16071_v44 = vadd.f32 %v7856_v25, %v7852_v15 }
0x210a   :  { %7858 = vst [vmem:[#allocation5] sm:$0x2] %v16071_v44  ;;  %v7860_v30 = vrot.slane %v16071_v44, 1 }
0x210c   :  { %7927 = vmatmul.mubr.f32.vlgmr.msra.gmra.mxu0 %v7860_v30  ;;  %11404 = vmatmul.mubr.f32.vlgmr.msra.gmra.mxu1 %v7860_v30 }
0x210d   :  { %8040 = vmatpush1.msra.mxu0 %v15836_v56  ;;  %11407 = vmatpush3.msra.mxu1 %v15725_v6  ;;  %v17016_v6 = vld [vmem:[#allocation50_spill] sm:$0xff] }
0x210e   :  { %8041 = vmatprep.subr.mxu0 %v15838_v2  ;;  %11408 = vmatprep.subr.mxu1 %v16822_v7 }
0x210f   :  { %8042 = vmatpush1.msra.mxu0 %v15842_v43  ;;  %11409 = vmatpush3.msra.mxu1 %v15727_v23  ;;  %v17017_v23 = vld [vmem:[#allocation46_spill] sm:$0xff] }
0x2110   :  { %8043 = vmatprep.subr.mxu0 %v15845_v52  ;;  %11410 = vmatprep.subr.mxu1 %v16822_v7 }
0x2111   :  { %8044 = vmatpush1.msra.mxu0 %v15849_v60  ;;  %11411 = vmatpush3.msra.mxu1 %v15731_v61  ;;  %v17018_v61 = vld [vmem:[#allocation36_spill] sm:$0xff] }
0x2112   :  { %8045 = vmatprep.subr.mxu0 %v15852_v1  ;;  %11412 = vmatprep.subr.mxu1 %v16822_v7 }
0x2113   :  { %8046 = vmatpush1.msra.mxu0 %v15855_v49  ;;  %11413 = vmatpush3.msra.mxu1 %v15735_v32  ;;  %v17019_v32 = vld [vmem:[#allocation40_spill] sm:$0xff] }
0x2114   :  { %8047 = vmatprep.subr.mxu0 %v15858_v38  ;;  %11414 = vmatprep.subr.mxu1 %v16822_v7 }
0x2115   :  { %8048 = vmatpush1.msra.mxu0 %v15861_v31  ;;  %11415 = vmatpush3.msra.mxu1 %v15739_v37  ;;  %v17020_v37 = vld [vmem:[#allocation44_spill] sm:$0xff] }
0x2116   :  { %8049 = vmatprep.subr.mxu0 %v15864_v21  ;;  %11416 = vmatprep.subr.mxu1 %v16822_v7 }
0x2117   :  { %8050 = vmatpush1.msra.mxu0 %v15867_v34  ;;  %11417 = vmatpush3.msra.mxu1 %v15743_v10  ;;  %v17021_v10 = vld [vmem:[#allocation47_spill] sm:$0xff] }
0x2118   :  { %8051 = vmatprep.subr.mxu0 %v15870_v16  ;;  %11418 = vmatprep.subr.mxu1 %v16822_v7 }
0x2119   :  { %8052 = vmatpush1.msra.mxu0 %v15873_v28  ;;  %11419 = vmatpush3.msra.mxu1 %v15747_v33  ;;  %v17022_v33 = vld [vmem:[#allocation51_spill] sm:$0xff] }
0x211a   :  { %8053 = vmatprep.subr.mxu0 %v15876_v20  ;;  %11420 = vmatprep.subr.mxu1 %v16822_v7 }
0x211b   :  { %8054 = vmatpush1.msra.mxu0 %v15879_v47  ;;  %11421 = vmatpush3.msra.mxu1 %v15751_v35  ;;  %v17023_v35 = vld [vmem:[#allocation35_spill] sm:$0xff] }
0x211c   :  { %8055 = vmatprep.subr.mxu0 %v15882_v50  ;;  %11422 = vmatprep.subr.mxu1 %v16822_v7 }
0x211d   :  { %8056 = vmatpush1.msra.mxu0 %v15885_v29  ;;  %11423 = vmatpush3.msra.mxu1 %v15755_v26 }
0x211e   :  { %8057 = vmatprep.subr.mxu0 %v15888_v13  ;;  %11424 = vmatprep.subr.mxu1 %v16822_v7 }
0x211f   :  { %8058 = vmatpush1.msra.mxu0 %v15891_v11  ;;  %11425 = vmatpush3.msra.mxu1 %v15759_v14 }
0x2120   :  { %8059 = vmatprep.subr.mxu0 %v15894_v55  ;;  %11426 = vmatprep.subr.mxu1 %v16822_v7 }
0x2121   :  { %8060 = vmatpush1.msra.mxu0 %v15897_v53  ;;  %11427 = vmatpush3.msra.mxu1 %v15763_v9  ;;  %v17024_v9 = vld [vmem:[#allocation33_spill] sm:$0xff] }
0x2122   :  { %8061 = vmatprep.subr.mxu0 %v15900_v36  ;;  %11428 = vmatprep.subr.mxu1 %v16822_v7 }
0x2123   :  { %8062 = vmatpush1.msra.mxu0 %v15903_v8  ;;  %11429 = vmatpush3.msra.mxu1 %v15767_v57 }
0x2124   :  { %8063 = vmatprep.subr.mxu0 %v15906_v45  ;;  %11430 = vmatprep.subr.mxu1 %v16822_v7 }
0x2125   :  { %8064 = vmatpush1.msra.mxu0 %v15909_v27  ;;  %11431 = vmatpush3.msra.mxu1 %v15771_v48 }
0x2126   :  { %8065 = vmatprep.subr.mxu0 %v15912_v3  ;;  %11432 = vmatprep.subr.mxu1 %v16822_v7 }
0x2127   :  { %8066 = vmatpush1.msra.mxu0 %v17006_v17  ;;  %11433 = vmatpush3.msra.mxu1 %v17016_v6 }
0x2128   :  { %8067 = vmatprep.subr.mxu0 %v17017_v23  ;;  %11434 = vmatprep.subr.mxu1 %v16822_v7 }
0x2129   :  { %8068 = vmatpush1.msra.mxu0 %v17018_v61  ;;  %11435 = vmatpush3.msra.mxu1 %v17019_v32 }
0x212a   :  { %8069 = vmatprep.subr.mxu0 %v17020_v37  ;;  %11436 = vmatprep.subr.mxu1 %v16822_v7 }
0x212b   :  { %8070 = vmatpush1.msra.mxu0 %v17021_v10  ;;  %8103 = vmatprep.mubr.f32.mxu0 %v16822_v7 }
0x212c   :  { %11437 = vmatpush3.msra.mxu1 %v17022_v33  ;;  %11438 = vmatprep.mubr.msk.f32.mxu1 %vm12483_vm0, %v16822_v7  ;;  %v8031_v33 = vrot.slane %v16071_v44, 7  ;;  %v16160_v44 = vld [vmem:[#allocation12 + $0x5e0] sm:$0xff] }
0x212d   :  { %8216 = vmatprep.subr.mxu0 %v17023_v35  ;;  %11441 = vmatprep.subr.mxu1 %v16822_v7 }
0x21cc   :  { %v7928_v26 = vpop.f32.mrf.mxu0  ;;  %v7999_v14 = vpop.f32.mrf.mxu1 }
0x21cd   :  { %v7929_v57 = vadd.f32 %v7928_v26, %v17024_v9  ;;  %v8000_v24 = vadd.f32 %v7999_v14, %v15984_v40 }
0x21ce   :  { %v7930_v48 = vpop.f32.mrf.mxu0  ;;  %v11405_v0 = vpop.f32.mrf.mxu1 }
0x21cf   :  { %v8004_v22 = vrot.slane %v7929_v57, 6  ;;  %v7931_v41 = vadd.f32 %v7930_v48, %v15975_v59  ;;  %v8024_v18 = vrot.slane %v8000_v24, 6  ;;  %v16220_v24 = vld [vmem:[#allocation12 + $0x4f0] sm:$0xff] }
0x21d1   :  { %v8006_v39 = vadd.f32 %v8004_v22, %v15971_v5  ;;  %v8014_v54 = vrot.slane %v7931_v41, 6  ;;  %v16154_v22 = vld [vmem:[#allocation12 + $0x5f8] sm:$0xff]  ;;  %v16166_v41 = vld [vmem:[#allocation12 + $0x5c8] sm:$0xff] }
0x21d3   :  { %v9261_v42 = vmul.f32 -1.442695, %v8006_v39  ;;  %v8016_v51 = vadd.f32 %v8014_v54, %v15980_v12  ;;  %v16172_v39 = vld [vmem:[#allocation12 + $0x5b0] sm:$0xff]  ;;  %v16184_v54 = vld [vmem:[#allocation12 + $0x580] sm:$0xff] }
0x21d5   :  { %11961 = vpow2.f32 %v9261_v42  ;;  %v9262_v19 = vmul.f32 -1.442695, %v8016_v51  ;;  %v16178_v42 = vld [vmem:[#allocation12 + $0x598] sm:$0xff]  ;;  %v16190_v51 = vld [vmem:[#allocation12 + $0x568] sm:$0xff] }
0x21d7   :  { %11963 = vpow2.f32 %v9262_v19  ;;  %v16196_v19 = vld [vmem:[#allocation12 + $0x550] sm:$0xff] }
0x21e2   :  { %v11962_v58 = vpop.eup %11961 }
0x21e3   :  { %v8010_v46 = vadd.f32 1.0, %v11962_v58  ;;  %v16202_v58 = vld [vmem:[#allocation12 + $0x538] sm:$0xff] }
0x21e4   :  { %v11964_v4 = vpop.eup %11963 }
0x21e5   :  { %11965 = vrcp.f32 %v8010_v46  ;;  %v8020_v63 = vadd.f32 1.0, %v11964_v4  ;;  %v16208_v46 = vld [vmem:[#allocation12 + $0x520] sm:$0xff]  ;;  %v16214_v4 = vld [vmem:[#allocation12 + $0x508] sm:$0xff] }
0x21e7   :  { %11967 = vrcp.f32 %v8020_v63  ;;  %v16226_v63 = vld [vmem:[#allocation12 + $0x4d8] sm:$0xff] }
0x21f2   :  { %v11966_v15 = vpop.eup %11965 }
0x21f3   :  { %v8026_v25 = vmul.f32 %v11966_v15, %v8024_v18  ;;  %v16232_v18 = vld [vmem:[#allocation12 + $0x4c0] sm:$0xff]  ;;  %v16238_v15 = vld [vmem:[#allocation12 + $0x4a8] sm:$0xff] }
0x21f4   :  { %v11968_v6 = vpop.eup %11967  ;;  %17025 = vst [vmem:[#allocation39_spill] sm:$0xff] %v16232_v18  ;;  %17026 = vst [vmem:[#allocation32_spill] sm:$0xff] %v16238_v15 }
0x21f5   :  { %v8027_v30 = vadd.f32 %v8026_v25, %v15989_v62  ;;  %v8029_v32 = vsub.f32 1.0, %v11968_v6  ;;  %v8033_v48 = vmul.f32 %v11968_v6, %v8031_v33  ;;  %v16245_v25 = vld [vmem:[#allocation12 + $0x490] sm:$0xff] }
0x21f6   :  { %17027 = vst [vmem:[#allocation52_spill] sm:$0xff] %v16245_v25 }
0x21f7   :  { %11969 = vtanh.f32 %v8027_v30 }
0x2204   :  { %v11970_v26 = vpop.eup %11969 }
0x2205   :  { %v8030_v57 = vmul.f32 %v11970_v26, %v8029_v32 }
0x2207   :  { %v16149_v0 = vadd.f32 %v8033_v48, %v8030_v57 }
0x2209   :  { %8035 = vst [vmem:[#allocation5] sm:$0x4] %v16149_v0  ;;  %v8037_v14 = vrot.slane %v16149_v0, 2 }
0x220b   :  { %8104 = vmatmul.mubr.f32.vlgmr.msra.gmra.mxu0 %v8037_v14  ;;  %11439 = vmatmul.mubr.f32.vlgmr.msra.gmra.mxu1 %v8037_v14 }
0x220c   :  { %8217 = vmatpush1.msra.mxu0 %v15836_v56  ;;  %11442 = vmatpush3.msra.mxu1 %v16154_v22 }
0x220d   :  { %8218 = vmatprep.subr.mxu0 %v15838_v2  ;;  %11443 = vmatprep.subr.mxu1 %v16822_v7 }
0x220e   :  { %8219 = vmatpush1.msra.mxu0 %v15842_v43  ;;  %11444 = vmatpush3.msra.mxu1 %v16160_v44 }
0x220f   :  { %8220 = vmatprep.subr.mxu0 %v15845_v52  ;;  %11445 = vmatprep.subr.mxu1 %v16822_v7 }
0x2210   :  { %8221 = vmatpush1.msra.mxu0 %v15849_v60  ;;  %11446 = vmatpush3.msra.mxu1 %v16166_v41 }
0x2211   :  { %8222 = vmatprep.subr.mxu0 %v15852_v1  ;;  %11447 = vmatprep.subr.mxu1 %v16822_v7 }
0x2212   :  { %8223 = vmatpush1.msra.mxu0 %v15855_v49  ;;  %11448 = vmatpush3.msra.mxu1 %v16172_v39 }
0x2213   :  { %8224 = vmatprep.subr.mxu0 %v15858_v38  ;;  %11449 = vmatprep.subr.mxu1 %v16822_v7 }
0x2214   :  { %8225 = vmatpush1.msra.mxu0 %v15861_v31  ;;  %11450 = vmatpush3.msra.mxu1 %v16178_v42 }
0x2215   :  { %8226 = vmatprep.subr.mxu0 %v15864_v21  ;;  %11451 = vmatprep.subr.mxu1 %v16822_v7 }
0x2216   :  { %8227 = vmatpush1.msra.mxu0 %v15867_v34  ;;  %11452 = vmatpush3.msra.mxu1 %v16184_v54 }
0x2217   :  { %8228 = vmatprep.subr.mxu0 %v15870_v16  ;;  %11453 = vmatprep.subr.mxu1 %v16822_v7 }
0x2218   :  { %8229 = vmatpush1.msra.mxu0 %v15873_v28  ;;  %11454 = vmatpush3.msra.mxu1 %v16190_v51 }
0x2219   :  { %8230 = vmatprep.subr.mxu0 %v15876_v20  ;;  %11455 = vmatprep.subr.mxu1 %v16822_v7 }
0x221a   :  { %8231 = vmatpush1.msra.mxu0 %v15879_v47  ;;  %11456 = vmatpush3.msra.mxu1 %v16196_v19 }
0x221b   :  { %8232 = vmatprep.subr.mxu0 %v15882_v50  ;;  %11457 = vmatprep.subr.mxu1 %v16822_v7 }
0x221c   :  { %8233 = vmatpush1.msra.mxu0 %v15885_v29  ;;  %11458 = vmatpush3.msra.mxu1 %v16202_v58 }
0x221d   :  { %8234 = vmatprep.subr.mxu0 %v15888_v13  ;;  %11459 = vmatprep.subr.mxu1 %v16822_v7 }
0x221e   :  { %8235 = vmatpush1.msra.mxu0 %v15891_v11  ;;  %11460 = vmatpush3.msra.mxu1 %v16208_v46 }
0x221f   :  { %8236 = vmatprep.subr.mxu0 %v15894_v55  ;;  %11461 = vmatprep.subr.mxu1 %v16822_v7 }
0x2220   :  { %8237 = vmatpush1.msra.mxu0 %v15897_v53  ;;  %11462 = vmatpush3.msra.mxu1 %v16214_v4 }
0x2221   :  { %8238 = vmatprep.subr.mxu0 %v15900_v36  ;;  %11463 = vmatprep.subr.mxu1 %v16822_v7 }
0x2222   :  { %8239 = vmatpush1.msra.mxu0 %v15903_v8  ;;  %11464 = vmatpush3.msra.mxu1 %v16220_v24 }
0x2223   :  { %8240 = vmatprep.subr.mxu0 %v15906_v45  ;;  %11465 = vmatprep.subr.mxu1 %v16822_v7 }
0x2224   :  { %8241 = vmatpush1.msra.mxu0 %v15909_v27  ;;  %11466 = vmatpush3.msra.mxu1 %v16226_v63 }
0x2225   :  { %8242 = vmatprep.subr.mxu0 %v15912_v3  ;;  %11467 = vmatprep.subr.mxu1 %v16822_v7 }
0x2226   :  { %8243 = vmatpush1.msra.mxu0 %v17006_v17  ;;  %11468 = vmatpush3.msra.mxu1 %v16232_v18 }
0x2227   :  { %8244 = vmatprep.subr.mxu0 %v17017_v23  ;;  %11469 = vmatprep.subr.mxu1 %v16822_v7 }
0x2228   :  { %8245 = vmatpush1.msra.mxu0 %v17018_v61  ;;  %11470 = vmatpush3.msra.mxu1 %v16238_v15 }
0x2229   :  { %8246 = vmatprep.subr.mxu0 %v17020_v37  ;;  %11471 = vmatprep.subr.mxu1 %v16822_v7 }
0x222a   :  { %8247 = vmatpush1.msra.mxu0 %v17021_v10  ;;  %8280 = vmatprep.mubr.f32.mxu0 %v16822_v7 }
0x222b   :  { %11472 = vmatpush3.msra.mxu1 %v16245_v25  ;;  %11473 = vmatprep.mubr.msk.f32.mxu1 %vm12483_vm0, %v16822_v7 }
0x222c   :  { %8393 = vmatprep.subr.mxu0 %v17023_v35  ;;  %11476 = vmatprep.subr.mxu1 %v16822_v7 }
0x22cb   :  { %v8105_v30 = vpop.f32.mrf.mxu0  ;;  %v8176_v6 = vpop.f32.mrf.mxu1 }
0x22cc   :  { %v8106_v32 = vadd.f32 %v8105_v30, %v17024_v9  ;;  %v8177_v30 = vadd.f32 %v8176_v6, %v15984_v40 }
0x22cd   :  { %v8107_v33 = vpop.f32.mrf.mxu0  ;;  %v11440_v26 = vpop.f32.mrf.mxu1 }
0x22ce   :  { %v8181_v57 = vrot.slane %v8106_v32, 5  ;;  %v8108_v48 = vadd.f32 %v8107_v33, %v15975_v59  ;;  %v8201_v26 = vrot.slane %v8177_v30, 5 }
0x22d0   :  { %v8183_v14 = vadd.f32 %v8181_v57, %v15971_v5  ;;  %v8191_v25 = vrot.slane %v8108_v48, 5 }
0x22d2   :  { %v9263_v10 = vmul.f32 -1.442695, %v8183_v14  ;;  %v8193_v37 = vadd.f32 %v8191_v25, %v15980_v12  ;;  %v8208_v25 = vrot.slane %v16149_v0, 7 }
0x22d4   :  { %11971 = vpow2.f32 %v9263_v10  ;;  %v9264_v15 = vmul.f32 -1.442695, %v8193_v37 }
0x22d6   :  { %11973 = vpow2.f32 %v9264_v15 }
0x22e1   :  { %v11972_v35 = vpop.eup %11971 }
0x22e2   :  { %v8187_v61 = vadd.f32 1.0, %v11972_v35 }
0x22e3   :  { %v11974_v23 = vpop.eup %11973 }
0x22e4   :  { %11975 = vrcp.f32 %v8187_v61  ;;  %v8197_v9 = vadd.f32 1.0, %v11974_v23 }
0x22e6   :  { %11977 = vrcp.f32 %v8197_v9 }
0x22f1   :  { %v11976_v32 = vpop.eup %11975 }
0x22f2   :  { %v8203_v18 = vmul.f32 %v11976_v32, %v8201_v26 }
0x22f3   :  { %v11978_v57 = vpop.eup %11977 }
0x22f4   :  { %v8204_v33 = vadd.f32 %v8203_v18, %v15989_v62  ;;  %v8206_v10 = vsub.f32 1.0, %v11978_v57  ;;  %v8210_v48 = vmul.f32 %v11978_v57, %v8208_v25  ;;  %v16347_v25 = vld [vmem:[#allocation12 + $0x5d8] sm:$0xff] }
0x22f6   :  { %11979 = vtanh.f32 %v8204_v33 }
0x2303   :  { %v11980_v37 = vpop.eup %11979 }
0x2304   :  { %v8207_v15 = vmul.f32 %v11980_v37, %v8206_v10  ;;  %v16343_v10 = vld [vmem:[#allocation12 + $0x5e8] sm:$0xff]  ;;  %v16351_v37 = vld [vmem:[#allocation12 + $0x5d0] sm:$0xff] }
0x2306   :  { %v16259_v14 = vadd.f32 %v8210_v48, %v8207_v15  ;;  %v16355_v15 = vld [vmem:[#allocation12 + $0x5c0] sm:$0xff]  ;;  %v16359_v48 = vld [vmem:[#allocation12 + $0x5b8] sm:$0xff] }
0x2308   :  { %8212 = vst [vmem:[#allocation5] sm:$0x8] %v16259_v14  ;;  %v8214_v23 = vrot.slane %v16259_v14, 3  ;;  %v8385_v35 = vrot.slane %v16259_v14, 7  ;;  %v16363_v14 = vld [vmem:[#allocation12 + $0x5a8] sm:$0xff] }
0x230a   :  { %8281 = vmatmul.mubr.f32.vlgmr.msra.gmra.mxu0 %v8214_v23  ;;  %11474 = vmatmul.mubr.f32.vlgmr.msra.gmra.mxu1 %v8214_v23  ;;  %v16367_v23 = vld [vmem:[#allocation12 + $0x5a0] sm:$0xff] }
0x230b   :  { %8394 = vmatpush1.msra.mxu0 %v15836_v56  ;;  %11477 = vmatpush3.msra.mxu1 %v16154_v22  ;;  %v17028_v56 = vld [vmem:[#allocation39_spill] sm:$0xff] }
0x230c   :  { %8395 = vmatprep.subr.mxu0 %v15838_v2  ;;  %11478 = vmatprep.subr.mxu1 %v16822_v7  ;;  %v17029_v2 = vld [vmem:[#allocation46_spill] sm:$0xff] }
0x230d   :  { %8396 = vmatpush1.msra.mxu0 %v15842_v43  ;;  %11479 = vmatpush3.msra.mxu1 %v16160_v44  ;;  %v17030_v43 = vld [vmem:[#allocation36_spill] sm:$0xff] }
0x230e   :  { %8397 = vmatprep.subr.mxu0 %v15845_v52  ;;  %11480 = vmatprep.subr.mxu1 %v16822_v7  ;;  %v17031_v52 = vld [vmem:[#allocation32_spill] sm:$0xff] }
0x230f   :  { %8398 = vmatpush1.msra.mxu0 %v15849_v60  ;;  %11481 = vmatpush3.msra.mxu1 %v16166_v41  ;;  %v17032_v60 = vld [vmem:[#allocation44_spill] sm:$0xff] }
0x2310   :  { %8399 = vmatprep.subr.mxu0 %v15852_v1  ;;  %11482 = vmatprep.subr.mxu1 %v16822_v7  ;;  %v17033_v1 = vld [vmem:[#allocation47_spill] sm:$0xff] }
0x2311   :  { %8400 = vmatpush1.msra.mxu0 %v15855_v49  ;;  %11483 = vmatpush3.msra.mxu1 %v16172_v39  ;;  %v17034_v49 = vld [vmem:[#allocation52_spill] sm:$0xff] }
0x2312   :  { %8401 = vmatprep.subr.mxu0 %v15858_v38  ;;  %11484 = vmatprep.subr.mxu1 %v16822_v7  ;;  %v16328_v38 = vld [vmem:[#allocation12 + $0x5f0] sm:$0xff] }
0x2313   :  { %8402 = vmatpush1.msra.mxu0 %v15861_v31  ;;  %11485 = vmatpush3.msra.mxu1 %v16178_v42 }
0x2314   :  { %8403 = vmatprep.subr.mxu0 %v15864_v21  ;;  %11486 = vmatprep.subr.mxu1 %v16822_v7 }
0x2315   :  { %8404 = vmatpush1.msra.mxu0 %v15867_v34  ;;  %11487 = vmatpush3.msra.mxu1 %v16184_v54  ;;  %v17035_v34 = vld [vmem:[#allocation33_spill] sm:$0xff] }
0x2316   :  { %8405 = vmatprep.subr.mxu0 %v15870_v16  ;;  %11488 = vmatprep.subr.mxu1 %v16822_v7 }
0x2317   :  { %8406 = vmatpush1.msra.mxu0 %v15873_v28  ;;  %11489 = vmatpush3.msra.mxu1 %v16190_v51 }
0x2318   :  { %8407 = vmatprep.subr.mxu0 %v15876_v20  ;;  %11490 = vmatprep.subr.mxu1 %v16822_v7 }
0x2319   :  { %8408 = vmatpush1.msra.mxu0 %v15879_v47  ;;  %11491 = vmatpush3.msra.mxu1 %v16196_v19 }
0x231a   :  { %8409 = vmatprep.subr.mxu0 %v15882_v50  ;;  %11492 = vmatprep.subr.mxu1 %v16822_v7 }
0x231b   :  { %8410 = vmatpush1.msra.mxu0 %v15885_v29  ;;  %11493 = vmatpush3.msra.mxu1 %v16202_v58 }
0x231c   :  { %8411 = vmatprep.subr.mxu0 %v15888_v13  ;;  %11494 = vmatprep.subr.mxu1 %v16822_v7 }
0x231d   :  { %8412 = vmatpush1.msra.mxu0 %v15891_v11  ;;  %11495 = vmatpush3.msra.mxu1 %v16208_v46 }
0x231e   :  { %8413 = vmatprep.subr.mxu0 %v15894_v55  ;;  %11496 = vmatprep.subr.mxu1 %v16822_v7 }
0x231f   :  { %8414 = vmatpush1.msra.mxu0 %v15897_v53  ;;  %11497 = vmatpush3.msra.mxu1 %v16214_v4 }
0x2320   :  { %8415 = vmatprep.subr.mxu0 %v15900_v36  ;;  %11498 = vmatprep.subr.mxu1 %v16822_v7 }
0x2321   :  { %8416 = vmatpush1.msra.mxu0 %v15903_v8  ;;  %11499 = vmatpush3.msra.mxu1 %v16220_v24 }
0x2322   :  { %8417 = vmatprep.subr.mxu0 %v15906_v45  ;;  %11500 = vmatprep.subr.mxu1 %v16822_v7 }
0x2323   :  { %8418 = vmatpush1.msra.mxu0 %v15909_v27  ;;  %11501 = vmatpush3.msra.mxu1 %v16226_v63 }
0x2324   :  { %8419 = vmatprep.subr.mxu0 %v15912_v3  ;;  %11502 = vmatprep.subr.mxu1 %v16822_v7 }
0x2325   :  { %8420 = vmatpush1.msra.mxu0 %v17006_v17  ;;  %11503 = vmatpush3.msra.mxu1 %v17028_v56 }
0x2326   :  { %8421 = vmatprep.subr.mxu0 %v17029_v2  ;;  %11504 = vmatprep.subr.mxu1 %v16822_v7  ;;  %v16371_v2 = vld [vmem:[#allocation12 + $0x590] sm:$0xff] }
0x2327   :  { %8422 = vmatpush1.msra.mxu0 %v17030_v43  ;;  %11505 = vmatpush3.msra.mxu1 %v17031_v52  ;;  %v16375_v43 = vld [vmem:[#allocation12 + $0x588] sm:$0xff] }
0x2328   :  { %8423 = vmatprep.subr.mxu0 %v17032_v60  ;;  %11506 = vmatprep.subr.mxu1 %v16822_v7  ;;  %v16379_v60 = vld [vmem:[#allocation12 + $0x578] sm:$0xff] }
0x2329   :  { %8424 = vmatpush1.msra.mxu0 %v17033_v1  ;;  %8457 = vmatprep.mubr.f32.mxu0 %v16822_v7  ;;  %v16383_v1 = vld [vmem:[#allocation12 + $0x570] sm:$0xff] }
0x232a   :  { %11507 = vmatpush3.msra.mxu1 %v17034_v49  ;;  %11508 = vmatprep.mubr.msk.f32.mxu1 %vm12483_vm0, %v16822_v7 }
0x232b   :  { %8570 = vmatprep.subr.mxu0 %v16328_v38  ;;  %11511 = vmatprep.subr.mxu1 %v16822_v7 }
0x23ca   :  { %v8282_v31 = vpop.f32.mrf.mxu0  ;;  %v8353_v21 = vpop.f32.mrf.mxu1 }
0x23cb   :  { %v8283_v16 = vadd.f32 %v8282_v31, %v17035_v34  ;;  %v8354_v27 = vadd.f32 %v8353_v21, %v15984_v40  ;;  %v16387_v31 = vld [vmem:[#allocation12 + $0x560] sm:$0xff]  ;;  %v16391_v21 = vld [vmem:[#allocation12 + $0x558] sm:$0xff] }
0x23cc   :  { %v8284_v28 = vpop.f32.mrf.mxu0  ;;  %v11475_v20 = vpop.f32.mrf.mxu1 }
0x23cd   :  { %v8358_v47 = vrot.slane %v8283_v16, 4  ;;  %v8285_v50 = vadd.f32 %v8284_v28, %v15975_v59  ;;  %v8378_v17 = vrot.slane %v8354_v27, 4  ;;  %v16395_v16 = vld [vmem:[#allocation12 + $0x548] sm:$0xff]  ;;  %v16399_v28 = vld [vmem:[#allocation12 + $0x540] sm:$0xff]  ;;  %v16403_v20 = vld [vmem:[#allocation12 + $0x530] sm:$0xff] }
0x23ce   :  { %v16447_v27 = vld [vmem:[#allocation12 + $0x4b0] sm:$0xff] }
0x23cf   :  { %v8360_v29 = vadd.f32 %v8358_v47, %v15971_v5  ;;  %v8368_v11 = vrot.slane %v8285_v50, 4  ;;  %v16407_v47 = vld [vmem:[#allocation12 + $0x528] sm:$0xff]  ;;  %v16411_v50 = vld [vmem:[#allocation12 + $0x518] sm:$0xff] }
0x23d1   :  { %v9265_v13 = vmul.f32 -1.442695, %v8360_v29  ;;  %v8370_v55 = vadd.f32 %v8368_v11, %v15980_v12  ;;  %v16415_v29 = vld [vmem:[#allocation12 + $0x510] sm:$0xff]  ;;  %v16423_v11 = vld [vmem:[#allocation12 + $0x4f8] sm:$0xff] }
0x23d3   :  { %11981 = vpow2.f32 %v9265_v13  ;;  %v9266_v53 = vmul.f32 -1.442695, %v8370_v55  ;;  %v16419_v13 = vld [vmem:[#allocation12 + $0x500] sm:$0xff]  ;;  %v16427_v55 = vld [vmem:[#allocation12 + $0x4e8] sm:$0xff] }
0x23d5   :  { %11983 = vpow2.f32 %v9266_v53  ;;  %v16431_v53 = vld [vmem:[#allocation12 + $0x4e0] sm:$0xff] }
0x23e0   :  { %v11982_v36 = vpop.eup %11981 }
0x23e1   :  { %v8364_v8 = vadd.f32 1.0, %v11982_v36  ;;  %v16435_v36 = vld [vmem:[#allocation12 + $0x4d0] sm:$0xff] }
0x23e2   :  { %v11984_v45 = vpop.eup %11983 }
0x23e3   :  { %11985 = vrcp.f32 %v8364_v8  ;;  %v8374_v3 = vadd.f32 1.0, %v11984_v45  ;;  %v16439_v8 = vld [vmem:[#allocation12 + $0x4c8] sm:$0xff]  ;;  %v16443_v45 = vld [vmem:[#allocation12 + $0x4b8] sm:$0xff] }
0x23e5   :  { %11987 = vrcp.f32 %v8374_v3  ;;  %v16451_v3 = vld [vmem:[#allocation12 + $0x4a0] sm:$0xff] }
0x23e6   :  { %17036 = vst [vmem:[#allocation49_spill] sm:$0xff] %v16451_v3 }
0x23f0   :  { %v11986_v61 = vpop.eup %11985 }
0x23f1   :  { %v8380_v9 = vmul.f32 %v11986_v61, %v8378_v17  ;;  %v16455_v17 = vld [vmem:[#allocation12 + $0x498] sm:$0xff]  ;;  %v16459_v61 = vld [vmem:[#allocation12 + $0x488] sm:$0xff] }
0x23f2   :  { %v11988_v18 = vpop.eup %11987  ;;  %17037 = vst [vmem:[#allocation43_spill] sm:$0xff] %v16455_v17  ;;  %17038 = vst [vmem:[#allocation41_spill] sm:$0xff] %v16459_v61 }
0x23f3   :  { %v8381_v0 = vadd.f32 %v8380_v9, %v15989_v62  ;;  %v8383_v6 = vsub.f32 1.0, %v11988_v18  ;;  %v8387_v32 = vmul.f32 %v11988_v18, %v8385_v35  ;;  %v16463_v9 = vld [vmem:[#allocation12 + $0x480] sm:$0xff] }
0x23f4   :  { %17039 = vst [vmem:[#allocation42_spill] sm:$0xff] %v16463_v9 }
0x23f5   :  { %11989 = vtanh.f32 %v8381_v0 }
0x2402   :  { %v11990_v30 = vpop.eup %11989 }
0x2403   :  { %v8384_v26 = vmul.f32 %v11990_v30, %v8383_v6 }
0x2405   :  { %v16339_v33 = vadd.f32 %v8387_v32, %v8384_v26 }
0x2407   :  { %8389 = vst [vmem:[#allocation5] sm:$0x10] %v16339_v33  ;;  %v8391_v57 = vrot.slane %v16339_v33, 4 }
0x2409   :  { %8458 = vmatmul.mubr.f32.vlgmr.msra.gmra.mxu0 %v8391_v57  ;;  %11509 = vmatmul.mubr.f32.vlgmr.msra.gmra.mxu1 %v8391_v57 }
0x240a   :  { %8571 = vmatpush1.msra.mxu0 %v16343_v10  ;;  %11512 = vmatpush3.msra.mxu1 %v16154_v22 }
0x240b   :  { %8572 = vmatprep.subr.mxu0 %v16347_v25  ;;  %11513 = vmatprep.subr.mxu1 %v16822_v7 }
0x240c   :  { %8573 = vmatpush1.msra.mxu0 %v16351_v37  ;;  %11514 = vmatpush3.msra.mxu1 %v16160_v44 }
0x240d   :  { %8574 = vmatprep.subr.mxu0 %v16355_v15  ;;  %11515 = vmatprep.subr.mxu1 %v16822_v7 }
0x240e   :  { %8575 = vmatpush1.msra.mxu0 %v16359_v48  ;;  %11516 = vmatpush3.msra.mxu1 %v16166_v41 }
0x240f   :  { %8576 = vmatprep.subr.mxu0 %v16363_v14  ;;  %11517 = vmatprep.subr.mxu1 %v16822_v7 }
0x2410   :  { %8577 = vmatpush1.msra.mxu0 %v16367_v23  ;;  %11518 = vmatpush3.msra.mxu1 %v16172_v39 }
0x2411   :  { %8578 = vmatprep.subr.mxu0 %v16371_v2  ;;  %11519 = vmatprep.subr.mxu1 %v16822_v7 }
0x2412   :  { %8579 = vmatpush1.msra.mxu0 %v16375_v43  ;;  %11520 = vmatpush3.msra.mxu1 %v16178_v42 }
0x2413   :  { %8580 = vmatprep.subr.mxu0 %v16379_v60  ;;  %11521 = vmatprep.subr.mxu1 %v16822_v7 }
0x2414   :  { %8581 = vmatpush1.msra.mxu0 %v16383_v1  ;;  %11522 = vmatpush3.msra.mxu1 %v16184_v54 }
0x2415   :  { %8582 = vmatprep.subr.mxu0 %v16387_v31  ;;  %11523 = vmatprep.subr.mxu1 %v16822_v7 }
0x2416   :  { %8583 = vmatpush1.msra.mxu0 %v16391_v21  ;;  %11524 = vmatpush3.msra.mxu1 %v16190_v51 }
0x2417   :  { %8584 = vmatprep.subr.mxu0 %v16395_v16  ;;  %11525 = vmatprep.subr.mxu1 %v16822_v7 }
0x2418   :  { %8585 = vmatpush1.msra.mxu0 %v16399_v28  ;;  %11526 = vmatpush3.msra.mxu1 %v16196_v19 }
0x2419   :  { %8586 = vmatprep.subr.mxu0 %v16403_v20  ;;  %11527 = vmatprep.subr.mxu1 %v16822_v7 }
0x241a   :  { %8587 = vmatpush1.msra.mxu0 %v16407_v47  ;;  %11528 = vmatpush3.msra.mxu1 %v16202_v58 }
0x241b   :  { %8588 = vmatprep.subr.mxu0 %v16411_v50  ;;  %11529 = vmatprep.subr.mxu1 %v16822_v7 }
0x241c   :  { %8589 = vmatpush1.msra.mxu0 %v16415_v29  ;;  %11530 = vmatpush3.msra.mxu1 %v16208_v46 }
0x241d   :  { %8590 = vmatprep.subr.mxu0 %v16419_v13  ;;  %11531 = vmatprep.subr.mxu1 %v16822_v7 }
0x241e   :  { %8591 = vmatpush1.msra.mxu0 %v16423_v11  ;;  %11532 = vmatpush3.msra.mxu1 %v16214_v4 }
0x241f   :  { %8592 = vmatprep.subr.mxu0 %v16427_v55  ;;  %11533 = vmatprep.subr.mxu1 %v16822_v7 }
0x2420   :  { %8593 = vmatpush1.msra.mxu0 %v16431_v53  ;;  %11534 = vmatpush3.msra.mxu1 %v16220_v24 }
0x2421   :  { %8594 = vmatprep.subr.mxu0 %v16435_v36  ;;  %11535 = vmatprep.subr.mxu1 %v16822_v7 }
0x2422   :  { %8595 = vmatpush1.msra.mxu0 %v16439_v8  ;;  %11536 = vmatpush3.msra.mxu1 %v16226_v63 }
0x2423   :  { %8596 = vmatprep.subr.mxu0 %v16443_v45  ;;  %11537 = vmatprep.subr.mxu1 %v16822_v7 }
0x2424   :  { %8597 = vmatpush1.msra.mxu0 %v16447_v27  ;;  %11538 = vmatpush3.msra.mxu1 %v17028_v56 }
0x2425   :  { %8598 = vmatprep.subr.mxu0 %v16451_v3  ;;  %11539 = vmatprep.subr.mxu1 %v16822_v7 }
0x2426   :  { %8599 = vmatpush1.msra.mxu0 %v16455_v17  ;;  %11540 = vmatpush3.msra.mxu1 %v17031_v52 }
0x2427   :  { %8600 = vmatprep.subr.mxu0 %v16459_v61  ;;  %11541 = vmatprep.subr.mxu1 %v16822_v7 }
0x2428   :  { %8601 = vmatpush1.msra.mxu0 %v16463_v9  ;;  %8634 = vmatprep.mubr.f32.mxu0 %v16822_v7 }
0x2429   :  { %11542 = vmatpush3.msra.mxu1 %v17034_v49  ;;  %11543 = vmatprep.mubr.msk.f32.mxu1 %vm12483_vm0, %v16822_v7 }
0x242a   :  { %8747 = vmatprep.subr.mxu0 %v16328_v38  ;;  %11546 = vmatprep.subr.mxu1 %v16822_v7 }
0x24c9   :  { %v8459_v0 = vpop.f32.mrf.mxu0  ;;  %v8530_v18 = vpop.f32.mrf.mxu1 }
0x24ca   :  { %v8460_v6 = vadd.f32 %v8459_v0, %v17035_v34  ;;  %v8531_v0 = vadd.f32 %v8530_v18, %v15984_v40 }
0x24cb   :  { %v8461_v35 = vpop.f32.mrf.mxu0  ;;  %v11510_v30 = vpop.f32.mrf.mxu1 }
0x24cc   :  { %v8535_v26 = vrot.slane %v8460_v6, 3  ;;  %v8462_v32 = vadd.f32 %v8461_v35, %v15975_v59  ;;  %v8555_v30 = vrot.slane %v8531_v0, 3 }
0x24ce   :  { %v8537_v57 = vadd.f32 %v8535_v26, %v15971_v5  ;;  %v8545_v49 = vrot.slane %v8462_v32, 3 }
0x24d0   :  { %v9267_v9 = vmul.f32 -1.442695, %v8537_v57  ;;  %v8547_v61 = vadd.f32 %v8545_v49, %v15980_v12  ;;  %v8562_v49 = vrot.slane %v16339_v33, 7 }
0x24d2   :  { %11991 = vpow2.f32 %v9267_v9  ;;  %v9268_v52 = vmul.f32 -1.442695, %v8547_v61 }
0x24d4   :  { %11993 = vpow2.f32 %v9268_v52 }
0x24df   :  { %v11992_v38 = vpop.eup %11991 }
0x24e0   :  { %v8541_v17 = vadd.f32 1.0, %v11992_v38 }
0x24e1   :  { %v11994_v3 = vpop.eup %11993 }
0x24e2   :  { %11995 = vrcp.f32 %v8541_v17  ;;  %v8551_v34 = vadd.f32 1.0, %v11994_v3 }
0x24e4   :  { %11997 = vrcp.f32 %v8551_v34 }
0x24ef   :  { %v11996_v6 = vpop.eup %11995 }
0x24f0   :  { %v8557_v56 = vmul.f32 %v11996_v6, %v8555_v30 }
0x24f1   :  { %v11998_v26 = vpop.eup %11997 }
0x24f2   :  { %v8558_v35 = vadd.f32 %v8557_v56, %v15989_v62  ;;  %v8560_v9 = vsub.f32 1.0, %v11998_v26  ;;  %v8564_v32 = vmul.f32 %v11998_v26, %v8562_v49 }
0x24f4   :  { %11999 = vtanh.f32 %v8558_v35 }
0x2501   :  { %v12000_v61 = vpop.eup %11999 }
0x2502   :  { %v8561_v52 = vmul.f32 %v12000_v61, %v8560_v9 }
0x2504   :  { %v16479_v57 = vadd.f32 %v8564_v32, %v8561_v52 }
0x2506   :  { %8566 = vst [vmem:[#allocation5] sm:$0x20] %v16479_v57  ;;  %v8568_v3 = vrot.slane %v16479_v57, 5 }
0x2508   :  { %8635 = vmatmul.mubr.f32.vlgmr.msra.gmra.mxu0 %v8568_v3  ;;  %11544 = vmatmul.mubr.f32.vlgmr.msra.gmra.mxu1 %v8568_v3 }
0x2509   :  { %8748 = vmatpush1.msra.mxu0 %v16343_v10  ;;  %11547 = vmatpush3.msra.mxu1 %v16154_v22  ;;  %v17040_v22 = vld [vmem:[#allocation39_spill] sm:$0xff] }
0x250a   :  { %8749 = vmatprep.subr.mxu0 %v16347_v25  ;;  %11548 = vmatprep.subr.mxu1 %v16822_v7 }
0x250b   :  { %8750 = vmatpush1.msra.mxu0 %v16351_v37  ;;  %11549 = vmatpush3.msra.mxu1 %v16160_v44  ;;  %v17041_v44 = vld [vmem:[#allocation49_spill] sm:$0xff] }
0x250c   :  { %8751 = vmatprep.subr.mxu0 %v16355_v15  ;;  %11550 = vmatprep.subr.mxu1 %v16822_v7 }
0x250d   :  { %8752 = vmatpush1.msra.mxu0 %v16359_v48  ;;  %11551 = vmatpush3.msra.mxu1 %v16166_v41  ;;  %v17042_v41 = vld [vmem:[#allocation43_spill] sm:$0xff] }
0x250e   :  { %8753 = vmatprep.subr.mxu0 %v16363_v14  ;;  %11552 = vmatprep.subr.mxu1 %v16822_v7 }
0x250f   :  { %8754 = vmatpush1.msra.mxu0 %v16367_v23  ;;  %11553 = vmatpush3.msra.mxu1 %v16172_v39  ;;  %v17043_v39 = vld [vmem:[#allocation32_spill] sm:$0xff] }
0x2510   :  { %8755 = vmatprep.subr.mxu0 %v16371_v2  ;;  %11554 = vmatprep.subr.mxu1 %v16822_v7 }
0x2511   :  { %8756 = vmatpush1.msra.mxu0 %v16375_v43  ;;  %11555 = vmatpush3.msra.mxu1 %v16178_v42  ;;  %v17044_v42 = vld [vmem:[#allocation41_spill] sm:$0xff] }
0x2512   :  { %8757 = vmatprep.subr.mxu0 %v16379_v60  ;;  %11556 = vmatprep.subr.mxu1 %v16822_v7 }
0x2513   :  { %8758 = vmatpush1.msra.mxu0 %v16383_v1  ;;  %11557 = vmatpush3.msra.mxu1 %v16184_v54  ;;  %v17045_v54 = vld [vmem:[#allocation42_spill] sm:$0xff] }
0x2514   :  { %8759 = vmatprep.subr.mxu0 %v16387_v31  ;;  %11558 = vmatprep.subr.mxu1 %v16822_v7 }
0x2515   :  { %8760 = vmatpush1.msra.mxu0 %v16391_v21  ;;  %11559 = vmatpush3.msra.mxu1 %v16190_v51  ;;  %v17046_v51 = vld [vmem:[#allocation52_spill] sm:$0xff] }
0x2516   :  { %8761 = vmatprep.subr.mxu0 %v16395_v16  ;;  %11560 = vmatprep.subr.mxu1 %v16822_v7 }
0x2517   :  { %8762 = vmatpush1.msra.mxu0 %v16399_v28  ;;  %11561 = vmatpush3.msra.mxu1 %v16196_v19 }
0x2518   :  { %8763 = vmatprep.subr.mxu0 %v16403_v20  ;;  %11562 = vmatprep.subr.mxu1 %v16822_v7  ;;  %v8739_v20 = vrot.slane %v16479_v57, 7 }
0x2519   :  { %8764 = vmatpush1.msra.mxu0 %v16407_v47  ;;  %11563 = vmatpush3.msra.mxu1 %v16202_v58 }
0x251a   :  { %8765 = vmatprep.subr.mxu0 %v16411_v50  ;;  %11564 = vmatprep.subr.mxu1 %v16822_v7 }
0x251b   :  { %8766 = vmatpush1.msra.mxu0 %v16415_v29  ;;  %11565 = vmatpush3.msra.mxu1 %v16208_v46  ;;  %v17047_v46 = vld [vmem:[#allocation33_spill] sm:$0xff] }
0x251c   :  { %8767 = vmatprep.subr.mxu0 %v16419_v13  ;;  %11566 = vmatprep.subr.mxu1 %v16822_v7 }
0x251d   :  { %8768 = vmatpush1.msra.mxu0 %v16423_v11  ;;  %11567 = vmatpush3.msra.mxu1 %v16214_v4 }
0x251e   :  { %8769 = vmatprep.subr.mxu0 %v16427_v55  ;;  %11568 = vmatprep.subr.mxu1 %v16822_v7 }
0x251f   :  { %8770 = vmatpush1.msra.mxu0 %v16431_v53  ;;  %11569 = vmatpush3.msra.mxu1 %v16220_v24 }
0x2520   :  { %8771 = vmatprep.subr.mxu0 %v16435_v36  ;;  %11570 = vmatprep.subr.mxu1 %v16822_v7 }
0x2521   :  { %8772 = vmatpush1.msra.mxu0 %v16439_v8  ;;  %11571 = vmatpush3.msra.mxu1 %v16226_v63 }
0x2522   :  { %8773 = vmatprep.subr.mxu0 %v16443_v45  ;;  %11572 = vmatprep.subr.mxu1 %v16822_v7 }
0x2523   :  { %8774 = vmatpush1.msra.mxu0 %v16447_v27  ;;  %11573 = vmatpush3.msra.mxu1 %v17040_v22 }
0x2524   :  { %8775 = vmatprep.subr.mxu0 %v17041_v44  ;;  %11574 = vmatprep.subr.mxu1 %v16822_v7 }
0x2525   :  { %8776 = vmatpush1.msra.mxu0 %v17042_v41  ;;  %11575 = vmatpush3.msra.mxu1 %v17043_v39 }
0x2526   :  { %8777 = vmatprep.subr.mxu0 %v17044_v42  ;;  %11576 = vmatprep.subr.mxu1 %v16822_v7 }
0x2527   :  { %8778 = vmatpush1.msra.mxu0 %v17045_v54  ;;  %8811 = vmatprep.mubr.f32.mxu0 %v16822_v7  ;;  %v9009_v54 = vld [vmem:[#allocation19 + $0x78] sm:$0xff] }
0x2528   :  { %11577 = vmatpush3.msra.mxu1 %v17046_v51  ;;  %11578 = vmatprep.mubr.msk.f32.mxu1 %vm12483_vm0, %v16822_v7  ;;  %v9008_v51 = vld [vmem:[#allocation19 + $0x70] sm:$0xff] }
0x2529   :  { %11581 = vmatprep.subr.mxu0 %v16822_v7 }
0x25c8   :  { %v8636_v19 = vpop.f32.mrf.mxu0  ;;  %v8707_v58 = vpop.f32.mrf.mxu1 }
0x25c9   :  { %v8637_v4 = vadd.f32 %v8636_v19, %v17047_v46  ;;  %v8708_v2 = vadd.f32 %v8707_v58, %v15984_v40  ;;  %v9006_v19 = vld [vmem:[#allocation19 + $0x60] sm:$0xff]  ;;  %v9005_v58 = vld [vmem:[#allocation19 + $0x58] sm:$0xff] }
0x25ca   :  { %v8638_v24 = vpop.f32.mrf.mxu0  ;;  %v11545_v63 = vpop.f32.mrf.mxu1 }
0x25cb   :  { %v8712_v56 = vrot.slane %v8637_v4, 2  ;;  %v8639_v34 = vadd.f32 %v8638_v24, %v15975_v59  ;;  %v8732_v60 = vrot.slane %v8708_v2, 2  ;;  %v9003_v4 = vld [vmem:[#allocation19 + $0x48] sm:$0xff]  ;;  %v9002_v24 = vld [vmem:[#allocation19 + $0x40] sm:$0xff]  ;;  %v9001_v63 = vld [vmem:[#allocation19 + $0x38] sm:$0xff] }
0x25cd   :  { %v8714_v33 = vadd.f32 %v8712_v56, %v15971_v5  ;;  %v8722_v25 = vrot.slane %v8639_v34, 2  ;;  %v9000_v56 = vld [vmem:[#allocation19 + $0x30] sm:$0xff]  ;;  %v8999_v34 = vld [vmem:[#allocation19 + $0x28] sm:$0xff] }
0x25cf   :  { %v9269_v10 = vmul.f32 -1.442695, %v8714_v33  ;;  %v8724_v37 = vadd.f32 %v8722_v25, %v15980_v12  ;;  %v8998_v33 = vld [vmem:[#allocation19 + $0x20] sm:$0xff]  ;;  %v8996_v25 = vld [vmem:[#allocation19 + $0x10] sm:$0xff] }
0x25d1   :  { %12001 = vpow2.f32 %v9269_v10  ;;  %v9270_v15 = vmul.f32 -1.442695, %v8724_v37  ;;  %v8997_v10 = vld [vmem:[#allocation19 + $0x18] sm:$0xff]  ;;  %v8995_v37 = vld [vmem:[#allocation19 + $0x8] sm:$0xff] }
0x25d3   :  { %12003 = vpow2.f32 %v9270_v15  ;;  %v8994_v15 = vld [vmem:[#allocation19] sm:$0xff] }
0x25de   :  { %v12002_v48 = vpop.eup %12001 }
0x25df   :  { %v8718_v14 = vadd.f32 1.0, %v12002_v48  ;;  %v8993_v48 = vld [vmem:[%s17049_s23] sm:$0xff] }
0x25e0   :  { %v12004_v23 = vpop.eup %12003 }
0x25e1   :  { %12005 = vrcp.f32 %v8718_v14  ;;  %v8728_v43 = vadd.f32 1.0, %v12004_v23  ;;  %v12484_v14 = vmov 0   ;;  %v9087_v23 = vsub.f32 1.0, %v8993_v48 }
0x25e2   :  { %11681 = vset.pattern.permute.xlu0 %v12484_v14  ;;  %11682 = vset.pattern.permute.xlu1 %v12484_v14 }
0x25e3   :  { %12007 = vrcp.f32 %v8728_v43  ;;  %v9088_v2 = vmul.f32 -1e+32, %v9087_v23 }
0x25e5   :  { %9091 = vperm.xlu0 %11681, %v9088_v2  }
0x25ee   :  { %v12006_v1 = vpop.eup %12005 }
0x25ef   :  { %v8734_v31 = vmul.f32 %v12006_v1, %v8732_v60  ;;  %v17050_v60 = vld [vmem:[#allocation37_spill] sm:$0xff] }
0x25f0   :  { %v12008_v16 = vpop.eup %12007 }
0x25f1   :  { %v8735_v21 = vadd.f32 %v8734_v31, %v15989_v62  ;;  %v8737_v28 = vsub.f32 1.0, %v12008_v16  ;;  %v8741_v29 = vmul.f32 %v12008_v16, %v8739_v20 }
0x25f3   :  { %12009 = vtanh.f32 %v8735_v21  ;;  %v9274_v21 = vld [vmem:[#allocation21] ss:$0 sm:$0xff] }
0x2600   :  { %v12010_v47 = vpop.eup %12009 }
0x2601   :  { %v8738_v50 = vmul.f32 %v12010_v47, %v8737_v28 }
0x2603   :  { %v8742_v13 = vadd.f32 %v8741_v29, %v8738_v50 }
0x2605   :  { %8743 = vst [vmem:[#allocation5] sm:$0x40] %v8742_v13  ;;  %v8745_v11 = vrot.slane %v8742_v13, 6  ;;  %v8916_v3 = vrot.slane %v8742_v13, 7 }
0x2607   :  { %8812 = vmatmul.mubr.f32.vlgmr.msra.gmra.mxu0 %v8745_v11  ;;  %11579 = vmatmul.mubr.f32.vlgmr.msra.gmra.mxu1 %v8745_v11 }
0x2608   :  { %11583 = vmatprep.mubr.msk.f32.mxu0 %vm12483_vm0, %v16822_v7 }
0x2660   :  { %v9092_v28 = vpop.permute.xlu0 %9091 }
0x26c7   :  { %v8813_v55 = vpop.f32.mrf.mxu0  ;;  %v8884_v53 = vpop.f32.mrf.mxu1 }
0x26c8   :  { %v8814_v36 = vadd.f32 %v8813_v55, %v17047_v46  ;;  %v8885_v49 = vadd.f32 %v8884_v53, %v15984_v40  ;;  %v17048_v40 = vld [vmem:[#allocation38_spill] sm:$0xff]  ;;  %v9004_v46 = vld [vmem:[#allocation19 + $0x50] sm:$0xff]  ;;  %v9108_v53 = vld [vmem:[%s16605_s4] sm:$0xff]  ;;  %s12485_s4 = smov [#allocation22]  }
0x26c9   :  { %v8815_v8 = vpop.f32.mrf.mxu0  ;;  %v11580_v45 = vpop.f32.mrf.mxu1  ;;  %vm9119_vm5 = vcmp.ne.s32.totalorder %v9108_v53, 0  ;;  %s9157_s3 = sshll.u32 %s12485_s4, 4  ;;  %s9158_s3 = int_to_ptr.vmem [resolvable:$true] %s9157_s3 }
0x26ca   :  { %v8889_v27 = vrot.slane %v8814_v36, 1  ;;  %v8816_v17 = vadd.f32 %v8815_v8, %v15975_v59  ;;  %v8909_v52 = vrot.slane %v8885_v49, 1  ;;  %s12413_s13 = scalar_lea.vmem %s9158_s3, 128  ;;  %p12418_p12 = scmp.lt.s32.totalorder %s9158_s3, %s9158_s3 }
0x26cb   :  { %p12414_p11 = scmp.ne.s32.totalorder %s9158_s3, %s12413_s13  ;;  %p12419_p13 = scmp.lt.s32.totalorder %s12413_s13, %s12413_s13 }
0x26cc   :  { %v8891_v18 = vadd.f32 %v8889_v27, %v15971_v5  ;;  %v8899_v0 = vrot.slane %v8816_v17, 1 }
0x26cd   :  { %p12420_p0 = por %p12419_p13, %p12418_p12 }
0x26ce   :  { %v9271_v38 = vmul.f32 -1.442695, %v8891_v18  ;;  %v8901_v30 = vadd.f32 %v8899_v0, %v15980_v12 }
0x26cf   :  { %p12421_p1 = pnand %p12420_p0, %p12414_p11 }
0x26d0   :  { %12011 = vpow2.f32 %v9271_v38  ;;  %v9272_v6 = vmul.f32 -1.442695, %v8901_v30 }
0x26d2   :  { %12013 = vpow2.f32 %v9272_v6  ;;  %v9276_v6 = vsel %vm9119_vm5, 1.0, %v16822_v7 }
0x26dd   :  { %v12012_v35 = vpop.eup %12011 }
0x26de   :  { %v8895_v26 = vadd.f32 1.0, %v12012_v35  ;;  %v9134_v35 = vsel %vm9123_vm6, %v9276_v6, 0.0 }
0x26df   :  { %v12014_v9 = vpop.eup %12013 }
0x26e0   :  { %12015 = vrcp.f32 %v8895_v26  ;;  %v8905_v61 = vadd.f32 1.0, %v12014_v9 }
0x26e2   :  { %12017 = vrcp.f32 %v8905_v61 }
0x26ed   :  { %v12016_v32 = vpop.eup %12015 }
0x26ee   :  { %v8911_v57 = vmul.f32 %v12016_v32, %v8909_v52 }
0x26ef   :  { %v12018_v5 = vpop.eup %12017 }
0x26f0   :  { %v8912_v59 = vadd.f32 %v8911_v57, %v15989_v62  ;;  %v8914_v22 = vsub.f32 1.0, %v12018_v5  ;;  %v8918_v41 = vmul.f32 %v12018_v5, %v8916_v3  ;;  %v9007_v62 = vld [vmem:[#allocation19 + $0x68] sm:$0xff] }
0x26f2   :  { %12019 = vtanh.f32 %v8912_v59 }
0x26ff   :  { %v12020_v12 = vpop.eup %12019 }
0x2700   :  { %v8915_v44 = vmul.f32 %v12020_v12, %v8914_v22 }
0x2702   :  { %v8919_v39 = vadd.f32 %v8918_v41, %v8915_v44 }
0x2704   :  { %8920 = vst [vmem:[#allocation5] sm:$0x80] %v8919_v39 }
0x270b   :  { %v8921_v42 = vld [vmem:[#allocation5] sm:$0xff] }
0x270c   :  { %11582 = vmatpush3.msra.mxu0 %v8921_v42 }
0x270d   :  { %11584 = vmatmul.mubr.msk.f32.vlgmr.msra.gmra.mxu0 %vm476_vm2, %v17048_v40  ;;  %11586 = vmatprep.subr.mxu0 %v16822_v7 }
0x270e   :  { %11587 = vmatpush3.msra.mxu0 %v9009_v54  ;;  %11618 = vmatprep.mubr.msk.f32.mxu0 %vm12483_vm0, %v16822_v7 }
0x270f   :  { %11588 = vmatprep.subr.mxu0 %v16822_v7 }
0x2710   :  { %11589 = vmatpush3.msra.mxu0 %v9008_v51 }
0x2711   :  { %11590 = vmatprep.subr.mxu0 %v16822_v7 }
0x2712   :  { %11591 = vmatpush3.msra.mxu0 %v9007_v62 }
0x2713   :  { %11592 = vmatprep.subr.mxu0 %v16822_v7 }
0x2714   :  { %11593 = vmatpush3.msra.mxu0 %v9006_v19 }
0x2715   :  { %11594 = vmatprep.subr.mxu0 %v16822_v7 }
0x2716   :  { %11595 = vmatpush3.msra.mxu0 %v9005_v58 }
0x2717   :  { %11596 = vmatprep.subr.mxu0 %v16822_v7 }
0x2718   :  { %11597 = vmatpush3.msra.mxu0 %v9004_v46 }
0x2719   :  { %11598 = vmatprep.subr.mxu0 %v16822_v7 }
0x271a   :  { %11599 = vmatpush3.msra.mxu0 %v9003_v4 }
0x271b   :  { %11600 = vmatprep.subr.mxu0 %v16822_v7 }
0x271c   :  { %11601 = vmatpush3.msra.mxu0 %v9002_v24 }
0x271d   :  { %11602 = vmatprep.subr.mxu0 %v16822_v7 }
0x271e   :  { %11603 = vmatpush3.msra.mxu0 %v9001_v63 }
0x271f   :  { %11604 = vmatprep.subr.mxu0 %v16822_v7 }
0x2720   :  { %11605 = vmatpush3.msra.mxu0 %v9000_v56 }
0x2721   :  { %11606 = vmatprep.subr.mxu0 %v16822_v7 }
0x2722   :  { %11607 = vmatpush3.msra.mxu0 %v8999_v34 }
0x2723   :  { %11608 = vmatprep.subr.mxu0 %v16822_v7 }
0x2724   :  { %11609 = vmatpush3.msra.mxu0 %v8998_v33 }
0x2725   :  { %11610 = vmatprep.subr.mxu0 %v16822_v7 }
0x2726   :  { %11611 = vmatpush3.msra.mxu0 %v8997_v10 }
0x2727   :  { %11612 = vmatprep.subr.mxu0 %v16822_v7 }
0x2728   :  { %11613 = vmatpush3.msra.mxu0 %v8996_v25 }
0x2729   :  { %11614 = vmatprep.subr.mxu0 %v16822_v7 }
0x272a   :  { %11615 = vmatpush3.msra.mxu0 %v8995_v37 }
0x272b   :  { %11616 = vmatprep.subr.mxu0 %v16822_v7 }
0x272c   :  { %11617 = vmatpush3.msra.mxu0 %v8994_v15 }
0x27cd   :  { %v8988_v43 = vpop.f32.mrf.mxu0 }
0x27ce   :  { %v8992_v1 = vsel %vm2268_vm3, %v8921_v42, %v8988_v43 }
0x27cf   :  { %11619 = vmatmul.mubr.f32.vlgmr.msra.gmra.mxu0 %v8992_v1  ;;  %v11585_v31 = vpop.f32.mrf.mxu0 }
0x288f   :  { %v9083_v16 = vpop.f32.mrf.mxu0 }
0x2890   :  { %v9084_v20 = vadd.f32 %v9274_v21, %v9083_v16 }
0x2891   :  { %v11620_v47 = vpop.f32.mrf.mxu0 }
0x2892   :  { %v9094_v50 = vadd.f32 %v9092_v28, %v9084_v20 }
0x2894   :  { %9095 = vmax.xlane.f32.xlu1 %v9094_v50 }
0x291d   :  { %v9096_v29 = vpop.xlane.xlu1 %9095 }
0x291e   :  { %v9097_v13 = vsub.f32 %v9094_v50, %v9096_v29 }
0x2920   :  { %v9098_v11 = vmul.f32 1.442695, %v9097_v13 }
0x2922   :  { %12021 = vpow2.f32 %v9098_v11 }
0x292f   :  { %v12022_v55 = vpop.eup %12021 }
0x2930   :  { %9100 = vadd.xlane.f32.xlu1 %v12022_v55 }
0x2941   :  { %9110 = vperm.xlu1 %11682, %v9108_v53  }
0x29b9   :  { %v9101_v36 = vpop.xlane.xlu1 %9100 }
0x29ba   :  { %12023 = vrcp.f32 %v9101_v36 }
0x29bb   :  { %12025 = vlog2.f32 %v9101_v36 }
0x29bd   :  { %v9111_v8 = vpop.permute.xlu1 %9110 }
0x29be   :  { %vm9112_vm4 = vcmp.eq.s32.totalorder %v17050_v60, %v9111_v8 }
0x29bf   :  { %v9275_v38 = vsel %vm9112_vm4, 1.0, %v16822_v7 }
0x29c7   :  { %v12024_v45 = vpop.eup %12023 }
0x29c8   :  { %v12026_v27 = vpop.eup %12025  ;;  %v9103_v17 = vmul.f32 %v12024_v45, %v12022_v55 }
0x29c9   :  { %v9106_v18 = vmul.f32 0.6931472, %v12026_v27 }
0x29ca   :  { %9104 = vst [vmem:[#allocation22] sm:$0xff] %v9103_v17 }
0x29cb   :  { %v9107_v0 = vsub.f32 %v9097_v13, %v9106_v18 }
0x29cd   :  { %v9115_v30 = vmul.f32 %v9275_v38, %v9107_v0 }
0x29cf   :  { %9116 = vadd.xlane.f32.xlu1 %v9115_v30 }
0x29d3   :  { %9135 = vadd.xlane.f32.xlu1 %v9134_v35 }
0x2a58   :  { %v9117_v26 = vpop.xlane.xlu1 %9116 }
0x2a59   :  { %v9118_v9 = vsub.f32 0.0, %v9117_v26 }
0x2a5b   :  { %v9122_v49 = vmul.f32 %v9276_v6, %v9118_v9 }
0x2a5c   :  { %v9136_v52 = vpop.xlane.xlu1 %9135 }
0x2a5d   :  { %v9124_v61 = vsel %vm9123_vm6, %v9122_v49, 0.0  ;;  %v9137_v32 = vrot.slane %v9136_v52, 4 }
0x2a5e   :  { %9125 = vadd.xlane.f32.xlu0 %v9124_v61 }
0x2a5f   :  { %v9138_v57 = vadd.f32 %v9137_v32, %v9136_v52 }
0x2a61   :  { %v9139_v59 = vrot.slane %v9138_v57, 2 }
0x2a63   :  { %v9140_v12 = vadd.f32 %v9139_v59, %v9138_v57 }
0x2ae7   :  { %v9126_v5 = vpop.xlane.xlu0 %9125 }
0x2ae8   :  { %v9127_v3 = vrot.slane %v9126_v5, 4 }
0x2aea   :  { %v9128_v22 = vadd.f32 %v9127_v3, %v9126_v5 }
0x2aec   :  { %v9129_v44 = vrot.slane %v9128_v22, 2 }
0x2aed   :  { %12424 = shalt.err (!%p12421_p1)
}
0x2aee   :  { %9160 = dma.vmem_to_hbm [thread:$0]  %s9158_s3, 128, %s16618_s17, [#allocation9]   ;;  %v9130_v7 = vadd.f32 %v9129_v44, %v9128_v22  ;;  %v9141_v41 = vrot.slane %v9140_v12, 1  ;;  %vm9149_vm7 = vcmask 0  }
0x2aef   :  { %s12486_s2 = smov [#allocation23]  }
0x2af0   :  { %v9131_v39 = vrot.slane %v9130_v7, 1  ;;  %v9142_v54 = vadd.f32 %v9141_v41, %v9140_v12  ;;  %s9167_s15 = sshll.u32 %s12486_s2, 4  ;;  %s9168_s15 = int_to_ptr.vmem [resolvable:$true] %s9167_s15 }
0x2af1   :  { %s12433_s17 = scalar_lea.vmem %s9168_s15, 16  ;;  %s12437_s24 = scalar_lea.vmem %s9168_s15, 32 }
0x2af2   :  { %v9132_v42 = vadd.f32 %v9131_v39, %v9130_v7  ;;  %p12434_p2 = scmp.ne.s32.totalorder %s9168_s15, %s12433_s17  ;;  %p12438_p3 = scmp.lt.s32.totalorder %s9168_s15, %s9168_s15 }
0x2af3   :  { %p12439_p4 = scmp.lt.s32.totalorder %s12437_s24, %s12433_s17 }
0x2af4   :  { %11655 = vpush %v9132_v42 }
0x2af5   :  { %11657 = vpush %v9142_v54  ;;  %p12440_p5 = por %p12439_p4, %p12438_p3 }
0x2af7   :  { %p12441_p6 = pnand %p12440_p5, %p12434_p2 }
0x2b25   :  { %s11656_s8 = spop %11655 }
0x2b26   :  { %s11658_s21 = spop %11657 }
0x2b27   :  { %v9144_v40 = vstv %s11658_s21 }
0x2b28   :  { %12027 = vrcp.f32 %v9144_v40 }
0x2b35   :  { %v12028_v51 = vpop.eup %12027 }
0x2b36   :  { %11659 = vpush %v12028_v51 }
0x2b67   :  { %s11660_s11 = spop %11659 }
0x2b68   :  { %s9147_s27 = smul.f32 %s11660_s11, %s11656_s8 }
0x2b6a   :  { %v9148_v62 = vstv %s9147_s27 }
0x2b6b   :  { %9150 = vst.msk [vmem:[#allocation23] sm:$0x1] %vm9149_vm7, %v9148_v62 }
0x2b6c   :  { %12444 = shalt.err (!%p12441_p6)
}
0x2b6d   :  { %9170 = dma.vmem_to_hbm [thread:$0]  %s9168_s15, 16, %s16619_s18, [#allocation24]  }
0x2b6e   :  { %12463 = dma.done.wait [#allocation9], 128  }
0x2b6f   :  { %12464 = vsyncadd [#allocation9], 4294967168 }
0x2b70   :  { %12465 = dma.done.wait [#allocation24], 16  }
0x2b71   :  { %12466 = vsyncadd [#allocation24], 4294967280 }
0x2b72   :  { %9181 = vsyncpa [#allocation8], 1 }
0x2b73   :  { %9182 = vsyncpa [#allocation11], 1 }
0x2b74   :  { %9183 = vsyncpa [#allocation14], 1 }
0x2b75   :  { %9184 = vsyncpa [#allocation17], 1 }
0x2b76   :  { %9185 = vsyncpa [#allocation20], 1 }
0x2b77   :  { %9186 = vsyncpa [#allocation9], 1 }
0x2b78   :  { %9187 = vsyncpa [#allocation24], 1 }

</bundles_post_ra>
